<compile_context>
chip_gen: v7x
topology: tpu7x:2x2x1
jax: 0.10.0
libtpu: 0.0.40
codegen_flags: <defaults>
</compile_context>

<pallas_src>
import jax
import jax.numpy as jnp
from jax import lax
from jax.experimental import pallas as pl
from jax.experimental.pallas import tpu as pltpu

IMAGE_SIZE = 28  # fc1 input size (32 * 28 * 28) hard-codes the spatial size


# --------------------------------------------------------------------------
# Conv 3x3 (stride 1, pad 1, in_channels=1) fused with ReLU, all channels per
# batch element in one MXU matmul over im2col patches. Grid iterates over the
# batch ("parallel"). Output is lane-dense (B, C_out, H*W); the PyTorch NCHW
# flatten then becomes a free contiguous reshape outside the kernel.
# --------------------------------------------------------------------------
def conv_mxu_kernel(p_ref, w_ref, b_ref, o_ref):
    # p_ref: (1, 16, H*W)  im2col patches (9 taps zero-padded to 16)   VMEM
    # w_ref: (C, 16)       conv weights  (9 taps zero-padded to 16)    VMEM
    # b_ref: (C, 1)        conv bias                                   VMEM
    # o_ref: (1, C, H*W)   relu(conv) output, lane dim = H*W = 784     VMEM
    acc = jnp.dot(w_ref[...], p_ref[0], preferred_element_type=jnp.float32)  # (C, H*W)
    o_ref[0] = jnp.maximum(acc + b_ref[...], 0.0)


def conv3x3_relu_flat(x, w, b):
    """3x3 conv (stride 1, pad 1, in_ch=1) + ReLU. Returns (B, C_out, H*W)."""
    B, _, H, W = x.shape
    C = w.shape[0]
    HW = H * W
    x_pad = jnp.pad(x[:, 0], ((0, 0), (1, 1), (1, 1)))        # (B, H+2, W+2)
    # im2col (layout plumbing done by XLA; ~56 KB per batch element): tap index
    # t = ky*3 + kx, lane dim is the flattened spatial position y*W + x.
    patches = jnp.stack(
        [x_pad[:, ky:ky + H, kx:kx + W].reshape(B, HW)
         for ky in range(3) for kx in range(3)],
        axis=1)                                                # (B, 9, HW)
    patches = jnp.pad(patches, ((0, 0), (0, 7), (0, 0)))       # K: 9 -> 16 (zeroed)
    w16 = jnp.pad(w.reshape(C, 9), ((0, 0), (0, 7)))           # (C, 16), tiny
    b2 = b.reshape(C, 1)
    return pl.pallas_call(
        conv_mxu_kernel,
        out_shape=jax.ShapeDtypeStruct((B, C, HW), jnp.float32),
        grid=(B,),
        in_specs=[
            pl.BlockSpec((1, 16, HW), lambda i: (i, 0, 0)),
            pl.BlockSpec((C, 16), lambda i: (0, 0)),
            pl.BlockSpec((C, 1), lambda i: (0, 0)),
        ],
        out_specs=pl.BlockSpec((1, C, HW), lambda i: (i, 0, 0)),
        compiler_params=pltpu.CompilerParams(
            dimension_semantics=("parallel",)),
    )(patches, w16, b2)


# --------------------------------------------------------------------------
# Fused MLP: y = fc3(relu(fc2(relu(fc1(x)))))
# Grid reduces over fc1's K dimension (2 steps at tk=12544). fc1_w stays in
# PyTorch (N1, K) layout and is streamed; its last dim is contracted in-kernel
# (x @ W.T, native trans_b MXU form -> no weight transpose/relayout). The
# activation x is VMEM-resident and sliced in-kernel. fc2/fc3 + biases + ReLUs
# run in the final-step epilogue entirely in VMEM.
# --------------------------------------------------------------------------
def mlp_fused_kernel(x_ref, w1_ref, b1_ref, w2_ref, b2_ref, w3_ref, b3_ref,
                     o_ref, acc_ref):
    k = pl.program_id(0)
    tk = w1_ref.shape[1]

    @pl.when(k == 0)
    def _():
        acc_ref[...] = jnp.zeros_like(acc_ref)

    # fc1 partial: x slice (B, tk) contracted with w1 tile (N1, tk) on the last
    # dim (x @ w1.T). The streamed weight tile is the native-orientation LHS/RHS
    # of a trans_b matmul, so no vxpose/relayout of the 6 MiB tile is emitted.
    start = pl.multiple_of(k * tk, 128)
    xs = x_ref[:, pl.ds(start, tk)]
    acc_ref[...] += lax.dot_general(
        xs, w1_ref[...],
        dimension_numbers=(((1,), (1,)), ((), ())),
        preferred_element_type=jnp.float32)

    @pl.when(k == pl.num_programs(0) - 1)
    def _():
        h1 = jnp.maximum(acc_ref[...] + b1_ref[...], 0.0)           # (B, 128)
        h2 = lax.dot_general(h1, w2_ref[...],
                             dimension_numbers=(((1,), (1,)), ((), ())),
                             preferred_element_type=jnp.float32)
        h2 = jnp.maximum(h2 + b2_ref[...], 0.0)                      # (B, 64)
        h3 = lax.dot_general(h2, w3_ref[...],
                             dimension_numbers=(((1,), (1,)), ((), ())),
                             preferred_element_type=jnp.float32)
        o_ref[...] = h3 + b3_ref[...]                                # (B, 10)


def mlp_fused(x, w1, b1, w2, b2, w3, b3, *, tk=12544):
    # x: (B, K); w1: (N1, K); w2: (N2, N1); w3: (N3, N2)  -- PyTorch layouts.
    B, K = x.shape
    N1, N2, N3 = w1.shape[0], w2.shape[0], w3.shape[0]
    assert K % tk == 0 and tk % 128 == 0, (K, tk)
    return pl.pallas_call(
        mlp_fused_kernel,
        out_shape=jax.ShapeDtypeStruct((B, N3), jnp.float32),
        grid=(K // tk,),
        in_specs=[
            pl.BlockSpec((B, K), lambda k: (0, 0)),        # activations (VMEM-resident)
            pl.BlockSpec((N1, tk), lambda k: (0, k)),      # fc1_w (streamed, no transpose)
            pl.BlockSpec((1, N1), lambda k: (0, 0)),       # fc1_b (resident)
            pl.BlockSpec((N2, N1), lambda k: (0, 0)),      # fc2_w (resident, 32 KB)
            pl.BlockSpec((1, N2), lambda k: (0, 0)),       # fc2_b
            pl.BlockSpec((N3, N2), lambda k: (0, 0)),      # fc3_w (resident)
            pl.BlockSpec((1, N3), lambda k: (0, 0)),       # fc3_b
        ],
        out_specs=pl.BlockSpec((B, N3), lambda k: (0, 0)),
        scratch_shapes=[pltpu.VMEM((B, N1), jnp.float32)],
        compiler_params=pltpu.CompilerParams(
            dimension_semantics=("arbitrary",),
            # ~12.3 MiB double-buffered fc1_w tiles + <1 MiB residents; set the
            # scoped-VMEM budget explicitly so it is valid on v5e/v6e/v7x.
            vmem_limit_bytes=24 * 1024 * 1024),
    )(x, w1, b1.reshape(1, N1), w2, b2.reshape(1, N2), w3, b3.reshape(1, N3))


# --------------------------------------------------------------------------
# SimpleCNN forward
# --------------------------------------------------------------------------
def simple_cnn_forward(x, params):
    B = x.shape[0]
    h = conv3x3_relu_flat(x, params["conv1_w"], params["conv1_b"])  # (B, 32, 784)
    h = h.reshape(B, -1)   # PyTorch NCHW flatten; contiguous -> free reshape
    return mlp_fused(h,
                     params["fc1_w"], params["fc1_b"],
                     params["fc2_w"], params["fc2_b"],
                     params["fc3_w"], params["fc3_b"],
                     tk=12544)   # 25088 = 2 * 12544; explicit VMEM budget above


def init_params(key):
    ks = jax.random.split(key, 8)
    flat = 32 * IMAGE_SIZE * IMAGE_SIZE
    return {
        "conv1_w": 0.05 * jax.random.normal(ks[0], (32, 1, 3, 3), jnp.float32),
        "conv1_b": 0.05 * jax.random.normal(ks[1], (32,), jnp.float32),
        "fc1_w": 0.01 * jax.random.normal(ks[2], (128, flat), jnp.float32),
        "fc1_b": 0.01 * jax.random.normal(ks[3], (128,), jnp.float32),
        "fc2_w": 0.05 * jax.random.normal(ks[4], (64, 128), jnp.float32),
        "fc2_b": 0.05 * jax.random.normal(ks[5], (64,), jnp.float32),
        "fc3_w": 0.05 * jax.random.normal(ks[6], (10, 64), jnp.float32),
        "fc3_b": 0.05 * jax.random.normal(ks[7], (10,), jnp.float32),
    }


def reference_forward(x, p):
    # Plain-JAX reference of the PyTorch forward (for correctness checking).
    h = jax.lax.conv_general_dilated(
        x, p["conv1_w"], window_strides=(1, 1), padding=((1, 1), (1, 1)),
        dimension_numbers=("NCHW", "OIHW", "NCHW"))
    h = jnp.maximum(h + p["conv1_b"][None, :, None, None], 0.0)
    h = h.reshape(h.shape[0], -1)
    h = jnp.maximum(h @ p["fc1_w"].T + p["fc1_b"], 0.0)
    h = jnp.maximum(h @ p["fc2_w"].T + p["fc2_b"], 0.0)
    return h @ p["fc3_w"].T + p["fc3_b"]


if __name__ == "__main__":
    key = jax.random.PRNGKey(0)
    k_x, k_p = jax.random.split(key)
    batch = 2
    x = jax.random.normal(k_x, (batch, 1, IMAGE_SIZE, IMAGE_SIZE), jnp.float32)
    params = init_params(k_p)

    fwd = jax.jit(simple_cnn_forward)
    out = jax.block_until_ready(fwd(x, params))
    assert out.shape == (batch, 10), out.shape

    ref = jax.block_until_ready(reference_forward(x, params))
    err = float(jnp.max(jnp.abs(out - ref)))
    assert jnp.allclose(out, ref, atol=1e-3, rtol=1e-3), err

    print("KERNEL_OK")
</pallas_src>

<mosaic_0001>
module attributes {stable_mosaic.version = 11 : i64} {
  func.func @conv_mxu_kernel(%arg0: i32, %arg1: memref<1x16x784xf32, #tpu.memory_space<vmem>>, %arg2: memref<32x16xf32, #tpu.memory_space<vmem>>, %arg3: memref<32x1xf32, #tpu.memory_space<vmem>>, %arg4: memref<1x32x784xf32, #tpu.memory_space<vmem>>) attributes {dimension_semantics = [#tpu.dimension_semantics<parallel>], iteration_bounds = array<i64: 2>, scalar_prefetch = 0 : i64, scratch_operands = 0 : i64, tpu.core_type = #tpu.core_type<tc>, window_params = [{transform_indices = @transform_0, window_bounds = array<i64: 1, 16, 784>}, {pipeline_mode = #tpu.pipeline_mode<synchronous>, transform_indices = @transform_1, window_bounds = array<i64: 32, 16>}, {pipeline_mode = #tpu.pipeline_mode<synchronous>, transform_indices = @transform_2, window_bounds = array<i64: 32, 1>}, {transform_indices = @transform_3, window_bounds = array<i64: 1, 32, 784>}]} {
    %c0 = arith.constant 0 : index
    %c0_0 = arith.constant 0 : index
    %0 = vector.load %arg2[%c0, %c0_0] : memref<32x16xf32, #tpu.memory_space<vmem>>, vector<32x16xf32>
    %c0_1 = arith.constant 0 : index
    %c0_2 = arith.constant 0 : index
    %c0_3 = arith.constant 0 : index
    %1 = vector.load %arg1[%c0_1, %c0_2, %c0_3] : memref<1x16x784xf32, #tpu.memory_space<vmem>>, vector<1x16x784xf32>
    %2 = vector.shape_cast %1 : vector<1x16x784xf32> to vector<16x784xf32>
    %cst = arith.constant dense<0.000000e+00> : vector<32x784xf32>
    %3 = tpu.matmul %0, %2, %cst {dimension_numbers = #tpu.dot_dimension_numbers<[1], [0], [0], [1], [0, 0, 1, 1], [], []>} : vector<32x16xf32>, vector<16x784xf32>, vector<32x784xf32> -> vector<32x784xf32>
    %c0_4 = arith.constant 0 : index
    %c0_5 = arith.constant 0 : index
    %4 = vector.load %arg3[%c0_4, %c0_5] : memref<32x1xf32, #tpu.memory_space<vmem>>, vector<32x1xf32>
    %5 = vector.broadcast %4 : vector<32x1xf32> to vector<32x784xf32>
    %6 = arith.addf %3, %5 : vector<32x784xf32>
    %cst_6 = arith.constant 0.000000e+00 : f32
    %7 = vector.broadcast %cst_6 : f32 to vector<32x784xf32>
    %8 = arith.maximumf %6, %7 : vector<32x784xf32>
    %c0_7 = arith.constant 0 : index
    %c0_8 = arith.constant 0 : index
    %c0_9 = arith.constant 0 : index
    %9 = vector.load %arg4[%c0_7, %c0_8, %c0_9] : memref<1x32x784xf32, #tpu.memory_space<vmem>>, vector<1x32x784xf32>
    %10 = vector.shape_cast %9 : vector<1x32x784xf32> to vector<32x784xf32>
    %11 = vector.shape_cast %8 : vector<32x784xf32> to vector<1x32x784xf32>
    tpu.vector_store %arg4[%c0_7, %c0_8, %c0_9], %11 {strides = array<i32>} : memref<1x32x784xf32, #tpu.memory_space<vmem>>, vector<1x32x784xf32>,
    return
  }
  func.func @transform_0(%arg0: i32) -> (i32, i32, i32) {
    %c0_i32 = arith.constant 0 : i32
    %c0_i32_0 = arith.constant 0 : i32
    %c0_i32_1 = arith.constant 0 : i32
    return %arg0, %c0_i32, %c0_i32_0 : i32, i32, i32
  }
  func.func @transform_1(%arg0: i32) -> (i32, i32) {
    %c0_i32 = arith.constant 0 : i32
    %c0_i32_0 = arith.constant 0 : i32
    %c0_i32_1 = arith.constant 0 : i32
    return %c0_i32, %c0_i32_0 : i32, i32
  }
  func.func @transform_2(%arg0: i32) -> (i32, i32) {
    %c0_i32 = arith.constant 0 : i32
    %c0_i32_0 = arith.constant 0 : i32
    %c0_i32_1 = arith.constant 0 : i32
    return %c0_i32, %c0_i32_0 : i32, i32
  }
  func.func @transform_3(%arg0: i32) -> (i32, i32, i32) {
    %c0_i32 = arith.constant 0 : i32
    %c0_i32_0 = arith.constant 0 : i32
    %c0_i32_1 = arith.constant 0 : i32
    return %arg0, %c0_i32, %c0_i32_0 : i32, i32, i32
  }
}

module attributes {stable_mosaic.version = 11 : i64} {
  func.func @mlp_fused_kernel(%arg0: i32, %arg1: memref<2x25088xf32, #tpu.memory_space<vmem>>, %arg2: memref<128x12544xf32, #tpu.memory_space<vmem>>, %arg3: memref<1x128xf32, #tpu.memory_space<vmem>>, %arg4: memref<64x128xf32, #tpu.memory_space<vmem>>, %arg5: memref<1x64xf32, #tpu.memory_space<vmem>>, %arg6: memref<10x64xf32, #tpu.memory_space<vmem>>, %arg7: memref<1x10xf32, #tpu.memory_space<vmem>>, %arg8: memref<2x10xf32, #tpu.memory_space<vmem>>, %arg9: memref<2x128xf32, #tpu.memory_space<vmem>>) attributes {dimension_semantics = [#tpu.dimension_semantics<arbitrary>], iteration_bounds = array<i64: 2>, scalar_prefetch = 0 : i64, scratch_operands = 1 : i64, tpu.core_type = #tpu.core_type<tc>, window_params = [{pipeline_mode = #tpu.pipeline_mode<synchronous>, transform_indices = @transform_0, window_bounds = array<i64: 2, 25088>}, {transform_indices = @transform_1, window_bounds = array<i64: 128, 12544>}, {pipeline_mode = #tpu.pipeline_mode<synchronous>, transform_indices = @transform_2, window_bounds = array<i64: 1, 128>}, {pipeline_mode = #tpu.pipeline_mode<synchronous>, transform_indices = @transform_3, window_bounds = array<i64: 64, 128>}, {pipeline_mode = #tpu.pipeline_mode<synchronous>, transform_indices = @transform_4, window_bounds = array<i64: 1, 64>}, {pipeline_mode = #tpu.pipeline_mode<synchronous>, transform_indices = @transform_5, window_bounds = array<i64: 10, 64>}, {pipeline_mode = #tpu.pipeline_mode<synchronous>, transform_indices = @transform_6, window_bounds = array<i64: 1, 10>}, {pipeline_mode = #tpu.pipeline_mode<synchronous>, transform_indices = @transform_7, window_bounds = array<i64: 2, 10>}]} {
    %c0_i32 = arith.constant 0 : i32
    %0 = arith.cmpi eq, %arg0, %c0_i32 : i32
    %1 = arith.extui %0 : i1 to i32
    %c0_i32_0 = arith.constant 0 : i32
    %2 = arith.cmpi ne, %1, %c0_i32_0 : i32
    scf.if %2 {
      %cst_8 = arith.constant 0.000000e+00 : f32
      %15 = vector.broadcast %cst_8 : f32 to vector<2x128xf32>
      %c0_9 = arith.constant 0 : index
      %c0_10 = arith.constant 0 : index
      %16 = vector.load %arg9[%c0_9, %c0_10] : memref<2x128xf32, #tpu.memory_space<vmem>>, vector<2x128xf32>
      tpu.vector_store %arg9[%c0_9, %c0_10], %15 {strides = array<i32>} : memref<2x128xf32, #tpu.memory_space<vmem>>, vector<2x128xf32>,
    } else {
    }
    %c12544_i32 = arith.constant 12544 : i32
    %3 = arith.muli %arg0, %c12544_i32 : i32
    %4 = tpu.assume_multiple %3, 128 : i32
    %c0 = arith.constant 0 : index
    %5 = arith.index_cast %4 : i32 to index
    %6 = vector.load %arg1[%c0, %5] : memref<2x25088xf32, #tpu.memory_space<vmem>>, vector<2x12544xf32>
    %c0_1 = arith.constant 0 : index
    %c0_2 = arith.constant 0 : index
    %7 = vector.load %arg9[%c0_1, %c0_2] : memref<2x128xf32, #tpu.memory_space<vmem>>, vector<2x128xf32>
    %c0_3 = arith.constant 0 : index
    %c0_4 = arith.constant 0 : index
    %8 = vector.load %arg2[%c0_3, %c0_4] : memref<128x12544xf32, #tpu.memory_space<vmem>>, vector<128x12544xf32>
    %cst = arith.constant dense<0.000000e+00> : vector<2x128xf32>
    %9 = tpu.matmul %6, %8, %cst {dimension_numbers = #tpu.dot_dimension_numbers<[1], [1], [0], [0], [0, 0, 1, 0], [], []>} : vector<2x12544xf32>, vector<128x12544xf32>, vector<2x128xf32> -> vector<2x128xf32>
    %10 = arith.addf %7, %9 : vector<2x128xf32>
    %c0_5 = arith.constant 0 : index
    %c0_6 = arith.constant 0 : index
    %11 = vector.load %arg9[%c0_5, %c0_6] : memref<2x128xf32, #tpu.memory_space<vmem>>, vector<2x128xf32>
    tpu.vector_store %arg9[%c0_5, %c0_6], %10 {strides = array<i32>} : memref<2x128xf32, #tpu.memory_space<vmem>>, vector<2x128xf32>,
    %c1_i32 = arith.constant 1 : i32
    %12 = arith.cmpi eq, %arg0, %c1_i32 : i32
    %13 = arith.extui %12 : i1 to i32
    %c0_i32_7 = arith.constant 0 : i32
    %14 = arith.cmpi ne, %13, %c0_i32_7 : i32
    scf.if %14 {
      %c0_8 = arith.constant 0 : index
      %c0_9 = arith.constant 0 : index
      %15 = vector.load %arg9[%c0_8, %c0_9] : memref<2x128xf32, #tpu.memory_space<vmem>>, vector<2x128xf32>
      %c0_10 = arith.constant 0 : index
      %c0_11 = arith.constant 0 : index
      %16 = vector.load %arg3[%c0_10, %c0_11] : memref<1x128xf32, #tpu.memory_space<vmem>>, vector<1x128xf32>
      %17 = vector.broadcast %16 : vector<1x128xf32> to vector<2x128xf32>
      %18 = arith.addf %15, %17 : vector<2x128xf32>
      %cst_12 = arith.constant 0.000000e+00 : f32
      %19 = vector.broadcast %cst_12 : f32 to vector<2x128xf32>
      %20 = arith.maximumf %18, %19 : vector<2x128xf32>
      %c0_13 = arith.constant 0 : index
      %c0_14 = arith.constant 0 : index
      %21 = vector.load %arg4[%c0_13, %c0_14] : memref<64x128xf32, #tpu.memory_space<vmem>>, vector<64x128xf32>
      %cst_15 = arith.constant dense<0.000000e+00> : vector<2x64xf32>
      %22 = tpu.matmul %20, %21, %cst_15 {dimension_numbers = #tpu.dot_dimension_numbers<[1], [1], [0], [0], [0, 0, 1, 0], [], []>} : vector<2x128xf32>, vector<64x128xf32>, vector<2x64xf32> -> vector<2x64xf32>
      %c0_16 = arith.constant 0 : index
      %c0_17 = arith.constant 0 : index
      %23 = vector.load %arg5[%c0_16, %c0_17] : memref<1x64xf32, #tpu.memory_space<vmem>>, vector<1x64xf32>
      %24 = vector.broadcast %23 : vector<1x64xf32> to vector<2x64xf32>
      %25 = arith.addf %22, %24 : vector<2x64xf32>
      %cst_18 = arith.constant 0.000000e+00 : f32
      %26 = vector.broadcast %cst_18 : f32 to vector<2x64xf32>
      %27 = arith.maximumf %25, %26 : vector<2x64xf32>
      %c0_19 = arith.constant 0 : index
      %c0_20 = arith.constant 0 : index
      %28 = vector.load %arg6[%c0_19, %c0_20] : memref<10x64xf32, #tpu.memory_space<vmem>>, vector<10x64xf32>
      %cst_21 = arith.constant dense<0.000000e+00> : vector<2x10xf32>
      %29 = tpu.matmul %27, %28, %cst_21 {dimension_numbers = #tpu.dot_dimension_numbers<[1], [1], [0], [0], [0, 0, 1, 0], [], []>} : vector<2x64xf32>, vector<10x64xf32>, vector<2x10xf32> -> vector<2x10xf32>
      %c0_22 = arith.constant 0 : index
      %c0_23 = arith.constant 0 : index
      %30 = vector.load %arg7[%c0_22, %c0_23] : memref<1x10xf32, #tpu.memory_space<vmem>>, vector<1x10xf32>
      %31 = vector.broadcast %30 : vector<1x10xf32> to vector<2x10xf32>
      %32 = arith.addf %29, %31 : vector<2x10xf32>
      %c0_24 = arith.constant 0 : index
      %c0_25 = arith.constant 0 : index
      %33 = vector.load %arg8[%c0_24, %c0_25] : memref<2x10xf32, #tpu.memory_space<vmem>>, vector<2x10xf32>
      tpu.vector_store %arg8[%c0_24, %c0_25], %32 {strides = array<i32>} : memref<2x10xf32, #tpu.memory_space<vmem>>, vector<2x10xf32>,
    } else {
    }
    return
  }
  func.func @transform_0(%arg0: i32) -> (i32, i32) {
    %c0_i32 = arith.constant 0 : i32
    %c0_i32_0 = arith.constant 0 : i32
    %c0_i32_1 = arith.constant 0 : i32
    return %c0_i32, %c0_i32_0 : i32, i32
  }
  func.func @transform_1(%arg0: i32) -> (i32, i32) {
    %c0_i32 = arith.constant 0 : i32
    %c0_i32_0 = arith.constant 0 : i32
    return %c0_i32, %arg0 : i32, i32
  }
  func.func @transform_2(%arg0: i32) -> (i32, i32) {
    %c0_i32 = arith.constant 0 : i32
    %c0_i32_0 = arith.constant 0 : i32
    %c0_i32_1 = arith.constant 0 : i32
    return %c0_i32, %c0_i32_0 : i32, i32
  }
  func.func @transform_3(%arg0: i32) -> (i32, i32) {
    %c0_i32 = arith.constant 0 : i32
    %c0_i32_0 = arith.constant 0 : i32
    %c0_i32_1 = arith.constant 0 : i32
    return %c0_i32, %c0_i32_0 : i32, i32
  }
  func.func @transform_4(%arg0: i32) -> (i32, i32) {
    %c0_i32 = arith.constant 0 : i32
    %c0_i32_0 = arith.constant 0 : i32
    %c0_i32_1 = arith.constant 0 : i32
    return %c0_i32, %c0_i32_0 : i32, i32
  }
  func.func @transform_5(%arg0: i32) -> (i32, i32) {
    %c0_i32 = arith.constant 0 : i32
    %c0_i32_0 = arith.constant 0 : i32
    %c0_i32_1 = arith.constant 0 : i32
    return %c0_i32, %c0_i32_0 : i32, i32
  }
  func.func @transform_6(%arg0: i32) -> (i32, i32) {
    %c0_i32 = arith.constant 0 : i32
    %c0_i32_0 = arith.constant 0 : i32
    %c0_i32_1 = arith.constant 0 : i32
    return %c0_i32, %c0_i32_0 : i32, i32
  }
  func.func @transform_7(%arg0: i32) -> (i32, i32) {
    %c0_i32 = arith.constant 0 : i32
    %c0_i32_0 = arith.constant 0 : i32
    %c0_i32_1 = arith.constant 0 : i32
    return %c0_i32, %c0_i32_0 : i32, i32
  }
}

</mosaic_0001>

<bundles_post_ra>
// kernel: simple_cnn_forward.2
= control target key start
LH: loop header
LB: loop body
LE: loop exit
PB: predicated region body
PF: predicated region fallthrough
CT: control target
= control target key end

     0   :  { %s792_s12 = smov 0   ;;  %s935_s0 = inlined_call_operand.vmem [shape: f32[2,16,784], index: 0, kind: input, shape index: {}]   ;;  %s936_s1 = inlined_call_operand.vmem [shape: f32[32,16], index: 1, kind: input, shape index: {}]   ;;  %s937_s2 = inlined_call_operand.vmem [shape: f32[32,1], index: 2, kind: input, shape index: {}]   ;;  %s938_s3 = inlined_call_operand.vmem [shape: f32[2,32,784], index: 3, kind: output, shape index: {}]  }
   0x1 LB: > { %s689_s13 = sadd.s32 4294967295, %s768_s12   ;;  %p693_p0 = scmp.ge.s32.totalorder %s768_s12, 1  ;;  %s768_s12 = sphi %s792_s12, %s13_s12  }
   0x2   : > { %p137_p1 = scmp.lt.s32.totalorder %s768_s12, 3 }
   0x4   : > { %p138_p2 = pnand %p693_p0, %p137_p1 }
   0x5   : > { %p161_p3 = scmp.lt.s32.totalorder (!%p138_p2), %s689_s13, 1  ;;  %v770_v0 = vmov (!%p138_p2), 0.0   ;;  %v191_v1 = vld [vmem:[%s937_s2 + $0x10] sm:$0xff] (!%p138_p2)  ;;  %v771_v2 = vmov (!%p138_p2), 0   ;;  %v189_v3 = vld [vmem:[%s937_s2] sm:$0xff] (!%p138_p2)  ;;  %v192_v4 = vld [vmem:[%s937_s2 + $0x18] sm:$0xff] (!%p138_p2) }
   0x6   : > { %141 = sbr.rel (%p138_p2) target bundleno = 266 (0x10a), region = 32  ;;  %290 = vmatprep.mubr.f32.mxu0 (!%p138_p2), %v770_v0  ;;  %308 = vmatprep.mubr.f32.mxu1 (!%p138_p2), %v770_v0  ;;  %v190_v5 = vld [vmem:[%s937_s2 + $0x8] sm:$0xff] (!%p138_p2)  ;;  %v171_v14 = vld [vmem:[%s936_s1] sm:$0xff] (!%p138_p2)  ;;  %vm213_vm0 = vcmask (!%p138_p2), 130048   ;;  %v174_v23 = vld [vmem:[%s936_s1 + $0x18] sm:$0xff] (!%p138_p2) }
   0x7   : > { %761 = vset.pattern.permute.xlu1 (!%p138_p2), %v771_v2  ;;  %760 = vset.pattern.permute.xlu0 (!%p138_p2), %v771_v2  ;;  %v172_v29 = vld [vmem:[%s936_s1 + $0x8] sm:$0xff] (!%p138_p2)  ;;  %v173_v30 = vld [vmem:[%s936_s1 + $0x10] sm:$0xff] (!%p138_p2) }
   0x8   : > { %205 = vperm.xlu1 (!%p138_p2), %761, %v191_v1   ;;  %195 = vperm.xlu0 (!%p138_p2), %760, %v189_v3  }
   0xc   : > { %210 = vperm.xlu1 (!%p138_p2), %761, %v192_v4   ;;  %200 = vperm.xlu0 (!%p138_p2), %760, %v190_v5  }
   0xd   : > { %s940_s13 = smov (!%p161_p3, %s689_s13), 1 }
   0xe   : > { %s748_s18 = smul.u32 112, %s940_s13 }
   0xf   : > { %s749_s7 = smul.u32 224, %s940_s13 }
  0x10   : > { %s165_s25 = scalar_lea.vmem %s935_s0, %s748_s18 }
  0x11   : > { %v176_v6 = vld [vmem:[%s165_s25 + $0x8] sm:$0xff]  ;;  %v183_v7 = vld [vmem:[%s165_s25 + $0x40] sm:$0xff]  ;;  %v182_v10 = vld [vmem:[%s165_s25 + $0x38] sm:$0xff]  ;;  %s870_s10 = scalar_lea.vmem %s938_s3, %s749_s7 }
  0x12   : > { %v175_v8 = vld [vmem:[%s165_s25] sm:$0xff]  ;;  %v730_v9 = vpack.c.bf16 %v183_v7, %v176_v6  ;;  %v178_v11 = vld [vmem:[%s165_s25 + $0x18] sm:$0xff]  ;;  %v185_v12 = vld [vmem:[%s165_s25 + $0x50] sm:$0xff] }
  0x13   : > { %v732_v13 = vpack.c.bf16 %v182_v10, %v175_v8  ;;  %v734_v15 = vpack.c.bf16 %v185_v12, %v178_v11  ;;  %v180_v16 = vld [vmem:[%s165_s25 + $0x28] sm:$0xff]  ;;  %v187_v17 = vld [vmem:[%s165_s25 + $0x60] sm:$0xff]  ;;  %v177_v18 = vld [vmem:[%s165_s25 + $0x10] sm:$0xff] }
  0x14   : > { %731 = vmatprep.subr.bf16.mxu0 %v730_v9  ;;  %746 = vmatprep.subr.bf16.mxu1 %v730_v9  ;;  %v738_v19 = vpack.c.bf16 %v187_v17, %v180_v16  ;;  %v184_v20 = vld [vmem:[%s165_s25 + $0x48] sm:$0xff]  ;;  %v179_v21 = vld [vmem:[%s165_s25 + $0x20] sm:$0xff]  ;;  %v186_v22 = vld [vmem:[%s165_s25 + $0x58] sm:$0xff] }
  0x15   : > { %733 = vmatpush1.bf16.msra.mxu0 %v732_v13  ;;  %747 = vmatpush1.bf16.msra.mxu1 %v732_v13  ;;  %v736_v24 = vpack.c.bf16 %v184_v20, %v177_v18  ;;  %v740_v25 = vpack.c.bf16 %v186_v22, %v179_v21  ;;  %v181_v26 = vld [vmem:[%s165_s25 + $0x30] sm:$0xff]  ;;  %v188_v27 = vld [vmem:[%s165_s25 + $0x68] sm:$0xff] }
  0x16   : > { %735 = vmatprep.subr.bf16.mxu1 %v734_v15  ;;  %739 = vmatprep.subr.bf16.mxu0 %v738_v19  ;;  %v742_v28 = vpack.c.bf16 %v188_v27, %v181_v26 }
  0x18   : > { %696 = vmatmul.mubr.msk.f32.vlgmr.msra.gmra.mrb[0].mxu0 %vm213_vm0, %v171_v14  ;;  %699 = vmatmul.mubr.msk.f32.vlgmr.msra.gmra.mrb[0].mxu1 %vm213_vm0, %v174_v23 }
  0x19   : > { %737 = vmatpush1.bf16.msra.mxu1 %v736_v24  ;;  %741 = vmatpush1.bf16.msra.mxu0 %v740_v25 }
  0x1a   : > { %296 = vmatprep.mubr.f32.mxu0 %v770_v0  ;;  %379 = vmatprep.mubr.f32.mxu1 %v770_v0 }
  0x1b   : > { %743 = vmatprep.subr.bf16.mxu1 %v742_v28 }
  0x1c   : > { %697 = vmatmul.mubr.msk.f32.gmra.mrb[2].mxu0 %vm213_vm0, %v172_v29  ;;  %700 = vmatmul.mubr.msk.f32.vlgmr.msra.gmra.mrb[2].mxu1 %vm213_vm0, %v171_v14 }
  0x1d   : > { %745 = vmatpush3.bf16.msra.mxu1 %v742_v28  ;;  %302 = vmatprep.mubr.f32.mxu0 %v770_v0 }
  0x1e   : > { %385 = vmatprep.mubr.f32.mxu1 %v770_v0 }
  0x20   : > { %698 = vmatmul.mubr.msk.f32.gmra.mrb[4].mxu0 %vm213_vm0, %v173_v30  ;;  %701 = vmatmul.mubr.msk.f32.gmra.mrb[4].mxu1 %vm213_vm0, %v172_v29 }
  0x21   : > { %391 = vmatprep.mubr.f32.mxu1 %v770_v0  ;;  %468 = vmatprep.mubr.f32.mxu0 %v770_v0 }
  0x24   : > { %702 = vmatmul.mubr.msk.f32.gmra.mrb[6].mxu1 %vm213_vm0, %v173_v30  ;;  %704 = vmatmul.mubr.msk.f32.vlgmr.msra.gmra.mrb[6].mxu0 %vm213_vm0, %v171_v14 }
  0x25   : > { %397 = vmatprep.mubr.f32.mxu1 %v770_v0  ;;  %474 = vmatprep.mubr.f32.mxu0 %v770_v0 }
  0x28   : > { %703 = vmatmul.mubr.msk.f32.gmra.mrb[8].mxu1 %vm213_vm0, %v174_v23  ;;  %705 = vmatmul.mubr.msk.f32.gmra.mrb[8].mxu0 %vm213_vm0, %v172_v29 }
  0x29   : > { %480 = vmatprep.mubr.f32.mxu0 %v770_v0  ;;  %724 = vmatprep.mubr.msk.f32.mxu1 %vm213_vm0, %v171_v14 }
  0x2c   : > { %706 = vmatmul.mubr.msk.f32.gmra.mrb[10].mxu0 %vm213_vm0, %v173_v30  ;;  %725 = vmatmul.mubr.msk.f32.vlgmr.msra.gmra.mrb[10].mxu1 %vm213_vm0, %v172_v29 }
  0x2d   : > { %486 = vmatprep.mubr.f32.mxu0 %v770_v0  ;;  %727 = vmatprep.mubr.msk.f32.mxu1 %vm213_vm0, %v173_v30 }
  0x30   : > { %707 = vmatmul.mubr.msk.f32.gmra.mrb[12].mxu0 %vm213_vm0, %v174_v23  ;;  %728 = vmatmul.mubr.msk.f32.gmra.mrb[12].mxu1 %vm213_vm0, %v174_v23 }
  0x87   : > { %v858_v31 = vpop.permute.xlu1 %205  ;;  %v860_v32 = vpop.permute.xlu0 %195 }
  0x8b   : > { %v863_v33 = vpop.permute.xlu1 %210  ;;  %v874_v42 = vpop.permute.xlu0 %200 }
  0xeb   : > { %v292_v34 = vpop.f32.mrb[0].mxu0  ;;  %v310_v35 = vpop.f32.mrb[0].mxu1 }
  0xec   : > { %v311_v36 = vadd.f32 %v310_v35, %v863_v33  ;;  %v293_v37 = vadd.f32 %v292_v34, %v860_v32  ;;  %v294_v38 = vpop.f32.mrb[1].mxu0  ;;  %v312_v39 = vpop.f32.mrb[1].mxu1 }
  0xed   : > { %v295_v40 = vadd.f32 %v294_v38, %v860_v32  ;;  %v313_v41 = vadd.f32 %v312_v39, %v863_v33 }
  0xee   : > { %v599_v43 = vmax.f32 %v311_v36, 0.0  ;;  %v578_v44 = vmax.f32 %v293_v37, 0.0 }
  0xef   : > { %v579_v45 = vmax.f32 %v295_v40, 0.0  ;;  %v600_v46 = vmax.f32 %v313_v41, 0.0  ;;  %v298_v47 = vpop.f32.mrb[2].mxu0  ;;  %v381_v48 = vpop.f32.mrb[2].mxu1 }
  0xf0   : > { %627 = vst [vmem:[%s870_s10 + $0xa8] sm:$0xff] %v599_v43  ;;  %606 = vst [vmem:[%s870_s10] sm:$0xff] %v578_v44  ;;  %v382_v49 = vadd.f32 %v381_v48, %v860_v32  ;;  %v299_v50 = vadd.f32 %v298_v47, %v874_v42  ;;  %v300_v51 = vpop.f32.mrb[3].mxu0  ;;  %v383_v52 = vpop.f32.mrb[3].mxu1 }
  0xf1   : > { %607 = vst [vmem:[%s870_s10 + $0x8] sm:$0xff] %v579_v45  ;;  %628 = vst [vmem:[%s870_s10 + $0xb0] sm:$0xff] %v600_v46  ;;  %v301_v53 = vadd.f32 %v300_v51, %v874_v42  ;;  %v384_v54 = vadd.f32 %v383_v52, %v860_v32 }
  0xf2   : > { %v580_v55 = vmax.f32 %v382_v49, 0.0  ;;  %v585_v56 = vmax.f32 %v299_v50, 0.0 }
  0xf3   : > { %v586_v57 = vmax.f32 %v301_v53, 0.0  ;;  %v581_v58 = vmax.f32 %v384_v54, 0.0  ;;  %v304_v59 = vpop.f32.mrb[4].mxu0  ;;  %v387_v60 = vpop.f32.mrb[4].mxu1 }
  0xf4   : > { %608 = vst [vmem:[%s870_s10 + $0x10] sm:$0xff] %v580_v55  ;;  %613 = vst [vmem:[%s870_s10 + $0x38] sm:$0xff] %v585_v56  ;;  %v305_v61 = vadd.f32 %v304_v59, %v858_v31  ;;  %v388_v62 = vadd.f32 %v387_v60, %v874_v42  ;;  %v306_v63 = vpop.f32.mrb[5].mxu0  ;;  %v389_v0 = vpop.f32.mrb[5].mxu1 }
  0xf5   : > { %614 = vst [vmem:[%s870_s10 + $0x40] sm:$0xff] %v586_v57  ;;  %609 = vst [vmem:[%s870_s10 + $0x18] sm:$0xff] %v581_v58  ;;  %v307_v1 = vadd.f32 %v306_v63, %v858_v31  ;;  %v390_v2 = vadd.f32 %v389_v0, %v874_v42 }
  0xf6   : > { %v592_v3 = vmax.f32 %v305_v61, 0.0  ;;  %v587_v4 = vmax.f32 %v388_v62, 0.0 }
  0xf7   : > { %v593_v5 = vmax.f32 %v307_v1, 0.0  ;;  %v588_v6 = vmax.f32 %v390_v2, 0.0  ;;  %v393_v7 = vpop.f32.mrb[6].mxu1  ;;  %v470_v8 = vpop.f32.mrb[6].mxu0 }
  0xf8   : > { %620 = vst [vmem:[%s870_s10 + $0x70] sm:$0xff] %v592_v3  ;;  %615 = vst [vmem:[%s870_s10 + $0x48] sm:$0xff] %v587_v4  ;;  %v394_v9 = vadd.f32 %v393_v7, %v858_v31  ;;  %v471_v10 = vadd.f32 %v470_v8, %v860_v32  ;;  %v395_v11 = vpop.f32.mrb[7].mxu1  ;;  %v472_v12 = vpop.f32.mrb[7].mxu0 }
  0xf9   : > { %621 = vst [vmem:[%s870_s10 + $0x78] sm:$0xff] %v593_v5  ;;  %616 = vst [vmem:[%s870_s10 + $0x50] sm:$0xff] %v588_v6  ;;  %v396_v13 = vadd.f32 %v395_v11, %v858_v31  ;;  %v473_v14 = vadd.f32 %v472_v12, %v860_v32 }
  0xfa   : > { %v594_v15 = vmax.f32 %v394_v9, 0.0  ;;  %v582_v16 = vmax.f32 %v471_v10, 0.0 }
  0xfb   : > { %v595_v17 = vmax.f32 %v396_v13, 0.0  ;;  %v583_v18 = vmax.f32 %v473_v14, 0.0  ;;  %v399_v19 = vpop.f32.mrb[8].mxu1  ;;  %v476_v20 = vpop.f32.mrb[8].mxu0 }
  0xfc   : > { %622 = vst [vmem:[%s870_s10 + $0x80] sm:$0xff] %v594_v15  ;;  %610 = vst [vmem:[%s870_s10 + $0x20] sm:$0xff] %v582_v16  ;;  %v400_v21 = vadd.f32 %v399_v19, %v863_v33  ;;  %v477_v22 = vadd.f32 %v476_v20, %v874_v42  ;;  %v401_v23 = vpop.f32.mrb[9].mxu1  ;;  %v478_v24 = vpop.f32.mrb[9].mxu0 }
  0xfd   : > { %623 = vst [vmem:[%s870_s10 + $0x88] sm:$0xff] %v595_v17  ;;  %611 = vst [vmem:[%s870_s10 + $0x28] sm:$0xff] %v583_v18  ;;  %v402_v25 = vadd.f32 %v401_v23, %v863_v33  ;;  %v479_v26 = vadd.f32 %v478_v24, %v874_v42 }
  0xfe   : > { %v601_v27 = vmax.f32 %v400_v21, 0.0  ;;  %v589_v28 = vmax.f32 %v477_v22, 0.0 }
  0xff   : > { %v602_v29 = vmax.f32 %v402_v25, 0.0  ;;  %v590_v30 = vmax.f32 %v479_v26, 0.0  ;;  %v482_v34 = vpop.f32.mrb[10].mxu0  ;;  %v726_v35 = vpop.f32.mrb[10].mxu1 }
 0x100   : > { %629 = vst [vmem:[%s870_s10 + $0xb8] sm:$0xff] %v601_v27  ;;  %617 = vst [vmem:[%s870_s10 + $0x58] sm:$0xff] %v589_v28  ;;  %v483_v36 = vadd.f32 %v482_v34, %v858_v31  ;;  %v565_v37 = vadd.f32 %v726_v35, %v874_v42  ;;  %v484_v38 = vpop.f32.mrb[11].mxu0  ;;  %v559_v39 = vpop.f32.mrb[11].mxu1 }
 0x101   : > { %630 = vst [vmem:[%s870_s10 + $0xc0] sm:$0xff] %v602_v29  ;;  %618 = vst [vmem:[%s870_s10 + $0x60] sm:$0xff] %v590_v30  ;;  %v485_v40 = vadd.f32 %v484_v38, %v858_v31  ;;  %v560_v41 = vadd.f32 %v559_v39, %v860_v32 }
 0x102   : > { %v596_v43 = vmax.f32 %v483_v36, 0.0  ;;  %v591_v44 = vmax.f32 %v565_v37, 0.0 }
 0x103   : > { %v597_v45 = vmax.f32 %v485_v40, 0.0  ;;  %v584_v46 = vmax.f32 %v560_v41, 0.0  ;;  %v488_v47 = vpop.f32.mrb[12].mxu0  ;;  %v729_v48 = vpop.f32.mrb[12].mxu1 }
 0x104   : > { %624 = vst [vmem:[%s870_s10 + $0x90] sm:$0xff] %v596_v43  ;;  %619 = vst.msk [vmem:[%s870_s10 + $0x68] sm:$0xff] %vm213_vm0, %v591_v44  ;;  %v489_v42 = vadd.f32 %v488_v47, %v863_v33  ;;  %v575_v49 = vadd.f32 %v729_v48, %v863_v33  ;;  %v490_v50 = vpop.f32.mrb[13].mxu0  ;;  %v569_v51 = vpop.f32.mrb[13].mxu1 }
 0x105   : > { %625 = vst [vmem:[%s870_s10 + $0x98] sm:$0xff] %v597_v45  ;;  %612 = vst.msk [vmem:[%s870_s10 + $0x30] sm:$0xff] %vm213_vm0, %v584_v46  ;;  %v491_v32 = vadd.f32 %v490_v50, %v863_v33  ;;  %v570_v52 = vadd.f32 %v569_v51, %v858_v31 }
 0x106   : > { %v603_v53 = vmax.f32 %v489_v42, 0.0  ;;  %v605_v54 = vmax.f32 %v575_v49, 0.0 }
 0x107   : > { %v604_v55 = vmax.f32 %v491_v32, 0.0  ;;  %v598_v56 = vmax.f32 %v570_v52, 0.0 }
 0x108   : > { %631 = vst [vmem:[%s870_s10 + $0xc8] sm:$0xff] %v603_v53  ;;  %633 = vst.msk [vmem:[%s870_s10 + $0xd8] sm:$0xff] %vm213_vm0, %v605_v54 }
 0x109   : > { %632 = vst [vmem:[%s870_s10 + $0xd0] sm:$0xff] %v604_v55  ;;  %626 = vst.msk [vmem:[%s870_s10 + $0xa0] sm:$0xff] %vm213_vm0, %v598_v56 }
 0x10a PF: > { %s13_s12 = sadd.s32 1, %s768_s12  }
 0x10b   : > { %p10_p4 = scmp.ge.s32.totalorder %s13_s12, 4  }
 0x10d   :  { %12 = sbr.rel (!%p10_p4) target bundleno = 1 (0x1), region = 62 }

// kernel: simple_cnn_forward.3
= control target key start
LH: loop header
LB: loop body
LE: loop exit
PB: predicated region body
PF: predicated region fallthrough
CT: control target
= control target key end

     0   :  { %s10542_s0 = inlined_call_operand.vmem [shape: f32[2,25088], index: 0, kind: input, shape index: {}]   ;;  %s10543_s1 = inlined_call_operand.hbm [shape: f32[128,25088], index: 1, kind: input, shape index: {}]   ;;  %s10544_s2 = inlined_call_operand.hbm [shape: f32[1,128], index: 2, kind: input, shape index: {}]   ;;  %s10545_s3 = inlined_call_operand.hbm [shape: f32[64,128], index: 3, kind: input, shape index: {}]   ;;  %s10546_s4 = inlined_call_operand.hbm [shape: f32[1,64], index: 4, kind: input, shape index: {}]   ;;  %s10547_s5 = inlined_call_operand.hbm [shape: f32[10,64], index: 5, kind: input, shape index: {}]   ;;  %s10548_s6 = inlined_call_operand.hbm [shape: f32[1,10], index: 6, kind: input, shape index: {}]   ;;  %s10549_s7 = inlined_call_operand.hbm [shape: f32[2,10], index: 7, kind: output, shape index: {}]  }
   0x1   :  { %10553 = sst [smem:[#allocation20_spill]] %s10544_s2 }
   0x2   :  { %12 = vsyncpa [#allocation4], 0 }
   0x3   :  { %14 = vsyncpa [#allocation4 + $0x1], 0 }
   0x4   :  { %15 = vsyncpa [#allocation7], 0 }
   0x5   :  { %16 = vsyncpa [#allocation10], 0 }
   0x6   :  { %17 = vsyncpa [#allocation13], 0 }
   0x7   :  { %18 = vsyncpa [#allocation5], 0  ;;  %s8316_s24 = smov 0   ;;  %s8318_s25 = smov 0  }
   0x8   :  { %s8320_s26 = smov 0   ;;  %s8322_s27 = smov 0  }
   0x9 LB: > { %s8335_s28 = sadd.s32 4294967295, %s8257_s27   ;;  %p65_p0 = scmp.ne.s32.totalorder %s8249_s25, %s8245_s24  ;;  %s8257_s27 = sphi %s8322_s27, %s10572_s27   ;;  %s8253_s26 = sphi %s8320_s26, %s10571_s26   ;;  %s8249_s25 = sphi %s8318_s25, %s10570_s25   ;;  %s8245_s24 = sphi %s8316_s24, %s10569_s24  }
   0xa   : > { %p10550_p1 = scmp.eq.s32.totalorder %s8335_s28, 0  ;;  %p6227_p2 = scmp.ge.s32.totalorder %s8257_s27, 1 }
   0xb   : > { %p202_p3 = scmp.lt.s32.totalorder %s8257_s27, 3  ;;  %s8259_s8 = smov [#allocation6]  }
   0xc   : > { %p8344_p5 = por %p10550_p1, %p65_p0  ;;  %s218_s9 = sshll.u32 %s8259_s8, 4  ;;  %s219_s9 = int_to_ptr.vmem [resolvable:$true] %s218_s9 }
   0xd   : > { %p8348_p6 = pnand %p6227_p2, %p202_p3  ;;  %s8260_s10 = smov [#allocation9]  }
   0xe   : > { %s10554_s29 = scalar_select %p8344_p5, 1, 0 }
   0xf   : > { %s10555_s30 = scalar_select %p8348_p6, 1, 0 }
  0x10   : > { %p7906_p7 = pneg %p8348_p6  ;;  %s242_s11 = sshll.u32 %s8260_s10, 4  ;;  %s8360_s11 = int_to_ptr.vmem [resolvable:$true] %s242_s11 }
  0x11   : > { %s8261_s13 = smov [#allocation8]   ;;  %s10557_s2 = sld [smem:[#allocation20_spill]] }
  0x12   : > { %p8356_p8 = pnand %p7906_p7, %p10550_p1  ;;  %s228_s14 = sshll.u32 %s8261_s13, 4  ;;  %s8362_s14 = int_to_ptr.vmem [resolvable:$true] %s228_s14 }
  0x14   : > { %p8372_p10 = pneg %p8356_p8 }
  0x17   : > { %s8011_s17 = scalar_lea.hbm %s10557_s2, 16 }
  0x18   : > { %p8012_p9 = scmp.ne.s32.totalorder %s10557_s2, %s8011_s17  ;;  %p8018_p13 = scmp.lt.u32.totalorder %s8011_s17, %s10557_s2 }
  0x1a   : > { %p8014_p11 = pnand %p8372_p10, %p8012_p9 }
  0x1c   : > { %p8015_p12 = pneg %p8014_p11 }
  0x1e   : > { %p8020_p0 = pnand %p8018_p13, %p8015_p12 }
  0x20   : > { %8023 = shalt.err (!%p8020_p0)
}
  0x21   : > { %s8024_s23 = scalar_lea.vmem %s219_s9, 16  ;;  %s8031_s24 = scalar_lea.vmem %s219_s9, 32 }
  0x22   : > { %p8025_p2 = scmp.ne.s32.totalorder %s219_s9, %s8024_s23  ;;  %p8032_p4 = scmp.lt.s32.totalorder %s219_s9, %s219_s9 }
  0x23   : > { %p8033_p1 = scmp.lt.s32.totalorder %s8031_s24, %s8024_s23 }
  0x24   : > { %p8027_p3 = pnand %p8025_p2, %p8372_p10 }
  0x25   : > { %p8034_p5 = por %p8033_p1, %p8032_p4 }
  0x26   : > { %p8028_p7 = pneg %p8027_p3 }
  0x28   : > { %p8035_p6 = pnand %p8034_p5, %p8028_p7 }
  0x2a   : > { %8038 = shalt.err (!%p8035_p6)
}
  0x2b   : > { %7909 = dma.hbm_to_vmem [thread:$0]  (!%p8356_p8), %s10557_s2, 16, %s219_s9, [#allocation7]  }
  0x2c   : > { %s8039_s16 = scalar_lea.hbm %s10546_s4, 16 }
  0x2d   : > { %p8040_p9 = scmp.ne.s32.totalorder %s10546_s4, %s8039_s16  ;;  %p8046_p4 = scmp.lt.u32.totalorder %s8039_s16, %s10546_s4 }
  0x2f   : > { %p8042_p11 = pnand %p8040_p9, %p8372_p10 }
  0x31   : > { %p8043_p1 = pneg %p8042_p11 }
  0x33   : > { %p8048_p5 = pnand %p8046_p4, %p8043_p1 }
  0x35   : > { %8051 = shalt.err (!%p8048_p5)
}
  0x36   : > { %s8052_s9 = scalar_lea.vmem %s8360_s11, 16  ;;  %s8059_s22 = scalar_lea.vmem %s8360_s11, 32 }
  0x37   : > { %p8053_p6 = scmp.ne.s32.totalorder %s8360_s11, %s8052_s9  ;;  %p8060_p0 = scmp.lt.s32.totalorder %s8360_s11, %s8360_s11 }
  0x38   : > { %p8061_p2 = scmp.lt.s32.totalorder %s8059_s22, %s8052_s9 }
  0x39   : > { %p8055_p12 = pnand %p8053_p6, %p8372_p10 }
  0x3a   : > { %p8062_p3 = por %p8061_p2, %p8060_p0 }
  0x3b   : > { %p8056_p13 = pneg %p8055_p12 }
  0x3d   : > { %p8063_p7 = pnand %p8062_p3, %p8056_p13 }
  0x3f   : > { %8066 = shalt.err (!%p8063_p7)
}
  0x40   : > { %7915 = dma.hbm_to_vmem [thread:$0]  (!%p8356_p8), %s10546_s4, 16, %s8360_s11, [#allocation10]  }
  0x41   : > { %s8067_s13 = scalar_lea.hbm %s10545_s3, 1024 }
  0x42   : > { %p8068_p9 = scmp.ne.s32.totalorder %s10545_s3, %s8067_s13  ;;  %p8074_p4 = scmp.lt.u32.totalorder %s8067_s13, %s10545_s3 }
  0x44   : > { %p8070_p11 = pnand %p8068_p9, %p8372_p10 }
  0x46   : > { %p8071_p1 = pneg %p8070_p11 }
  0x48   : > { %p8076_p5 = pnand %p8074_p4, %p8071_p1 }
  0x4a   : > { %8079 = shalt.err (!%p8076_p5)
}
  0x4b   : > { %s8080_s11 = scalar_lea.vmem %s8362_s14, 1024  ;;  %p8088_p0 = scmp.lt.s32.totalorder %s8362_s14, %s8362_s14 }
  0x4c   : > { %p8081_p6 = scmp.ne.s32.totalorder %s8362_s14, %s8080_s11  ;;  %p8089_p2 = scmp.lt.s32.totalorder %s8080_s11, %s8080_s11 }
  0x4e   : > { %p8083_p12 = pnand %p8081_p6, %p8372_p10  ;;  %p8090_p3 = por %p8089_p2, %p8088_p0 }
  0x50   : > { %p8084_p13 = pneg %p8083_p12 }
  0x52   : > { %p8091_p7 = pnand %p8090_p3, %p8084_p13 }
  0x54   : > { %8094 = shalt.err (!%p8091_p7)
}
  0x55   : > { %s8262_s19 = smov 128   ;;  %s8263_s21 = smov 8  }
  0x56   : > { %7912 = dma.hbm_to_vmem [thread:$0]  (!%p8356_p8), %s10545_s3, 1024, %s8362_s14, [#allocation7], %s8262_s19, %s8262_s19, %s8263_s21  }
  0x57   : > { %s8264_s23 = smov [#allocation11]   ;;  %s8265_s8 = smov [#allocation12]  }
  0x58   : > { %s252_s24 = sshll.u32 %s8264_s23, 4  ;;  %s266_s10 = sshll.u32 %s8265_s8, 4  ;;  %s253_s24 = int_to_ptr.vmem [resolvable:$true] %s252_s24  ;;  %s267_s10 = int_to_ptr.vmem [resolvable:$true] %s266_s10 }
  0x59   : > { %s8095_s16 = scalar_lea.hbm %s10547_s5, 256 }
  0x5a   : > { %p8096_p9 = scmp.ne.s32.totalorder %s10547_s5, %s8095_s16  ;;  %p8102_p4 = scmp.lt.u32.totalorder %s8095_s16, %s10547_s5 }
  0x5c   : > { %p8098_p11 = pnand %p8096_p9, %p8372_p10 }
  0x5e   : > { %p8099_p1 = pneg %p8098_p11 }
  0x60   : > { %p8104_p5 = pnand %p8102_p4, %p8099_p1 }
  0x62   : > { %8107 = shalt.err (!%p8104_p5)
}
  0x63   : > { %s8108_s14 = scalar_lea.vmem %s253_s24, 256  ;;  %p8116_p0 = scmp.lt.s32.totalorder %s253_s24, %s253_s24 }
  0x64   : > { %p8109_p6 = scmp.ne.s32.totalorder %s253_s24, %s8108_s14  ;;  %p8117_p2 = scmp.lt.s32.totalorder %s8108_s14, %s8108_s14 }
  0x66   : > { %p8111_p12 = pnand %p8109_p6, %p8372_p10  ;;  %p8118_p3 = por %p8117_p2, %p8116_p0 }
  0x68   : > { %p8112_p13 = pneg %p8111_p12 }
  0x6a   : > { %p8119_p7 = pnand %p8118_p3, %p8112_p13 }
  0x6c   : > { %8122 = shalt.err (!%p8119_p7)
}
  0x6d   : > { %7918 = dma.hbm_to_vmem [thread:$0]  (!%p8356_p8), %s10547_s5, 256, %s253_s24, [#allocation10], %s8262_s19, %s8262_s19, %s8263_s21  }
  0x6e   : > { %s8123_s8 = scalar_lea.hbm %s10548_s6, 16 }
  0x6f   : > { %p8124_p9 = scmp.ne.s32.totalorder %s10548_s6, %s8123_s8  ;;  %p8130_p4 = scmp.lt.u32.totalorder %s8123_s8, %s10548_s6 }
  0x71   : > { %p8126_p11 = pnand %p8124_p9, %p8372_p10 }
  0x73   : > { %p8127_p1 = pneg %p8126_p11 }
  0x75   : > { %p8132_p5 = pnand %p8130_p4, %p8127_p1 }
  0x77   : > { %8135 = shalt.err (!%p8132_p5)
}
  0x78   : > { %s8136_s18 = scalar_lea.vmem %s267_s10, 16  ;;  %s8143_s19 = scalar_lea.vmem %s267_s10, 32 }
  0x79   : > { %p8137_p6 = scmp.ne.s32.totalorder %s267_s10, %s8136_s18  ;;  %p8144_p0 = scmp.lt.s32.totalorder %s267_s10, %s267_s10 }
  0x7a   : > { %p8145_p2 = scmp.lt.s32.totalorder %s8143_s19, %s8136_s18 }
  0x7b   : > { %p8139_p12 = pnand %p8137_p6, %p8372_p10 }
  0x7c   : > { %p8146_p3 = por %p8145_p2, %p8144_p0 }
  0x7d   : > { %p8140_p13 = pneg %p8139_p12 }
  0x7f   : > { %p8147_p7 = pnand %p8146_p3, %p8140_p13 }
  0x81   : > { %8150 = shalt.err (!%p8147_p7)
}
  0x82   : > { %7921 = dma.hbm_to_vmem [thread:$0]  (!%p8356_p8), %s10548_s6, 16, %s267_s10, [#allocation13]  }
  0x83   : > { %s8472_s20 = sadd.s32 1, %s8257_s27   ;;  %s52_s14 = sadd.s32 1, %s8253_s26 }
  0x84   : > { %s49_s11 = ssub.s32 %s8257_s27, %s8472_s20  ;;  %p59_p9 = scmp.ne.s32.totalorder %s8253_s26, %s8249_s25 }
  0x85   : > { %p50_p10 = scmp.eq.s32.totalorder %s49_s11, 0  ;;  %p60_p11 = scmp.eq.s32.totalorder %s8257_s27, 0 }
  0x86   : > { %p7931_p1 = scmp.lt.s32.totalorder %s8257_s27, 2  ;;  %s277_s9 = sand.u32 1, %s8253_s26  }
  0x87   : > { %s8482_s12 = scalar_select %p50_p10, %s8253_s26, %s52_s14  }
  0x88   : > { %p61_p4 = por %p60_p11, %p59_p9  ;;  %s7878_s22 = smul.u32 12544, %s277_s9 }
  0x89   : > { %s6255_s2 = smul.u32 12544, %s8257_s27  ;;  %s8497_s27 = scalar_lea.sflag [#allocation4], %s277_s9 }
  0x8a   : > { %p8486_p5 = pnand %p7931_p1, %p61_p4  ;;  %s281_s15 = scalar_lea.vmem [#allocation3], %s7878_s22 }
  0x8b   : > { %s8493_s13 = scalar_lea.hbm %s10543_s1, %s6255_s2  ;;  %s288_s16 = sshll.u32 %s281_s15, 4  ;;  %s8495_s16 = int_to_ptr.vmem [resolvable:$true] %s288_s16 }
  0x8c   : > { %s8151_s17 = scalar_lea.hbm %s8493_s13, 200704  ;;  %p8153_p6 = pneg %p8486_p5 }
  0x8d   : > { %p8152_p8 = scmp.ne.s32.totalorder %s8493_s13, %s8151_s17  ;;  %s8156_s21 = scalar_lea.hbm %s10543_s1, 401408 }
  0x8e   : > { %p8157_p0 = scmp.lt.u32.totalorder %s8493_s13, %s10543_s1  ;;  %p8158_p2 = scmp.lt.u32.totalorder %s8156_s21, %s8151_s17 }
  0x8f   : > { %p8154_p12 = pnand %p8153_p6, %p8152_p8  ;;  %p8160_p7 = scmp.lt.u32.totalorder %s8151_s17, %s8493_s13 }
  0x90   : > { %p8159_p3 = por %p8158_p2, %p8157_p0 }
  0x91   : > { %p8155_p13 = pneg %p8154_p12 }
  0x92   : > { %p8161_p10 = por %p8160_p7, %p8159_p3 }
  0x94   : > { %p8162_p9 = pnand %p8161_p10, %p8155_p13 }
  0x96   : > { %8165 = shalt.err (!%p8162_p9)
}
  0x97   : > { %s8166_s14 = scalar_lea.vmem %s8495_s16, 200704  ;;  %s8266_s9 = smov [#allocation3]  }
  0x98   : > { %p8167_p11 = scmp.ne.s32.totalorder %s8495_s16, %s8166_s14  ;;  %s8171_s22 = sshll.u32 %s8266_s9, 4  ;;  %s8172_s22 = int_to_ptr.vmem [resolvable:$false] %s8171_s22 }
  0x99   : > { %s8173_s2 = scalar_lea.vmem %s8172_s22, 401408  ;;  %p8174_p8 = scmp.lt.s32.totalorder %s8495_s16, %s8172_s22 }
  0x9a   : > { %p8169_p1 = pnand %p8167_p11, %p8153_p6  ;;  %p8175_p12 = scmp.lt.s32.totalorder %s8173_s2, %s8166_s14 }
  0x9c   : > { %p8170_p4 = pneg %p8169_p1  ;;  %p8176_p0 = por %p8175_p12, %p8174_p8 }
  0x9e   : > { %p8177_p2 = pnand %p8176_p0, %p8170_p4 }
  0xa0   : > { %8180 = shalt.err (!%p8177_p2)
}
  0xa1   : > { %s8267_s10 = smov 25088   ;;  %s8268_s8 = smov 12544  }
  0xa2   : > { %s8269_s15 = smov 784   ;;  %p10560_p6 = scmp.ne.s32.totalorder %s10555_s30, 0 }
  0xa3   : > { %7925 = dma.hbm_to_vmem [thread:$0]  (!%p8486_p5), %s8493_s13, 200704, %s8495_s16, %s8497_s27, %s8267_s10, %s8268_s8, %s8269_s15  }
  0xa4   : > { %300 = sbr.rel (%p10560_p6) target bundleno = 2477 (0x9ad), region = 48  ;;  %s302_s17 = sand.u32 (!%p10560_p6), 1, %s8249_s25  }
  0xa5   : > { %s7879_s18 = smul.u32 (!%p10560_p6), 12544, %s302_s17  ;;  %s303_s19 = scalar_lea.sflag (!%p10560_p6), [#allocation4], %s302_s17 }
  0xa6   : > { %p10561_p13 = scmp.ne.s32.totalorder (!%p10560_p6), %s10554_s29, 0 }
  0xa7   : > { %s8528_s21 = scalar_lea.vmem (!%p10560_p6), [#allocation3], %s7879_s18 }
  0xab   : > { %8224 = dma.done.wait (%p10561_p13), %s303_s19, 200704  }
  0xac   : > { %8226 = vsyncadd (%p10561_p13), %s303_s19, 4294766592  ;;  %p10562_p3 = scmp.eq.s32.totalorder %s8335_s28, 0 }
  0xae   : > { %8228 = dma.done.wait (%p10562_p3), [#allocation7], 1040   ;;  %p10563_p5 = pmov %p10562_p3 }
  0xaf   : > { %p10564_p7 = pmov %p10562_p3 }
  0xb0   : > { %8230 = vsyncadd (%p10563_p5), [#allocation7], 4294966256 }
  0xb1   : > { %8232 = dma.done.wait (%p10564_p7), [#allocation10], 272   ;;  %p10565_p10 = pmov %p10562_p3 }
  0xb2   : > { %p10566_p9 = pmov %p10562_p3 }
  0xb3   : > { %8234 = vsyncadd (%p10565_p10), [#allocation10], 4294967024 }
  0xb4   : > { %8236 = dma.done.wait (%p10566_p9), [#allocation13], 16   ;;  %p10567_p11 = pmov %p10562_p3 }
  0xb5   : > { %p10568_p1 = scmp.ne.s32.totalorder %s8335_s28, 0 }
  0xb6   : > { %8238 = vsyncadd (%p10567_p11), [#allocation13], 4294967280  ;;  %v8270_v0 = vmov (!%p10568_p1), 0.0  }
  0xb7   : > { %356 = sbr.rel (%p10568_p1) target bundleno = 190 (0xbe), region = 76  ;;  %357 = vst [vmem:[#allocation2] sm:$0x3] (!%p10568_p1), %v8270_v0 }
  0xbe PF: > { %v390_v1 = vld [vmem:[%s8528_s21 + $0x8] sm:$0xff]  ;;  %v488_v2 = vld [vmem:[%s8528_s21 + $0x318] sm:$0xff]  ;;  %v389_v3 = vld [vmem:[%s8528_s21] sm:$0xff]  ;;  %s358_s29 = smul.u32 12544, %s8335_s28  ;;  %v8271_v31 = vmov 1983009808   ;;  %v1986_v33 = vlaneseq }
  0xbf   : > { %v6294_v4 = vpack.c.bf16 %v488_v2, %v390_v1  ;;  %v487_v5 = vld [vmem:[%s8528_s21 + $0x310] sm:$0xff]  ;;  %v392_v6 = vld [vmem:[%s8528_s21 + $0x18] sm:$0xff]  ;;  %v490_v7 = vld [vmem:[%s8528_s21 + $0x328] sm:$0xff]  ;;  %v1984_v32 = vunpack.c.l.s4 %v8271_v31  ;;  %p6244_p4 = scmp.ne.s32.totalorder %s8335_s28, 1 }
  0xc0   : > { %v6296_v8 = vpack.c.bf16 %v487_v5, %v389_v3  ;;  %v6326_v9 = vpack.c.bf16 %v490_v7, %v392_v6  ;;  %v391_v10 = vld [vmem:[%s8528_s21 + $0x10] sm:$0xff]  ;;  %v489_v11 = vld [vmem:[%s8528_s21 + $0x320] sm:$0xff]  ;;  %v586_v12 = vld [vmem:[%s8528_s21 + $0x628] sm:$0xff]  ;;  %s359_s30 = sshra.s32 %s358_s29, 7  ;;  %v1987_v41 = vshrl.u32 %v1986_v33, 7  ;;  %vm8273_vm0 = vmmov (!%p6244_p4), 0  }
  0xc1   : > { %6295 = vmatprep.subr.bf16.mxu0 %v6294_v4  ;;  %v6328_v13 = vpack.c.bf16 %v489_v11, %v391_v10  ;;  %v684_v14 = vld [vmem:[%s8528_s21 + $0x938] sm:$0xff]  ;;  %v686_v17 = vld [vmem:[%s8528_s21 + $0x948] sm:$0xff]  ;;  %v585_v18 = vld [vmem:[%s8528_s21 + $0x620] sm:$0xff]  ;;  %v1985_v40 = vunpack.c.0.s8 %v1984_v32  ;;  %s6242_s23 = sshll.u32 %s359_s30, 1  ;;  %vm6037_vm1 = vcmask (!%p6244_p4), 523264   ;;  %vm6117_vm3 = vcmask (!%p6244_p4), 74752  }
  0xc2   : > { %6297 = vmatpush1.bf16.xpose.msra.mxu0 %v6296_v8  ;;  %6327 = vmatprep.subr.bf16.mxu1 %v6326_v9  ;;  %v6298_v15 = vpack.c.bf16 %v684_v14, %v586_v12  ;;  %v588_v16 = vld [vmem:[%s8528_s21 + $0x638] sm:$0xff]  ;;  %v683_v19 = vld [vmem:[%s8528_s21 + $0x930] sm:$0xff]  ;;  %v685_v22 = vld [vmem:[%s8528_s21 + $0x940] sm:$0xff]  ;;  %s8580_s27 = scalar_lea.vmem %s10542_s0, %s6242_s23 }
  0xc3   : > { %6329 = vmatpush1.bf16.xpose.msra.mxu1 %v6328_v13  ;;  %v6330_v20 = vpack.c.bf16 %v686_v17, %v588_v16  ;;  %v587_v21 = vld [vmem:[%s8528_s21 + $0x630] sm:$0xff]  ;;  %v782_v23 = vld [vmem:[%s8528_s21 + $0xc48] sm:$0xff]  ;;  %v880_v24 = vld [vmem:[%s8528_s21 + $0xf58] sm:$0xff]  ;;  %v6300_v27 = vpack.c.bf16 %v683_v19, %v585_v18  ;;  %v8582_v48 = vsub.s32 %v1985_v40, %v1987_v41 }
  0xc4   : > { %6299 = vmatprep.subr.bf16.mxu0 %v6298_v15  ;;  %v784_v25 = vld [vmem:[%s8528_s21 + $0xc58] sm:$0xff]  ;;  %v882_v26 = vld [vmem:[%s8528_s21 + $0xf68] sm:$0xff]  ;;  %v6332_v28 = vpack.c.bf16 %v685_v22, %v587_v21  ;;  %v6302_v29 = vpack.c.bf16 %v880_v24, %v782_v23  ;;  %v781_v34 = vld [vmem:[%s8528_s21 + $0xc40] sm:$0xff] }
  0xc5   : > { %6331 = vmatprep.subr.bf16.mxu1 %v6330_v20  ;;  %v6334_v30 = vpack.c.bf16 %v882_v26, %v784_v25  ;;  %v879_v35 = vld [vmem:[%s8528_s21 + $0xf50] sm:$0xff]  ;;  %v881_v37 = vld [vmem:[%s8528_s21 + $0xf60] sm:$0xff]  ;;  %v978_v38 = vld [vmem:[%s8528_s21 + $0x1268] sm:$0xff] }
  0xc6   : > { %v783_v36 = vld [vmem:[%s8528_s21 + $0xc50] sm:$0xff]  ;;  %v1076_v39 = vld [vmem:[%s8528_s21 + $0x1578] sm:$0xff]  ;;  %v1078_v43 = vld [vmem:[%s8528_s21 + $0x1588] sm:$0xff]  ;;  %v6304_v44 = vpack.c.bf16 %v879_v35, %v781_v34 }
  0xc7   : > { %v980_v42 = vld [vmem:[%s8528_s21 + $0x1278] sm:$0xff]  ;;  %v6336_v45 = vpack.c.bf16 %v881_v37, %v783_v36  ;;  %v6306_v46 = vpack.c.bf16 %v1076_v39, %v978_v38  ;;  %v977_v49 = vld [vmem:[%s8528_s21 + $0x1260] sm:$0xff]  ;;  %v1075_v50 = vld [vmem:[%s8528_s21 + $0x1570] sm:$0xff] }
  0xc8   : > { %v6338_v47 = vpack.c.bf16 %v1078_v43, %v980_v42  ;;  %v979_v51 = vld [vmem:[%s8528_s21 + $0x1270] sm:$0xff]  ;;  %v363_v52 = vld [vmem:[%s8580_s27] sm:$0xff]  ;;  %v1174_v54 = vld [vmem:[%s8528_s21 + $0x1888] sm:$0xff]  ;;  %v6308_v60 = vpack.c.bf16 %v1075_v50, %v977_v49 }
  0xc9   : > { %v1077_v53 = vld [vmem:[%s8528_s21 + $0x1580] sm:$0xff]  ;;  %v1272_v55 = vld [vmem:[%s8528_s21 + $0x1b98] sm:$0xff]  ;;  %v8592_v56 = vrot.slane %v363_v52, %v8582_v48  ;;  %v1982_v57 = vcombine.high %v363_v52, %v363_v52  ;;  %v1274_v59 = vld [vmem:[%s8528_s21 + $0x1ba8] sm:$0xff] }
  0xca   : > { %6301 = vmatpush1.bf16.xpose.msra.mxu0 %v6300_v27  ;;  %v1176_v58 = vld [vmem:[%s8528_s21 + $0x1898] sm:$0xff]  ;;  %v6340_v63 = vpack.c.bf16 %v1077_v53, %v979_v51  ;;  %v6310_v0 = vpack.c.bf16 %v1272_v55, %v1174_v54  ;;  %v1173_v3 = vld [vmem:[%s8528_s21 + $0x1880] sm:$0xff]  ;;  %v1271_v4 = vld [vmem:[%s8528_s21 + $0x1b90] sm:$0xff] }
  0xcb   : > { %6333 = vmatpush1.bf16.xpose.msra.mxu1 %v6332_v28  ;;  %6303 = vmatprep.subr.bf16.mxu0 %v6302_v29  ;;  %v1997_v61 = vcombine.high %v8592_v56, %v8592_v56  ;;  %v8599_v62 = vrot.slane %v1982_v57, %v8582_v48  ;;  %v6342_v1 = vpack.c.bf16 %v1274_v59, %v1176_v58  ;;  %v1175_v5 = vld [vmem:[%s8528_s21 + $0x1890] sm:$0xff]  ;;  %v1273_v6 = vld [vmem:[%s8528_s21 + $0x1ba0] sm:$0xff]  ;;  %v1370_v7 = vld [vmem:[%s8528_s21 + $0x1ea8] sm:$0xff] }
  0xcc   : > { %6335 = vmatprep.subr.bf16.mxu1 %v6334_v30  ;;  %v1468_v8 = vld [vmem:[%s8528_s21 + $0x21b8] sm:$0xff]  ;;  %v1470_v10 = vld [vmem:[%s8528_s21 + $0x21c8] sm:$0xff]  ;;  %v6312_v11 = vpack.c.bf16 %v1271_v4, %v1173_v3  ;;  %v6344_v12 = vpack.c.bf16 %v1273_v6, %v1175_v5  ;;  %v1369_v15 = vld [vmem:[%s8528_s21 + $0x1ea0] sm:$0xff] }
  0xcd   : > { %2560 = vmatprep.mubr.f32.mxu0 %v1997_v61  ;;  %v1998_v2 = vcombine.high %v8599_v62, %v8599_v62  ;;  %v1372_v9 = vld [vmem:[%s8528_s21 + $0x1eb8] sm:$0xff]  ;;  %v6314_v13 = vpack.c.bf16 %v1468_v8, %v1370_v7  ;;  %v1467_v16 = vld [vmem:[%s8528_s21 + $0x21b0] sm:$0xff]  ;;  %v1469_v18 = vld [vmem:[%s8528_s21 + $0x21c0] sm:$0xff] }
  0xce   : > { %v6346_v14 = vpack.c.bf16 %v1470_v10, %v1372_v9  ;;  %v1371_v17 = vld [vmem:[%s8528_s21 + $0x1eb0] sm:$0xff]  ;;  %v1566_v19 = vld [vmem:[%s8528_s21 + $0x24c8] sm:$0xff]  ;;  %v1664_v20 = vld [vmem:[%s8528_s21 + $0x27d8] sm:$0xff]  ;;  %v6316_v23 = vpack.c.bf16 %v1467_v16, %v1369_v15 }
  0xcf   : > { %2630 = vmatprep.mubr.f32.mxu1 %v1998_v2  ;;  %v1568_v21 = vld [vmem:[%s8528_s21 + $0x24d8] sm:$0xff]  ;;  %v1666_v22 = vld [vmem:[%s8528_s21 + $0x27e8] sm:$0xff]  ;;  %v6348_v24 = vpack.c.bf16 %v1469_v18, %v1371_v17  ;;  %v6318_v25 = vpack.c.bf16 %v1664_v20, %v1566_v19  ;;  %v1565_v27 = vld [vmem:[%s8528_s21 + $0x24c0] sm:$0xff] }
  0xd0   : > { %v6350_v26 = vpack.c.bf16 %v1666_v22, %v1568_v21  ;;  %v1663_v28 = vld [vmem:[%s8528_s21 + $0x27d0] sm:$0xff]  ;;  %v1665_v30 = vld [vmem:[%s8528_s21 + $0x27e0] sm:$0xff]  ;;  %v1762_v31 = vld [vmem:[%s8528_s21 + $0x2ae8] sm:$0xff] }
  0xd1   : > { %v1567_v29 = vld [vmem:[%s8528_s21 + $0x24d0] sm:$0xff]  ;;  %v1860_v32 = vld [vmem:[%s8528_s21 + $0x2df8] sm:$0xff]  ;;  %v1862_v34 = vld [vmem:[%s8528_s21 + $0x2e08] sm:$0xff]  ;;  %v6320_v35 = vpack.c.bf16 %v1663_v28, %v1565_v27 }
  0xd2   : > { %6305 = vmatpush1.bf16.xpose.msra.mxu0 %v6304_v44  ;;  %v1764_v33 = vld [vmem:[%s8528_s21 + $0x2af8] sm:$0xff]  ;;  %v6352_v36 = vpack.c.bf16 %v1665_v30, %v1567_v29  ;;  %v6322_v37 = vpack.c.bf16 %v1860_v32, %v1762_v31  ;;  %v1761_v39 = vld [vmem:[%s8528_s21 + $0x2ae0] sm:$0xff]  ;;  %v1859_v40 = vld [vmem:[%s8528_s21 + $0x2df0] sm:$0xff] }
  0xd3   : > { %6337 = vmatpush1.bf16.xpose.msra.mxu1 %v6336_v45  ;;  %6307 = vmatprep.subr.bf16.mxu0 %v6306_v46  ;;  %v6354_v38 = vpack.c.bf16 %v1862_v34, %v1764_v33  ;;  %v1763_v41 = vld [vmem:[%s8528_s21 + $0x2af0] sm:$0xff]  ;;  %v1861_v42 = vld [vmem:[%s8528_s21 + $0x2e00] sm:$0xff]  ;;  %v394_v43 = vld [vmem:[%s8528_s21 + $0x28] sm:$0xff] }
  0xd4   : > { %6339 = vmatprep.subr.bf16.mxu1 %v6338_v47  ;;  %v492_v44 = vld [vmem:[%s8528_s21 + $0x338] sm:$0xff]  ;;  %v494_v46 = vld [vmem:[%s8528_s21 + $0x348] sm:$0xff]  ;;  %v6324_v47 = vpack.c.bf16 %v1859_v40, %v1761_v39  ;;  %v6356_v50 = vpack.c.bf16 %v1861_v42, %v1763_v41  ;;  %v393_v54 = vld [vmem:[%s8528_s21 + $0x20] sm:$0xff] }
  0xd5   : > { %v396_v45 = vld [vmem:[%s8528_s21 + $0x38] sm:$0xff]  ;;  %v364_v49 = vld [vmem:[%s8580_s27 + $0x8] sm:$0xff]  ;;  %v6358_v51 = vpack.c.bf16 %v492_v44, %v394_v43  ;;  %v491_v55 = vld [vmem:[%s8528_s21 + $0x330] sm:$0xff] }
  0xd6   : > { %v6390_v52 = vpack.c.bf16 %v494_v46, %v396_v45  ;;  %v1999_v53 = vcombine.high %v364_v49, %v364_v49  ;;  %v395_v57 = vld [vmem:[%s8528_s21 + $0x30] sm:$0xff]  ;;  %v493_v58 = vld [vmem:[%s8528_s21 + $0x340] sm:$0xff]  ;;  %v590_v59 = vld [vmem:[%s8528_s21 + $0x648] sm:$0xff]  ;;  %v8643_v61 = vrot.slane %v364_v49, %v8582_v48  ;;  %v6360_v2 = vpack.c.bf16 %v491_v55, %v393_v54 }
  0xd7   : > { %v6392_v3 = vpack.c.bf16 %v493_v58, %v395_v57  ;;  %v589_v8 = vld [vmem:[%s8528_s21 + $0x640] sm:$0xff]  ;;  %v687_v9 = vld [vmem:[%s8528_s21 + $0x950] sm:$0xff]  ;;  %v982_v22 = vld [vmem:[%s8528_s21 + $0x1288] sm:$0xff] }
  0xd8   : > { %v2014_v6 = vcombine.high %v8643_v61, %v8643_v61  ;;  %v591_v10 = vld [vmem:[%s8528_s21 + $0x650] sm:$0xff]  ;;  %v785_v18 = vld [vmem:[%s8528_s21 + $0xc60] sm:$0xff]  ;;  %v1178_v34 = vld [vmem:[%s8528_s21 + $0x18a8] sm:$0xff] }
  0xd9   : > { %v883_v19 = vld [vmem:[%s8528_s21 + $0xf70] sm:$0xff]  ;;  %v885_v21 = vld [vmem:[%s8528_s21 + $0xf80] sm:$0xff]  ;;  %v1374_v46 = vld [vmem:[%s8528_s21 + $0x1ec8] sm:$0xff] }
  0xda   : > { %6309 = vmatpush1.bf16.xpose.msra.mxu0 %v6308_v60  ;;  %v688_v60 = vld [vmem:[%s8528_s21 + $0x958] sm:$0xff]  ;;  %v787_v20 = vld [vmem:[%s8528_s21 + $0xc70] sm:$0xff]  ;;  %v981_v30 = vld [vmem:[%s8528_s21 + $0x1280] sm:$0xff] }
  0xdb   : > { %6341 = vmatpush1.bf16.xpose.msra.mxu1 %v6340_v63  ;;  %6311 = vmatprep.subr.bf16.mxu0 %v6310_v0  ;;  %v592_v63 = vld [vmem:[%s8528_s21 + $0x658] sm:$0xff]  ;;  %v690_v0 = vld [vmem:[%s8528_s21 + $0x968] sm:$0xff]  ;;  %v6362_v4 = vpack.c.bf16 %v688_v60, %v590_v59  ;;  %v6400_v27 = vpack.c.bf16 %v885_v21, %v787_v20  ;;  %v1079_v31 = vld [vmem:[%s8528_s21 + $0x1590] sm:$0xff] }
  0xdc   : > { %6343 = vmatprep.subr.bf16.mxu1 %v6342_v1  ;;  %v8648_v1 = vrot.slane %v1999_v53, %v8582_v48  ;;  %v6394_v5 = vpack.c.bf16 %v690_v0, %v592_v63  ;;  %v983_v32 = vld [vmem:[%s8528_s21 + $0x1290] sm:$0xff]  ;;  %v1081_v33 = vld [vmem:[%s8528_s21 + $0x15a0] sm:$0xff]  ;;  %v1376_v49 = vld [vmem:[%s8528_s21 + $0x1ed8] sm:$0xff] }
  0xdd   : > { %v6404_v39 = vpack.c.bf16 %v1081_v33, %v983_v32  ;;  %v1177_v42 = vld [vmem:[%s8528_s21 + $0x18a0] sm:$0xff]  ;;  %v1275_v43 = vld [vmem:[%s8528_s21 + $0x1bb0] sm:$0xff]  ;;  %v1570_v60 = vld [vmem:[%s8528_s21 + $0x24e8] sm:$0xff] }
  0xde   : > { %v2015_v7 = vcombine.high %v8648_v1, %v8648_v1  ;;  %v1179_v44 = vld [vmem:[%s8528_s21 + $0x18b0] sm:$0xff]  ;;  %v1277_v45 = vld [vmem:[%s8528_s21 + $0x1bc0] sm:$0xff]  ;;  %v1668_v63 = vld [vmem:[%s8528_s21 + $0x27f8] sm:$0xff] }
  0xdf   : > { %v1373_v55 = vld [vmem:[%s8528_s21 + $0x1ec0] sm:$0xff]  ;;  %v1471_v57 = vld [vmem:[%s8528_s21 + $0x21d0] sm:$0xff]  ;;  %v1572_v0 = vld [vmem:[%s8528_s21 + $0x24f8] sm:$0xff] }
  0xe0   : > { %v1375_v58 = vld [vmem:[%s8528_s21 + $0x1ed0] sm:$0xff]  ;;  %v1473_v59 = vld [vmem:[%s8528_s21 + $0x21e0] sm:$0xff]  ;;  %v398_v21 = vld [vmem:[%s8528_s21 + $0x48] sm:$0xff] }
  0xe1   : > { %v1865_v20 = vld [vmem:[%s8528_s21 + $0x2e20] sm:$0xff]  ;;  %v495_v32 = vld [vmem:[%s8528_s21 + $0x350] sm:$0xff]  ;;  %vm7876_vm2 = vmpackc.low (!%p6244_p4), %vm6037_vm1, %vm6037_vm1 }
  0xe2   : > { %6313 = vmatpush1.bf16.xpose.msra.mxu0 %v6312_v11  ;;  %v689_v11 = vld [vmem:[%s8528_s21 + $0x960] sm:$0xff]  ;;  %v399_v33 = vld [vmem:[%s8528_s21 + $0x50] sm:$0xff] }
  0xe3   : > { %6345 = vmatpush1.bf16.xpose.msra.mxu1 %v6344_v12  ;;  %6315 = vmatprep.subr.bf16.mxu0 %v6314_v13  ;;  %v786_v12 = vld [vmem:[%s8528_s21 + $0xc68] sm:$0xff]  ;;  %v884_v13 = vld [vmem:[%s8528_s21 + $0xf78] sm:$0xff]  ;;  %v6396_v15 = vpack.c.bf16 %v689_v11, %v591_v10  ;;  %v1669_v10 = vld [vmem:[%s8528_s21 + $0x2800] sm:$0xff] }
  0xe4   : > { %6347 = vmatprep.subr.bf16.mxu1 %v6346_v14  ;;  %v886_v14 = vld [vmem:[%s8528_s21 + $0xf88] sm:$0xff]  ;;  %v6366_v16 = vpack.c.bf16 %v884_v13, %v786_v12  ;;  %v1864_v12 = vld [vmem:[%s8528_s21 + $0x2e18] sm:$0xff] }
  0xe5   : > { %v1766_v11 = vld [vmem:[%s8528_s21 + $0x2b08] sm:$0xff]  ;;  %v1768_v13 = vld [vmem:[%s8528_s21 + $0x2b18] sm:$0xff] }
  0xea   : > { %6317 = vmatpush1.bf16.xpose.msra.mxu0 %v6316_v23  ;;  %v1080_v23 = vld [vmem:[%s8528_s21 + $0x1598] sm:$0xff] }
  0xeb   : > { %6349 = vmatpush1.bf16.xpose.msra.mxu1 %v6348_v24  ;;  %6319 = vmatprep.subr.bf16.mxu0 %v6318_v25  ;;  %v984_v24 = vld [vmem:[%s8528_s21 + $0x1298] sm:$0xff]  ;;  %v1082_v25 = vld [vmem:[%s8528_s21 + $0x15a8] sm:$0xff]  ;;  %v6370_v28 = vpack.c.bf16 %v1080_v23, %v982_v22 }
  0xec   : > { %6351 = vmatprep.subr.bf16.mxu1 %v6350_v26  ;;  %v6368_v26 = vpack.c.bf16 %v883_v19, %v785_v18  ;;  %v6402_v29 = vpack.c.bf16 %v1082_v25, %v984_v24  ;;  %v1863_v18 = vld [vmem:[%s8528_s21 + $0x2e10] sm:$0xff]  ;;  %v496_v22 = vld [vmem:[%s8528_s21 + $0x358] sm:$0xff]  ;;  %v498_v24 = vld [vmem:[%s8528_s21 + $0x368] sm:$0xff] }
  0xed   : > { %v1767_v19 = vld [vmem:[%s8528_s21 + $0x2b10] sm:$0xff]  ;;  %v400_v23 = vld [vmem:[%s8528_s21 + $0x58] sm:$0xff] }
  0xf2   : > { %6321 = vmatpush1.bf16.xpose.msra.mxu0 %v6320_v35  ;;  %v1276_v35 = vld [vmem:[%s8528_s21 + $0x1bb8] sm:$0xff] }
  0xf3   : > { %6353 = vmatpush1.bf16.xpose.msra.mxu1 %v6352_v36  ;;  %6323 = vmatprep.subr.bf16.mxu0 %v6322_v37  ;;  %v1180_v36 = vld [vmem:[%s8528_s21 + $0x18b8] sm:$0xff]  ;;  %v1278_v37 = vld [vmem:[%s8528_s21 + $0x1bc8] sm:$0xff]  ;;  %v6374_v40 = vpack.c.bf16 %v1276_v35, %v1178_v34  ;;  %v497_v34 = vld [vmem:[%s8528_s21 + $0x360] sm:$0xff] }
  0xf4   : > { %6355 = vmatprep.subr.bf16.mxu1 %v6354_v38  ;;  %v6372_v38 = vpack.c.bf16 %v1079_v31, %v981_v30  ;;  %v6406_v41 = vpack.c.bf16 %v1278_v37, %v1180_v36  ;;  %v397_v31 = vld [vmem:[%s8528_s21 + $0x40] sm:$0xff]  ;;  %v594_v35 = vld [vmem:[%s8528_s21 + $0x668] sm:$0xff]  ;;  %v692_v36 = vld [vmem:[%s8528_s21 + $0x978] sm:$0xff] }
  0xfa   : > { %6325 = vmatpush1.bf16.xpose.msra.mxu0 %v6324_v47  ;;  %v1472_v47 = vld [vmem:[%s8528_s21 + $0x21d8] sm:$0xff] }
  0xfb   : > { %6357 = vmatpush1.bf16.xpose.msra.mxu1 %v6356_v50  ;;  %6359 = vmatprep.subr.bf16.mxu0 %v6358_v51  ;;  %v1474_v50 = vld [vmem:[%s8528_s21 + $0x21e8] sm:$0xff]  ;;  %v6376_v51 = vpack.c.bf16 %v1275_v43, %v1177_v42  ;;  %v6378_v53 = vpack.c.bf16 %v1472_v47, %v1374_v46  ;;  %v6456_v42 = vpack.c.bf16 %v497_v34, %v399_v33  ;;  %v593_v47 = vld [vmem:[%s8528_s21 + $0x660] sm:$0xff]  ;;  %v1475_v33 = vld [vmem:[%s8528_s21 + $0x21f0] sm:$0xff] }
  0xfc   : > { %6391 = vmatprep.subr.bf16.mxu1 %v6390_v52  ;;  %v6408_v52 = vpack.c.bf16 %v1277_v45, %v1179_v44  ;;  %v6410_v54 = vpack.c.bf16 %v1474_v50, %v1376_v49  ;;  %v6426_v43 = vpack.c.bf16 %v692_v36, %v594_v35  ;;  %v691_v49 = vld [vmem:[%s8528_s21 + $0x970] sm:$0xff]  ;;  %v1477_v35 = vld [vmem:[%s8528_s21 + $0x2200] sm:$0xff]  ;;  %v1574_v36 = vld [vmem:[%s8528_s21 + $0x2508] sm:$0xff] }
  0xfd   : > { %v595_v50 = vld [vmem:[%s8528_s21 + $0x670] sm:$0xff] }
  0xfe   : > { %v1379_v34 = vld [vmem:[%s8528_s21 + $0x1ef0] sm:$0xff] }
 0x101   : > { %2561 = vmatmul.mubr.f32.vlgmr.msra.gmra.mrb[0].mxu0 %v8592_v56  ;;  %v788_v56 = vld [vmem:[%s8528_s21 + $0xc78] sm:$0xff] }
 0x102   : > { %2631 = vmatmul.mubr.f32.vlgmr.msra.gmra.mrb[0].mxu1 %v8599_v62  ;;  %6361 = vmatpush1.bf16.xpose.msra.mxu0 %v6360_v2  ;;  %v6364_v62 = vpack.c.bf16 %v687_v9, %v589_v8  ;;  %v6398_v17 = vpack.c.bf16 %v886_v14, %v788_v56  ;;  %v1670_v2 = vld [vmem:[%s8528_s21 + $0x2808] sm:$0xff]  ;;  %v1667_v8 = vld [vmem:[%s8528_s21 + $0x27f0] sm:$0xff] }
 0x103   : > { %6393 = vmatpush1.bf16.xpose.msra.mxu1 %v6392_v3  ;;  %6363 = vmatprep.subr.bf16.mxu0 %v6362_v4  ;;  %v6380_v3 = vpack.c.bf16 %v1471_v57, %v1373_v55  ;;  %v6412_v4 = vpack.c.bf16 %v1473_v59, %v1375_v58  ;;  %v1571_v9 = vld [vmem:[%s8528_s21 + $0x24f0] sm:$0xff]  ;;  %v1866_v56 = vld [vmem:[%s8528_s21 + $0x2e28] sm:$0xff]  ;;  %v789_v59 = vld [vmem:[%s8528_s21 + $0xc80] sm:$0xff] }
 0x104   : > { %6395 = vmatprep.subr.bf16.mxu1 %v6394_v5  ;;  %2700 = vmatprep.mubr.f32.mxu0 %v2014_v6  ;;  %v6382_v5 = vpack.c.bf16 %v1668_v63, %v1570_v60  ;;  %v6414_v6 = vpack.c.bf16 %v1670_v2, %v1572_v0  ;;  %v887_v60 = vld [vmem:[%s8528_s21 + $0xf90] sm:$0xff]  ;;  %v889_v0 = vld [vmem:[%s8528_s21 + $0xfa0] sm:$0xff]  ;;  %v986_v2 = vld [vmem:[%s8528_s21 + $0x12a8] sm:$0xff] }
 0x105   : > { %2770 = vmatprep.mubr.f32.mxu1 %v2015_v7  ;;  %v1569_v7 = vld [vmem:[%s8528_s21 + $0x24e0] sm:$0xff]  ;;  %v791_v63 = vld [vmem:[%s8528_s21 + $0xc90] sm:$0xff] }
 0x106   : > { %v6384_v14 = vpack.c.bf16 %v1667_v8, %v1569_v7  ;;  %v6464_v7 = vpack.c.bf16 %v889_v0, %v791_v63  ;;  %v1869_v63 = vld [vmem:[%s8528_s21 + $0x2e40] sm:$0xff]  ;;  %v402_v0 = vld [vmem:[%s8528_s21 + $0x68] sm:$0xff] }
 0x10a   : > { %6365 = vmatpush1.bf16.xpose.msra.mxu0 %v6364_v62  ;;  %v6416_v62 = vpack.c.bf16 %v1669_v10, %v1571_v9  ;;  %v985_v10 = vld [vmem:[%s8528_s21 + $0x12a0] sm:$0xff] }
 0x10b   : > { %6397 = vmatpush1.bf16.xpose.msra.mxu1 %v6396_v15  ;;  %6367 = vmatprep.subr.bf16.mxu0 %v6366_v16  ;;  %v6386_v15 = vpack.c.bf16 %v1864_v12, %v1766_v11  ;;  %v6418_v16 = vpack.c.bf16 %v1866_v56, %v1768_v13  ;;  %v1083_v11 = vld [vmem:[%s8528_s21 + $0x15b0] sm:$0xff]  ;;  %v1085_v13 = vld [vmem:[%s8528_s21 + $0x15c0] sm:$0xff]  ;;  %v1182_v56 = vld [vmem:[%s8528_s21 + $0x18c8] sm:$0xff] }
 0x10c   : > { %6399 = vmatprep.subr.bf16.mxu1 %v6398_v17  ;;  %v1765_v17 = vld [vmem:[%s8528_s21 + $0x2b00] sm:$0xff]  ;;  %v987_v12 = vld [vmem:[%s8528_s21 + $0x12b0] sm:$0xff] }
 0x10d   : > { %v6388_v25 = vpack.c.bf16 %v1863_v18, %v1765_v17  ;;  %v6468_v17 = vpack.c.bf16 %v1085_v13, %v987_v12  ;;  %v499_v12 = vld [vmem:[%s8528_s21 + $0x370] sm:$0xff] }
 0x10e   : > { %v403_v13 = vld [vmem:[%s8528_s21 + $0x70] sm:$0xff] }
 0x112   : > { %6369 = vmatpush1.bf16.xpose.msra.mxu0 %v6368_v26  ;;  %v365_v26 = vld [vmem:[%s8580_s27 + $0x10] sm:$0xff] }
 0x113   : > { %6401 = vmatpush1.bf16.xpose.msra.mxu1 %v6400_v27  ;;  %6371 = vmatprep.subr.bf16.mxu0 %v6370_v28  ;;  %v6420_v27 = vpack.c.bf16 %v1865_v20, %v1767_v19  ;;  %v6422_v28 = vpack.c.bf16 %v496_v22, %v398_v21  ;;  %v2016_v30 = vcombine.high %v365_v26, %v365_v26  ;;  %v1181_v20 = vld [vmem:[%s8528_s21 + $0x18c0] sm:$0xff]  ;;  %v1279_v21 = vld [vmem:[%s8528_s21 + $0x1bd0] sm:$0xff] }
 0x114   : > { %6403 = vmatprep.subr.bf16.mxu1 %v6402_v29  ;;  %v6454_v29 = vpack.c.bf16 %v498_v24, %v400_v23  ;;  %v8720_v37 = vrot.slane %v365_v26, %v8582_v48  ;;  %v1183_v22 = vld [vmem:[%s8528_s21 + $0x18d0] sm:$0xff]  ;;  %v1281_v23 = vld [vmem:[%s8528_s21 + $0x1be0] sm:$0xff]  ;;  %v1378_v24 = vld [vmem:[%s8528_s21 + $0x1ee8] sm:$0xff] }
 0x115   : > { %v1380_v26 = vld [vmem:[%s8528_s21 + $0x1ef8] sm:$0xff] }
 0x116   : > { %v2031_v45 = vcombine.high %v8720_v37, %v8720_v37 }
 0x11a   : > { %6373 = vmatpush1.bf16.xpose.msra.mxu0 %v6372_v38  ;;  %v596_v38 = vld [vmem:[%s8528_s21 + $0x678] sm:$0xff] }
 0x11b   : > { %6405 = vmatpush1.bf16.xpose.msra.mxu1 %v6404_v39  ;;  %6375 = vmatprep.subr.bf16.mxu0 %v6374_v40  ;;  %v694_v39 = vld [vmem:[%s8528_s21 + $0x988] sm:$0xff]  ;;  %v8725_v40 = vrot.slane %v2016_v30, %v8582_v48 }
 0x11c   : > { %6407 = vmatprep.subr.bf16.mxu1 %v6406_v41  ;;  %v6424_v41 = vpack.c.bf16 %v495_v32, %v397_v31  ;;  %v6458_v44 = vpack.c.bf16 %v694_v39, %v596_v38  ;;  %v1377_v32 = vld [vmem:[%s8528_s21 + $0x1ee0] sm:$0xff]  ;;  %v1672_v38 = vld [vmem:[%s8528_s21 + $0x2818] sm:$0xff] }
 0x11d   : > { %v2032_v46 = vcombine.high %v8725_v40, %v8725_v40  ;;  %v1576_v39 = vld [vmem:[%s8528_s21 + $0x2518] sm:$0xff] }
 0x122   : > { %6377 = vmatpush1.bf16.xpose.msra.mxu0 %v6376_v51  ;;  %v693_v51 = vld [vmem:[%s8528_s21 + $0x980] sm:$0xff] }
 0x123   : > { %6409 = vmatpush1.bf16.xpose.msra.mxu1 %v6408_v52  ;;  %6379 = vmatprep.subr.bf16.mxu0 %v6378_v53  ;;  %v790_v52 = vld [vmem:[%s8528_s21 + $0xc88] sm:$0xff]  ;;  %v888_v53 = vld [vmem:[%s8528_s21 + $0xf98] sm:$0xff]  ;;  %v6460_v55 = vpack.c.bf16 %v693_v51, %v595_v50  ;;  %v1673_v50 = vld [vmem:[%s8528_s21 + $0x2820] sm:$0xff] }
 0x124   : > { %6411 = vmatprep.subr.bf16.mxu1 %v6410_v54  ;;  %v890_v54 = vld [vmem:[%s8528_s21 + $0xfa8] sm:$0xff]  ;;  %v6430_v57 = vpack.c.bf16 %v888_v53, %v790_v52  ;;  %v1868_v52 = vld [vmem:[%s8528_s21 + $0x2e38] sm:$0xff] }
 0x125   : > { %v1770_v51 = vld [vmem:[%s8528_s21 + $0x2b28] sm:$0xff]  ;;  %v1772_v53 = vld [vmem:[%s8528_s21 + $0x2b38] sm:$0xff] }
 0x12a   : > { %6381 = vmatpush1.bf16.xpose.msra.mxu0 %v6380_v3  ;;  %v1084_v3 = vld [vmem:[%s8528_s21 + $0x15b8] sm:$0xff] }
 0x12b   : > { %6413 = vmatpush1.bf16.xpose.msra.mxu1 %v6412_v4  ;;  %6383 = vmatprep.subr.bf16.mxu0 %v6382_v5  ;;  %v988_v4 = vld [vmem:[%s8528_s21 + $0x12b8] sm:$0xff]  ;;  %v1086_v5 = vld [vmem:[%s8528_s21 + $0x15c8] sm:$0xff]  ;;  %v6434_v8 = vpack.c.bf16 %v1084_v3, %v986_v2 }
 0x12c   : > { %6415 = vmatprep.subr.bf16.mxu1 %v6414_v6  ;;  %v6432_v6 = vpack.c.bf16 %v887_v60, %v789_v59  ;;  %v6466_v9 = vpack.c.bf16 %v1086_v5, %v988_v4  ;;  %v1867_v59 = vld [vmem:[%s8528_s21 + $0x2e30] sm:$0xff]  ;;  %v500_v2 = vld [vmem:[%s8528_s21 + $0x378] sm:$0xff]  ;;  %v502_v4 = vld [vmem:[%s8528_s21 + $0x388] sm:$0xff] }
 0x12d   : > { %v1771_v60 = vld [vmem:[%s8528_s21 + $0x2b30] sm:$0xff]  ;;  %v404_v3 = vld [vmem:[%s8528_s21 + $0x78] sm:$0xff] }
 0x132   : > { %6385 = vmatpush1.bf16.xpose.msra.mxu0 %v6384_v14  ;;  %v1280_v14 = vld [vmem:[%s8528_s21 + $0x1bd8] sm:$0xff] }
 0x133   : > { %6417 = vmatpush1.bf16.xpose.msra.mxu1 %v6416_v62  ;;  %6387 = vmatprep.subr.bf16.mxu0 %v6386_v15  ;;  %v1184_v62 = vld [vmem:[%s8528_s21 + $0x18d8] sm:$0xff]  ;;  %v1282_v15 = vld [vmem:[%s8528_s21 + $0x1be8] sm:$0xff]  ;;  %v6438_v18 = vpack.c.bf16 %v1280_v14, %v1182_v56  ;;  %v501_v56 = vld [vmem:[%s8528_s21 + $0x380] sm:$0xff] }
 0x134   : > { %6419 = vmatprep.subr.bf16.mxu1 %v6418_v16  ;;  %v6436_v16 = vpack.c.bf16 %v1083_v11, %v985_v10  ;;  %v6470_v19 = vpack.c.bf16 %v1282_v15, %v1184_v62  ;;  %v401_v11 = vld [vmem:[%s8528_s21 + $0x60] sm:$0xff]  ;;  %v598_v14 = vld [vmem:[%s8528_s21 + $0x688] sm:$0xff]  ;;  %v696_v62 = vld [vmem:[%s8528_s21 + $0x998] sm:$0xff] }
 0x13a   : > { %6389 = vmatpush1.bf16.xpose.msra.mxu0 %v6388_v25  ;;  %v1476_v25 = vld [vmem:[%s8528_s21 + $0x21f8] sm:$0xff] }
 0x13b   : > { %6421 = vmatpush1.bf16.xpose.msra.mxu1 %v6420_v27  ;;  %6423 = vmatprep.subr.bf16.mxu0 %v6422_v28  ;;  %v1478_v27 = vld [vmem:[%s8528_s21 + $0x2208] sm:$0xff]  ;;  %v6440_v28 = vpack.c.bf16 %v1279_v21, %v1181_v20  ;;  %v6442_v30 = vpack.c.bf16 %v1476_v25, %v1378_v24  ;;  %v6520_v20 = vpack.c.bf16 %v501_v56, %v403_v13  ;;  %v597_v25 = vld [vmem:[%s8528_s21 + $0x680] sm:$0xff]  ;;  %v1479_v13 = vld [vmem:[%s8528_s21 + $0x2210] sm:$0xff] }
 0x13c   : > { %6455 = vmatprep.subr.bf16.mxu1 %v6454_v29  ;;  %v6472_v29 = vpack.c.bf16 %v1281_v23, %v1183_v22  ;;  %v6474_v31 = vpack.c.bf16 %v1478_v27, %v1380_v26  ;;  %v6490_v21 = vpack.c.bf16 %v696_v62, %v598_v14  ;;  %v695_v26 = vld [vmem:[%s8528_s21 + $0x990] sm:$0xff]  ;;  %v1481_v14 = vld [vmem:[%s8528_s21 + $0x2220] sm:$0xff]  ;;  %v1578_v62 = vld [vmem:[%s8528_s21 + $0x2528] sm:$0xff] }
 0x13d   : > { %v599_v27 = vld [vmem:[%s8528_s21 + $0x690] sm:$0xff] }
 0x13e   : > { %v1383_v56 = vld [vmem:[%s8528_s21 + $0x1f10] sm:$0xff] }
 0x141   : > { %2701 = vmatmul.mubr.f32.vlgmr.msra.gmra.mrb[2].mxu0 %v8643_v61  ;;  %v792_v61 = vld [vmem:[%s8528_s21 + $0xc98] sm:$0xff] }
 0x142   : > { %6425 = vmatpush1.bf16.xpose.msra.mxu0 %v6424_v41  ;;  %2771 = vmatmul.mubr.f32.vlgmr.msra.gmra.mrb[2].mxu1 %v8648_v1  ;;  %v6428_v1 = vpack.c.bf16 %v691_v49, %v593_v47  ;;  %v6462_v58 = vpack.c.bf16 %v890_v54, %v792_v61  ;;  %v1674_v41 = vld [vmem:[%s8528_s21 + $0x2828] sm:$0xff]  ;;  %v1671_v47 = vld [vmem:[%s8528_s21 + $0x2810] sm:$0xff] }
 0x143   : > { %6457 = vmatpush1.bf16.xpose.msra.mxu1 %v6456_v42  ;;  %6427 = vmatprep.subr.bf16.mxu0 %v6426_v43  ;;  %v6444_v42 = vpack.c.bf16 %v1475_v33, %v1377_v32  ;;  %v6476_v43 = vpack.c.bf16 %v1477_v35, %v1379_v34  ;;  %v1575_v49 = vld [vmem:[%s8528_s21 + $0x2510] sm:$0xff]  ;;  %v1870_v61 = vld [vmem:[%s8528_s21 + $0x2e48] sm:$0xff]  ;;  %v793_v35 = vld [vmem:[%s8528_s21 + $0xca0] sm:$0xff] }
 0x144   : > { %6459 = vmatprep.subr.bf16.mxu1 %v6458_v44  ;;  %2840 = vmatprep.mubr.f32.mxu0 %v2031_v45  ;;  %v6446_v44 = vpack.c.bf16 %v1672_v38, %v1574_v36  ;;  %v6478_v45 = vpack.c.bf16 %v1674_v41, %v1576_v39  ;;  %v891_v36 = vld [vmem:[%s8528_s21 + $0xfb0] sm:$0xff]  ;;  %v893_v39 = vld [vmem:[%s8528_s21 + $0xfc0] sm:$0xff]  ;;  %v990_v41 = vld [vmem:[%s8528_s21 + $0x12c8] sm:$0xff] }
 0x145   : > { %2910 = vmatprep.mubr.f32.mxu1 %v2032_v46  ;;  %v1573_v46 = vld [vmem:[%s8528_s21 + $0x2500] sm:$0xff]  ;;  %v795_v38 = vld [vmem:[%s8528_s21 + $0xcb0] sm:$0xff] }
 0x146   : > { %v6448_v54 = vpack.c.bf16 %v1671_v47, %v1573_v46  ;;  %v6528_v46 = vpack.c.bf16 %v893_v39, %v795_v38  ;;  %v1873_v38 = vld [vmem:[%s8528_s21 + $0x2e60] sm:$0xff]  ;;  %v406_v39 = vld [vmem:[%s8528_s21 + $0x88] sm:$0xff] }
 0x14a   : > { %6429 = vmatpush1.bf16.xpose.msra.mxu0 %v6428_v1  ;;  %v6480_v1 = vpack.c.bf16 %v1673_v50, %v1575_v49  ;;  %v989_v50 = vld [vmem:[%s8528_s21 + $0x12c0] sm:$0xff] }
 0x14b   : > { %6461 = vmatpush1.bf16.xpose.msra.mxu1 %v6460_v55  ;;  %6431 = vmatprep.subr.bf16.mxu0 %v6430_v57  ;;  %v6450_v55 = vpack.c.bf16 %v1868_v52, %v1770_v51  ;;  %v6482_v57 = vpack.c.bf16 %v1870_v61, %v1772_v53  ;;  %v1087_v51 = vld [vmem:[%s8528_s21 + $0x15d0] sm:$0xff]  ;;  %v1089_v53 = vld [vmem:[%s8528_s21 + $0x15e0] sm:$0xff]  ;;  %v1186_v61 = vld [vmem:[%s8528_s21 + $0x18e8] sm:$0xff] }
 0x14c   : > { %6463 = vmatprep.subr.bf16.mxu1 %v6462_v58  ;;  %v1769_v58 = vld [vmem:[%s8528_s21 + $0x2b20] sm:$0xff]  ;;  %v991_v52 = vld [vmem:[%s8528_s21 + $0x12d0] sm:$0xff] }
 0x14d   : > { %v6452_v5 = vpack.c.bf16 %v1867_v59, %v1769_v58  ;;  %v6532_v58 = vpack.c.bf16 %v1089_v53, %v991_v52  ;;  %v503_v52 = vld [vmem:[%s8528_s21 + $0x390] sm:$0xff] }
 0x14e   : > { %v407_v53 = vld [vmem:[%s8528_s21 + $0x90] sm:$0xff] }
 0x152   : > { %6433 = vmatpush1.bf16.xpose.msra.mxu0 %v6432_v6  ;;  %v366_v6 = vld [vmem:[%s8580_s27 + $0x18] sm:$0xff] }
 0x153   : > { %6465 = vmatpush1.bf16.xpose.msra.mxu1 %v6464_v7  ;;  %6435 = vmatprep.subr.bf16.mxu0 %v6434_v8  ;;  %v6484_v7 = vpack.c.bf16 %v1869_v63, %v1771_v60  ;;  %v6486_v8 = vpack.c.bf16 %v500_v2, %v402_v0  ;;  %v2033_v10 = vcombine.high %v366_v6, %v366_v6  ;;  %v1185_v63 = vld [vmem:[%s8528_s21 + $0x18e0] sm:$0xff]  ;;  %v1283_v0 = vld [vmem:[%s8528_s21 + $0x1bf0] sm:$0xff] }
 0x154   : > { %6467 = vmatprep.subr.bf16.mxu1 %v6466_v9  ;;  %v6518_v9 = vpack.c.bf16 %v502_v4, %v404_v3  ;;  %v8797_v15 = vrot.slane %v366_v6, %v8582_v48  ;;  %v1187_v2 = vld [vmem:[%s8528_s21 + $0x18f0] sm:$0xff]  ;;  %v1285_v3 = vld [vmem:[%s8528_s21 + $0x1c00] sm:$0xff]  ;;  %v1382_v4 = vld [vmem:[%s8528_s21 + $0x1f08] sm:$0xff] }
 0x155   : > { %v1384_v6 = vld [vmem:[%s8528_s21 + $0x1f18] sm:$0xff] }
 0x156   : > { %v2048_v23 = vcombine.high %v8797_v15, %v8797_v15 }
 0x15a   : > { %6437 = vmatpush1.bf16.xpose.msra.mxu0 %v6436_v16  ;;  %v600_v16 = vld [vmem:[%s8528_s21 + $0x698] sm:$0xff] }
 0x15b   : > { %6469 = vmatpush1.bf16.xpose.msra.mxu1 %v6468_v17  ;;  %6439 = vmatprep.subr.bf16.mxu0 %v6438_v18  ;;  %v698_v17 = vld [vmem:[%s8528_s21 + $0x9a8] sm:$0xff]  ;;  %v8802_v18 = vrot.slane %v2033_v10, %v8582_v48 }
 0x15c   : > { %6471 = vmatprep.subr.bf16.mxu1 %v6470_v19  ;;  %v6488_v19 = vpack.c.bf16 %v499_v12, %v401_v11  ;;  %v6522_v22 = vpack.c.bf16 %v698_v17, %v600_v16  ;;  %v1381_v12 = vld [vmem:[%s8528_s21 + $0x1f00] sm:$0xff]  ;;  %v1676_v16 = vld [vmem:[%s8528_s21 + $0x2838] sm:$0xff] }
 0x15d   : > { %v2049_v24 = vcombine.high %v8802_v18, %v8802_v18  ;;  %v1580_v17 = vld [vmem:[%s8528_s21 + $0x2538] sm:$0xff] }
 0x162   : > { %6441 = vmatpush1.bf16.xpose.msra.mxu0 %v6440_v28  ;;  %v697_v28 = vld [vmem:[%s8528_s21 + $0x9a0] sm:$0xff] }
 0x163   : > { %6473 = vmatpush1.bf16.xpose.msra.mxu1 %v6472_v29  ;;  %6443 = vmatprep.subr.bf16.mxu0 %v6442_v30  ;;  %v794_v29 = vld [vmem:[%s8528_s21 + $0xca8] sm:$0xff]  ;;  %v892_v30 = vld [vmem:[%s8528_s21 + $0xfb8] sm:$0xff]  ;;  %v6524_v32 = vpack.c.bf16 %v697_v28, %v599_v27  ;;  %v1677_v27 = vld [vmem:[%s8528_s21 + $0x2840] sm:$0xff] }
 0x164   : > { %6475 = vmatprep.subr.bf16.mxu1 %v6474_v31  ;;  %v894_v31 = vld [vmem:[%s8528_s21 + $0xfc8] sm:$0xff]  ;;  %v6494_v33 = vpack.c.bf16 %v892_v30, %v794_v29  ;;  %v1872_v29 = vld [vmem:[%s8528_s21 + $0x2e58] sm:$0xff] }
 0x165   : > { %v1774_v28 = vld [vmem:[%s8528_s21 + $0x2b48] sm:$0xff]  ;;  %v1776_v30 = vld [vmem:[%s8528_s21 + $0x2b58] sm:$0xff] }
 0x16a   : > { %6445 = vmatpush1.bf16.xpose.msra.mxu0 %v6444_v42  ;;  %v1088_v42 = vld [vmem:[%s8528_s21 + $0x15d8] sm:$0xff] }
 0x16b   : > { %6477 = vmatpush1.bf16.xpose.msra.mxu1 %v6476_v43  ;;  %6447 = vmatprep.subr.bf16.mxu0 %v6446_v44  ;;  %v992_v43 = vld [vmem:[%s8528_s21 + $0x12d8] sm:$0xff]  ;;  %v1090_v44 = vld [vmem:[%s8528_s21 + $0x15e8] sm:$0xff]  ;;  %v6498_v47 = vpack.c.bf16 %v1088_v42, %v990_v41 }
 0x16c   : > { %6479 = vmatprep.subr.bf16.mxu1 %v6478_v45  ;;  %v6496_v45 = vpack.c.bf16 %v891_v36, %v793_v35  ;;  %v6530_v49 = vpack.c.bf16 %v1090_v44, %v992_v43  ;;  %v1871_v35 = vld [vmem:[%s8528_s21 + $0x2e50] sm:$0xff]  ;;  %v504_v41 = vld [vmem:[%s8528_s21 + $0x398] sm:$0xff]  ;;  %v506_v43 = vld [vmem:[%s8528_s21 + $0x3a8] sm:$0xff] }
 0x16d   : > { %v1775_v36 = vld [vmem:[%s8528_s21 + $0x2b50] sm:$0xff]  ;;  %v408_v42 = vld [vmem:[%s8528_s21 + $0x98] sm:$0xff] }
 0x172   : > { %6449 = vmatpush1.bf16.xpose.msra.mxu0 %v6448_v54  ;;  %v1284_v54 = vld [vmem:[%s8528_s21 + $0x1bf8] sm:$0xff] }
 0x173   : > { %6481 = vmatpush1.bf16.xpose.msra.mxu1 %v6480_v1  ;;  %6451 = vmatprep.subr.bf16.mxu0 %v6450_v55  ;;  %v1188_v1 = vld [vmem:[%s8528_s21 + $0x18f8] sm:$0xff]  ;;  %v1286_v55 = vld [vmem:[%s8528_s21 + $0x1c08] sm:$0xff]  ;;  %v6502_v59 = vpack.c.bf16 %v1284_v54, %v1186_v61  ;;  %v505_v61 = vld [vmem:[%s8528_s21 + $0x3a0] sm:$0xff] }
 0x174   : > { %6483 = vmatprep.subr.bf16.mxu1 %v6482_v57  ;;  %v6500_v57 = vpack.c.bf16 %v1087_v51, %v989_v50  ;;  %v6534_v60 = vpack.c.bf16 %v1286_v55, %v1188_v1  ;;  %v405_v51 = vld [vmem:[%s8528_s21 + $0x80] sm:$0xff]  ;;  %v602_v54 = vld [vmem:[%s8528_s21 + $0x6a8] sm:$0xff]  ;;  %v700_v1 = vld [vmem:[%s8528_s21 + $0x9b8] sm:$0xff] }
 0x17a   : > { %6453 = vmatpush1.bf16.xpose.msra.mxu0 %v6452_v5  ;;  %v1480_v5 = vld [vmem:[%s8528_s21 + $0x2218] sm:$0xff] }
 0x17b   : > { %6485 = vmatpush1.bf16.xpose.msra.mxu1 %v6484_v7  ;;  %6487 = vmatprep.subr.bf16.mxu0 %v6486_v8  ;;  %v1482_v7 = vld [vmem:[%s8528_s21 + $0x2228] sm:$0xff]  ;;  %v6504_v8 = vpack.c.bf16 %v1283_v0, %v1185_v63  ;;  %v6506_v10 = vpack.c.bf16 %v1480_v5, %v1382_v4  ;;  %v6584_v63 = vpack.c.bf16 %v505_v61, %v407_v53  ;;  %v601_v5 = vld [vmem:[%s8528_s21 + $0x6a0] sm:$0xff] }
 0x17c   : > { %6519 = vmatprep.subr.bf16.mxu1 %v6518_v9  ;;  %v6536_v9 = vpack.c.bf16 %v1285_v3, %v1187_v2  ;;  %v6538_v11 = vpack.c.bf16 %v1482_v7, %v1384_v6  ;;  %v6554_v0 = vpack.c.bf16 %v700_v1, %v602_v54  ;;  %v699_v6 = vld [vmem:[%s8528_s21 + $0x9b0] sm:$0xff] }
 0x17d   : > { %v603_v7 = vld [vmem:[%s8528_s21 + $0x6b0] sm:$0xff] }
 0x181   : > { %2841 = vmatmul.mubr.f32.vlgmr.msra.gmra.mrb[4].mxu0 %v8720_v37  ;;  %v796_v37 = vld [vmem:[%s8528_s21 + $0xcb8] sm:$0xff] }
 0x182   : > { %6489 = vmatpush1.bf16.xpose.msra.mxu0 %v6488_v19  ;;  %2911 = vmatmul.mubr.f32.vlgmr.msra.gmra.mrb[4].mxu1 %v8725_v40  ;;  %v6492_v40 = vpack.c.bf16 %v695_v26, %v597_v25  ;;  %v6526_v34 = vpack.c.bf16 %v894_v31, %v796_v37  ;;  %v1678_v19 = vld [vmem:[%s8528_s21 + $0x2848] sm:$0xff]  ;;  %v1675_v25 = vld [vmem:[%s8528_s21 + $0x2830] sm:$0xff] }
 0x183   : > { %6521 = vmatpush1.bf16.xpose.msra.mxu1 %v6520_v20  ;;  %6491 = vmatprep.subr.bf16.mxu0 %v6490_v21  ;;  %v6508_v20 = vpack.c.bf16 %v1479_v13, %v1381_v12  ;;  %v6540_v21 = vpack.c.bf16 %v1481_v14, %v1383_v56  ;;  %v1579_v26 = vld [vmem:[%s8528_s21 + $0x2530] sm:$0xff]  ;;  %v1874_v37 = vld [vmem:[%s8528_s21 + $0x2e68] sm:$0xff]  ;;  %v797_v14 = vld [vmem:[%s8528_s21 + $0xcc0] sm:$0xff] }
 0x184   : > { %6523 = vmatprep.subr.bf16.mxu1 %v6522_v22  ;;  %2980 = vmatprep.mubr.f32.mxu0 %v2048_v23  ;;  %v6510_v22 = vpack.c.bf16 %v1676_v16, %v1578_v62  ;;  %v6542_v23 = vpack.c.bf16 %v1678_v19, %v1580_v17  ;;  %v895_v62 = vld [vmem:[%s8528_s21 + $0xfd0] sm:$0xff]  ;;  %v897_v17 = vld [vmem:[%s8528_s21 + $0xfe0] sm:$0xff]  ;;  %v994_v19 = vld [vmem:[%s8528_s21 + $0x12e8] sm:$0xff] }
 0x185   : > { %3050 = vmatprep.mubr.f32.mxu1 %v2049_v24  ;;  %v1577_v24 = vld [vmem:[%s8528_s21 + $0x2520] sm:$0xff]  ;;  %v799_v16 = vld [vmem:[%s8528_s21 + $0xcd0] sm:$0xff] }
 0x186   : > { %v6512_v31 = vpack.c.bf16 %v1675_v25, %v1577_v24  ;;  %v6592_v24 = vpack.c.bf16 %v897_v17, %v799_v16 }
 0x18a   : > { %6493 = vmatpush1.bf16.xpose.msra.mxu0 %v6492_v40  ;;  %v6544_v40 = vpack.c.bf16 %v1677_v27, %v1579_v26  ;;  %v993_v27 = vld [vmem:[%s8528_s21 + $0x12e0] sm:$0xff] }
 0x18b   : > { %6525 = vmatpush1.bf16.xpose.msra.mxu1 %v6524_v32  ;;  %6495 = vmatprep.subr.bf16.mxu0 %v6494_v33  ;;  %v6514_v32 = vpack.c.bf16 %v1872_v29, %v1774_v28  ;;  %v6546_v33 = vpack.c.bf16 %v1874_v37, %v1776_v30  ;;  %v1091_v28 = vld [vmem:[%s8528_s21 + $0x15f0] sm:$0xff]  ;;  %v1093_v37 = vld [vmem:[%s8528_s21 + $0x1600] sm:$0xff] }
 0x18c   : > { %6527 = vmatprep.subr.bf16.mxu1 %v6526_v34  ;;  %v1773_v34 = vld [vmem:[%s8528_s21 + $0x2b40] sm:$0xff]  ;;  %v995_v29 = vld [vmem:[%s8528_s21 + $0x12f0] sm:$0xff] }
 0x18d   : > { %v6516_v44 = vpack.c.bf16 %v1871_v35, %v1773_v34  ;;  %v1192_v34 = vld [vmem:[%s8528_s21 + $0x1918] sm:$0xff]  ;;  %v1290_v35 = vld [vmem:[%s8528_s21 + $0x1c28] sm:$0xff] }
 0x192   : > { %6497 = vmatpush1.bf16.xpose.msra.mxu0 %v6496_v45  ;;  %v367_v45 = vld [vmem:[%s8580_s27 + $0x20] sm:$0xff] }
 0x193   : > { %6529 = vmatpush1.bf16.xpose.msra.mxu1 %v6528_v46  ;;  %6499 = vmatprep.subr.bf16.mxu0 %v6498_v47  ;;  %v6548_v46 = vpack.c.bf16 %v1873_v38, %v1775_v36  ;;  %v6550_v47 = vpack.c.bf16 %v504_v41, %v406_v39  ;;  %v2050_v50 = vcombine.high %v367_v45, %v367_v45 }
 0x194   : > { %6531 = vmatprep.subr.bf16.mxu1 %v6530_v49  ;;  %v6582_v49 = vpack.c.bf16 %v506_v43, %v408_v42  ;;  %v8874_v55 = vrot.slane %v367_v45, %v8582_v48  ;;  %v6564_v38 = vpack.c.bf16 %v1091_v28, %v993_v27  ;;  %v6596_v41 = vpack.c.bf16 %v1093_v37, %v995_v29  ;;  %v1287_v45 = vld [vmem:[%s8528_s21 + $0x1c10] sm:$0xff]  ;;  %v368_v28 = vld [vmem:[%s8580_s27 + $0x28] sm:$0xff] }
 0x195   : > { %v6598_v43 = vpack.c.bf16 %v1290_v35, %v1192_v34  ;;  %v509_v34 = vld [vmem:[%s8528_s21 + $0x3c0] sm:$0xff]  ;;  %v606_v35 = vld [vmem:[%s8528_s21 + $0x6c8] sm:$0xff] }
 0x196   : > { %v2065_v3 = vcombine.high %v8874_v55, %v8874_v55 }
 0x19a   : > { %6501 = vmatpush1.bf16.xpose.msra.mxu0 %v6500_v57  ;;  %v604_v57 = vld [vmem:[%s8528_s21 + $0x6b8] sm:$0xff] }
 0x19b   : > { %6533 = vmatpush1.bf16.xpose.msra.mxu1 %v6532_v58  ;;  %6503 = vmatprep.subr.bf16.mxu0 %v6502_v59  ;;  %v702_v58 = vld [vmem:[%s8528_s21 + $0x9c8] sm:$0xff]  ;;  %v8879_v59 = vrot.slane %v2050_v50, %v8582_v48  ;;  %v1484_v50 = vld [vmem:[%s8528_s21 + $0x2238] sm:$0xff] }
 0x19c   : > { %6535 = vmatprep.subr.bf16.mxu1 %v6534_v60  ;;  %v6552_v60 = vpack.c.bf16 %v503_v52, %v405_v51  ;;  %v6586_v2 = vpack.c.bf16 %v702_v58, %v604_v57  ;;  %v1388_v51 = vld [vmem:[%s8528_s21 + $0x1f38] sm:$0xff]  ;;  %v1486_v52 = vld [vmem:[%s8528_s21 + $0x2248] sm:$0xff]  ;;  %v1385_v57 = vld [vmem:[%s8528_s21 + $0x1f20] sm:$0xff] }
 0x19d   : > { %v2066_v4 = vcombine.high %v8879_v59, %v8879_v59  ;;  %v6602_v1 = vpack.c.bf16 %v1486_v52, %v1388_v51  ;;  %v1483_v58 = vld [vmem:[%s8528_s21 + $0x2230] sm:$0xff]  ;;  %v605_v51 = vld [vmem:[%s8528_s21 + $0x6c0] sm:$0xff] }
 0x19e   : > { %v703_v52 = vld [vmem:[%s8528_s21 + $0x9d0] sm:$0xff] }
 0x1a2   : > { %6505 = vmatpush1.bf16.xpose.msra.mxu0 %v6504_v8  ;;  %v701_v8 = vld [vmem:[%s8528_s21 + $0x9c0] sm:$0xff] }
 0x1a3   : > { %6537 = vmatpush1.bf16.xpose.msra.mxu1 %v6536_v9  ;;  %6507 = vmatprep.subr.bf16.mxu0 %v6506_v10  ;;  %v798_v9 = vld [vmem:[%s8528_s21 + $0xcc8] sm:$0xff]  ;;  %v896_v10 = vld [vmem:[%s8528_s21 + $0xfd8] sm:$0xff]  ;;  %v6588_v12 = vpack.c.bf16 %v701_v8, %v603_v7 }
 0x1a4   : > { %6539 = vmatprep.subr.bf16.mxu1 %v6538_v11  ;;  %v898_v11 = vld [vmem:[%s8528_s21 + $0xfe8] sm:$0xff]  ;;  %v6558_v13 = vpack.c.bf16 %v896_v10, %v798_v9  ;;  %v1581_v9 = vld [vmem:[%s8528_s21 + $0x2540] sm:$0xff]  ;;  %v1679_v10 = vld [vmem:[%s8528_s21 + $0x2850] sm:$0xff] }
 0x1aa   : > { %6509 = vmatpush1.bf16.xpose.msra.mxu0 %v6508_v20  ;;  %v1092_v20 = vld [vmem:[%s8528_s21 + $0x15f8] sm:$0xff] }
 0x1ab   : > { %6541 = vmatpush1.bf16.xpose.msra.mxu1 %v6540_v21  ;;  %6511 = vmatprep.subr.bf16.mxu0 %v6510_v22  ;;  %v996_v21 = vld [vmem:[%s8528_s21 + $0x12f8] sm:$0xff]  ;;  %v1094_v22 = vld [vmem:[%s8528_s21 + $0x1608] sm:$0xff]  ;;  %v6562_v25 = vpack.c.bf16 %v1092_v20, %v994_v19  ;;  %v1777_v19 = vld [vmem:[%s8528_s21 + $0x2b60] sm:$0xff] }
 0x1ac   : > { %6543 = vmatprep.subr.bf16.mxu1 %v6542_v23  ;;  %v6560_v23 = vpack.c.bf16 %v895_v62, %v797_v14  ;;  %v6594_v26 = vpack.c.bf16 %v1094_v22, %v996_v21  ;;  %v6576_v14 = vpack.c.bf16 %v1679_v10, %v1581_v9  ;;  %v1875_v20 = vld [vmem:[%s8528_s21 + $0x2e70] sm:$0xff]  ;;  %v1877_v22 = vld [vmem:[%s8528_s21 + $0x2e80] sm:$0xff] }
 0x1ad   : > { %v1779_v21 = vld [vmem:[%s8528_s21 + $0x2b70] sm:$0xff]  ;;  %v6580_v27 = vpack.c.bf16 %v1875_v20, %v1777_v19 }
 0x1ae   : > { %v6612_v29 = vpack.c.bf16 %v1877_v22, %v1779_v21  ;;  %v1196_v21 = vld [vmem:[%s8528_s21 + $0x1938] sm:$0xff]  ;;  %v1294_v22 = vld [vmem:[%s8528_s21 + $0x1c48] sm:$0xff] }
 0x1b2   : > { %6513 = vmatpush1.bf16.xpose.msra.mxu0 %v6512_v31  ;;  %v1190_v31 = vld [vmem:[%s8528_s21 + $0x1908] sm:$0xff] }
 0x1b3   : > { %6545 = vmatpush1.bf16.xpose.msra.mxu1 %v6544_v40  ;;  %6515 = vmatprep.subr.bf16.mxu0 %v6514_v32  ;;  %v1288_v40 = vld [vmem:[%s8528_s21 + $0x1c18] sm:$0xff] }
 0x1b4   : > { %6547 = vmatprep.subr.bf16.mxu1 %v6546_v33  ;;  %v6566_v42 = vpack.c.bf16 %v1288_v40, %v1190_v31  ;;  %v2067_v31 = vcombine.high %v368_v28, %v368_v28  ;;  %v409_v40 = vld [vmem:[%s8528_s21 + $0xa0] sm:$0xff] }
 0x1ba   : > { %6517 = vmatpush1.bf16.xpose.msra.mxu0 %v6516_v44  ;;  %v1189_v44 = vld [vmem:[%s8528_s21 + $0x1900] sm:$0xff] }
 0x1bb   : > { %6549 = vmatpush1.bf16.xpose.msra.mxu1 %v6548_v46  ;;  %6551 = vmatprep.subr.bf16.mxu0 %v6550_v47  ;;  %v1191_v46 = vld [vmem:[%s8528_s21 + $0x1910] sm:$0xff]  ;;  %v1289_v47 = vld [vmem:[%s8528_s21 + $0x1c20] sm:$0xff]  ;;  %v6568_v53 = vpack.c.bf16 %v1287_v45, %v1189_v44 }
 0x1bc   : > { %6583 = vmatprep.subr.bf16.mxu1 %v6582_v49  ;;  %v1386_v49 = vld [vmem:[%s8528_s21 + $0x1f28] sm:$0xff]  ;;  %v6600_v61 = vpack.c.bf16 %v1289_v47, %v1191_v46 }
 0x1bd   : > { %v6570_v54 = vpack.c.bf16 %v1484_v50, %v1386_v49 }
 0x1c1   : > { %2981 = vmatmul.mubr.f32.vlgmr.msra.gmra.mrb[6].mxu0 %v8797_v15  ;;  %v800_v15 = vld [vmem:[%s8528_s21 + $0xcd8] sm:$0xff] }
 0x1c2   : > { %6553 = vmatpush1.bf16.xpose.msra.mxu0 %v6552_v60  ;;  %3051 = vmatmul.mubr.f32.vlgmr.msra.gmra.mrb[6].mxu1 %v8802_v18  ;;  %v6556_v18 = vpack.c.bf16 %v699_v6, %v601_v5  ;;  %v6590_v56 = vpack.c.bf16 %v898_v11, %v800_v15  ;;  %v1387_v60 = vld [vmem:[%s8528_s21 + $0x1f30] sm:$0xff]  ;;  %v6572_v5 = vpack.c.bf16 %v1483_v58, %v1385_v57  ;;  %v1681_v11 = vld [vmem:[%s8528_s21 + $0x2860] sm:$0xff]  ;;  %v902_v57 = vld [vmem:[%s8528_s21 + $0x1008] sm:$0xff] }
 0x1c3   : > { %6585 = vmatpush1.bf16.xpose.msra.mxu1 %v6584_v63  ;;  %6555 = vmatprep.subr.bf16.mxu0 %v6554_v0  ;;  %v1485_v63 = vld [vmem:[%s8528_s21 + $0x2240] sm:$0xff]  ;;  %v1582_v0 = vld [vmem:[%s8528_s21 + $0x2548] sm:$0xff]  ;;  %v1583_v15 = vld [vmem:[%s8528_s21 + $0x2550] sm:$0xff] }
 0x1c4   : > { %6587 = vmatprep.subr.bf16.mxu1 %v6586_v2  ;;  %3120 = vmatprep.mubr.f32.mxu0 %v2065_v3  ;;  %v1680_v2 = vld [vmem:[%s8528_s21 + $0x2858] sm:$0xff]  ;;  %v6604_v6 = vpack.c.bf16 %v1485_v63, %v1387_v60  ;;  %v6608_v62 = vpack.c.bf16 %v1681_v11, %v1583_v15 }
 0x1c5   : > { %3190 = vmatprep.mubr.f32.mxu1 %v2066_v4  ;;  %v1584_v3 = vld [vmem:[%s8528_s21 + $0x2558] sm:$0xff]  ;;  %v1682_v4 = vld [vmem:[%s8528_s21 + $0x2868] sm:$0xff]  ;;  %v6574_v7 = vpack.c.bf16 %v1680_v2, %v1582_v0  ;;  %v801_v0 = vld [vmem:[%s8528_s21 + $0xce0] sm:$0xff] }
 0x1c6   : > { %v6606_v8 = vpack.c.bf16 %v1682_v4, %v1584_v3  ;;  %v899_v2 = vld [vmem:[%s8528_s21 + $0xff0] sm:$0xff]  ;;  %v901_v4 = vld [vmem:[%s8528_s21 + $0x1000] sm:$0xff] }
 0x1c7   : > { %v803_v3 = vld [vmem:[%s8528_s21 + $0xcf0] sm:$0xff]  ;;  %v6624_v9 = vpack.c.bf16 %v899_v2, %v801_v0  ;;  %v1882_v0 = vld [vmem:[%s8528_s21 + $0x2ea8] sm:$0xff] }
 0x1c8   : > { %v6656_v10 = vpack.c.bf16 %v901_v4, %v803_v3 }
 0x1ca   : > { %6557 = vmatpush1.bf16.xpose.msra.mxu0 %v6556_v18  ;;  %v1778_v18 = vld [vmem:[%s8528_s21 + $0x2b68] sm:$0xff] }
 0x1cb   : > { %6589 = vmatpush1.bf16.xpose.msra.mxu1 %v6588_v12  ;;  %6559 = vmatprep.subr.bf16.mxu0 %v6558_v13  ;;  %v1876_v12 = vld [vmem:[%s8528_s21 + $0x2e78] sm:$0xff] }
 0x1cc   : > { %6591 = vmatprep.subr.bf16.mxu1 %v6590_v56  ;;  %v1780_v13 = vld [vmem:[%s8528_s21 + $0x2b78] sm:$0xff]  ;;  %v1878_v56 = vld [vmem:[%s8528_s21 + $0x2e88] sm:$0xff]  ;;  %v6578_v16 = vpack.c.bf16 %v1876_v12, %v1778_v18  ;;  %v997_v18 = vld [vmem:[%s8528_s21 + $0x1300] sm:$0xff] }
 0x1cd   : > { %v6610_v17 = vpack.c.bf16 %v1878_v56, %v1780_v13  ;;  %v1095_v12 = vld [vmem:[%s8528_s21 + $0x1610] sm:$0xff] }
 0x1ce   : > { %v999_v13 = vld [vmem:[%s8528_s21 + $0x1310] sm:$0xff] }
 0x1d2   : > { %6561 = vmatpush1.bf16.xpose.msra.mxu0 %v6560_v23  ;;  %v410_v23 = vld [vmem:[%s8528_s21 + $0xa8] sm:$0xff] }
 0x1d3   : > { %6593 = vmatpush1.bf16.xpose.msra.mxu1 %v6592_v24  ;;  %6563 = vmatprep.subr.bf16.mxu0 %v6562_v25  ;;  %v508_v24 = vld [vmem:[%s8528_s21 + $0x3b8] sm:$0xff] }
 0x1d4   : > { %v2562_v30 = vpop.f32.mrb[0].mxu0  ;;  %6595 = vmatprep.subr.bf16.mxu1 %v6594_v26  ;;  %v412_v25 = vld [vmem:[%s8528_s21 + $0xb8] sm:$0xff]  ;;  %v510_v26 = vld [vmem:[%s8528_s21 + $0x3c8] sm:$0xff] }
 0x1d5   : > { %v2564_v32 = vpop.f32.mrb[1].mxu0  ;;  %v2632_v33 = vpop.f32.mrb[0].mxu1  ;;  %v6646_v37 = vpack.c.bf16 %v510_v26, %v412_v25 }
 0x1d6   : > { %v8911_v36 = vadd.f32 %v2632_v33, %v2562_v30  ;;  %v2634_v39 = vpop.f32.mrb[1].mxu1  ;;  %v6614_v30 = vpack.c.bf16 %v508_v24, %v410_v23  ;;  %v507_v32 = vld [vmem:[%s8528_s21 + $0x3b0] sm:$0xff]  ;;  %v6628_v23 = vpack.c.bf16 %v1095_v12, %v997_v18  ;;  %v514_v18 = vld [vmem:[%s8528_s21 + $0x3e8] sm:$0xff] }
 0x1d7   : > { %v411_v33 = vld [vmem:[%s8528_s21 + $0xb0] sm:$0xff]  ;;  %v8953_v39 = vrot.slane %v368_v28, %v8582_v48  ;;  %v6616_v44 = vpack.c.bf16 %v507_v32, %v409_v40  ;;  %v6662_v28 = vpack.c.bf16 %v1294_v22, %v1196_v21  ;;  %v1488_v40 = vld [vmem:[%s8528_s21 + $0x2258] sm:$0xff]  ;;  %v513_v21 = vld [vmem:[%s8528_s21 + $0x3e0] sm:$0xff] }
 0x1d8   : > { %v6648_v45 = vpack.c.bf16 %v509_v34, %v411_v33  ;;  %v1392_v32 = vld [vmem:[%s8528_s21 + $0x1f58] sm:$0xff]  ;;  %v1490_v33 = vld [vmem:[%s8528_s21 + $0x2268] sm:$0xff] }
 0x1d9   : > { %v2082_v49 = vcombine.high %v8953_v39, %v8953_v39  ;;  %v610_v22 = vld [vmem:[%s8528_s21 + $0x6e8] sm:$0xff] }
 0x1da   : > { %6565 = vmatpush1.bf16.xpose.msra.mxu0 %v6564_v38  ;;  %v704_v38 = vld [vmem:[%s8528_s21 + $0x9d8] sm:$0xff] }
 0x1db   : > { %6597 = vmatpush1.bf16.xpose.msra.mxu1 %v6596_v41  ;;  %6567 = vmatprep.subr.bf16.mxu0 %v6566_v42  ;;  %v608_v41 = vld [vmem:[%s8528_s21 + $0x6d8] sm:$0xff]  ;;  %v706_v42 = vld [vmem:[%s8528_s21 + $0x9e8] sm:$0xff]  ;;  %v6618_v46 = vpack.c.bf16 %v704_v38, %v606_v35 }
 0x1dc   : > { %6599 = vmatprep.subr.bf16.mxu1 %v6598_v43  ;;  %v8958_v43 = vrot.slane %v2067_v31, %v8582_v48  ;;  %v6650_v47 = vpack.c.bf16 %v706_v42, %v608_v41  ;;  %v1390_v31 = vld [vmem:[%s8528_s21 + $0x1f48] sm:$0xff]  ;;  %v6666_v41 = vpack.c.bf16 %v1490_v33, %v1392_v32  ;;  %v1389_v42 = vld [vmem:[%s8528_s21 + $0x1f40] sm:$0xff]  ;;  %v707_v33 = vld [vmem:[%s8528_s21 + $0x9f0] sm:$0xff] }
 0x1dd   : > { %v6634_v38 = vpack.c.bf16 %v1488_v40, %v1390_v31  ;;  %v609_v32 = vld [vmem:[%s8528_s21 + $0x6e0] sm:$0xff] }
 0x1de   : > { %v2083_v50 = vcombine.high %v8958_v43, %v8958_v43 }
 0x1e2   : > { %6569 = vmatpush1.bf16.xpose.msra.mxu0 %v6568_v53  ;;  %v607_v53 = vld [vmem:[%s8528_s21 + $0x6d0] sm:$0xff] }
 0x1e3   : > { %6601 = vmatpush1.bf16.xpose.msra.mxu1 %v6600_v61  ;;  %6571 = vmatprep.subr.bf16.mxu0 %v6570_v54  ;;  %v705_v61 = vld [vmem:[%s8528_s21 + $0x9e0] sm:$0xff]  ;;  %v802_v54 = vld [vmem:[%s8528_s21 + $0xce8] sm:$0xff] }
 0x1e4   : > { %6603 = vmatprep.subr.bf16.mxu1 %v6602_v1  ;;  %v900_v1 = vld [vmem:[%s8528_s21 + $0xff8] sm:$0xff]  ;;  %v6652_v58 = vpack.c.bf16 %v705_v61, %v607_v53 }
 0x1e5   : > { %v6622_v60 = vpack.c.bf16 %v900_v1, %v802_v54  ;;  %v1585_v1 = vld [vmem:[%s8528_s21 + $0x2560] sm:$0xff] }
 0x1ea   : > { %6573 = vmatpush1.bf16.xpose.msra.mxu0 %v6572_v5  ;;  %v998_v5 = vld [vmem:[%s8528_s21 + $0x1308] sm:$0xff] }
 0x1eb   : > { %6605 = vmatpush1.bf16.xpose.msra.mxu1 %v6604_v6  ;;  %6575 = vmatprep.subr.bf16.mxu0 %v6574_v7  ;;  %v1096_v6 = vld [vmem:[%s8528_s21 + $0x1618] sm:$0xff] }
 0x1ec   : > { %6607 = vmatprep.subr.bf16.mxu1 %v6606_v8  ;;  %v1000_v7 = vld [vmem:[%s8528_s21 + $0x1318] sm:$0xff]  ;;  %v1098_v8 = vld [vmem:[%s8528_s21 + $0x1628] sm:$0xff]  ;;  %v6626_v15 = vpack.c.bf16 %v1096_v6, %v998_v5  ;;  %v1781_v6 = vld [vmem:[%s8528_s21 + $0x2b80] sm:$0xff] }
 0x1ed   : > { %v6658_v11 = vpack.c.bf16 %v1098_v8, %v1000_v7  ;;  %v1879_v7 = vld [vmem:[%s8528_s21 + $0x2e90] sm:$0xff] }
 0x1ee   : > { %v1783_v8 = vld [vmem:[%s8528_s21 + $0x2b90] sm:$0xff]  ;;  %v6644_v12 = vpack.c.bf16 %v1879_v7, %v1781_v6 }
 0x1f2   : > { %6577 = vmatpush1.bf16.xpose.msra.mxu0 %v6576_v14  ;;  %v1097_v14 = vld [vmem:[%s8528_s21 + $0x1620] sm:$0xff] }
 0x1f3   : > { %6609 = vmatpush1.bf16.xpose.msra.mxu1 %v6608_v62  ;;  %6579 = vmatprep.subr.bf16.mxu0 %v6578_v16  ;;  %v1194_v62 = vld [vmem:[%s8528_s21 + $0x1928] sm:$0xff]  ;;  %v1292_v16 = vld [vmem:[%s8528_s21 + $0x1c38] sm:$0xff]  ;;  %v6660_v26 = vpack.c.bf16 %v1097_v14, %v999_v13 }
 0x1f4   : > { %6611 = vmatprep.subr.bf16.mxu1 %v6610_v17  ;;  %v369_v13 = vld [vmem:[%s8580_s27 + $0x30] sm:$0xff] }
 0x1fa   : > { %6581 = vmatpush1.bf16.xpose.msra.mxu0 %v6580_v27  ;;  %v6630_v27 = vpack.c.bf16 %v1292_v16, %v1194_v62  ;;  %v2084_v16 = vcombine.high %v369_v13, %v369_v13 }
 0x1fb   : > { %6613 = vmatpush1.bf16.xpose.msra.mxu1 %v6612_v29  ;;  %6615 = vmatprep.subr.bf16.mxu0 %v6614_v30  ;;  %v1291_v29 = vld [vmem:[%s8528_s21 + $0x1c30] sm:$0xff] }
 0x1fc   : > { %6647 = vmatprep.subr.bf16.mxu1 %v6646_v37  ;;  %v1195_v30 = vld [vmem:[%s8528_s21 + $0x1930] sm:$0xff]  ;;  %v1293_v37 = vld [vmem:[%s8528_s21 + $0x1c40] sm:$0xff] }
 0x1fd   : > { %v6664_v35 = vpack.c.bf16 %v1293_v37, %v1195_v30 }
 0x201   : > { %3121 = vmatmul.mubr.f32.vlgmr.msra.gmra.mrb[8].mxu0 %v8874_v55  ;;  %v804_v55 = vld [vmem:[%s8528_s21 + $0xcf8] sm:$0xff] }
 0x202   : > { %6617 = vmatpush1.bf16.xpose.msra.mxu0 %v6616_v44  ;;  %3191 = vmatmul.mubr.f32.vlgmr.msra.gmra.mrb[8].mxu1 %v8879_v59  ;;  %v6620_v59 = vpack.c.bf16 %v703_v52, %v605_v51  ;;  %v6654_v63 = vpack.c.bf16 %v902_v57, %v804_v55  ;;  %v1487_v44 = vld [vmem:[%s8528_s21 + $0x2250] sm:$0xff]  ;;  %v1686_v51 = vld [vmem:[%s8528_s21 + $0x2888] sm:$0xff] }
 0x203   : > { %6649 = vmatpush1.bf16.xpose.msra.mxu1 %v6648_v45  ;;  %6619 = vmatprep.subr.bf16.mxu0 %v6618_v46  ;;  %v1391_v45 = vld [vmem:[%s8528_s21 + $0x1f50] sm:$0xff]  ;;  %v1489_v46 = vld [vmem:[%s8528_s21 + $0x2260] sm:$0xff]  ;;  %v6636_v52 = vpack.c.bf16 %v1487_v44, %v1389_v42  ;;  %v906_v42 = vld [vmem:[%s8528_s21 + $0x1028] sm:$0xff] }
 0x204   : > { %6651 = vmatprep.subr.bf16.mxu1 %v6650_v47  ;;  %3260 = vmatprep.mubr.f32.mxu0 %v2082_v49  ;;  %v1586_v47 = vld [vmem:[%s8528_s21 + $0x2568] sm:$0xff]  ;;  %v1684_v49 = vld [vmem:[%s8528_s21 + $0x2878] sm:$0xff]  ;;  %v6668_v53 = vpack.c.bf16 %v1489_v46, %v1391_v45  ;;  %v1683_v55 = vld [vmem:[%s8528_s21 + $0x2870] sm:$0xff] }
 0x205   : > { %3330 = vmatprep.mubr.f32.mxu1 %v2083_v50  ;;  %v1588_v50 = vld [vmem:[%s8528_s21 + $0x2578] sm:$0xff]  ;;  %v6638_v61 = vpack.c.bf16 %v1684_v49, %v1586_v47  ;;  %v1587_v57 = vld [vmem:[%s8528_s21 + $0x2570] sm:$0xff]  ;;  %v6640_v2 = vpack.c.bf16 %v1683_v55, %v1585_v1  ;;  %v805_v47 = vld [vmem:[%s8528_s21 + $0xd00] sm:$0xff] }
 0x206   : > { %v6670_v54 = vpack.c.bf16 %v1686_v51, %v1588_v50  ;;  %v903_v49 = vld [vmem:[%s8528_s21 + $0x1010] sm:$0xff]  ;;  %v905_v51 = vld [vmem:[%s8528_s21 + $0x1020] sm:$0xff] }
 0x207   : > { %v807_v50 = vld [vmem:[%s8528_s21 + $0xd10] sm:$0xff]  ;;  %v6688_v1 = vpack.c.bf16 %v903_v49, %v805_v47  ;;  %v1886_v47 = vld [vmem:[%s8528_s21 + $0x2ec8] sm:$0xff] }
 0x208   : > { %v6720_v55 = vpack.c.bf16 %v905_v51, %v807_v50 }
 0x20a   : > { %6621 = vmatpush1.bf16.xpose.msra.mxu0 %v6620_v59  ;;  %v1685_v59 = vld [vmem:[%s8528_s21 + $0x2880] sm:$0xff] }
 0x20b   : > { %6653 = vmatpush1.bf16.xpose.msra.mxu1 %v6652_v58  ;;  %6623 = vmatprep.subr.bf16.mxu0 %v6622_v60  ;;  %v1782_v58 = vld [vmem:[%s8528_s21 + $0x2b88] sm:$0xff]  ;;  %v1880_v60 = vld [vmem:[%s8528_s21 + $0x2e98] sm:$0xff]  ;;  %v6672_v3 = vpack.c.bf16 %v1685_v59, %v1587_v57 }
 0x20c   : > { %6655 = vmatprep.subr.bf16.mxu1 %v6654_v63  ;;  %v1784_v63 = vld [vmem:[%s8528_s21 + $0x2b98] sm:$0xff]  ;;  %v6642_v4 = vpack.c.bf16 %v1880_v60, %v1782_v58  ;;  %v1001_v58 = vld [vmem:[%s8528_s21 + $0x1320] sm:$0xff]  ;;  %v1099_v60 = vld [vmem:[%s8528_s21 + $0x1630] sm:$0xff] }
 0x20d   : > { %v6674_v5 = vpack.c.bf16 %v1882_v0, %v1784_v63  ;;  %v1003_v63 = vld [vmem:[%s8528_s21 + $0x1330] sm:$0xff] }
 0x212   : > { %6625 = vmatpush1.bf16.xpose.msra.mxu0 %v6624_v9  ;;  %v1881_v9 = vld [vmem:[%s8528_s21 + $0x2ea0] sm:$0xff] }
 0x213   : > { %6657 = vmatpush1.bf16.xpose.msra.mxu1 %v6656_v10  ;;  %6627 = vmatprep.subr.bf16.mxu0 %v6626_v15  ;;  %v414_v10 = vld [vmem:[%s8528_s21 + $0xc8] sm:$0xff]  ;;  %v512_v15 = vld [vmem:[%s8528_s21 + $0x3d8] sm:$0xff] }
 0x214   : > { %v2702_v56 = vpop.f32.mrb[2].mxu0  ;;  %6659 = vmatprep.subr.bf16.mxu1 %v6658_v11  ;;  %v416_v11 = vld [vmem:[%s8528_s21 + $0xd8] sm:$0xff]  ;;  %v6678_v14 = vpack.c.bf16 %v512_v15, %v414_v10  ;;  %v6692_v10 = vpack.c.bf16 %v1099_v60, %v1001_v58  ;;  %v518_v58 = vld [vmem:[%s8528_s21 + $0x408] sm:$0xff] }
 0x215   : > { %v2703_v17 = vadd.f32 %v2702_v56, %v8911_v36  ;;  %v2704_v19 = vpop.f32.mrb[3].mxu0  ;;  %v2772_v20 = vpop.f32.mrb[2].mxu1  ;;  %v1193_v36 = vld [vmem:[%s8528_s21 + $0x1920] sm:$0xff]  ;;  %v6676_v56 = vpack.c.bf16 %v1881_v9, %v1783_v8  ;;  %v6710_v62 = vpack.c.bf16 %v514_v18, %v416_v11  ;;  %v1200_v8 = vld [vmem:[%s8528_s21 + $0x1958] sm:$0xff]  ;;  %v1298_v9 = vld [vmem:[%s8528_s21 + $0x1c68] sm:$0xff] }
 0x216   : > { %v2774_v24 = vpop.f32.mrb[3].mxu1  ;;  %v6632_v34 = vpack.c.bf16 %v1291_v29, %v1193_v36  ;;  %v511_v19 = vld [vmem:[%s8528_s21 + $0x3d0] sm:$0xff] }
 0x217   : > { %v8991_v25 = vadd.f32 %v2772_v20, %v2703_v17  ;;  %v413_v17 = vld [vmem:[%s8528_s21 + $0xc0] sm:$0xff]  ;;  %v415_v20 = vld [vmem:[%s8528_s21 + $0xd0] sm:$0xff]  ;;  %v9033_v24 = vrot.slane %v369_v13, %v8582_v48  ;;  %v6726_v13 = vpack.c.bf16 %v1298_v9, %v1200_v8  ;;  %v614_v9 = vld [vmem:[%s8528_s21 + $0x708] sm:$0xff] }
 0x218   : > { %v6680_v36 = vpack.c.bf16 %v511_v19, %v413_v17  ;;  %v6712_v29 = vpack.c.bf16 %v513_v21, %v415_v20  ;;  %v1492_v17 = vld [vmem:[%s8528_s21 + $0x2278] sm:$0xff]  ;;  %v1494_v20 = vld [vmem:[%s8528_s21 + $0x2288] sm:$0xff]  ;;  %v517_v8 = vld [vmem:[%s8528_s21 + $0x400] sm:$0xff] }
 0x219   : > { %v2099_v31 = vcombine.high %v9033_v24, %v9033_v24  ;;  %v1396_v19 = vld [vmem:[%s8528_s21 + $0x1f78] sm:$0xff] }
 0x21a   : > { %6629 = vmatpush1.bf16.xpose.msra.mxu0 %v6628_v23  ;;  %v708_v23 = vld [vmem:[%s8528_s21 + $0x9f8] sm:$0xff] }
 0x21b   : > { %6661 = vmatpush1.bf16.xpose.msra.mxu1 %v6660_v26  ;;  %6631 = vmatprep.subr.bf16.mxu0 %v6630_v27  ;;  %v612_v26 = vld [vmem:[%s8528_s21 + $0x6f8] sm:$0xff]  ;;  %v710_v27 = vld [vmem:[%s8528_s21 + $0xa08] sm:$0xff]  ;;  %v6682_v30 = vpack.c.bf16 %v708_v23, %v610_v22 }
 0x21c   : > { %6663 = vmatprep.subr.bf16.mxu1 %v6662_v28  ;;  %v9038_v28 = vrot.slane %v2084_v16, %v8582_v48  ;;  %v6714_v37 = vpack.c.bf16 %v710_v27, %v612_v26  ;;  %v1394_v16 = vld [vmem:[%s8528_s21 + $0x1f68] sm:$0xff]  ;;  %v6730_v26 = vpack.c.bf16 %v1494_v20, %v1396_v19  ;;  %v1393_v27 = vld [vmem:[%s8528_s21 + $0x1f60] sm:$0xff]  ;;  %v711_v20 = vld [vmem:[%s8528_s21 + $0xa10] sm:$0xff] }
 0x21d   : > { %v6698_v23 = vpack.c.bf16 %v1492_v17, %v1394_v16  ;;  %v613_v19 = vld [vmem:[%s8528_s21 + $0x700] sm:$0xff] }
 0x21e   : > { %v2100_v40 = vcombine.high %v9038_v28, %v9038_v28 }
 0x222   : > { %6633 = vmatpush1.bf16.xpose.msra.mxu0 %v6632_v34  ;;  %v611_v34 = vld [vmem:[%s8528_s21 + $0x6f0] sm:$0xff] }
 0x223   : > { %6665 = vmatpush1.bf16.xpose.msra.mxu1 %v6664_v35  ;;  %6635 = vmatprep.subr.bf16.mxu0 %v6634_v38  ;;  %v709_v35 = vld [vmem:[%s8528_s21 + $0xa00] sm:$0xff]  ;;  %v806_v38 = vld [vmem:[%s8528_s21 + $0xd08] sm:$0xff] }
 0x224   : > { %6667 = vmatprep.subr.bf16.mxu1 %v6666_v41  ;;  %v904_v41 = vld [vmem:[%s8528_s21 + $0x1018] sm:$0xff]  ;;  %v6716_v44 = vpack.c.bf16 %v709_v35, %v611_v34 }
 0x225   : > { %v6686_v45 = vpack.c.bf16 %v904_v41, %v806_v38  ;;  %v1589_v41 = vld [vmem:[%s8528_s21 + $0x2580] sm:$0xff] }
 0x22a   : > { %6637 = vmatpush1.bf16.xpose.msra.mxu0 %v6636_v52  ;;  %v1002_v52 = vld [vmem:[%s8528_s21 + $0x1328] sm:$0xff] }
 0x22b   : > { %6669 = vmatpush1.bf16.xpose.msra.mxu1 %v6668_v53  ;;  %6639 = vmatprep.subr.bf16.mxu0 %v6638_v61  ;;  %v1100_v53 = vld [vmem:[%s8528_s21 + $0x1638] sm:$0xff] }
 0x22c   : > { %6671 = vmatprep.subr.bf16.mxu1 %v6670_v54  ;;  %v1004_v61 = vld [vmem:[%s8528_s21 + $0x1338] sm:$0xff]  ;;  %v1102_v54 = vld [vmem:[%s8528_s21 + $0x1648] sm:$0xff]  ;;  %v6690_v57 = vpack.c.bf16 %v1100_v53, %v1002_v52  ;;  %v1785_v53 = vld [vmem:[%s8528_s21 + $0x2ba0] sm:$0xff] }
 0x22d   : > { %v6722_v59 = vpack.c.bf16 %v1102_v54, %v1004_v61  ;;  %v1883_v61 = vld [vmem:[%s8528_s21 + $0x2eb0] sm:$0xff] }
 0x22e   : > { %v1787_v54 = vld [vmem:[%s8528_s21 + $0x2bb0] sm:$0xff]  ;;  %v6708_v60 = vpack.c.bf16 %v1883_v61, %v1785_v53 }
 0x232   : > { %6641 = vmatpush1.bf16.xpose.msra.mxu0 %v6640_v2  ;;  %v1101_v2 = vld [vmem:[%s8528_s21 + $0x1640] sm:$0xff] }
 0x233   : > { %6673 = vmatpush1.bf16.xpose.msra.mxu1 %v6672_v3  ;;  %6643 = vmatprep.subr.bf16.mxu0 %v6642_v4  ;;  %v1198_v3 = vld [vmem:[%s8528_s21 + $0x1948] sm:$0xff]  ;;  %v1296_v4 = vld [vmem:[%s8528_s21 + $0x1c58] sm:$0xff]  ;;  %v6724_v18 = vpack.c.bf16 %v1101_v2, %v1003_v63 }
 0x234   : > { %6675 = vmatprep.subr.bf16.mxu1 %v6674_v5  ;;  %v370_v63 = vld [vmem:[%s8580_s27 + $0x38] sm:$0xff] }
 0x23a   : > { %6645 = vmatpush1.bf16.xpose.msra.mxu0 %v6644_v12  ;;  %v6694_v12 = vpack.c.bf16 %v1296_v4, %v1198_v3  ;;  %v2101_v4 = vcombine.high %v370_v63, %v370_v63 }
 0x23b   : > { %6677 = vmatpush1.bf16.xpose.msra.mxu1 %v6676_v56  ;;  %6679 = vmatprep.subr.bf16.mxu0 %v6678_v14  ;;  %v1295_v56 = vld [vmem:[%s8528_s21 + $0x1c50] sm:$0xff] }
 0x23c   : > { %6711 = vmatprep.subr.bf16.mxu1 %v6710_v62  ;;  %v1199_v14 = vld [vmem:[%s8528_s21 + $0x1950] sm:$0xff]  ;;  %v1297_v62 = vld [vmem:[%s8528_s21 + $0x1c60] sm:$0xff] }
 0x23d   : > { %v6728_v22 = vpack.c.bf16 %v1297_v62, %v1199_v14 }
 0x241   : > { %3261 = vmatmul.mubr.f32.vlgmr.msra.gmra.mrb[10].mxu0 %v8953_v39  ;;  %v808_v39 = vld [vmem:[%s8528_s21 + $0xd18] sm:$0xff] }
 0x242   : > { %6681 = vmatpush1.bf16.xpose.msra.mxu0 %v6680_v36  ;;  %3331 = vmatmul.mubr.f32.vlgmr.msra.gmra.mrb[10].mxu1 %v8958_v43  ;;  %v6684_v43 = vpack.c.bf16 %v707_v33, %v609_v32  ;;  %v6718_v46 = vpack.c.bf16 %v906_v42, %v808_v39  ;;  %v1491_v36 = vld [vmem:[%s8528_s21 + $0x2270] sm:$0xff]  ;;  %v1690_v32 = vld [vmem:[%s8528_s21 + $0x28a8] sm:$0xff] }
 0x243   : > { %6713 = vmatpush1.bf16.xpose.msra.mxu1 %v6712_v29  ;;  %6683 = vmatprep.subr.bf16.mxu0 %v6682_v30  ;;  %v1395_v29 = vld [vmem:[%s8528_s21 + $0x1f70] sm:$0xff]  ;;  %v1493_v30 = vld [vmem:[%s8528_s21 + $0x2280] sm:$0xff]  ;;  %v6700_v33 = vpack.c.bf16 %v1491_v36, %v1393_v27  ;;  %v910_v27 = vld [vmem:[%s8528_s21 + $0x1048] sm:$0xff] }
 0x244   : > { %6715 = vmatprep.subr.bf16.mxu1 %v6714_v37  ;;  %3400 = vmatprep.mubr.f32.mxu0 %v2099_v31  ;;  %v1590_v37 = vld [vmem:[%s8528_s21 + $0x2588] sm:$0xff]  ;;  %v1688_v31 = vld [vmem:[%s8528_s21 + $0x2898] sm:$0xff]  ;;  %v6732_v34 = vpack.c.bf16 %v1493_v30, %v1395_v29  ;;  %v1687_v39 = vld [vmem:[%s8528_s21 + $0x2890] sm:$0xff] }
 0x245   : > { %3470 = vmatprep.mubr.f32.mxu1 %v2100_v40  ;;  %v1592_v40 = vld [vmem:[%s8528_s21 + $0x2598] sm:$0xff]  ;;  %v6702_v35 = vpack.c.bf16 %v1688_v31, %v1590_v37  ;;  %v1591_v42 = vld [vmem:[%s8528_s21 + $0x2590] sm:$0xff]  ;;  %v6704_v49 = vpack.c.bf16 %v1687_v39, %v1589_v41  ;;  %v809_v37 = vld [vmem:[%s8528_s21 + $0xd20] sm:$0xff] }
 0x246   : > { %v6734_v38 = vpack.c.bf16 %v1690_v32, %v1592_v40  ;;  %v907_v31 = vld [vmem:[%s8528_s21 + $0x1030] sm:$0xff]  ;;  %v909_v32 = vld [vmem:[%s8528_s21 + $0x1040] sm:$0xff] }
 0x247   : > { %v811_v40 = vld [vmem:[%s8528_s21 + $0xd30] sm:$0xff]  ;;  %v6752_v41 = vpack.c.bf16 %v907_v31, %v809_v37  ;;  %v1890_v37 = vld [vmem:[%s8528_s21 + $0x2ee8] sm:$0xff] }
 0x248   : > { %v6784_v39 = vpack.c.bf16 %v909_v32, %v811_v40 }
 0x24a   : > { %6685 = vmatpush1.bf16.xpose.msra.mxu0 %v6684_v43  ;;  %v1689_v43 = vld [vmem:[%s8528_s21 + $0x28a0] sm:$0xff] }
 0x24b   : > { %6717 = vmatpush1.bf16.xpose.msra.mxu1 %v6716_v44  ;;  %6687 = vmatprep.subr.bf16.mxu0 %v6686_v45  ;;  %v1786_v44 = vld [vmem:[%s8528_s21 + $0x2ba8] sm:$0xff]  ;;  %v1884_v45 = vld [vmem:[%s8528_s21 + $0x2eb8] sm:$0xff]  ;;  %v6736_v50 = vpack.c.bf16 %v1689_v43, %v1591_v42 }
 0x24c   : > { %6719 = vmatprep.subr.bf16.mxu1 %v6718_v46  ;;  %v1788_v46 = vld [vmem:[%s8528_s21 + $0x2bb8] sm:$0xff]  ;;  %v6706_v51 = vpack.c.bf16 %v1884_v45, %v1786_v44  ;;  %v1005_v44 = vld [vmem:[%s8528_s21 + $0x1340] sm:$0xff]  ;;  %v1103_v45 = vld [vmem:[%s8528_s21 + $0x1650] sm:$0xff] }
 0x24d   : > { %v6738_v52 = vpack.c.bf16 %v1886_v47, %v1788_v46  ;;  %v1007_v46 = vld [vmem:[%s8528_s21 + $0x1350] sm:$0xff] }
 0x252   : > { %6689 = vmatpush1.bf16.xpose.msra.mxu0 %v6688_v1  ;;  %v1885_v1 = vld [vmem:[%s8528_s21 + $0x2ec0] sm:$0xff] }
 0x253   : > { %6721 = vmatpush1.bf16.xpose.msra.mxu1 %v6720_v55  ;;  %6691 = vmatprep.subr.bf16.mxu0 %v6690_v57  ;;  %v418_v55 = vld [vmem:[%s8528_s21 + $0xe8] sm:$0xff]  ;;  %v516_v57 = vld [vmem:[%s8528_s21 + $0x3f8] sm:$0xff] }
 0x254   : > { %v2842_v0 = vpop.f32.mrb[4].mxu0  ;;  %6723 = vmatprep.subr.bf16.mxu1 %v6722_v59  ;;  %v420_v59 = vld [vmem:[%s8528_s21 + $0xf8] sm:$0xff]  ;;  %v6742_v2 = vpack.c.bf16 %v516_v57, %v418_v55  ;;  %v6756_v55 = vpack.c.bf16 %v1103_v45, %v1005_v44  ;;  %v522_v44 = vld [vmem:[%s8528_s21 + $0x428] sm:$0xff] }
 0x255   : > { %v2843_v5 = vadd.f32 %v2842_v0, %v8991_v25  ;;  %v2844_v6 = vpop.f32.mrb[5].mxu0  ;;  %v2912_v7 = vpop.f32.mrb[4].mxu1  ;;  %v1197_v25 = vld [vmem:[%s8528_s21 + $0x1940] sm:$0xff]  ;;  %v6740_v0 = vpack.c.bf16 %v1885_v1, %v1787_v54  ;;  %v6774_v3 = vpack.c.bf16 %v518_v58, %v420_v59  ;;  %v1204_v54 = vld [vmem:[%s8528_s21 + $0x1978] sm:$0xff]  ;;  %v1302_v1 = vld [vmem:[%s8528_s21 + $0x1c88] sm:$0xff] }
 0x256   : > { %v2914_v15 = vpop.f32.mrb[5].mxu1  ;;  %v6696_v21 = vpack.c.bf16 %v1295_v56, %v1197_v25  ;;  %v515_v6 = vld [vmem:[%s8528_s21 + $0x3f0] sm:$0xff] }
 0x257   : > { %v9071_v11 = vadd.f32 %v2912_v7, %v2843_v5  ;;  %v417_v5 = vld [vmem:[%s8528_s21 + $0xe0] sm:$0xff]  ;;  %v419_v7 = vld [vmem:[%s8528_s21 + $0xf0] sm:$0xff]  ;;  %v9113_v15 = vrot.slane %v370_v63, %v8582_v48  ;;  %v6790_v63 = vpack.c.bf16 %v1302_v1, %v1204_v54  ;;  %v618_v1 = vld [vmem:[%s8528_s21 + $0x728] sm:$0xff] }
 0x258   : > { %v6744_v25 = vpack.c.bf16 %v515_v6, %v417_v5  ;;  %v6776_v56 = vpack.c.bf16 %v517_v8, %v419_v7  ;;  %v1496_v5 = vld [vmem:[%s8528_s21 + $0x2298] sm:$0xff]  ;;  %v1498_v7 = vld [vmem:[%s8528_s21 + $0x22a8] sm:$0xff]  ;;  %v521_v54 = vld [vmem:[%s8528_s21 + $0x420] sm:$0xff] }
 0x259   : > { %v2116_v16 = vcombine.high %v9113_v15, %v9113_v15  ;;  %v1400_v6 = vld [vmem:[%s8528_s21 + $0x1f98] sm:$0xff] }
 0x25a   : > { %6693 = vmatpush1.bf16.xpose.msra.mxu0 %v6692_v10  ;;  %v712_v10 = vld [vmem:[%s8528_s21 + $0xa18] sm:$0xff] }
 0x25b   : > { %6725 = vmatpush1.bf16.xpose.msra.mxu1 %v6724_v18  ;;  %6695 = vmatprep.subr.bf16.mxu0 %v6694_v12  ;;  %v616_v18 = vld [vmem:[%s8528_s21 + $0x718] sm:$0xff]  ;;  %v714_v12 = vld [vmem:[%s8528_s21 + $0xa28] sm:$0xff]  ;;  %v6746_v14 = vpack.c.bf16 %v712_v10, %v614_v9 }
 0x25c   : > { %6727 = vmatprep.subr.bf16.mxu1 %v6726_v13  ;;  %v9118_v13 = vrot.slane %v2101_v4, %v8582_v48  ;;  %v6778_v62 = vpack.c.bf16 %v714_v12, %v616_v18  ;;  %v1398_v4 = vld [vmem:[%s8528_s21 + $0x1f88] sm:$0xff]  ;;  %v6794_v18 = vpack.c.bf16 %v1498_v7, %v1400_v6  ;;  %v1397_v12 = vld [vmem:[%s8528_s21 + $0x1f80] sm:$0xff]  ;;  %v715_v7 = vld [vmem:[%s8528_s21 + $0xa30] sm:$0xff] }
 0x25d   : > { %v6762_v10 = vpack.c.bf16 %v1496_v5, %v1398_v4  ;;  %v617_v6 = vld [vmem:[%s8528_s21 + $0x720] sm:$0xff] }
 0x25e   : > { %v2117_v17 = vcombine.high %v9118_v13, %v9118_v13 }
 0x262   : > { %6697 = vmatpush1.bf16.xpose.msra.mxu0 %v6696_v21  ;;  %v615_v21 = vld [vmem:[%s8528_s21 + $0x710] sm:$0xff] }
 0x263   : > { %6729 = vmatpush1.bf16.xpose.msra.mxu1 %v6728_v22  ;;  %6699 = vmatprep.subr.bf16.mxu0 %v6698_v23  ;;  %v713_v22 = vld [vmem:[%s8528_s21 + $0xa20] sm:$0xff]  ;;  %v810_v23 = vld [vmem:[%s8528_s21 + $0xd28] sm:$0xff] }
 0x264   : > { %6731 = vmatprep.subr.bf16.mxu1 %v6730_v26  ;;  %v908_v26 = vld [vmem:[%s8528_s21 + $0x1038] sm:$0xff]  ;;  %v6780_v36 = vpack.c.bf16 %v713_v22, %v615_v21 }
 0x265   : > { %v6750_v29 = vpack.c.bf16 %v908_v26, %v810_v23  ;;  %v1593_v26 = vld [vmem:[%s8528_s21 + $0x25a0] sm:$0xff] }
 0x26a   : > { %6701 = vmatpush1.bf16.xpose.msra.mxu0 %v6700_v33  ;;  %v1006_v33 = vld [vmem:[%s8528_s21 + $0x1348] sm:$0xff] }
 0x26b   : > { %6733 = vmatpush1.bf16.xpose.msra.mxu1 %v6732_v34  ;;  %6703 = vmatprep.subr.bf16.mxu0 %v6702_v35  ;;  %v1104_v34 = vld [vmem:[%s8528_s21 + $0x1658] sm:$0xff] }
 0x26c   : > { %6735 = vmatprep.subr.bf16.mxu1 %v6734_v38  ;;  %v1008_v35 = vld [vmem:[%s8528_s21 + $0x1358] sm:$0xff]  ;;  %v1106_v38 = vld [vmem:[%s8528_s21 + $0x1668] sm:$0xff]  ;;  %v6754_v42 = vpack.c.bf16 %v1104_v34, %v1006_v33  ;;  %v1789_v34 = vld [vmem:[%s8528_s21 + $0x2bc0] sm:$0xff] }
 0x26d   : > { %v6786_v43 = vpack.c.bf16 %v1106_v38, %v1008_v35  ;;  %v1887_v35 = vld [vmem:[%s8528_s21 + $0x2ed0] sm:$0xff] }
 0x26e   : > { %v1791_v38 = vld [vmem:[%s8528_s21 + $0x2bd0] sm:$0xff]  ;;  %v6772_v45 = vpack.c.bf16 %v1887_v35, %v1789_v34 }
 0x272   : > { %6705 = vmatpush1.bf16.xpose.msra.mxu0 %v6704_v49  ;;  %v1105_v49 = vld [vmem:[%s8528_s21 + $0x1660] sm:$0xff] }
 0x273   : > { %6737 = vmatpush1.bf16.xpose.msra.mxu1 %v6736_v50  ;;  %6707 = vmatprep.subr.bf16.mxu0 %v6706_v51  ;;  %v1202_v50 = vld [vmem:[%s8528_s21 + $0x1968] sm:$0xff]  ;;  %v1300_v51 = vld [vmem:[%s8528_s21 + $0x1c78] sm:$0xff]  ;;  %v6788_v58 = vpack.c.bf16 %v1105_v49, %v1007_v46 }
 0x274   : > { %6739 = vmatprep.subr.bf16.mxu1 %v6738_v52  ;;  %v371_v46 = vld [vmem:[%s8580_s27 + $0x40] sm:$0xff] }
 0x27a   : > { %6709 = vmatpush1.bf16.xpose.msra.mxu0 %v6708_v60  ;;  %v6758_v60 = vpack.c.bf16 %v1300_v51, %v1202_v50  ;;  %v2118_v51 = vcombine.high %v371_v46, %v371_v46 }
 0x27b   : > { %6741 = vmatpush1.bf16.xpose.msra.mxu1 %v6740_v0  ;;  %6743 = vmatprep.subr.bf16.mxu0 %v6742_v2  ;;  %v1299_v0 = vld [vmem:[%s8528_s21 + $0x1c70] sm:$0xff] }
 0x27c   : > { %6775 = vmatprep.subr.bf16.mxu1 %v6774_v3  ;;  %v1203_v2 = vld [vmem:[%s8528_s21 + $0x1970] sm:$0xff]  ;;  %v1301_v3 = vld [vmem:[%s8528_s21 + $0x1c80] sm:$0xff] }
 0x27d   : > { %v6792_v9 = vpack.c.bf16 %v1301_v3, %v1203_v2 }
 0x281   : > { %3401 = vmatmul.mubr.f32.vlgmr.msra.gmra.mrb[12].mxu0 %v9033_v24  ;;  %v812_v24 = vld [vmem:[%s8528_s21 + $0xd38] sm:$0xff] }
 0x282   : > { %6745 = vmatpush1.bf16.xpose.msra.mxu0 %v6744_v25  ;;  %3471 = vmatmul.mubr.f32.vlgmr.msra.gmra.mrb[12].mxu1 %v9038_v28  ;;  %v6748_v28 = vpack.c.bf16 %v711_v20, %v613_v19  ;;  %v6782_v30 = vpack.c.bf16 %v910_v27, %v812_v24  ;;  %v1495_v25 = vld [vmem:[%s8528_s21 + $0x2290] sm:$0xff]  ;;  %v1694_v19 = vld [vmem:[%s8528_s21 + $0x28c8] sm:$0xff] }
 0x283   : > { %6777 = vmatpush1.bf16.xpose.msra.mxu1 %v6776_v56  ;;  %6747 = vmatprep.subr.bf16.mxu0 %v6746_v14  ;;  %v1399_v56 = vld [vmem:[%s8528_s21 + $0x1f90] sm:$0xff]  ;;  %v1497_v14 = vld [vmem:[%s8528_s21 + $0x22a0] sm:$0xff]  ;;  %v6764_v20 = vpack.c.bf16 %v1495_v25, %v1397_v12  ;;  %v914_v12 = vld [vmem:[%s8528_s21 + $0x1068] sm:$0xff] }
 0x284   : > { %6779 = vmatprep.subr.bf16.mxu1 %v6778_v62  ;;  %3540 = vmatprep.mubr.f32.mxu0 %v2116_v16  ;;  %v1594_v62 = vld [vmem:[%s8528_s21 + $0x25a8] sm:$0xff]  ;;  %v1692_v16 = vld [vmem:[%s8528_s21 + $0x28b8] sm:$0xff]  ;;  %v6796_v21 = vpack.c.bf16 %v1497_v14, %v1399_v56  ;;  %v1691_v24 = vld [vmem:[%s8528_s21 + $0x28b0] sm:$0xff] }
 0x285   : > { %3610 = vmatprep.mubr.f32.mxu1 %v2117_v17  ;;  %v1596_v17 = vld [vmem:[%s8528_s21 + $0x25b8] sm:$0xff]  ;;  %v6766_v22 = vpack.c.bf16 %v1692_v16, %v1594_v62  ;;  %v1595_v27 = vld [vmem:[%s8528_s21 + $0x25b0] sm:$0xff]  ;;  %v6768_v31 = vpack.c.bf16 %v1691_v24, %v1593_v26  ;;  %v813_v62 = vld [vmem:[%s8528_s21 + $0xd40] sm:$0xff] }
 0x286   : > { %v6798_v23 = vpack.c.bf16 %v1694_v19, %v1596_v17  ;;  %v911_v16 = vld [vmem:[%s8528_s21 + $0x1050] sm:$0xff]  ;;  %v913_v19 = vld [vmem:[%s8528_s21 + $0x1060] sm:$0xff] }
 0x287   : > { %v815_v17 = vld [vmem:[%s8528_s21 + $0xd50] sm:$0xff]  ;;  %v6816_v26 = vpack.c.bf16 %v911_v16, %v813_v62  ;;  %v1894_v62 = vld [vmem:[%s8528_s21 + $0x2f08] sm:$0xff] }
 0x288   : > { %v6848_v24 = vpack.c.bf16 %v913_v19, %v815_v17 }
 0x28a   : > { %6749 = vmatpush1.bf16.xpose.msra.mxu0 %v6748_v28  ;;  %v1693_v28 = vld [vmem:[%s8528_s21 + $0x28c0] sm:$0xff] }
 0x28b   : > { %6781 = vmatpush1.bf16.xpose.msra.mxu1 %v6780_v36  ;;  %6751 = vmatprep.subr.bf16.mxu0 %v6750_v29  ;;  %v1790_v36 = vld [vmem:[%s8528_s21 + $0x2bc8] sm:$0xff]  ;;  %v1888_v29 = vld [vmem:[%s8528_s21 + $0x2ed8] sm:$0xff]  ;;  %v6800_v40 = vpack.c.bf16 %v1693_v28, %v1595_v27 }
 0x28c   : > { %6783 = vmatprep.subr.bf16.mxu1 %v6782_v30  ;;  %v1792_v30 = vld [vmem:[%s8528_s21 + $0x2bd8] sm:$0xff]  ;;  %v6770_v32 = vpack.c.bf16 %v1888_v29, %v1790_v36  ;;  %v1009_v36 = vld [vmem:[%s8528_s21 + $0x1360] sm:$0xff]  ;;  %v1107_v29 = vld [vmem:[%s8528_s21 + $0x1670] sm:$0xff] }
 0x28d   : > { %v6802_v33 = vpack.c.bf16 %v1890_v37, %v1792_v30  ;;  %v1011_v30 = vld [vmem:[%s8528_s21 + $0x1370] sm:$0xff] }
 0x292   : > { %6753 = vmatpush1.bf16.xpose.msra.mxu0 %v6752_v41  ;;  %v1889_v41 = vld [vmem:[%s8528_s21 + $0x2ee0] sm:$0xff] }
 0x293   : > { %6785 = vmatpush1.bf16.xpose.msra.mxu1 %v6784_v39  ;;  %6755 = vmatprep.subr.bf16.mxu0 %v6754_v42  ;;  %v422_v39 = vld [vmem:[%s8528_s21 + $0x108] sm:$0xff]  ;;  %v520_v42 = vld [vmem:[%s8528_s21 + $0x418] sm:$0xff] }
 0x294   : > { %v2982_v47 = vpop.f32.mrb[6].mxu0  ;;  %6787 = vmatprep.subr.bf16.mxu1 %v6786_v43  ;;  %v424_v43 = vld [vmem:[%s8528_s21 + $0x118] sm:$0xff]  ;;  %v6806_v49 = vpack.c.bf16 %v520_v42, %v422_v39  ;;  %v6820_v39 = vpack.c.bf16 %v1107_v29, %v1009_v36  ;;  %v526_v36 = vld [vmem:[%s8528_s21 + $0x448] sm:$0xff] }
 0x295   : > { %v2983_v52 = vadd.f32 %v2982_v47, %v9071_v11  ;;  %v2984_v53 = vpop.f32.mrb[7].mxu0  ;;  %v3052_v61 = vpop.f32.mrb[6].mxu1  ;;  %v1201_v11 = vld [vmem:[%s8528_s21 + $0x1960] sm:$0xff]  ;;  %v6804_v47 = vpack.c.bf16 %v1889_v41, %v1791_v38  ;;  %v6838_v50 = vpack.c.bf16 %v522_v44, %v424_v43  ;;  %v1208_v38 = vld [vmem:[%s8528_s21 + $0x1998] sm:$0xff]  ;;  %v1306_v41 = vld [vmem:[%s8528_s21 + $0x1ca8] sm:$0xff] }
 0x296   : > { %v3054_v57 = vpop.f32.mrb[7].mxu1  ;;  %v6760_v8 = vpack.c.bf16 %v1299_v0, %v1201_v11  ;;  %v519_v53 = vld [vmem:[%s8528_s21 + $0x410] sm:$0xff] }
 0x297   : > { %v9151_v59 = vadd.f32 %v3052_v61, %v2983_v52  ;;  %v421_v52 = vld [vmem:[%s8528_s21 + $0x100] sm:$0xff]  ;;  %v423_v61 = vld [vmem:[%s8528_s21 + $0x110] sm:$0xff]  ;;  %v9193_v57 = vrot.slane %v371_v46, %v8582_v48  ;;  %v6854_v46 = vpack.c.bf16 %v1306_v41, %v1208_v38  ;;  %v622_v41 = vld [vmem:[%s8528_s21 + $0x748] sm:$0xff] }
 0x298   : > { %v6808_v11 = vpack.c.bf16 %v519_v53, %v421_v52  ;;  %v6840_v0 = vpack.c.bf16 %v521_v54, %v423_v61  ;;  %v1500_v52 = vld [vmem:[%s8528_s21 + $0x22b8] sm:$0xff]  ;;  %v1502_v61 = vld [vmem:[%s8528_s21 + $0x22c8] sm:$0xff]  ;;  %v525_v38 = vld [vmem:[%s8528_s21 + $0x440] sm:$0xff] }
 0x299   : > { %v2133_v4 = vcombine.high %v9193_v57, %v9193_v57  ;;  %v1404_v53 = vld [vmem:[%s8528_s21 + $0x1fb8] sm:$0xff] }
 0x29a   : > { %6757 = vmatpush1.bf16.xpose.msra.mxu0 %v6756_v55  ;;  %v716_v55 = vld [vmem:[%s8528_s21 + $0xa38] sm:$0xff] }
 0x29b   : > { %6789 = vmatpush1.bf16.xpose.msra.mxu1 %v6788_v58  ;;  %6759 = vmatprep.subr.bf16.mxu0 %v6758_v60  ;;  %v620_v58 = vld [vmem:[%s8528_s21 + $0x738] sm:$0xff]  ;;  %v718_v60 = vld [vmem:[%s8528_s21 + $0xa48] sm:$0xff]  ;;  %v6810_v2 = vpack.c.bf16 %v716_v55, %v618_v1 }
 0x29c   : > { %6791 = vmatprep.subr.bf16.mxu1 %v6790_v63  ;;  %v9198_v63 = vrot.slane %v2118_v51, %v8582_v48  ;;  %v6842_v3 = vpack.c.bf16 %v718_v60, %v620_v58  ;;  %v1402_v51 = vld [vmem:[%s8528_s21 + $0x1fa8] sm:$0xff]  ;;  %v6858_v58 = vpack.c.bf16 %v1502_v61, %v1404_v53  ;;  %v1401_v60 = vld [vmem:[%s8528_s21 + $0x1fa0] sm:$0xff]  ;;  %v719_v61 = vld [vmem:[%s8528_s21 + $0xa50] sm:$0xff] }
 0x29d   : > { %v6826_v55 = vpack.c.bf16 %v1500_v52, %v1402_v51  ;;  %v621_v53 = vld [vmem:[%s8528_s21 + $0x740] sm:$0xff] }
 0x29e   : > { %v2134_v5 = vcombine.high %v9198_v63, %v9198_v63 }
 0x2a2   : > { %6761 = vmatpush1.bf16.xpose.msra.mxu0 %v6760_v8  ;;  %v619_v8 = vld [vmem:[%s8528_s21 + $0x730] sm:$0xff] }
 0x2a3   : > { %6793 = vmatpush1.bf16.xpose.msra.mxu1 %v6792_v9  ;;  %6763 = vmatprep.subr.bf16.mxu0 %v6762_v10  ;;  %v717_v9 = vld [vmem:[%s8528_s21 + $0xa40] sm:$0xff]  ;;  %v814_v10 = vld [vmem:[%s8528_s21 + $0xd48] sm:$0xff] }
 0x2a4   : > { %6795 = vmatprep.subr.bf16.mxu1 %v6794_v18  ;;  %v912_v18 = vld [vmem:[%s8528_s21 + $0x1058] sm:$0xff]  ;;  %v6844_v25 = vpack.c.bf16 %v717_v9, %v619_v8 }
 0x2a5   : > { %v6814_v56 = vpack.c.bf16 %v912_v18, %v814_v10  ;;  %v1597_v18 = vld [vmem:[%s8528_s21 + $0x25c0] sm:$0xff] }
 0x2aa   : > { %6765 = vmatpush1.bf16.xpose.msra.mxu0 %v6764_v20  ;;  %v1010_v20 = vld [vmem:[%s8528_s21 + $0x1368] sm:$0xff] }
 0x2ab   : > { %6797 = vmatpush1.bf16.xpose.msra.mxu1 %v6796_v21  ;;  %6767 = vmatprep.subr.bf16.mxu0 %v6766_v22  ;;  %v1108_v21 = vld [vmem:[%s8528_s21 + $0x1678] sm:$0xff] }
 0x2ac   : > { %6799 = vmatprep.subr.bf16.mxu1 %v6798_v23  ;;  %v1012_v22 = vld [vmem:[%s8528_s21 + $0x1378] sm:$0xff]  ;;  %v1110_v23 = vld [vmem:[%s8528_s21 + $0x1688] sm:$0xff]  ;;  %v6818_v27 = vpack.c.bf16 %v1108_v21, %v1010_v20  ;;  %v1793_v21 = vld [vmem:[%s8528_s21 + $0x2be0] sm:$0xff] }
 0x2ad   : > { %v6850_v28 = vpack.c.bf16 %v1110_v23, %v1012_v22  ;;  %v1891_v22 = vld [vmem:[%s8528_s21 + $0x2ef0] sm:$0xff] }
 0x2ae   : > { %v1795_v23 = vld [vmem:[%s8528_s21 + $0x2bf0] sm:$0xff]  ;;  %v6836_v29 = vpack.c.bf16 %v1891_v22, %v1793_v21 }
 0x2b2   : > { %6769 = vmatpush1.bf16.xpose.msra.mxu0 %v6768_v31  ;;  %v1109_v31 = vld [vmem:[%s8528_s21 + $0x1680] sm:$0xff] }
 0x2b3   : > { %6801 = vmatpush1.bf16.xpose.msra.mxu1 %v6800_v40  ;;  %6771 = vmatprep.subr.bf16.mxu0 %v6770_v32  ;;  %v1206_v40 = vld [vmem:[%s8528_s21 + $0x1988] sm:$0xff]  ;;  %v1304_v32 = vld [vmem:[%s8528_s21 + $0x1c98] sm:$0xff]  ;;  %v6852_v44 = vpack.c.bf16 %v1109_v31, %v1011_v30 }
 0x2b4   : > { %6803 = vmatprep.subr.bf16.mxu1 %v6802_v33  ;;  %v372_v30 = vld [vmem:[%s8580_s27 + $0x48] sm:$0xff] }
 0x2ba   : > { %6773 = vmatpush1.bf16.xpose.msra.mxu0 %v6772_v45  ;;  %v6822_v45 = vpack.c.bf16 %v1304_v32, %v1206_v40  ;;  %v2135_v32 = vcombine.high %v372_v30, %v372_v30 }
 0x2bb   : > { %6805 = vmatpush1.bf16.xpose.msra.mxu1 %v6804_v47  ;;  %6807 = vmatprep.subr.bf16.mxu0 %v6806_v49  ;;  %v1303_v47 = vld [vmem:[%s8528_s21 + $0x1c90] sm:$0xff] }
 0x2bc   : > { %6839 = vmatprep.subr.bf16.mxu1 %v6838_v50  ;;  %v1207_v49 = vld [vmem:[%s8528_s21 + $0x1990] sm:$0xff]  ;;  %v1305_v50 = vld [vmem:[%s8528_s21 + $0x1ca0] sm:$0xff] }
 0x2bd   : > { %v6856_v1 = vpack.c.bf16 %v1305_v50, %v1207_v49 }
 0x2c1   : > { %3541 = vmatmul.mubr.f32.vlgmr.msra.gmra.mrb[14].mxu0 %v9113_v15  ;;  %v816_v15 = vld [vmem:[%s8528_s21 + $0xd58] sm:$0xff] }
 0x2c2   : > { %6809 = vmatpush1.bf16.xpose.msra.mxu0 %v6808_v11  ;;  %3611 = vmatmul.mubr.f32.vlgmr.msra.gmra.mrb[14].mxu1 %v9118_v13  ;;  %v6812_v13 = vpack.c.bf16 %v715_v7, %v617_v6  ;;  %v6846_v14 = vpack.c.bf16 %v914_v12, %v816_v15  ;;  %v1499_v11 = vld [vmem:[%s8528_s21 + $0x22b0] sm:$0xff]  ;;  %v1698_v6 = vld [vmem:[%s8528_s21 + $0x28e8] sm:$0xff] }
 0x2c3   : > { %6841 = vmatpush1.bf16.xpose.msra.mxu1 %v6840_v0  ;;  %6811 = vmatprep.subr.bf16.mxu0 %v6810_v2  ;;  %v1403_v0 = vld [vmem:[%s8528_s21 + $0x1fb0] sm:$0xff]  ;;  %v1501_v2 = vld [vmem:[%s8528_s21 + $0x22c0] sm:$0xff]  ;;  %v6828_v7 = vpack.c.bf16 %v1499_v11, %v1401_v60  ;;  %v918_v60 = vld [vmem:[%s8528_s21 + $0x1088] sm:$0xff] }
 0x2c4   : > { %6843 = vmatprep.subr.bf16.mxu1 %v6842_v3  ;;  %3680 = vmatprep.mubr.f32.mxu0 %v2133_v4  ;;  %v1598_v3 = vld [vmem:[%s8528_s21 + $0x25c8] sm:$0xff]  ;;  %v1696_v4 = vld [vmem:[%s8528_s21 + $0x28d8] sm:$0xff]  ;;  %v6860_v8 = vpack.c.bf16 %v1501_v2, %v1403_v0  ;;  %v1695_v15 = vld [vmem:[%s8528_s21 + $0x28d0] sm:$0xff] }
 0x2c5   : > { %3750 = vmatprep.mubr.f32.mxu1 %v2134_v5  ;;  %v1600_v5 = vld [vmem:[%s8528_s21 + $0x25d8] sm:$0xff]  ;;  %v6830_v9 = vpack.c.bf16 %v1696_v4, %v1598_v3  ;;  %v1599_v12 = vld [vmem:[%s8528_s21 + $0x25d0] sm:$0xff]  ;;  %v6832_v16 = vpack.c.bf16 %v1695_v15, %v1597_v18  ;;  %v817_v3 = vld [vmem:[%s8528_s21 + $0xd60] sm:$0xff] }
 0x2c6   : > { %v6862_v10 = vpack.c.bf16 %v1698_v6, %v1600_v5  ;;  %v915_v4 = vld [vmem:[%s8528_s21 + $0x1070] sm:$0xff]  ;;  %v917_v6 = vld [vmem:[%s8528_s21 + $0x1080] sm:$0xff] }
 0x2c7   : > { %v819_v5 = vld [vmem:[%s8528_s21 + $0xd70] sm:$0xff]  ;;  %v6880_v18 = vpack.c.bf16 %v915_v4, %v817_v3  ;;  %v1898_v3 = vld [vmem:[%s8528_s21 + $0x2f28] sm:$0xff] }
 0x2c8   : > { %v6912_v15 = vpack.c.bf16 %v917_v6, %v819_v5 }
 0x2ca   : > { %6813 = vmatpush1.bf16.xpose.msra.mxu0 %v6812_v13  ;;  %v1697_v13 = vld [vmem:[%s8528_s21 + $0x28e0] sm:$0xff] }
 0x2cb   : > { %6845 = vmatpush1.bf16.xpose.msra.mxu1 %v6844_v25  ;;  %6815 = vmatprep.subr.bf16.mxu0 %v6814_v56  ;;  %v1794_v25 = vld [vmem:[%s8528_s21 + $0x2be8] sm:$0xff]  ;;  %v1892_v56 = vld [vmem:[%s8528_s21 + $0x2ef8] sm:$0xff]  ;;  %v6864_v17 = vpack.c.bf16 %v1697_v13, %v1599_v12 }
 0x2cc   : > { %6847 = vmatprep.subr.bf16.mxu1 %v6846_v14  ;;  %v1796_v14 = vld [vmem:[%s8528_s21 + $0x2bf8] sm:$0xff]  ;;  %v6834_v19 = vpack.c.bf16 %v1892_v56, %v1794_v25  ;;  %v1013_v25 = vld [vmem:[%s8528_s21 + $0x1380] sm:$0xff]  ;;  %v1111_v56 = vld [vmem:[%s8528_s21 + $0x1690] sm:$0xff] }
 0x2cd   : > { %v6866_v20 = vpack.c.bf16 %v1894_v62, %v1796_v14  ;;  %v1015_v14 = vld [vmem:[%s8528_s21 + $0x1390] sm:$0xff] }
 0x2d2   : > { %6817 = vmatpush1.bf16.xpose.msra.mxu0 %v6816_v26  ;;  %v1893_v26 = vld [vmem:[%s8528_s21 + $0x2f00] sm:$0xff] }
 0x2d3   : > { %6849 = vmatpush1.bf16.xpose.msra.mxu1 %v6848_v24  ;;  %6819 = vmatprep.subr.bf16.mxu0 %v6818_v27  ;;  %v426_v24 = vld [vmem:[%s8528_s21 + $0x128] sm:$0xff]  ;;  %v524_v27 = vld [vmem:[%s8528_s21 + $0x438] sm:$0xff] }
 0x2d4   : > { %v3122_v37 = vpop.f32.mrb[8].mxu0  ;;  %6851 = vmatprep.subr.bf16.mxu1 %v6850_v28  ;;  %v428_v28 = vld [vmem:[%s8528_s21 + $0x138] sm:$0xff]  ;;  %v6870_v31 = vpack.c.bf16 %v524_v27, %v426_v24  ;;  %v6884_v24 = vpack.c.bf16 %v1111_v56, %v1013_v25  ;;  %v530_v25 = vld [vmem:[%s8528_s21 + $0x468] sm:$0xff] }
 0x2d5   : > { %v3123_v33 = vadd.f32 %v3122_v37, %v9151_v59  ;;  %v3124_v34 = vpop.f32.mrb[9].mxu0  ;;  %v3192_v35 = vpop.f32.mrb[8].mxu1  ;;  %v1205_v59 = vld [vmem:[%s8528_s21 + $0x1980] sm:$0xff]  ;;  %v6868_v37 = vpack.c.bf16 %v1893_v26, %v1795_v23  ;;  %v6902_v40 = vpack.c.bf16 %v526_v36, %v428_v28  ;;  %v1212_v23 = vld [vmem:[%s8528_s21 + $0x19b8] sm:$0xff]  ;;  %v1310_v26 = vld [vmem:[%s8528_s21 + $0x1cc8] sm:$0xff] }
 0x2d6   : > { %v3194_v42 = vpop.f32.mrb[9].mxu1  ;;  %v6824_v54 = vpack.c.bf16 %v1303_v47, %v1205_v59  ;;  %v523_v34 = vld [vmem:[%s8528_s21 + $0x430] sm:$0xff] }
 0x2d7   : > { %v9231_v43 = vadd.f32 %v3192_v35, %v3123_v33  ;;  %v425_v33 = vld [vmem:[%s8528_s21 + $0x120] sm:$0xff]  ;;  %v427_v35 = vld [vmem:[%s8528_s21 + $0x130] sm:$0xff]  ;;  %v9273_v42 = vrot.slane %v372_v30, %v8582_v48  ;;  %v6918_v30 = vpack.c.bf16 %v1310_v26, %v1212_v23  ;;  %v626_v26 = vld [vmem:[%s8528_s21 + $0x768] sm:$0xff] }
 0x2d8   : > { %v6872_v59 = vpack.c.bf16 %v523_v34, %v425_v33  ;;  %v6904_v47 = vpack.c.bf16 %v525_v38, %v427_v35  ;;  %v1504_v33 = vld [vmem:[%s8528_s21 + $0x22d8] sm:$0xff]  ;;  %v1506_v35 = vld [vmem:[%s8528_s21 + $0x22e8] sm:$0xff]  ;;  %v529_v23 = vld [vmem:[%s8528_s21 + $0x460] sm:$0xff] }
 0x2d9   : > { %v2150_v51 = vcombine.high %v9273_v42, %v9273_v42  ;;  %v1408_v34 = vld [vmem:[%s8528_s21 + $0x1fd8] sm:$0xff] }
 0x2da   : > { %6821 = vmatpush1.bf16.xpose.msra.mxu0 %v6820_v39  ;;  %v720_v39 = vld [vmem:[%s8528_s21 + $0xa58] sm:$0xff] }
 0x2db   : > { %6853 = vmatpush1.bf16.xpose.msra.mxu1 %v6852_v44  ;;  %6823 = vmatprep.subr.bf16.mxu0 %v6822_v45  ;;  %v624_v44 = vld [vmem:[%s8528_s21 + $0x758] sm:$0xff]  ;;  %v722_v45 = vld [vmem:[%s8528_s21 + $0xa68] sm:$0xff]  ;;  %v6874_v49 = vpack.c.bf16 %v720_v39, %v622_v41 }
 0x2dc   : > { %6855 = vmatprep.subr.bf16.mxu1 %v6854_v46  ;;  %v9278_v46 = vrot.slane %v2135_v32, %v8582_v48  ;;  %v6906_v50 = vpack.c.bf16 %v722_v45, %v624_v44  ;;  %v1406_v32 = vld [vmem:[%s8528_s21 + $0x1fc8] sm:$0xff]  ;;  %v6922_v44 = vpack.c.bf16 %v1506_v35, %v1408_v34  ;;  %v1405_v45 = vld [vmem:[%s8528_s21 + $0x1fc0] sm:$0xff]  ;;  %v723_v35 = vld [vmem:[%s8528_s21 + $0xa70] sm:$0xff] }
 0x2dd   : > { %v6890_v39 = vpack.c.bf16 %v1504_v33, %v1406_v32  ;;  %v625_v34 = vld [vmem:[%s8528_s21 + $0x760] sm:$0xff] }
 0x2de   : > { %v2151_v52 = vcombine.high %v9278_v46, %v9278_v46 }
 0x2e2   : > { %6825 = vmatpush1.bf16.xpose.msra.mxu0 %v6824_v54  ;;  %v623_v54 = vld [vmem:[%s8528_s21 + $0x750] sm:$0xff] }
 0x2e3   : > { %6857 = vmatpush1.bf16.xpose.msra.mxu1 %v6856_v1  ;;  %6827 = vmatprep.subr.bf16.mxu0 %v6826_v55  ;;  %v721_v1 = vld [vmem:[%s8528_s21 + $0xa60] sm:$0xff]  ;;  %v818_v55 = vld [vmem:[%s8528_s21 + $0xd68] sm:$0xff] }
 0x2e4   : > { %6859 = vmatprep.subr.bf16.mxu1 %v6858_v58  ;;  %v916_v58 = vld [vmem:[%s8528_s21 + $0x1078] sm:$0xff]  ;;  %v6908_v11 = vpack.c.bf16 %v721_v1, %v623_v54 }
 0x2e5   : > { %v6878_v0 = vpack.c.bf16 %v916_v58, %v818_v55  ;;  %v1601_v58 = vld [vmem:[%s8528_s21 + $0x25e0] sm:$0xff] }
 0x2ea   : > { %6829 = vmatpush1.bf16.xpose.msra.mxu0 %v6828_v7  ;;  %v1014_v7 = vld [vmem:[%s8528_s21 + $0x1388] sm:$0xff] }
 0x2eb   : > { %6861 = vmatpush1.bf16.xpose.msra.mxu1 %v6860_v8  ;;  %6831 = vmatprep.subr.bf16.mxu0 %v6830_v9  ;;  %v1112_v8 = vld [vmem:[%s8528_s21 + $0x1698] sm:$0xff] }
 0x2ec   : > { %6863 = vmatprep.subr.bf16.mxu1 %v6862_v10  ;;  %v1016_v9 = vld [vmem:[%s8528_s21 + $0x1398] sm:$0xff]  ;;  %v1114_v10 = vld [vmem:[%s8528_s21 + $0x16a8] sm:$0xff]  ;;  %v6882_v12 = vpack.c.bf16 %v1112_v8, %v1014_v7  ;;  %v1797_v8 = vld [vmem:[%s8528_s21 + $0x2c00] sm:$0xff] }
 0x2ed   : > { %v6914_v13 = vpack.c.bf16 %v1114_v10, %v1016_v9  ;;  %v1895_v9 = vld [vmem:[%s8528_s21 + $0x2f10] sm:$0xff] }
 0x2ee   : > { %v1799_v10 = vld [vmem:[%s8528_s21 + $0x2c10] sm:$0xff]  ;;  %v6900_v56 = vpack.c.bf16 %v1895_v9, %v1797_v8 }
 0x2f2   : > { %6833 = vmatpush1.bf16.xpose.msra.mxu0 %v6832_v16  ;;  %v1113_v16 = vld [vmem:[%s8528_s21 + $0x16a0] sm:$0xff] }
 0x2f3   : > { %6865 = vmatpush1.bf16.xpose.msra.mxu1 %v6864_v17  ;;  %6835 = vmatprep.subr.bf16.mxu0 %v6834_v19  ;;  %v1210_v17 = vld [vmem:[%s8528_s21 + $0x19a8] sm:$0xff]  ;;  %v1308_v19 = vld [vmem:[%s8528_s21 + $0x1cb8] sm:$0xff]  ;;  %v6916_v36 = vpack.c.bf16 %v1113_v16, %v1015_v14 }
 0x2f4   : > { %6867 = vmatprep.subr.bf16.mxu1 %v6866_v20  ;;  %v373_v14 = vld [vmem:[%s8580_s27 + $0x50] sm:$0xff] }
 0x2fa   : > { %6837 = vmatpush1.bf16.xpose.msra.mxu0 %v6836_v29  ;;  %v6886_v29 = vpack.c.bf16 %v1308_v19, %v1210_v17  ;;  %v2152_v19 = vcombine.high %v373_v14, %v373_v14 }
 0x2fb   : > { %6869 = vmatpush1.bf16.xpose.msra.mxu1 %v6868_v37  ;;  %6871 = vmatprep.subr.bf16.mxu0 %v6870_v31  ;;  %v1307_v37 = vld [vmem:[%s8528_s21 + $0x1cb0] sm:$0xff] }
 0x2fc   : > { %6903 = vmatprep.subr.bf16.mxu1 %v6902_v40  ;;  %v1211_v31 = vld [vmem:[%s8528_s21 + $0x19b0] sm:$0xff]  ;;  %v1309_v40 = vld [vmem:[%s8528_s21 + $0x1cc0] sm:$0xff] }
 0x2fd   : > { %v6920_v41 = vpack.c.bf16 %v1309_v40, %v1211_v31 }
 0x301   : > { %3681 = vmatmul.mubr.f32.vlgmr.msra.gmra.mrb[16].mxu0 %v9193_v57  ;;  %v820_v57 = vld [vmem:[%s8528_s21 + $0xd78] sm:$0xff] }
 0x302   : > { %6873 = vmatpush1.bf16.xpose.msra.mxu0 %v6872_v59  ;;  %3751 = vmatmul.mubr.f32.vlgmr.msra.gmra.mrb[16].mxu1 %v9198_v63  ;;  %v6876_v63 = vpack.c.bf16 %v719_v61, %v621_v53  ;;  %v6910_v2 = vpack.c.bf16 %v918_v60, %v820_v57  ;;  %v1503_v59 = vld [vmem:[%s8528_s21 + $0x22d0] sm:$0xff]  ;;  %v1702_v53 = vld [vmem:[%s8528_s21 + $0x2908] sm:$0xff] }
 0x303   : > { %6905 = vmatpush1.bf16.xpose.msra.mxu1 %v6904_v47  ;;  %6875 = vmatprep.subr.bf16.mxu0 %v6874_v49  ;;  %v1407_v47 = vld [vmem:[%s8528_s21 + $0x1fd0] sm:$0xff]  ;;  %v1505_v49 = vld [vmem:[%s8528_s21 + $0x22e0] sm:$0xff]  ;;  %v6892_v61 = vpack.c.bf16 %v1503_v59, %v1405_v45  ;;  %v922_v45 = vld [vmem:[%s8528_s21 + $0x10a8] sm:$0xff] }
 0x304   : > { %6907 = vmatprep.subr.bf16.mxu1 %v6906_v50  ;;  %3820 = vmatprep.mubr.f32.mxu0 %v2150_v51  ;;  %v1602_v50 = vld [vmem:[%s8528_s21 + $0x25e8] sm:$0xff]  ;;  %v1700_v51 = vld [vmem:[%s8528_s21 + $0x28f8] sm:$0xff]  ;;  %v6924_v54 = vpack.c.bf16 %v1505_v49, %v1407_v47  ;;  %v1699_v57 = vld [vmem:[%s8528_s21 + $0x28f0] sm:$0xff] }
 0x305   : > { %3890 = vmatprep.mubr.f32.mxu1 %v2151_v52  ;;  %v1604_v52 = vld [vmem:[%s8528_s21 + $0x25f8] sm:$0xff]  ;;  %v6894_v1 = vpack.c.bf16 %v1700_v51, %v1602_v50  ;;  %v1603_v60 = vld [vmem:[%s8528_s21 + $0x25f0] sm:$0xff]  ;;  %v6896_v4 = vpack.c.bf16 %v1699_v57, %v1601_v58  ;;  %v821_v50 = vld [vmem:[%s8528_s21 + $0xd80] sm:$0xff] }
 0x306   : > { %v6926_v55 = vpack.c.bf16 %v1702_v53, %v1604_v52  ;;  %v919_v51 = vld [vmem:[%s8528_s21 + $0x1090] sm:$0xff]  ;;  %v921_v53 = vld [vmem:[%s8528_s21 + $0x10a0] sm:$0xff] }
 0x307   : > { %v823_v52 = vld [vmem:[%s8528_s21 + $0xd90] sm:$0xff]  ;;  %v6944_v58 = vpack.c.bf16 %v919_v51, %v821_v50  ;;  %v1902_v50 = vld [vmem:[%s8528_s21 + $0x2f48] sm:$0xff] }
 0x308   : > { %v6976_v57 = vpack.c.bf16 %v921_v53, %v823_v52 }
 0x30a   : > { %6877 = vmatpush1.bf16.xpose.msra.mxu0 %v6876_v63  ;;  %v1701_v63 = vld [vmem:[%s8528_s21 + $0x2900] sm:$0xff] }
 0x30b   : > { %6909 = vmatpush1.bf16.xpose.msra.mxu1 %v6908_v11  ;;  %6879 = vmatprep.subr.bf16.mxu0 %v6878_v0  ;;  %v1798_v11 = vld [vmem:[%s8528_s21 + $0x2c08] sm:$0xff]  ;;  %v1896_v0 = vld [vmem:[%s8528_s21 + $0x2f18] sm:$0xff]  ;;  %v6928_v5 = vpack.c.bf16 %v1701_v63, %v1603_v60 }
 0x30c   : > { %6911 = vmatprep.subr.bf16.mxu1 %v6910_v2  ;;  %v1800_v2 = vld [vmem:[%s8528_s21 + $0x2c18] sm:$0xff]  ;;  %v6898_v6 = vpack.c.bf16 %v1896_v0, %v1798_v11  ;;  %v1017_v11 = vld [vmem:[%s8528_s21 + $0x13a0] sm:$0xff]  ;;  %v1115_v0 = vld [vmem:[%s8528_s21 + $0x16b0] sm:$0xff] }
 0x30d   : > { %v6930_v7 = vpack.c.bf16 %v1898_v3, %v1800_v2  ;;  %v1019_v2 = vld [vmem:[%s8528_s21 + $0x13b0] sm:$0xff] }
 0x312   : > { %6881 = vmatpush1.bf16.xpose.msra.mxu0 %v6880_v18  ;;  %v1897_v18 = vld [vmem:[%s8528_s21 + $0x2f20] sm:$0xff] }
 0x313   : > { %6913 = vmatpush1.bf16.xpose.msra.mxu1 %v6912_v15  ;;  %6883 = vmatprep.subr.bf16.mxu0 %v6882_v12  ;;  %v430_v15 = vld [vmem:[%s8528_s21 + $0x148] sm:$0xff]  ;;  %v528_v12 = vld [vmem:[%s8528_s21 + $0x458] sm:$0xff] }
 0x314   : > { %v3262_v62 = vpop.f32.mrb[10].mxu0  ;;  %6915 = vmatprep.subr.bf16.mxu1 %v6914_v13  ;;  %v432_v13 = vld [vmem:[%s8528_s21 + $0x158] sm:$0xff]  ;;  %v6934_v16 = vpack.c.bf16 %v528_v12, %v430_v15  ;;  %v6948_v15 = vpack.c.bf16 %v1115_v0, %v1017_v11  ;;  %v534_v11 = vld [vmem:[%s8528_s21 + $0x488] sm:$0xff] }
 0x315   : > { %v3263_v20 = vadd.f32 %v3262_v62, %v9231_v43  ;;  %v3264_v21 = vpop.f32.mrb[11].mxu0  ;;  %v3332_v22 = vpop.f32.mrb[10].mxu1  ;;  %v1209_v43 = vld [vmem:[%s8528_s21 + $0x19a0] sm:$0xff]  ;;  %v6932_v62 = vpack.c.bf16 %v1897_v18, %v1799_v10  ;;  %v6966_v17 = vpack.c.bf16 %v530_v25, %v432_v13  ;;  %v1216_v10 = vld [vmem:[%s8528_s21 + $0x19d8] sm:$0xff]  ;;  %v1314_v18 = vld [vmem:[%s8528_s21 + $0x1ce8] sm:$0xff] }
 0x316   : > { %v3334_v27 = vpop.f32.mrb[11].mxu1  ;;  %v6888_v38 = vpack.c.bf16 %v1307_v37, %v1209_v43  ;;  %v527_v21 = vld [vmem:[%s8528_s21 + $0x450] sm:$0xff] }
 0x317   : > { %v9311_v28 = vadd.f32 %v3332_v22, %v3263_v20  ;;  %v429_v20 = vld [vmem:[%s8528_s21 + $0x140] sm:$0xff]  ;;  %v431_v22 = vld [vmem:[%s8528_s21 + $0x150] sm:$0xff]  ;;  %v9353_v27 = vrot.slane %v373_v14, %v8582_v48  ;;  %v6982_v14 = vpack.c.bf16 %v1314_v18, %v1216_v10  ;;  %v630_v18 = vld [vmem:[%s8528_s21 + $0x788] sm:$0xff] }
 0x318   : > { %v6936_v43 = vpack.c.bf16 %v527_v21, %v429_v20  ;;  %v6968_v37 = vpack.c.bf16 %v529_v23, %v431_v22  ;;  %v1508_v20 = vld [vmem:[%s8528_s21 + $0x22f8] sm:$0xff]  ;;  %v1510_v22 = vld [vmem:[%s8528_s21 + $0x2308] sm:$0xff]  ;;  %v533_v10 = vld [vmem:[%s8528_s21 + $0x480] sm:$0xff] }
 0x319   : > { %v2167_v32 = vcombine.high %v9353_v27, %v9353_v27  ;;  %v1412_v21 = vld [vmem:[%s8528_s21 + $0x1ff8] sm:$0xff] }
 0x31a   : > { %6885 = vmatpush1.bf16.xpose.msra.mxu0 %v6884_v24  ;;  %v724_v24 = vld [vmem:[%s8528_s21 + $0xa78] sm:$0xff] }
 0x31b   : > { %6917 = vmatpush1.bf16.xpose.msra.mxu1 %v6916_v36  ;;  %6887 = vmatprep.subr.bf16.mxu0 %v6886_v29  ;;  %v628_v36 = vld [vmem:[%s8528_s21 + $0x778] sm:$0xff]  ;;  %v726_v29 = vld [vmem:[%s8528_s21 + $0xa88] sm:$0xff]  ;;  %v6938_v31 = vpack.c.bf16 %v724_v24, %v626_v26 }
 0x31c   : > { %6919 = vmatprep.subr.bf16.mxu1 %v6918_v30  ;;  %v9358_v30 = vrot.slane %v2152_v19, %v8582_v48  ;;  %v6970_v40 = vpack.c.bf16 %v726_v29, %v628_v36  ;;  %v1410_v19 = vld [vmem:[%s8528_s21 + $0x1fe8] sm:$0xff]  ;;  %v6986_v36 = vpack.c.bf16 %v1510_v22, %v1412_v21  ;;  %v1409_v29 = vld [vmem:[%s8528_s21 + $0x1fe0] sm:$0xff]  ;;  %v727_v22 = vld [vmem:[%s8528_s21 + $0xa90] sm:$0xff] }
 0x31d   : > { %v6954_v24 = vpack.c.bf16 %v1508_v20, %v1410_v19  ;;  %v629_v21 = vld [vmem:[%s8528_s21 + $0x780] sm:$0xff] }
 0x31e   : > { %v2168_v33 = vcombine.high %v9358_v30, %v9358_v30 }
 0x322   : > { %6889 = vmatpush1.bf16.xpose.msra.mxu0 %v6888_v38  ;;  %v627_v38 = vld [vmem:[%s8528_s21 + $0x770] sm:$0xff] }
 0x323   : > { %6921 = vmatpush1.bf16.xpose.msra.mxu1 %v6920_v41  ;;  %6891 = vmatprep.subr.bf16.mxu0 %v6890_v39  ;;  %v725_v41 = vld [vmem:[%s8528_s21 + $0xa80] sm:$0xff]  ;;  %v822_v39 = vld [vmem:[%s8528_s21 + $0xd88] sm:$0xff] }
 0x324   : > { %6923 = vmatprep.subr.bf16.mxu1 %v6922_v44  ;;  %v920_v44 = vld [vmem:[%s8528_s21 + $0x1098] sm:$0xff]  ;;  %v6972_v59 = vpack.c.bf16 %v725_v41, %v627_v38 }
 0x325   : > { %v6942_v47 = vpack.c.bf16 %v920_v44, %v822_v39  ;;  %v1605_v44 = vld [vmem:[%s8528_s21 + $0x2600] sm:$0xff] }
 0x32a   : > { %6893 = vmatpush1.bf16.xpose.msra.mxu0 %v6892_v61  ;;  %v1018_v61 = vld [vmem:[%s8528_s21 + $0x13a8] sm:$0xff] }
 0x32b   : > { %6925 = vmatpush1.bf16.xpose.msra.mxu1 %v6924_v54  ;;  %6895 = vmatprep.subr.bf16.mxu0 %v6894_v1  ;;  %v1116_v54 = vld [vmem:[%s8528_s21 + $0x16b8] sm:$0xff] }
 0x32c   : > { %6927 = vmatprep.subr.bf16.mxu1 %v6926_v55  ;;  %v1020_v1 = vld [vmem:[%s8528_s21 + $0x13b8] sm:$0xff]  ;;  %v1118_v55 = vld [vmem:[%s8528_s21 + $0x16c8] sm:$0xff]  ;;  %v6946_v60 = vpack.c.bf16 %v1116_v54, %v1018_v61  ;;  %v1801_v54 = vld [vmem:[%s8528_s21 + $0x2c20] sm:$0xff] }
 0x32d   : > { %v6978_v63 = vpack.c.bf16 %v1118_v55, %v1020_v1  ;;  %v1899_v1 = vld [vmem:[%s8528_s21 + $0x2f30] sm:$0xff] }
 0x32e   : > { %v1803_v55 = vld [vmem:[%s8528_s21 + $0x2c30] sm:$0xff]  ;;  %v6964_v0 = vpack.c.bf16 %v1899_v1, %v1801_v54 }
 0x332   : > { %6897 = vmatpush1.bf16.xpose.msra.mxu0 %v6896_v4  ;;  %v1117_v4 = vld [vmem:[%s8528_s21 + $0x16c0] sm:$0xff] }
 0x333   : > { %6929 = vmatpush1.bf16.xpose.msra.mxu1 %v6928_v5  ;;  %6899 = vmatprep.subr.bf16.mxu0 %v6898_v6  ;;  %v1214_v5 = vld [vmem:[%s8528_s21 + $0x19c8] sm:$0xff]  ;;  %v1312_v6 = vld [vmem:[%s8528_s21 + $0x1cd8] sm:$0xff]  ;;  %v6980_v25 = vpack.c.bf16 %v1117_v4, %v1019_v2 }
 0x334   : > { %6931 = vmatprep.subr.bf16.mxu1 %v6930_v7  ;;  %v374_v2 = vld [vmem:[%s8580_s27 + $0x58] sm:$0xff] }
 0x33a   : > { %6901 = vmatpush1.bf16.xpose.msra.mxu0 %v6900_v56  ;;  %v6950_v56 = vpack.c.bf16 %v1312_v6, %v1214_v5  ;;  %v2169_v6 = vcombine.high %v374_v2, %v374_v2 }
 0x33b   : > { %6933 = vmatpush1.bf16.xpose.msra.mxu1 %v6932_v62  ;;  %6935 = vmatprep.subr.bf16.mxu0 %v6934_v16  ;;  %v1311_v62 = vld [vmem:[%s8528_s21 + $0x1cd0] sm:$0xff] }
 0x33c   : > { %6967 = vmatprep.subr.bf16.mxu1 %v6966_v17  ;;  %v1215_v16 = vld [vmem:[%s8528_s21 + $0x19d0] sm:$0xff]  ;;  %v1313_v17 = vld [vmem:[%s8528_s21 + $0x1ce0] sm:$0xff] }
 0x33d   : > { %v6984_v26 = vpack.c.bf16 %v1313_v17, %v1215_v16 }
 0x341   : > { %3821 = vmatmul.mubr.f32.vlgmr.msra.gmra.mrb[18].mxu0 %v9273_v42  ;;  %v824_v42 = vld [vmem:[%s8528_s21 + $0xd98] sm:$0xff] }
 0x342   : > { %6937 = vmatpush1.bf16.xpose.msra.mxu0 %v6936_v43  ;;  %3891 = vmatmul.mubr.f32.vlgmr.msra.gmra.mrb[18].mxu1 %v9278_v46  ;;  %v6940_v46 = vpack.c.bf16 %v723_v35, %v625_v34  ;;  %v6974_v49 = vpack.c.bf16 %v922_v45, %v824_v42  ;;  %v1507_v43 = vld [vmem:[%s8528_s21 + $0x22f0] sm:$0xff]  ;;  %v1706_v34 = vld [vmem:[%s8528_s21 + $0x2928] sm:$0xff] }
 0x343   : > { %6969 = vmatpush1.bf16.xpose.msra.mxu1 %v6968_v37  ;;  %6939 = vmatprep.subr.bf16.mxu0 %v6938_v31  ;;  %v1411_v37 = vld [vmem:[%s8528_s21 + $0x1ff0] sm:$0xff]  ;;  %v1509_v31 = vld [vmem:[%s8528_s21 + $0x2300] sm:$0xff]  ;;  %v6956_v35 = vpack.c.bf16 %v1507_v43, %v1409_v29  ;;  %v926_v29 = vld [vmem:[%s8528_s21 + $0x10c8] sm:$0xff] }
 0x344   : > { %6971 = vmatprep.subr.bf16.mxu1 %v6970_v40  ;;  %3960 = vmatprep.mubr.f32.mxu0 %v2167_v32  ;;  %v1606_v40 = vld [vmem:[%s8528_s21 + $0x2608] sm:$0xff]  ;;  %v1704_v32 = vld [vmem:[%s8528_s21 + $0x2918] sm:$0xff]  ;;  %v6988_v38 = vpack.c.bf16 %v1509_v31, %v1411_v37  ;;  %v1703_v42 = vld [vmem:[%s8528_s21 + $0x2910] sm:$0xff] }
 0x345   : > { %4030 = vmatprep.mubr.f32.mxu1 %v2168_v33  ;;  %v1608_v33 = vld [vmem:[%s8528_s21 + $0x2618] sm:$0xff]  ;;  %v6958_v41 = vpack.c.bf16 %v1704_v32, %v1606_v40  ;;  %v1607_v45 = vld [vmem:[%s8528_s21 + $0x2610] sm:$0xff]  ;;  %v6960_v51 = vpack.c.bf16 %v1703_v42, %v1605_v44  ;;  %v825_v40 = vld [vmem:[%s8528_s21 + $0xda0] sm:$0xff] }
 0x346   : > { %v6990_v39 = vpack.c.bf16 %v1706_v34, %v1608_v33  ;;  %v923_v32 = vld [vmem:[%s8528_s21 + $0x10b0] sm:$0xff]  ;;  %v925_v34 = vld [vmem:[%s8528_s21 + $0x10c0] sm:$0xff] }
 0x347   : > { %v827_v33 = vld [vmem:[%s8528_s21 + $0xdb0] sm:$0xff]  ;;  %v7008_v44 = vpack.c.bf16 %v923_v32, %v825_v40  ;;  %v1906_v40 = vld [vmem:[%s8528_s21 + $0x2f68] sm:$0xff] }
 0x348   : > { %v7040_v42 = vpack.c.bf16 %v925_v34, %v827_v33 }
 0x34a   : > { %6941 = vmatpush1.bf16.xpose.msra.mxu0 %v6940_v46  ;;  %v1705_v46 = vld [vmem:[%s8528_s21 + $0x2920] sm:$0xff] }
 0x34b   : > { %6973 = vmatpush1.bf16.xpose.msra.mxu1 %v6972_v59  ;;  %6943 = vmatprep.subr.bf16.mxu0 %v6942_v47  ;;  %v1802_v59 = vld [vmem:[%s8528_s21 + $0x2c28] sm:$0xff]  ;;  %v1900_v47 = vld [vmem:[%s8528_s21 + $0x2f38] sm:$0xff]  ;;  %v6992_v52 = vpack.c.bf16 %v1705_v46, %v1607_v45 }
 0x34c   : > { %6975 = vmatprep.subr.bf16.mxu1 %v6974_v49  ;;  %v1804_v49 = vld [vmem:[%s8528_s21 + $0x2c38] sm:$0xff]  ;;  %v6962_v53 = vpack.c.bf16 %v1900_v47, %v1802_v59  ;;  %v1021_v59 = vld [vmem:[%s8528_s21 + $0x13c0] sm:$0xff]  ;;  %v1119_v47 = vld [vmem:[%s8528_s21 + $0x16d0] sm:$0xff] }
 0x34d   : > { %v6994_v61 = vpack.c.bf16 %v1902_v50, %v1804_v49  ;;  %v1023_v49 = vld [vmem:[%s8528_s21 + $0x13d0] sm:$0xff] }
 0x352   : > { %6945 = vmatpush1.bf16.xpose.msra.mxu0 %v6944_v58  ;;  %v1901_v58 = vld [vmem:[%s8528_s21 + $0x2f40] sm:$0xff] }
 0x353   : > { %6977 = vmatpush1.bf16.xpose.msra.mxu1 %v6976_v57  ;;  %6947 = vmatprep.subr.bf16.mxu0 %v6946_v60  ;;  %v434_v57 = vld [vmem:[%s8528_s21 + $0x168] sm:$0xff]  ;;  %v532_v60 = vld [vmem:[%s8528_s21 + $0x478] sm:$0xff] }
 0x354   : > { %v3402_v3 = vpop.f32.mrb[12].mxu0  ;;  %6979 = vmatprep.subr.bf16.mxu1 %v6978_v63  ;;  %v436_v63 = vld [vmem:[%s8528_s21 + $0x178] sm:$0xff]  ;;  %v6998_v4 = vpack.c.bf16 %v532_v60, %v434_v57  ;;  %v7012_v57 = vpack.c.bf16 %v1119_v47, %v1021_v59  ;;  %v538_v59 = vld [vmem:[%s8528_s21 + $0x4a8] sm:$0xff] }
 0x355   : > { %v3403_v7 = vadd.f32 %v3402_v3, %v9311_v28  ;;  %v3404_v8 = vpop.f32.mrb[13].mxu0  ;;  %v3472_v9 = vpop.f32.mrb[12].mxu1  ;;  %v1213_v28 = vld [vmem:[%s8528_s21 + $0x19c0] sm:$0xff]  ;;  %v6996_v3 = vpack.c.bf16 %v1901_v58, %v1803_v55  ;;  %v7030_v5 = vpack.c.bf16 %v534_v11, %v436_v63  ;;  %v1220_v55 = vld [vmem:[%s8528_s21 + $0x19f8] sm:$0xff]  ;;  %v1318_v58 = vld [vmem:[%s8528_s21 + $0x1d08] sm:$0xff] }
 0x356   : > { %v3474_v12 = vpop.f32.mrb[13].mxu1  ;;  %v6952_v23 = vpack.c.bf16 %v1311_v62, %v1213_v28  ;;  %v531_v8 = vld [vmem:[%s8528_s21 + $0x470] sm:$0xff] }
 0x357   : > { %v9391_v13 = vadd.f32 %v3472_v9, %v3403_v7  ;;  %v433_v7 = vld [vmem:[%s8528_s21 + $0x160] sm:$0xff]  ;;  %v435_v9 = vld [vmem:[%s8528_s21 + $0x170] sm:$0xff]  ;;  %v9433_v12 = vrot.slane %v374_v2, %v8582_v48  ;;  %v7046_v2 = vpack.c.bf16 %v1318_v58, %v1220_v55  ;;  %v634_v58 = vld [vmem:[%s8528_s21 + $0x7a8] sm:$0xff] }
 0x358   : > { %v7000_v28 = vpack.c.bf16 %v531_v8, %v433_v7  ;;  %v7032_v62 = vpack.c.bf16 %v533_v10, %v435_v9  ;;  %v1512_v7 = vld [vmem:[%s8528_s21 + $0x2318] sm:$0xff]  ;;  %v1514_v9 = vld [vmem:[%s8528_s21 + $0x2328] sm:$0xff]  ;;  %v537_v55 = vld [vmem:[%s8528_s21 + $0x4a0] sm:$0xff] }
 0x359   : > { %v2184_v19 = vcombine.high %v9433_v12, %v9433_v12  ;;  %v1416_v8 = vld [vmem:[%s8528_s21 + $0x2018] sm:$0xff] }
 0x35a   : > { %6949 = vmatpush1.bf16.xpose.msra.mxu0 %v6948_v15  ;;  %v728_v15 = vld [vmem:[%s8528_s21 + $0xa98] sm:$0xff] }
 0x35b   : > { %6981 = vmatpush1.bf16.xpose.msra.mxu1 %v6980_v25  ;;  %6951 = vmatprep.subr.bf16.mxu0 %v6950_v56  ;;  %v632_v25 = vld [vmem:[%s8528_s21 + $0x798] sm:$0xff]  ;;  %v730_v56 = vld [vmem:[%s8528_s21 + $0xaa8] sm:$0xff]  ;;  %v7002_v16 = vpack.c.bf16 %v728_v15, %v630_v18 }
 0x35c   : > { %6983 = vmatprep.subr.bf16.mxu1 %v6982_v14  ;;  %v9438_v14 = vrot.slane %v2169_v6, %v8582_v48  ;;  %v7034_v17 = vpack.c.bf16 %v730_v56, %v632_v25  ;;  %v1414_v6 = vld [vmem:[%s8528_s21 + $0x2008] sm:$0xff]  ;;  %v7050_v25 = vpack.c.bf16 %v1514_v9, %v1416_v8  ;;  %v1413_v56 = vld [vmem:[%s8528_s21 + $0x2000] sm:$0xff]  ;;  %v731_v9 = vld [vmem:[%s8528_s21 + $0xab0] sm:$0xff] }
 0x35d   : > { %v7018_v15 = vpack.c.bf16 %v1512_v7, %v1414_v6  ;;  %v633_v8 = vld [vmem:[%s8528_s21 + $0x7a0] sm:$0xff] }
 0x35e   : > { %v2185_v20 = vcombine.high %v9438_v14, %v9438_v14 }
 0x362   : > { %6953 = vmatpush1.bf16.xpose.msra.mxu0 %v6952_v23  ;;  %v631_v23 = vld [vmem:[%s8528_s21 + $0x790] sm:$0xff] }
 0x363   : > { %6985 = vmatpush1.bf16.xpose.msra.mxu1 %v6984_v26  ;;  %6955 = vmatprep.subr.bf16.mxu0 %v6954_v24  ;;  %v729_v26 = vld [vmem:[%s8528_s21 + $0xaa0] sm:$0xff]  ;;  %v826_v24 = vld [vmem:[%s8528_s21 + $0xda8] sm:$0xff] }
 0x364   : > { %6987 = vmatprep.subr.bf16.mxu1 %v6986_v36  ;;  %v924_v36 = vld [vmem:[%s8528_s21 + $0x10b8] sm:$0xff]  ;;  %v7036_v43 = vpack.c.bf16 %v729_v26, %v631_v23 }
 0x365   : > { %v7006_v37 = vpack.c.bf16 %v924_v36, %v826_v24  ;;  %v1609_v36 = vld [vmem:[%s8528_s21 + $0x2620] sm:$0xff] }
 0x36a   : > { %6957 = vmatpush1.bf16.xpose.msra.mxu0 %v6956_v35  ;;  %v1022_v35 = vld [vmem:[%s8528_s21 + $0x13c8] sm:$0xff] }
 0x36b   : > { %6989 = vmatpush1.bf16.xpose.msra.mxu1 %v6988_v38  ;;  %6959 = vmatprep.subr.bf16.mxu0 %v6958_v41  ;;  %v1120_v38 = vld [vmem:[%s8528_s21 + $0x16d8] sm:$0xff] }
 0x36c   : > { %6991 = vmatprep.subr.bf16.mxu1 %v6990_v39  ;;  %v1024_v41 = vld [vmem:[%s8528_s21 + $0x13d8] sm:$0xff]  ;;  %v1122_v39 = vld [vmem:[%s8528_s21 + $0x16e8] sm:$0xff]  ;;  %v7010_v45 = vpack.c.bf16 %v1120_v38, %v1022_v35  ;;  %v1805_v38 = vld [vmem:[%s8528_s21 + $0x2c40] sm:$0xff] }
 0x36d   : > { %v7042_v46 = vpack.c.bf16 %v1122_v39, %v1024_v41  ;;  %v1903_v41 = vld [vmem:[%s8528_s21 + $0x2f50] sm:$0xff] }
 0x36e   : > { %v1807_v39 = vld [vmem:[%s8528_s21 + $0x2c50] sm:$0xff]  ;;  %v7028_v47 = vpack.c.bf16 %v1903_v41, %v1805_v38 }
 0x372   : > { %6961 = vmatpush1.bf16.xpose.msra.mxu0 %v6960_v51  ;;  %v1121_v51 = vld [vmem:[%s8528_s21 + $0x16e0] sm:$0xff] }
 0x373   : > { %6993 = vmatpush1.bf16.xpose.msra.mxu1 %v6992_v52  ;;  %6963 = vmatprep.subr.bf16.mxu0 %v6962_v53  ;;  %v1218_v52 = vld [vmem:[%s8528_s21 + $0x19e8] sm:$0xff]  ;;  %v1316_v53 = vld [vmem:[%s8528_s21 + $0x1cf8] sm:$0xff]  ;;  %v7044_v11 = vpack.c.bf16 %v1121_v51, %v1023_v49 }
 0x374   : > { %6995 = vmatprep.subr.bf16.mxu1 %v6994_v61  ;;  %v375_v49 = vld [vmem:[%s8580_s27 + $0x60] sm:$0xff] }
 0x37a   : > { %6965 = vmatpush1.bf16.xpose.msra.mxu0 %v6964_v0  ;;  %v7014_v0 = vpack.c.bf16 %v1316_v53, %v1218_v52  ;;  %v2186_v53 = vcombine.high %v375_v49, %v375_v49 }
 0x37b   : > { %6997 = vmatpush1.bf16.xpose.msra.mxu1 %v6996_v3  ;;  %6999 = vmatprep.subr.bf16.mxu0 %v6998_v4  ;;  %v1315_v3 = vld [vmem:[%s8528_s21 + $0x1cf0] sm:$0xff] }
 0x37c   : > { %7031 = vmatprep.subr.bf16.mxu1 %v7030_v5  ;;  %v1219_v4 = vld [vmem:[%s8528_s21 + $0x19f0] sm:$0xff]  ;;  %v1317_v5 = vld [vmem:[%s8528_s21 + $0x1d00] sm:$0xff] }
 0x37d   : > { %v7048_v18 = vpack.c.bf16 %v1317_v5, %v1219_v4 }
 0x381   : > { %3961 = vmatmul.mubr.f32.vlgmr.msra.gmra.mrb[20].mxu0 %v9353_v27  ;;  %v828_v27 = vld [vmem:[%s8528_s21 + $0xdb8] sm:$0xff] }
 0x382   : > { %7001 = vmatpush1.bf16.xpose.msra.mxu0 %v7000_v28  ;;  %4031 = vmatmul.mubr.f32.vlgmr.msra.gmra.mrb[20].mxu1 %v9358_v30  ;;  %v7004_v30 = vpack.c.bf16 %v727_v22, %v629_v21  ;;  %v7038_v31 = vpack.c.bf16 %v926_v29, %v828_v27  ;;  %v1511_v28 = vld [vmem:[%s8528_s21 + $0x2310] sm:$0xff]  ;;  %v1710_v21 = vld [vmem:[%s8528_s21 + $0x2948] sm:$0xff] }
 0x383   : > { %7033 = vmatpush1.bf16.xpose.msra.mxu1 %v7032_v62  ;;  %7003 = vmatprep.subr.bf16.mxu0 %v7002_v16  ;;  %v1415_v62 = vld [vmem:[%s8528_s21 + $0x2010] sm:$0xff]  ;;  %v1513_v16 = vld [vmem:[%s8528_s21 + $0x2320] sm:$0xff]  ;;  %v7020_v22 = vpack.c.bf16 %v1511_v28, %v1413_v56  ;;  %v930_v56 = vld [vmem:[%s8528_s21 + $0x10e8] sm:$0xff] }
 0x384   : > { %7035 = vmatprep.subr.bf16.mxu1 %v7034_v17  ;;  %4100 = vmatprep.mubr.f32.mxu0 %v2184_v19  ;;  %v1610_v17 = vld [vmem:[%s8528_s21 + $0x2628] sm:$0xff]  ;;  %v1708_v19 = vld [vmem:[%s8528_s21 + $0x2938] sm:$0xff]  ;;  %v7052_v23 = vpack.c.bf16 %v1513_v16, %v1415_v62  ;;  %v1707_v27 = vld [vmem:[%s8528_s21 + $0x2930] sm:$0xff] }
 0x385   : > { %4170 = vmatprep.mubr.f32.mxu1 %v2185_v20  ;;  %v1612_v20 = vld [vmem:[%s8528_s21 + $0x2638] sm:$0xff]  ;;  %v7022_v26 = vpack.c.bf16 %v1708_v19, %v1610_v17  ;;  %v1611_v29 = vld [vmem:[%s8528_s21 + $0x2630] sm:$0xff]  ;;  %v7024_v32 = vpack.c.bf16 %v1707_v27, %v1609_v36  ;;  %v829_v17 = vld [vmem:[%s8528_s21 + $0xdc0] sm:$0xff] }
 0x386   : > { %v7054_v24 = vpack.c.bf16 %v1710_v21, %v1612_v20  ;;  %v927_v19 = vld [vmem:[%s8528_s21 + $0x10d0] sm:$0xff]  ;;  %v929_v21 = vld [vmem:[%s8528_s21 + $0x10e0] sm:$0xff] }
 0x387   : > { %v831_v20 = vld [vmem:[%s8528_s21 + $0xdd0] sm:$0xff]  ;;  %v7072_v36 = vpack.c.bf16 %v927_v19, %v829_v17  ;;  %v1910_v17 = vld [vmem:[%s8528_s21 + $0x2f88] sm:$0xff] }
 0x388   : > { %v7104_v27 = vpack.c.bf16 %v929_v21, %v831_v20 }
 0x38a   : > { %7005 = vmatpush1.bf16.xpose.msra.mxu0 %v7004_v30  ;;  %v1709_v30 = vld [vmem:[%s8528_s21 + $0x2940] sm:$0xff] }
 0x38b   : > { %7037 = vmatpush1.bf16.xpose.msra.mxu1 %v7036_v43  ;;  %7007 = vmatprep.subr.bf16.mxu0 %v7006_v37  ;;  %v1806_v43 = vld [vmem:[%s8528_s21 + $0x2c48] sm:$0xff]  ;;  %v1904_v37 = vld [vmem:[%s8528_s21 + $0x2f58] sm:$0xff]  ;;  %v7056_v33 = vpack.c.bf16 %v1709_v30, %v1611_v29 }
 0x38c   : > { %7039 = vmatprep.subr.bf16.mxu1 %v7038_v31  ;;  %v1808_v31 = vld [vmem:[%s8528_s21 + $0x2c58] sm:$0xff]  ;;  %v7026_v34 = vpack.c.bf16 %v1904_v37, %v1806_v43  ;;  %v1025_v43 = vld [vmem:[%s8528_s21 + $0x13e0] sm:$0xff]  ;;  %v1123_v37 = vld [vmem:[%s8528_s21 + $0x16f0] sm:$0xff] }
 0x38d   : > { %v7058_v35 = vpack.c.bf16 %v1906_v40, %v1808_v31  ;;  %v1027_v31 = vld [vmem:[%s8528_s21 + $0x13f0] sm:$0xff] }
 0x392   : > { %7009 = vmatpush1.bf16.xpose.msra.mxu0 %v7008_v44  ;;  %v1905_v44 = vld [vmem:[%s8528_s21 + $0x2f60] sm:$0xff] }
 0x393   : > { %7041 = vmatpush1.bf16.xpose.msra.mxu1 %v7040_v42  ;;  %7011 = vmatprep.subr.bf16.mxu0 %v7010_v45  ;;  %v438_v42 = vld [vmem:[%s8528_s21 + $0x188] sm:$0xff]  ;;  %v536_v45 = vld [vmem:[%s8528_s21 + $0x498] sm:$0xff] }
 0x394   : > { %v3542_v50 = vpop.f32.mrb[14].mxu0  ;;  %7043 = vmatprep.subr.bf16.mxu1 %v7042_v46  ;;  %v440_v46 = vld [vmem:[%s8528_s21 + $0x198] sm:$0xff]  ;;  %v7062_v51 = vpack.c.bf16 %v536_v45, %v438_v42  ;;  %v7076_v42 = vpack.c.bf16 %v1123_v37, %v1025_v43  ;;  %v542_v43 = vld [vmem:[%s8528_s21 + $0x4c8] sm:$0xff] }
 0x395   : > { %v3543_v61 = vadd.f32 %v3542_v50, %v9391_v13  ;;  %v3544_v54 = vpop.f32.mrb[15].mxu0  ;;  %v3612_v1 = vpop.f32.mrb[14].mxu1  ;;  %v1217_v13 = vld [vmem:[%s8528_s21 + $0x19e0] sm:$0xff]  ;;  %v7060_v50 = vpack.c.bf16 %v1905_v44, %v1807_v39  ;;  %v7094_v52 = vpack.c.bf16 %v538_v59, %v440_v46  ;;  %v1224_v39 = vld [vmem:[%s8528_s21 + $0x1a18] sm:$0xff]  ;;  %v1322_v44 = vld [vmem:[%s8528_s21 + $0x1d28] sm:$0xff] }
 0x396   : > { %v3614_v60 = vpop.f32.mrb[15].mxu1  ;;  %v7016_v10 = vpack.c.bf16 %v1315_v3, %v1217_v13  ;;  %v535_v54 = vld [vmem:[%s8528_s21 + $0x490] sm:$0xff] }
 0x397   : > { %v9471_v63 = vadd.f32 %v3612_v1, %v3543_v61  ;;  %v437_v61 = vld [vmem:[%s8528_s21 + $0x180] sm:$0xff]  ;;  %v439_v1 = vld [vmem:[%s8528_s21 + $0x190] sm:$0xff]  ;;  %v9513_v60 = vrot.slane %v375_v49, %v8582_v48  ;;  %v7110_v49 = vpack.c.bf16 %v1322_v44, %v1224_v39  ;;  %v638_v44 = vld [vmem:[%s8528_s21 + $0x7c8] sm:$0xff] }
 0x398   : > { %v7064_v13 = vpack.c.bf16 %v535_v54, %v437_v61  ;;  %v7096_v3 = vpack.c.bf16 %v537_v55, %v439_v1  ;;  %v1516_v61 = vld [vmem:[%s8528_s21 + $0x2338] sm:$0xff]  ;;  %v1518_v1 = vld [vmem:[%s8528_s21 + $0x2348] sm:$0xff]  ;;  %v541_v39 = vld [vmem:[%s8528_s21 + $0x4c0] sm:$0xff] }
 0x399   : > { %v2201_v6 = vcombine.high %v9513_v60, %v9513_v60  ;;  %v1420_v54 = vld [vmem:[%s8528_s21 + $0x2038] sm:$0xff] }
 0x39a   : > { %7013 = vmatpush1.bf16.xpose.msra.mxu0 %v7012_v57  ;;  %v732_v57 = vld [vmem:[%s8528_s21 + $0xab8] sm:$0xff] }
 0x39b   : > { %7045 = vmatpush1.bf16.xpose.msra.mxu1 %v7044_v11  ;;  %7015 = vmatprep.subr.bf16.mxu0 %v7014_v0  ;;  %v636_v11 = vld [vmem:[%s8528_s21 + $0x7b8] sm:$0xff]  ;;  %v734_v0 = vld [vmem:[%s8528_s21 + $0xac8] sm:$0xff]  ;;  %v7066_v4 = vpack.c.bf16 %v732_v57, %v634_v58 }
 0x39c   : > { %7047 = vmatprep.subr.bf16.mxu1 %v7046_v2  ;;  %v9518_v2 = vrot.slane %v2186_v53, %v8582_v48  ;;  %v7098_v5 = vpack.c.bf16 %v734_v0, %v636_v11  ;;  %v1418_v53 = vld [vmem:[%s8528_s21 + $0x2028] sm:$0xff]  ;;  %v7114_v11 = vpack.c.bf16 %v1518_v1, %v1420_v54  ;;  %v1417_v0 = vld [vmem:[%s8528_s21 + $0x2020] sm:$0xff]  ;;  %v735_v1 = vld [vmem:[%s8528_s21 + $0xad0] sm:$0xff] }
 0x39d   : > { %v7082_v57 = vpack.c.bf16 %v1516_v61, %v1418_v53  ;;  %v637_v54 = vld [vmem:[%s8528_s21 + $0x7c0] sm:$0xff] }
 0x39e   : > { %v2202_v7 = vcombine.high %v9518_v2, %v9518_v2 }
 0x3a2   : > { %7017 = vmatpush1.bf16.xpose.msra.mxu0 %v7016_v10  ;;  %v635_v10 = vld [vmem:[%s8528_s21 + $0x7b0] sm:$0xff] }
 0x3a3   : > { %7049 = vmatpush1.bf16.xpose.msra.mxu1 %v7048_v18  ;;  %7019 = vmatprep.subr.bf16.mxu0 %v7018_v15  ;;  %v733_v18 = vld [vmem:[%s8528_s21 + $0xac0] sm:$0xff]  ;;  %v830_v15 = vld [vmem:[%s8528_s21 + $0xdc8] sm:$0xff] }
 0x3a4   : > { %7051 = vmatprep.subr.bf16.mxu1 %v7050_v25  ;;  %v928_v25 = vld [vmem:[%s8528_s21 + $0x10d8] sm:$0xff]  ;;  %v7100_v28 = vpack.c.bf16 %v733_v18, %v635_v10 }
 0x3a5   : > { %v7070_v62 = vpack.c.bf16 %v928_v25, %v830_v15  ;;  %v1613_v25 = vld [vmem:[%s8528_s21 + $0x2640] sm:$0xff] }
 0x3aa   : > { %7021 = vmatpush1.bf16.xpose.msra.mxu0 %v7020_v22  ;;  %v1026_v22 = vld [vmem:[%s8528_s21 + $0x13e8] sm:$0xff] }
 0x3ab   : > { %7053 = vmatpush1.bf16.xpose.msra.mxu1 %v7052_v23  ;;  %7023 = vmatprep.subr.bf16.mxu0 %v7022_v26  ;;  %v1124_v23 = vld [vmem:[%s8528_s21 + $0x16f8] sm:$0xff] }
 0x3ac   : > { %7055 = vmatprep.subr.bf16.mxu1 %v7054_v24  ;;  %v1028_v26 = vld [vmem:[%s8528_s21 + $0x13f8] sm:$0xff]  ;;  %v1126_v24 = vld [vmem:[%s8528_s21 + $0x1708] sm:$0xff]  ;;  %v7074_v29 = vpack.c.bf16 %v1124_v23, %v1026_v22  ;;  %v1809_v23 = vld [vmem:[%s8528_s21 + $0x2c60] sm:$0xff] }
 0x3ad   : > { %v7106_v30 = vpack.c.bf16 %v1126_v24, %v1028_v26  ;;  %v1907_v26 = vld [vmem:[%s8528_s21 + $0x2f70] sm:$0xff] }
 0x3ae   : > { %v1811_v24 = vld [vmem:[%s8528_s21 + $0x2c70] sm:$0xff]  ;;  %v7092_v37 = vpack.c.bf16 %v1907_v26, %v1809_v23 }
 0x3b2   : > { %7025 = vmatpush1.bf16.xpose.msra.mxu0 %v7024_v32  ;;  %v1125_v32 = vld [vmem:[%s8528_s21 + $0x1700] sm:$0xff] }
 0x3b3   : > { %7057 = vmatpush1.bf16.xpose.msra.mxu1 %v7056_v33  ;;  %7027 = vmatprep.subr.bf16.mxu0 %v7026_v34  ;;  %v1222_v33 = vld [vmem:[%s8528_s21 + $0x1a08] sm:$0xff]  ;;  %v1320_v34 = vld [vmem:[%s8528_s21 + $0x1d18] sm:$0xff]  ;;  %v7108_v59 = vpack.c.bf16 %v1125_v32, %v1027_v31 }
 0x3b4   : > { %7059 = vmatprep.subr.bf16.mxu1 %v7058_v35  ;;  %v376_v31 = vld [vmem:[%s8580_s27 + $0x68] sm:$0xff] }
 0x3ba   : > { %7029 = vmatpush1.bf16.xpose.msra.mxu0 %v7028_v47  ;;  %v7078_v47 = vpack.c.bf16 %v1320_v34, %v1222_v33  ;;  %v2203_v34 = vcombine.high %v376_v31, %v376_v31 }
 0x3bb   : > { %7061 = vmatpush1.bf16.xpose.msra.mxu1 %v7060_v50  ;;  %7063 = vmatprep.subr.bf16.mxu0 %v7062_v51  ;;  %v1319_v50 = vld [vmem:[%s8528_s21 + $0x1d10] sm:$0xff] }
 0x3bc   : > { %7095 = vmatprep.subr.bf16.mxu1 %v7094_v52  ;;  %v1223_v51 = vld [vmem:[%s8528_s21 + $0x1a10] sm:$0xff]  ;;  %v1321_v52 = vld [vmem:[%s8528_s21 + $0x1d20] sm:$0xff] }
 0x3bd   : > { %v7112_v58 = vpack.c.bf16 %v1321_v52, %v1223_v51 }
 0x3c1   : > { %4101 = vmatmul.mubr.f32.vlgmr.msra.gmra.mrb[22].mxu0 %v9433_v12  ;;  %v832_v12 = vld [vmem:[%s8528_s21 + $0xdd8] sm:$0xff] }
 0x3c2   : > { %7065 = vmatpush1.bf16.xpose.msra.mxu0 %v7064_v13  ;;  %4171 = vmatmul.mubr.f32.vlgmr.msra.gmra.mrb[22].mxu1 %v9438_v14  ;;  %v7068_v14 = vpack.c.bf16 %v731_v9, %v633_v8  ;;  %v7102_v16 = vpack.c.bf16 %v930_v56, %v832_v12  ;;  %v1515_v13 = vld [vmem:[%s8528_s21 + $0x2330] sm:$0xff]  ;;  %v1714_v8 = vld [vmem:[%s8528_s21 + $0x2968] sm:$0xff] }
 0x3c3   : > { %7097 = vmatpush1.bf16.xpose.msra.mxu1 %v7096_v3  ;;  %7067 = vmatprep.subr.bf16.mxu0 %v7066_v4  ;;  %v1419_v3 = vld [vmem:[%s8528_s21 + $0x2030] sm:$0xff]  ;;  %v1517_v4 = vld [vmem:[%s8528_s21 + $0x2340] sm:$0xff]  ;;  %v7084_v9 = vpack.c.bf16 %v1515_v13, %v1417_v0  ;;  %v934_v0 = vld [vmem:[%s8528_s21 + $0x1108] sm:$0xff] }
 0x3c4   : > { %7099 = vmatprep.subr.bf16.mxu1 %v7098_v5  ;;  %4240 = vmatprep.mubr.f32.mxu0 %v2201_v6  ;;  %v1614_v5 = vld [vmem:[%s8528_s21 + $0x2648] sm:$0xff]  ;;  %v1712_v6 = vld [vmem:[%s8528_s21 + $0x2958] sm:$0xff]  ;;  %v7116_v10 = vpack.c.bf16 %v1517_v4, %v1419_v3  ;;  %v1711_v12 = vld [vmem:[%s8528_s21 + $0x2950] sm:$0xff] }
 0x3c5   : > { %4310 = vmatprep.mubr.f32.mxu1 %v2202_v7  ;;  %v1616_v7 = vld [vmem:[%s8528_s21 + $0x2658] sm:$0xff]  ;;  %v7086_v18 = vpack.c.bf16 %v1712_v6, %v1614_v5  ;;  %v1615_v56 = vld [vmem:[%s8528_s21 + $0x2650] sm:$0xff]  ;;  %v7088_v19 = vpack.c.bf16 %v1711_v12, %v1613_v25  ;;  %v833_v5 = vld [vmem:[%s8528_s21 + $0xde0] sm:$0xff] }
 0x3c6   : > { %v7118_v15 = vpack.c.bf16 %v1714_v8, %v1616_v7  ;;  %v931_v6 = vld [vmem:[%s8528_s21 + $0x10f0] sm:$0xff]  ;;  %v933_v8 = vld [vmem:[%s8528_s21 + $0x1100] sm:$0xff] }
 0x3c7   : > { %v835_v7 = vld [vmem:[%s8528_s21 + $0xdf0] sm:$0xff]  ;;  %v7136_v25 = vpack.c.bf16 %v931_v6, %v833_v5  ;;  %v1914_v5 = vld [vmem:[%s8528_s21 + $0x2fa8] sm:$0xff] }
 0x3c8   : > { %v7168_v12 = vpack.c.bf16 %v933_v8, %v835_v7 }
 0x3ca   : > { %7069 = vmatpush1.bf16.xpose.msra.mxu0 %v7068_v14  ;;  %v1713_v14 = vld [vmem:[%s8528_s21 + $0x2960] sm:$0xff] }
 0x3cb   : > { %7101 = vmatpush1.bf16.xpose.msra.mxu1 %v7100_v28  ;;  %7071 = vmatprep.subr.bf16.mxu0 %v7070_v62  ;;  %v1810_v28 = vld [vmem:[%s8528_s21 + $0x2c68] sm:$0xff]  ;;  %v1908_v62 = vld [vmem:[%s8528_s21 + $0x2f78] sm:$0xff]  ;;  %v7120_v20 = vpack.c.bf16 %v1713_v14, %v1615_v56 }
 0x3cc   : > { %7103 = vmatprep.subr.bf16.mxu1 %v7102_v16  ;;  %v1812_v16 = vld [vmem:[%s8528_s21 + $0x2c78] sm:$0xff]  ;;  %v7090_v21 = vpack.c.bf16 %v1908_v62, %v1810_v28  ;;  %v1029_v28 = vld [vmem:[%s8528_s21 + $0x1400] sm:$0xff]  ;;  %v1127_v62 = vld [vmem:[%s8528_s21 + $0x1710] sm:$0xff] }
 0x3cd   : > { %v7122_v22 = vpack.c.bf16 %v1910_v17, %v1812_v16  ;;  %v1031_v16 = vld [vmem:[%s8528_s21 + $0x1410] sm:$0xff] }
 0x3d2   : > { %7073 = vmatpush1.bf16.xpose.msra.mxu0 %v7072_v36  ;;  %v1909_v36 = vld [vmem:[%s8528_s21 + $0x2f80] sm:$0xff] }
 0x3d3   : > { %7105 = vmatpush1.bf16.xpose.msra.mxu1 %v7104_v27  ;;  %7075 = vmatprep.subr.bf16.mxu0 %v7074_v29  ;;  %v442_v27 = vld [vmem:[%s8528_s21 + $0x1a8] sm:$0xff]  ;;  %v540_v29 = vld [vmem:[%s8528_s21 + $0x4b8] sm:$0xff] }
 0x3d4   : > { %v3682_v40 = vpop.f32.mrb[16].mxu0  ;;  %7107 = vmatprep.subr.bf16.mxu1 %v7106_v30  ;;  %v444_v30 = vld [vmem:[%s8528_s21 + $0x1b8] sm:$0xff]  ;;  %v7126_v32 = vpack.c.bf16 %v540_v29, %v442_v27  ;;  %v7140_v27 = vpack.c.bf16 %v1127_v62, %v1029_v28  ;;  %v546_v28 = vld [vmem:[%s8528_s21 + $0x4e8] sm:$0xff] }
 0x3d5   : > { %v3683_v35 = vadd.f32 %v3682_v40, %v9471_v63  ;;  %v3684_v38 = vpop.f32.mrb[17].mxu0  ;;  %v3752_v41 = vpop.f32.mrb[16].mxu1  ;;  %v1221_v63 = vld [vmem:[%s8528_s21 + $0x1a00] sm:$0xff]  ;;  %v7124_v40 = vpack.c.bf16 %v1909_v36, %v1811_v24  ;;  %v7158_v33 = vpack.c.bf16 %v542_v43, %v444_v30  ;;  %v1228_v24 = vld [vmem:[%s8528_s21 + $0x1a38] sm:$0xff]  ;;  %v1326_v36 = vld [vmem:[%s8528_s21 + $0x1d48] sm:$0xff] }
 0x3d6   : > { %v3754_v45 = vpop.f32.mrb[17].mxu1  ;;  %v7080_v55 = vpack.c.bf16 %v1319_v50, %v1221_v63  ;;  %v539_v38 = vld [vmem:[%s8528_s21 + $0x4b0] sm:$0xff] }
 0x3d7   : > { %v9551_v46 = vadd.f32 %v3752_v41, %v3683_v35  ;;  %v441_v35 = vld [vmem:[%s8528_s21 + $0x1a0] sm:$0xff]  ;;  %v443_v41 = vld [vmem:[%s8528_s21 + $0x1b0] sm:$0xff]  ;;  %v9593_v45 = vrot.slane %v376_v31, %v8582_v48  ;;  %v7174_v31 = vpack.c.bf16 %v1326_v36, %v1228_v24  ;;  %v642_v36 = vld [vmem:[%s8528_s21 + $0x7e8] sm:$0xff] }
 0x3d8   : > { %v7128_v63 = vpack.c.bf16 %v539_v38, %v441_v35  ;;  %v7160_v50 = vpack.c.bf16 %v541_v39, %v443_v41  ;;  %v1520_v35 = vld [vmem:[%s8528_s21 + $0x2358] sm:$0xff]  ;;  %v1522_v41 = vld [vmem:[%s8528_s21 + $0x2368] sm:$0xff]  ;;  %v545_v24 = vld [vmem:[%s8528_s21 + $0x4e0] sm:$0xff] }
 0x3d9   : > { %v2218_v53 = vcombine.high %v9593_v45, %v9593_v45  ;;  %v1424_v38 = vld [vmem:[%s8528_s21 + $0x2058] sm:$0xff] }
 0x3da   : > { %7077 = vmatpush1.bf16.xpose.msra.mxu0 %v7076_v42  ;;  %v736_v42 = vld [vmem:[%s8528_s21 + $0xad8] sm:$0xff] }
 0x3db   : > { %7109 = vmatpush1.bf16.xpose.msra.mxu1 %v7108_v59  ;;  %7079 = vmatprep.subr.bf16.mxu0 %v7078_v47  ;;  %v640_v59 = vld [vmem:[%s8528_s21 + $0x7d8] sm:$0xff]  ;;  %v738_v47 = vld [vmem:[%s8528_s21 + $0xae8] sm:$0xff]  ;;  %v7130_v51 = vpack.c.bf16 %v736_v42, %v638_v44 }
 0x3dc   : > { %7111 = vmatprep.subr.bf16.mxu1 %v7110_v49  ;;  %v9598_v49 = vrot.slane %v2203_v34, %v8582_v48  ;;  %v7162_v52 = vpack.c.bf16 %v738_v47, %v640_v59  ;;  %v1422_v34 = vld [vmem:[%s8528_s21 + $0x2048] sm:$0xff]  ;;  %v7178_v59 = vpack.c.bf16 %v1522_v41, %v1424_v38  ;;  %v1421_v47 = vld [vmem:[%s8528_s21 + $0x2040] sm:$0xff]  ;;  %v739_v41 = vld [vmem:[%s8528_s21 + $0xaf0] sm:$0xff] }
 0x3dd   : > { %v7146_v42 = vpack.c.bf16 %v1520_v35, %v1422_v34  ;;  %v641_v38 = vld [vmem:[%s8528_s21 + $0x7e0] sm:$0xff] }
 0x3de   : > { %v2219_v61 = vcombine.high %v9598_v49, %v9598_v49 }
 0x3e2   : > { %7081 = vmatpush1.bf16.xpose.msra.mxu0 %v7080_v55  ;;  %v639_v55 = vld [vmem:[%s8528_s21 + $0x7d0] sm:$0xff] }
 0x3e3   : > { %7113 = vmatpush1.bf16.xpose.msra.mxu1 %v7112_v58  ;;  %7083 = vmatprep.subr.bf16.mxu0 %v7082_v57  ;;  %v737_v58 = vld [vmem:[%s8528_s21 + $0xae0] sm:$0xff]  ;;  %v834_v57 = vld [vmem:[%s8528_s21 + $0xde8] sm:$0xff] }
 0x3e4   : > { %7115 = vmatprep.subr.bf16.mxu1 %v7114_v11  ;;  %v932_v11 = vld [vmem:[%s8528_s21 + $0x10f8] sm:$0xff]  ;;  %v7164_v13 = vpack.c.bf16 %v737_v58, %v639_v55 }
 0x3e5   : > { %v7134_v3 = vpack.c.bf16 %v932_v11, %v834_v57  ;;  %v1617_v11 = vld [vmem:[%s8528_s21 + $0x2660] sm:$0xff] }
 0x3ea   : > { %7085 = vmatpush1.bf16.xpose.msra.mxu0 %v7084_v9  ;;  %v1030_v9 = vld [vmem:[%s8528_s21 + $0x1408] sm:$0xff] }
 0x3eb   : > { %7117 = vmatpush1.bf16.xpose.msra.mxu1 %v7116_v10  ;;  %7087 = vmatprep.subr.bf16.mxu0 %v7086_v18  ;;  %v1128_v10 = vld [vmem:[%s8528_s21 + $0x1718] sm:$0xff] }
 0x3ec   : > { %7119 = vmatprep.subr.bf16.mxu1 %v7118_v15  ;;  %v1032_v18 = vld [vmem:[%s8528_s21 + $0x1418] sm:$0xff]  ;;  %v1130_v15 = vld [vmem:[%s8528_s21 + $0x1728] sm:$0xff]  ;;  %v7138_v56 = vpack.c.bf16 %v1128_v10, %v1030_v9  ;;  %v1813_v10 = vld [vmem:[%s8528_s21 + $0x2c80] sm:$0xff] }
 0x3ed   : > { %v7170_v14 = vpack.c.bf16 %v1130_v15, %v1032_v18  ;;  %v1911_v18 = vld [vmem:[%s8528_s21 + $0x2f90] sm:$0xff] }
 0x3ee   : > { %v1815_v15 = vld [vmem:[%s8528_s21 + $0x2c90] sm:$0xff]  ;;  %v7156_v62 = vpack.c.bf16 %v1911_v18, %v1813_v10 }
 0x3f2   : > { %7089 = vmatpush1.bf16.xpose.msra.mxu0 %v7088_v19  ;;  %v1129_v19 = vld [vmem:[%s8528_s21 + $0x1720] sm:$0xff] }
 0x3f3   : > { %7121 = vmatpush1.bf16.xpose.msra.mxu1 %v7120_v20  ;;  %7091 = vmatprep.subr.bf16.mxu0 %v7090_v21  ;;  %v1226_v20 = vld [vmem:[%s8528_s21 + $0x1a28] sm:$0xff]  ;;  %v1324_v21 = vld [vmem:[%s8528_s21 + $0x1d38] sm:$0xff]  ;;  %v7172_v43 = vpack.c.bf16 %v1129_v19, %v1031_v16 }
 0x3f4   : > { %7123 = vmatprep.subr.bf16.mxu1 %v7122_v22  ;;  %v377_v16 = vld [vmem:[%s8580_s27 + $0x70] sm:$0xff] }
 0x3fa   : > { %7093 = vmatpush1.bf16.xpose.msra.mxu0 %v7092_v37  ;;  %v7142_v37 = vpack.c.bf16 %v1324_v21, %v1226_v20  ;;  %v2220_v21 = vcombine.high %v377_v16, %v377_v16 }
 0x3fb   : > { %7125 = vmatpush1.bf16.xpose.msra.mxu1 %v7124_v40  ;;  %7127 = vmatprep.subr.bf16.mxu0 %v7126_v32  ;;  %v1323_v40 = vld [vmem:[%s8528_s21 + $0x1d30] sm:$0xff] }
 0x3fc   : > { %7159 = vmatprep.subr.bf16.mxu1 %v7158_v33  ;;  %v1227_v32 = vld [vmem:[%s8528_s21 + $0x1a30] sm:$0xff]  ;;  %v1325_v33 = vld [vmem:[%s8528_s21 + $0x1d40] sm:$0xff] }
 0x3fd   : > { %v7176_v44 = vpack.c.bf16 %v1325_v33, %v1227_v32 }
 0x401   : > { %4241 = vmatmul.mubr.f32.vlgmr.msra.gmra.mrb[24].mxu0 %v9513_v60  ;;  %v836_v60 = vld [vmem:[%s8528_s21 + $0xdf8] sm:$0xff] }
 0x402   : > { %7129 = vmatpush1.bf16.xpose.msra.mxu0 %v7128_v63  ;;  %4311 = vmatmul.mubr.f32.vlgmr.msra.gmra.mrb[24].mxu1 %v9518_v2  ;;  %v7132_v2 = vpack.c.bf16 %v735_v1, %v637_v54  ;;  %v7166_v4 = vpack.c.bf16 %v934_v0, %v836_v60  ;;  %v1519_v63 = vld [vmem:[%s8528_s21 + $0x2350] sm:$0xff]  ;;  %v1718_v54 = vld [vmem:[%s8528_s21 + $0x2988] sm:$0xff] }
 0x403   : > { %7161 = vmatpush1.bf16.xpose.msra.mxu1 %v7160_v50  ;;  %7131 = vmatprep.subr.bf16.mxu0 %v7130_v51  ;;  %v1423_v50 = vld [vmem:[%s8528_s21 + $0x2050] sm:$0xff]  ;;  %v1521_v51 = vld [vmem:[%s8528_s21 + $0x2360] sm:$0xff]  ;;  %v7148_v1 = vpack.c.bf16 %v1519_v63, %v1421_v47  ;;  %v938_v47 = vld [vmem:[%s8528_s21 + $0x1128] sm:$0xff] }
 0x404   : > { %7163 = vmatprep.subr.bf16.mxu1 %v7162_v52  ;;  %4380 = vmatprep.mubr.f32.mxu0 %v2218_v53  ;;  %v1618_v52 = vld [vmem:[%s8528_s21 + $0x2668] sm:$0xff]  ;;  %v1716_v53 = vld [vmem:[%s8528_s21 + $0x2978] sm:$0xff]  ;;  %v7180_v55 = vpack.c.bf16 %v1521_v51, %v1423_v50  ;;  %v1715_v60 = vld [vmem:[%s8528_s21 + $0x2970] sm:$0xff] }
 0x405   : > { %4450 = vmatprep.mubr.f32.mxu1 %v2219_v61  ;;  %v1620_v61 = vld [vmem:[%s8528_s21 + $0x2678] sm:$0xff]  ;;  %v7150_v58 = vpack.c.bf16 %v1716_v53, %v1618_v52  ;;  %v1619_v0 = vld [vmem:[%s8528_s21 + $0x2670] sm:$0xff]  ;;  %v7152_v6 = vpack.c.bf16 %v1715_v60, %v1617_v11  ;;  %v837_v52 = vld [vmem:[%s8528_s21 + $0xe00] sm:$0xff] }
 0x406   : > { %v7182_v57 = vpack.c.bf16 %v1718_v54, %v1620_v61  ;;  %v935_v53 = vld [vmem:[%s8528_s21 + $0x1110] sm:$0xff]  ;;  %v937_v54 = vld [vmem:[%s8528_s21 + $0x1120] sm:$0xff] }
 0x407   : > { %v839_v61 = vld [vmem:[%s8528_s21 + $0xe10] sm:$0xff]  ;;  %v7200_v11 = vpack.c.bf16 %v935_v53, %v837_v52  ;;  %v1918_v52 = vld [vmem:[%s8528_s21 + $0x2fc8] sm:$0xff] }
 0x408   : > { %v7232_v60 = vpack.c.bf16 %v937_v54, %v839_v61 }
 0x40a   : > { %7133 = vmatpush1.bf16.xpose.msra.mxu0 %v7132_v2  ;;  %v1717_v2 = vld [vmem:[%s8528_s21 + $0x2980] sm:$0xff] }
 0x40b   : > { %7165 = vmatpush1.bf16.xpose.msra.mxu1 %v7164_v13  ;;  %7135 = vmatprep.subr.bf16.mxu0 %v7134_v3  ;;  %v1814_v13 = vld [vmem:[%s8528_s21 + $0x2c88] sm:$0xff]  ;;  %v1912_v3 = vld [vmem:[%s8528_s21 + $0x2f98] sm:$0xff]  ;;  %v7184_v7 = vpack.c.bf16 %v1717_v2, %v1619_v0 }
 0x40c   : > { %7167 = vmatprep.subr.bf16.mxu1 %v7166_v4  ;;  %v1816_v4 = vld [vmem:[%s8528_s21 + $0x2c98] sm:$0xff]  ;;  %v7154_v8 = vpack.c.bf16 %v1912_v3, %v1814_v13  ;;  %v1033_v13 = vld [vmem:[%s8528_s21 + $0x1420] sm:$0xff]  ;;  %v1131_v3 = vld [vmem:[%s8528_s21 + $0x1730] sm:$0xff] }
 0x40d   : > { %v7186_v9 = vpack.c.bf16 %v1914_v5, %v1816_v4  ;;  %v1035_v4 = vld [vmem:[%s8528_s21 + $0x1430] sm:$0xff] }
 0x412   : > { %7137 = vmatpush1.bf16.xpose.msra.mxu0 %v7136_v25  ;;  %v1913_v25 = vld [vmem:[%s8528_s21 + $0x2fa0] sm:$0xff] }
 0x413   : > { %7169 = vmatpush1.bf16.xpose.msra.mxu1 %v7168_v12  ;;  %7139 = vmatprep.subr.bf16.mxu0 %v7138_v56  ;;  %v446_v12 = vld [vmem:[%s8528_s21 + $0x1c8] sm:$0xff]  ;;  %v544_v56 = vld [vmem:[%s8528_s21 + $0x4d8] sm:$0xff] }
 0x414   : > { %v3822_v17 = vpop.f32.mrb[18].mxu0  ;;  %7171 = vmatprep.subr.bf16.mxu1 %v7170_v14  ;;  %v448_v14 = vld [vmem:[%s8528_s21 + $0x1d8] sm:$0xff]  ;;  %v7190_v19 = vpack.c.bf16 %v544_v56, %v446_v12  ;;  %v7204_v12 = vpack.c.bf16 %v1131_v3, %v1033_v13  ;;  %v550_v13 = vld [vmem:[%s8528_s21 + $0x508] sm:$0xff] }
 0x415   : > { %v3823_v22 = vadd.f32 %v3822_v17, %v9551_v46  ;;  %v3824_v23 = vpop.f32.mrb[19].mxu0  ;;  %v3892_v26 = vpop.f32.mrb[18].mxu1  ;;  %v1225_v46 = vld [vmem:[%s8528_s21 + $0x1a20] sm:$0xff]  ;;  %v7188_v17 = vpack.c.bf16 %v1913_v25, %v1815_v15  ;;  %v7222_v20 = vpack.c.bf16 %v546_v28, %v448_v14  ;;  %v1232_v15 = vld [vmem:[%s8528_s21 + $0x1a58] sm:$0xff]  ;;  %v1330_v25 = vld [vmem:[%s8528_s21 + $0x1d68] sm:$0xff] }
 0x416   : > { %v3894_v29 = vpop.f32.mrb[19].mxu1  ;;  %v7144_v39 = vpack.c.bf16 %v1323_v40, %v1225_v46  ;;  %v543_v23 = vld [vmem:[%s8528_s21 + $0x4d0] sm:$0xff] }
 0x417   : > { %v9631_v30 = vadd.f32 %v3892_v26, %v3823_v22  ;;  %v445_v22 = vld [vmem:[%s8528_s21 + $0x1c0] sm:$0xff]  ;;  %v447_v26 = vld [vmem:[%s8528_s21 + $0x1d0] sm:$0xff]  ;;  %v9673_v29 = vrot.slane %v377_v16, %v8582_v48  ;;  %v7238_v16 = vpack.c.bf16 %v1330_v25, %v1232_v15  ;;  %v646_v25 = vld [vmem:[%s8528_s21 + $0x808] sm:$0xff] }
 0x418   : > { %v7192_v46 = vpack.c.bf16 %v543_v23, %v445_v22  ;;  %v7224_v40 = vpack.c.bf16 %v545_v24, %v447_v26  ;;  %v1524_v22 = vld [vmem:[%s8528_s21 + $0x2378] sm:$0xff]  ;;  %v1526_v26 = vld [vmem:[%s8528_s21 + $0x2388] sm:$0xff]  ;;  %v549_v15 = vld [vmem:[%s8528_s21 + $0x500] sm:$0xff] }
 0x419   : > { %v2235_v34 = vcombine.high %v9673_v29, %v9673_v29  ;;  %v1428_v23 = vld [vmem:[%s8528_s21 + $0x2078] sm:$0xff] }
 0x41a   : > { %7141 = vmatpush1.bf16.xpose.msra.mxu0 %v7140_v27  ;;  %v740_v27 = vld [vmem:[%s8528_s21 + $0xaf8] sm:$0xff] }
 0x41b   : > { %7173 = vmatpush1.bf16.xpose.msra.mxu1 %v7172_v43  ;;  %7143 = vmatprep.subr.bf16.mxu0 %v7142_v37  ;;  %v644_v43 = vld [vmem:[%s8528_s21 + $0x7f8] sm:$0xff]  ;;  %v742_v37 = vld [vmem:[%s8528_s21 + $0xb08] sm:$0xff]  ;;  %v7194_v32 = vpack.c.bf16 %v740_v27, %v642_v36 }
 0x41c   : > { %7175 = vmatprep.subr.bf16.mxu1 %v7174_v31  ;;  %v9678_v31 = vrot.slane %v2220_v21, %v8582_v48  ;;  %v7226_v33 = vpack.c.bf16 %v742_v37, %v644_v43  ;;  %v1426_v21 = vld [vmem:[%s8528_s21 + $0x2068] sm:$0xff]  ;;  %v7242_v43 = vpack.c.bf16 %v1526_v26, %v1428_v23  ;;  %v1425_v37 = vld [vmem:[%s8528_s21 + $0x2060] sm:$0xff]  ;;  %v743_v26 = vld [vmem:[%s8528_s21 + $0xb10] sm:$0xff] }
 0x41d   : > { %v7210_v27 = vpack.c.bf16 %v1524_v22, %v1426_v21  ;;  %v645_v23 = vld [vmem:[%s8528_s21 + $0x800] sm:$0xff] }
 0x41e   : > { %v2236_v35 = vcombine.high %v9678_v31, %v9678_v31 }
 0x422   : > { %7145 = vmatpush1.bf16.xpose.msra.mxu0 %v7144_v39  ;;  %v643_v39 = vld [vmem:[%s8528_s21 + $0x7f0] sm:$0xff] }
 0x423   : > { %7177 = vmatpush1.bf16.xpose.msra.mxu1 %v7176_v44  ;;  %7147 = vmatprep.subr.bf16.mxu0 %v7146_v42  ;;  %v741_v44 = vld [vmem:[%s8528_s21 + $0xb00] sm:$0xff]  ;;  %v838_v42 = vld [vmem:[%s8528_s21 + $0xe08] sm:$0xff] }
 0x424   : > { %7179 = vmatprep.subr.bf16.mxu1 %v7178_v59  ;;  %v936_v59 = vld [vmem:[%s8528_s21 + $0x1118] sm:$0xff]  ;;  %v7228_v63 = vpack.c.bf16 %v741_v44, %v643_v39 }
 0x425   : > { %v7198_v50 = vpack.c.bf16 %v936_v59, %v838_v42  ;;  %v1621_v59 = vld [vmem:[%s8528_s21 + $0x2680] sm:$0xff] }
 0x42a   : > { %7149 = vmatpush1.bf16.xpose.msra.mxu0 %v7148_v1  ;;  %v1034_v1 = vld [vmem:[%s8528_s21 + $0x1428] sm:$0xff] }
 0x42b   : > { %7181 = vmatpush1.bf16.xpose.msra.mxu1 %v7180_v55  ;;  %7151 = vmatprep.subr.bf16.mxu0 %v7150_v58  ;;  %v1132_v55 = vld [vmem:[%s8528_s21 + $0x1738] sm:$0xff] }
 0x42c   : > { %7183 = vmatprep.subr.bf16.mxu1 %v7182_v57  ;;  %v1036_v58 = vld [vmem:[%s8528_s21 + $0x1438] sm:$0xff]  ;;  %v1134_v57 = vld [vmem:[%s8528_s21 + $0x1748] sm:$0xff]  ;;  %v7202_v0 = vpack.c.bf16 %v1132_v55, %v1034_v1  ;;  %v1817_v55 = vld [vmem:[%s8528_s21 + $0x2ca0] sm:$0xff] }
 0x42d   : > { %v7234_v2 = vpack.c.bf16 %v1134_v57, %v1036_v58  ;;  %v1915_v58 = vld [vmem:[%s8528_s21 + $0x2fb0] sm:$0xff] }
 0x42e   : > { %v1819_v57 = vld [vmem:[%s8528_s21 + $0x2cb0] sm:$0xff]  ;;  %v7220_v3 = vpack.c.bf16 %v1915_v58, %v1817_v55 }
 0x432   : > { %7153 = vmatpush1.bf16.xpose.msra.mxu0 %v7152_v6  ;;  %v1133_v6 = vld [vmem:[%s8528_s21 + $0x1740] sm:$0xff] }
 0x433   : > { %7185 = vmatpush1.bf16.xpose.msra.mxu1 %v7184_v7  ;;  %7155 = vmatprep.subr.bf16.mxu0 %v7154_v8  ;;  %v1230_v7 = vld [vmem:[%s8528_s21 + $0x1a48] sm:$0xff]  ;;  %v1328_v8 = vld [vmem:[%s8528_s21 + $0x1d58] sm:$0xff]  ;;  %v7236_v28 = vpack.c.bf16 %v1133_v6, %v1035_v4 }
 0x434   : > { %7187 = vmatprep.subr.bf16.mxu1 %v7186_v9  ;;  %v378_v4 = vld [vmem:[%s8580_s27 + $0x78] sm:$0xff] }
 0x43a   : > { %7157 = vmatpush1.bf16.xpose.msra.mxu0 %v7156_v62  ;;  %v7206_v62 = vpack.c.bf16 %v1328_v8, %v1230_v7  ;;  %v2237_v8 = vcombine.high %v378_v4, %v378_v4 }
 0x43b   : > { %7189 = vmatpush1.bf16.xpose.msra.mxu1 %v7188_v17  ;;  %7191 = vmatprep.subr.bf16.mxu0 %v7190_v19  ;;  %v1327_v17 = vld [vmem:[%s8528_s21 + $0x1d50] sm:$0xff] }
 0x43c   : > { %7223 = vmatprep.subr.bf16.mxu1 %v7222_v20  ;;  %v1231_v19 = vld [vmem:[%s8528_s21 + $0x1a50] sm:$0xff]  ;;  %v1329_v20 = vld [vmem:[%s8528_s21 + $0x1d60] sm:$0xff] }
 0x43d   : > { %v7240_v36 = vpack.c.bf16 %v1329_v20, %v1231_v19 }
 0x441   : > { %4381 = vmatmul.mubr.f32.vlgmr.msra.gmra.mrb[26].mxu0 %v9593_v45  ;;  %v840_v45 = vld [vmem:[%s8528_s21 + $0xe18] sm:$0xff] }
 0x442   : > { %7193 = vmatpush1.bf16.xpose.msra.mxu0 %v7192_v46  ;;  %4451 = vmatmul.mubr.f32.vlgmr.msra.gmra.mrb[26].mxu1 %v9598_v49  ;;  %v7196_v49 = vpack.c.bf16 %v739_v41, %v641_v38  ;;  %v7230_v51 = vpack.c.bf16 %v938_v47, %v840_v45  ;;  %v1523_v46 = vld [vmem:[%s8528_s21 + $0x2370] sm:$0xff]  ;;  %v1722_v38 = vld [vmem:[%s8528_s21 + $0x29a8] sm:$0xff] }
 0x443   : > { %7225 = vmatpush1.bf16.xpose.msra.mxu1 %v7224_v40  ;;  %7195 = vmatprep.subr.bf16.mxu0 %v7194_v32  ;;  %v1427_v40 = vld [vmem:[%s8528_s21 + $0x2070] sm:$0xff]  ;;  %v1525_v32 = vld [vmem:[%s8528_s21 + $0x2380] sm:$0xff]  ;;  %v7212_v41 = vpack.c.bf16 %v1523_v46, %v1425_v37  ;;  %v942_v37 = vld [vmem:[%s8528_s21 + $0x1148] sm:$0xff] }
 0x444   : > { %7227 = vmatprep.subr.bf16.mxu1 %v7226_v33  ;;  %4520 = vmatprep.mubr.f32.mxu0 %v2235_v34  ;;  %v1622_v33 = vld [vmem:[%s8528_s21 + $0x2688] sm:$0xff]  ;;  %v1720_v34 = vld [vmem:[%s8528_s21 + $0x2998] sm:$0xff]  ;;  %v7244_v39 = vpack.c.bf16 %v1525_v32, %v1427_v40  ;;  %v1719_v45 = vld [vmem:[%s8528_s21 + $0x2990] sm:$0xff] }
 0x445   : > { %4590 = vmatprep.mubr.f32.mxu1 %v2236_v35  ;;  %v1624_v35 = vld [vmem:[%s8528_s21 + $0x2698] sm:$0xff]  ;;  %v7214_v44 = vpack.c.bf16 %v1720_v34, %v1622_v33  ;;  %v1623_v47 = vld [vmem:[%s8528_s21 + $0x2690] sm:$0xff]  ;;  %v7216_v53 = vpack.c.bf16 %v1719_v45, %v1621_v59  ;;  %v841_v33 = vld [vmem:[%s8528_s21 + $0xe20] sm:$0xff] }
 0x446   : > { %v7246_v42 = vpack.c.bf16 %v1722_v38, %v1624_v35  ;;  %v939_v34 = vld [vmem:[%s8528_s21 + $0x1130] sm:$0xff]  ;;  %v941_v38 = vld [vmem:[%s8528_s21 + $0x1140] sm:$0xff] }
 0x447   : > { %v843_v35 = vld [vmem:[%s8528_s21 + $0xe30] sm:$0xff]  ;;  %v7264_v59 = vpack.c.bf16 %v939_v34, %v841_v33  ;;  %v1922_v33 = vld [vmem:[%s8528_s21 + $0x2fe8] sm:$0xff] }
 0x448   : > { %v7296_v45 = vpack.c.bf16 %v941_v38, %v843_v35 }
 0x44a   : > { %7197 = vmatpush1.bf16.xpose.msra.mxu0 %v7196_v49  ;;  %v1721_v49 = vld [vmem:[%s8528_s21 + $0x29a0] sm:$0xff] }
 0x44b   : > { %7229 = vmatpush1.bf16.xpose.msra.mxu1 %v7228_v63  ;;  %7199 = vmatprep.subr.bf16.mxu0 %v7198_v50  ;;  %v1818_v63 = vld [vmem:[%s8528_s21 + $0x2ca8] sm:$0xff]  ;;  %v1916_v50 = vld [vmem:[%s8528_s21 + $0x2fb8] sm:$0xff]  ;;  %v7248_v61 = vpack.c.bf16 %v1721_v49, %v1623_v47 }
 0x44c   : > { %7231 = vmatprep.subr.bf16.mxu1 %v7230_v51  ;;  %v1820_v51 = vld [vmem:[%s8528_s21 + $0x2cb8] sm:$0xff]  ;;  %v7218_v54 = vpack.c.bf16 %v1916_v50, %v1818_v63  ;;  %v1037_v63 = vld [vmem:[%s8528_s21 + $0x1440] sm:$0xff]  ;;  %v1135_v50 = vld [vmem:[%s8528_s21 + $0x1750] sm:$0xff] }
 0x44d   : > { %v7250_v1 = vpack.c.bf16 %v1918_v52, %v1820_v51  ;;  %v1039_v51 = vld [vmem:[%s8528_s21 + $0x1450] sm:$0xff] }
 0x452   : > { %7201 = vmatpush1.bf16.xpose.msra.mxu0 %v7200_v11  ;;  %v1917_v11 = vld [vmem:[%s8528_s21 + $0x2fc0] sm:$0xff] }
 0x453   : > { %7233 = vmatpush1.bf16.xpose.msra.mxu1 %v7232_v60  ;;  %7203 = vmatprep.subr.bf16.mxu0 %v7202_v0  ;;  %v450_v60 = vld [vmem:[%s8528_s21 + $0x1e8] sm:$0xff]  ;;  %v548_v0 = vld [vmem:[%s8528_s21 + $0x4f8] sm:$0xff] }
 0x454   : > { %v3962_v5 = vpop.f32.mrb[20].mxu0  ;;  %7235 = vmatprep.subr.bf16.mxu1 %v7234_v2  ;;  %v452_v2 = vld [vmem:[%s8528_s21 + $0x1f8] sm:$0xff]  ;;  %v7254_v6 = vpack.c.bf16 %v548_v0, %v450_v60  ;;  %v7268_v60 = vpack.c.bf16 %v1135_v50, %v1037_v63  ;;  %v554_v63 = vld [vmem:[%s8528_s21 + $0x528] sm:$0xff] }
 0x455   : > { %v3963_v9 = vadd.f32 %v3962_v5, %v9631_v30  ;;  %v3964_v10 = vpop.f32.mrb[21].mxu0  ;;  %v4032_v18 = vpop.f32.mrb[20].mxu1  ;;  %v1229_v30 = vld [vmem:[%s8528_s21 + $0x1a40] sm:$0xff]  ;;  %v7252_v5 = vpack.c.bf16 %v1917_v11, %v1819_v57  ;;  %v7286_v7 = vpack.c.bf16 %v550_v13, %v452_v2  ;;  %v1236_v57 = vld [vmem:[%s8528_s21 + $0x1a78] sm:$0xff]  ;;  %v1334_v11 = vld [vmem:[%s8528_s21 + $0x1d88] sm:$0xff] }
 0x456   : > { %v4034_v56 = vpop.f32.mrb[21].mxu1  ;;  %v7208_v24 = vpack.c.bf16 %v1327_v17, %v1229_v30  ;;  %v547_v10 = vld [vmem:[%s8528_s21 + $0x4f0] sm:$0xff] }
 0x457   : > { %v9711_v14 = vadd.f32 %v4032_v18, %v3963_v9  ;;  %v449_v9 = vld [vmem:[%s8528_s21 + $0x1e0] sm:$0xff]  ;;  %v451_v18 = vld [vmem:[%s8528_s21 + $0x1f0] sm:$0xff]  ;;  %v9753_v56 = vrot.slane %v378_v4, %v8582_v48  ;;  %v7302_v4 = vpack.c.bf16 %v1334_v11, %v1236_v57  ;;  %v650_v11 = vld [vmem:[%s8528_s21 + $0x828] sm:$0xff] }
 0x458   : > { %v7256_v30 = vpack.c.bf16 %v547_v10, %v449_v9  ;;  %v7288_v17 = vpack.c.bf16 %v549_v15, %v451_v18  ;;  %v1528_v9 = vld [vmem:[%s8528_s21 + $0x2398] sm:$0xff]  ;;  %v1530_v18 = vld [vmem:[%s8528_s21 + $0x23a8] sm:$0xff]  ;;  %v553_v57 = vld [vmem:[%s8528_s21 + $0x520] sm:$0xff] }
 0x459   : > { %v2252_v21 = vcombine.high %v9753_v56, %v9753_v56  ;;  %v1432_v10 = vld [vmem:[%s8528_s21 + $0x2098] sm:$0xff] }
 0x45a   : > { %7205 = vmatpush1.bf16.xpose.msra.mxu0 %v7204_v12  ;;  %v744_v12 = vld [vmem:[%s8528_s21 + $0xb18] sm:$0xff] }
 0x45b   : > { %7237 = vmatpush1.bf16.xpose.msra.mxu1 %v7236_v28  ;;  %7207 = vmatprep.subr.bf16.mxu0 %v7206_v62  ;;  %v648_v28 = vld [vmem:[%s8528_s21 + $0x818] sm:$0xff]  ;;  %v746_v62 = vld [vmem:[%s8528_s21 + $0xb28] sm:$0xff]  ;;  %v7258_v19 = vpack.c.bf16 %v744_v12, %v646_v25 }
 0x45c   : > { %7239 = vmatprep.subr.bf16.mxu1 %v7238_v16  ;;  %v9758_v16 = vrot.slane %v2237_v8, %v8582_v48  ;;  %v7290_v20 = vpack.c.bf16 %v746_v62, %v648_v28  ;;  %v1430_v8 = vld [vmem:[%s8528_s21 + $0x2088] sm:$0xff]  ;;  %v7306_v28 = vpack.c.bf16 %v1530_v18, %v1432_v10  ;;  %v1429_v62 = vld [vmem:[%s8528_s21 + $0x2080] sm:$0xff]  ;;  %v747_v18 = vld [vmem:[%s8528_s21 + $0xb30] sm:$0xff] }
 0x45d   : > { %v7274_v12 = vpack.c.bf16 %v1528_v9, %v1430_v8  ;;  %v649_v10 = vld [vmem:[%s8528_s21 + $0x820] sm:$0xff] }
 0x45e   : > { %v2253_v22 = vcombine.high %v9758_v16, %v9758_v16 }
 0x462   : > { %7209 = vmatpush1.bf16.xpose.msra.mxu0 %v7208_v24  ;;  %v647_v24 = vld [vmem:[%s8528_s21 + $0x810] sm:$0xff] }
 0x463   : > { %7241 = vmatpush1.bf16.xpose.msra.mxu1 %v7240_v36  ;;  %7211 = vmatprep.subr.bf16.mxu0 %v7210_v27  ;;  %v745_v36 = vld [vmem:[%s8528_s21 + $0xb20] sm:$0xff]  ;;  %v842_v27 = vld [vmem:[%s8528_s21 + $0xe28] sm:$0xff] }
 0x464   : > { %7243 = vmatprep.subr.bf16.mxu1 %v7242_v43  ;;  %v940_v43 = vld [vmem:[%s8528_s21 + $0x1138] sm:$0xff]  ;;  %v7292_v46 = vpack.c.bf16 %v745_v36, %v647_v24 }
 0x465   : > { %v7262_v40 = vpack.c.bf16 %v940_v43, %v842_v27  ;;  %v1625_v43 = vld [vmem:[%s8528_s21 + $0x26a0] sm:$0xff] }
 0x46a   : > { %7213 = vmatpush1.bf16.xpose.msra.mxu0 %v7212_v41  ;;  %v1038_v41 = vld [vmem:[%s8528_s21 + $0x1448] sm:$0xff] }
 0x46b   : > { %7245 = vmatpush1.bf16.xpose.msra.mxu1 %v7244_v39  ;;  %7215 = vmatprep.subr.bf16.mxu0 %v7214_v44  ;;  %v1136_v39 = vld [vmem:[%s8528_s21 + $0x1758] sm:$0xff] }
 0x46c   : > { %7247 = vmatprep.subr.bf16.mxu1 %v7246_v42  ;;  %v1040_v44 = vld [vmem:[%s8528_s21 + $0x1458] sm:$0xff]  ;;  %v1138_v42 = vld [vmem:[%s8528_s21 + $0x1768] sm:$0xff]  ;;  %v7266_v47 = vpack.c.bf16 %v1136_v39, %v1038_v41  ;;  %v1821_v39 = vld [vmem:[%s8528_s21 + $0x2cc0] sm:$0xff] }
 0x46d   : > { %v7298_v49 = vpack.c.bf16 %v1138_v42, %v1040_v44  ;;  %v1919_v44 = vld [vmem:[%s8528_s21 + $0x2fd0] sm:$0xff] }
 0x46e   : > { %v1823_v42 = vld [vmem:[%s8528_s21 + $0x2cd0] sm:$0xff]  ;;  %v7284_v50 = vpack.c.bf16 %v1919_v44, %v1821_v39 }
 0x472   : > { %7217 = vmatpush1.bf16.xpose.msra.mxu0 %v7216_v53  ;;  %v1137_v53 = vld [vmem:[%s8528_s21 + $0x1760] sm:$0xff] }
 0x473   : > { %7249 = vmatpush1.bf16.xpose.msra.mxu1 %v7248_v61  ;;  %7219 = vmatprep.subr.bf16.mxu0 %v7218_v54  ;;  %v1234_v61 = vld [vmem:[%s8528_s21 + $0x1a68] sm:$0xff]  ;;  %v1332_v54 = vld [vmem:[%s8528_s21 + $0x1d78] sm:$0xff]  ;;  %v7300_v13 = vpack.c.bf16 %v1137_v53, %v1039_v51 }
 0x474   : > { %7251 = vmatprep.subr.bf16.mxu1 %v7250_v1  ;;  %v379_v51 = vld [vmem:[%s8580_s27 + $0x80] sm:$0xff] }
 0x47a   : > { %7221 = vmatpush1.bf16.xpose.msra.mxu0 %v7220_v3  ;;  %v7270_v3 = vpack.c.bf16 %v1332_v54, %v1234_v61  ;;  %v2254_v54 = vcombine.high %v379_v51, %v379_v51 }
 0x47b   : > { %7253 = vmatpush1.bf16.xpose.msra.mxu1 %v7252_v5  ;;  %7255 = vmatprep.subr.bf16.mxu0 %v7254_v6  ;;  %v1331_v5 = vld [vmem:[%s8528_s21 + $0x1d70] sm:$0xff] }
 0x47c   : > { %7287 = vmatprep.subr.bf16.mxu1 %v7286_v7  ;;  %v1235_v6 = vld [vmem:[%s8528_s21 + $0x1a70] sm:$0xff]  ;;  %v1333_v7 = vld [vmem:[%s8528_s21 + $0x1d80] sm:$0xff] }
 0x47d   : > { %v7304_v25 = vpack.c.bf16 %v1333_v7, %v1235_v6 }
 0x481   : > { %4521 = vmatmul.mubr.f32.vlgmr.msra.gmra.mrb[28].mxu0 %v9673_v29  ;;  %v844_v29 = vld [vmem:[%s8528_s21 + $0xe38] sm:$0xff] }
 0x482   : > { %7257 = vmatpush1.bf16.xpose.msra.mxu0 %v7256_v30  ;;  %4591 = vmatmul.mubr.f32.vlgmr.msra.gmra.mrb[28].mxu1 %v9678_v31  ;;  %v7260_v31 = vpack.c.bf16 %v743_v26, %v645_v23  ;;  %v7294_v32 = vpack.c.bf16 %v942_v37, %v844_v29  ;;  %v1527_v30 = vld [vmem:[%s8528_s21 + $0x2390] sm:$0xff]  ;;  %v1726_v23 = vld [vmem:[%s8528_s21 + $0x29c8] sm:$0xff] }
 0x483   : > { %7289 = vmatpush1.bf16.xpose.msra.mxu1 %v7288_v17  ;;  %7259 = vmatprep.subr.bf16.mxu0 %v7258_v19  ;;  %v1431_v17 = vld [vmem:[%s8528_s21 + $0x2090] sm:$0xff]  ;;  %v1529_v19 = vld [vmem:[%s8528_s21 + $0x23a0] sm:$0xff]  ;;  %v7276_v26 = vpack.c.bf16 %v1527_v30, %v1429_v62  ;;  %v946_v62 = vld [vmem:[%s8528_s21 + $0x1168] sm:$0xff] }
 0x484   : > { %7291 = vmatprep.subr.bf16.mxu1 %v7290_v20  ;;  %4660 = vmatprep.mubr.f32.mxu0 %v2252_v21  ;;  %v1626_v20 = vld [vmem:[%s8528_s21 + $0x26a8] sm:$0xff]  ;;  %v1724_v21 = vld [vmem:[%s8528_s21 + $0x29b8] sm:$0xff]  ;;  %v7308_v24 = vpack.c.bf16 %v1529_v19, %v1431_v17  ;;  %v1723_v29 = vld [vmem:[%s8528_s21 + $0x29b0] sm:$0xff] }
 0x485   : > { %4730 = vmatprep.mubr.f32.mxu1 %v2253_v22  ;;  %v1628_v22 = vld [vmem:[%s8528_s21 + $0x26b8] sm:$0xff]  ;;  %v7278_v36 = vpack.c.bf16 %v1724_v21, %v1626_v20  ;;  %v1627_v37 = vld [vmem:[%s8528_s21 + $0x26b0] sm:$0xff]  ;;  %v7280_v34 = vpack.c.bf16 %v1723_v29, %v1625_v43  ;;  %v845_v20 = vld [vmem:[%s8528_s21 + $0xe40] sm:$0xff] }
 0x486   : > { %v7310_v27 = vpack.c.bf16 %v1726_v23, %v1628_v22  ;;  %v943_v21 = vld [vmem:[%s8528_s21 + $0x1150] sm:$0xff]  ;;  %v945_v23 = vld [vmem:[%s8528_s21 + $0x1160] sm:$0xff] }
 0x487   : > { %v847_v22 = vld [vmem:[%s8528_s21 + $0xe50] sm:$0xff]  ;;  %v7328_v43 = vpack.c.bf16 %v943_v21, %v845_v20  ;;  %v1926_v20 = vld [vmem:[%s8528_s21 + $0x3008] sm:$0xff] }
 0x488   : > { %v7360_v29 = vpack.c.bf16 %v945_v23, %v847_v22 }
 0x48a   : > { %7261 = vmatpush1.bf16.xpose.msra.mxu0 %v7260_v31  ;;  %v1725_v31 = vld [vmem:[%s8528_s21 + $0x29c0] sm:$0xff] }
 0x48b   : > { %7293 = vmatpush1.bf16.xpose.msra.mxu1 %v7292_v46  ;;  %7263 = vmatprep.subr.bf16.mxu0 %v7262_v40  ;;  %v1822_v46 = vld [vmem:[%s8528_s21 + $0x2cc8] sm:$0xff]  ;;  %v1920_v40 = vld [vmem:[%s8528_s21 + $0x2fd8] sm:$0xff]  ;;  %v7312_v35 = vpack.c.bf16 %v1725_v31, %v1627_v37 }
 0x48c   : > { %7295 = vmatprep.subr.bf16.mxu1 %v7294_v32  ;;  %v1824_v32 = vld [vmem:[%s8528_s21 + $0x2cd8] sm:$0xff]  ;;  %v7282_v38 = vpack.c.bf16 %v1920_v40, %v1822_v46  ;;  %v1041_v46 = vld [vmem:[%s8528_s21 + $0x1460] sm:$0xff]  ;;  %v1139_v40 = vld [vmem:[%s8528_s21 + $0x1770] sm:$0xff] }
 0x48d   : > { %v7314_v41 = vpack.c.bf16 %v1922_v33, %v1824_v32  ;;  %v1043_v32 = vld [vmem:[%s8528_s21 + $0x1470] sm:$0xff] }
 0x492   : > { %7265 = vmatpush1.bf16.xpose.msra.mxu0 %v7264_v59  ;;  %v1921_v59 = vld [vmem:[%s8528_s21 + $0x2fe0] sm:$0xff] }
 0x493   : > { %7297 = vmatpush1.bf16.xpose.msra.mxu1 %v7296_v45  ;;  %7267 = vmatprep.subr.bf16.mxu0 %v7266_v47  ;;  %v454_v45 = vld [vmem:[%s8528_s21 + $0x208] sm:$0xff]  ;;  %v552_v47 = vld [vmem:[%s8528_s21 + $0x518] sm:$0xff] }
 0x494   : > { %v4102_v52 = vpop.f32.mrb[22].mxu0  ;;  %7299 = vmatprep.subr.bf16.mxu1 %v7298_v49  ;;  %v456_v49 = vld [vmem:[%s8528_s21 + $0x218] sm:$0xff]  ;;  %v7318_v53 = vpack.c.bf16 %v552_v47, %v454_v45  ;;  %v7332_v45 = vpack.c.bf16 %v1139_v40, %v1041_v46  ;;  %v558_v46 = vld [vmem:[%s8528_s21 + $0x548] sm:$0xff] }
 0x495   : > { %v4103_v1 = vadd.f32 %v4102_v52, %v9711_v14  ;;  %v4104_v55 = vpop.f32.mrb[23].mxu0  ;;  %v4172_v58 = vpop.f32.mrb[22].mxu1  ;;  %v1233_v14 = vld [vmem:[%s8528_s21 + $0x1a60] sm:$0xff]  ;;  %v7316_v52 = vpack.c.bf16 %v1921_v59, %v1823_v42  ;;  %v7350_v61 = vpack.c.bf16 %v554_v63, %v456_v49  ;;  %v1240_v42 = vld [vmem:[%s8528_s21 + $0x1a98] sm:$0xff]  ;;  %v1338_v59 = vld [vmem:[%s8528_s21 + $0x1da8] sm:$0xff] }
 0x496   : > { %v4174_v0 = vpop.f32.mrb[23].mxu1  ;;  %v7272_v15 = vpack.c.bf16 %v1331_v5, %v1233_v14  ;;  %v551_v55 = vld [vmem:[%s8528_s21 + $0x510] sm:$0xff] }
 0x497   : > { %v9791_v2 = vadd.f32 %v4172_v58, %v4103_v1  ;;  %v453_v1 = vld [vmem:[%s8528_s21 + $0x200] sm:$0xff]  ;;  %v455_v58 = vld [vmem:[%s8528_s21 + $0x210] sm:$0xff]  ;;  %v9833_v0 = vrot.slane %v379_v51, %v8582_v48  ;;  %v7366_v51 = vpack.c.bf16 %v1338_v59, %v1240_v42  ;;  %v654_v59 = vld [vmem:[%s8528_s21 + $0x848] sm:$0xff] }
 0x498   : > { %v7320_v14 = vpack.c.bf16 %v551_v55, %v453_v1  ;;  %v7352_v5 = vpack.c.bf16 %v553_v57, %v455_v58  ;;  %v1532_v1 = vld [vmem:[%s8528_s21 + $0x23b8] sm:$0xff]  ;;  %v1534_v58 = vld [vmem:[%s8528_s21 + $0x23c8] sm:$0xff]  ;;  %v557_v42 = vld [vmem:[%s8528_s21 + $0x540] sm:$0xff] }
 0x499   : > { %v2269_v8 = vcombine.high %v9833_v0, %v9833_v0  ;;  %v1436_v55 = vld [vmem:[%s8528_s21 + $0x20b8] sm:$0xff] }
 0x49a   : > { %7269 = vmatpush1.bf16.xpose.msra.mxu0 %v7268_v60  ;;  %v748_v60 = vld [vmem:[%s8528_s21 + $0xb38] sm:$0xff] }
 0x49b   : > { %7301 = vmatpush1.bf16.xpose.msra.mxu1 %v7300_v13  ;;  %7271 = vmatprep.subr.bf16.mxu0 %v7270_v3  ;;  %v652_v13 = vld [vmem:[%s8528_s21 + $0x838] sm:$0xff]  ;;  %v750_v3 = vld [vmem:[%s8528_s21 + $0xb48] sm:$0xff]  ;;  %v7322_v6 = vpack.c.bf16 %v748_v60, %v650_v11 }
 0x49c   : > { %7303 = vmatprep.subr.bf16.mxu1 %v7302_v4  ;;  %v9838_v4 = vrot.slane %v2254_v54, %v8582_v48  ;;  %v7354_v7 = vpack.c.bf16 %v750_v3, %v652_v13  ;;  %v1434_v54 = vld [vmem:[%s8528_s21 + $0x20a8] sm:$0xff]  ;;  %v7370_v13 = vpack.c.bf16 %v1534_v58, %v1436_v55  ;;  %v1433_v3 = vld [vmem:[%s8528_s21 + $0x20a0] sm:$0xff]  ;;  %v751_v58 = vld [vmem:[%s8528_s21 + $0xb50] sm:$0xff] }
 0x49d   : > { %v7338_v60 = vpack.c.bf16 %v1532_v1, %v1434_v54  ;;  %v653_v55 = vld [vmem:[%s8528_s21 + $0x840] sm:$0xff] }
 0x49e   : > { %v2270_v9 = vcombine.high %v9838_v4, %v9838_v4 }
 0x4a2   : > { %7273 = vmatpush1.bf16.xpose.msra.mxu0 %v7272_v15  ;;  %v651_v15 = vld [vmem:[%s8528_s21 + $0x830] sm:$0xff] }
 0x4a3   : > { %7305 = vmatpush1.bf16.xpose.msra.mxu1 %v7304_v25  ;;  %7275 = vmatprep.subr.bf16.mxu0 %v7274_v12  ;;  %v749_v25 = vld [vmem:[%s8528_s21 + $0xb40] sm:$0xff]  ;;  %v846_v12 = vld [vmem:[%s8528_s21 + $0xe48] sm:$0xff] }
 0x4a4   : > { %7307 = vmatprep.subr.bf16.mxu1 %v7306_v28  ;;  %v944_v28 = vld [vmem:[%s8528_s21 + $0x1158] sm:$0xff]  ;;  %v7356_v30 = vpack.c.bf16 %v749_v25, %v651_v15 }
 0x4a5   : > { %v7326_v17 = vpack.c.bf16 %v944_v28, %v846_v12  ;;  %v1629_v28 = vld [vmem:[%s8528_s21 + $0x26c0] sm:$0xff] }
 0x4aa   : > { %7277 = vmatpush1.bf16.xpose.msra.mxu0 %v7276_v26  ;;  %v1042_v26 = vld [vmem:[%s8528_s21 + $0x1468] sm:$0xff] }
 0x4ab   : > { %7309 = vmatpush1.bf16.xpose.msra.mxu1 %v7308_v24  ;;  %7279 = vmatprep.subr.bf16.mxu0 %v7278_v36  ;;  %v1140_v24 = vld [vmem:[%s8528_s21 + $0x1778] sm:$0xff] }
 0x4ac   : > { %7311 = vmatprep.subr.bf16.mxu1 %v7310_v27  ;;  %v1044_v36 = vld [vmem:[%s8528_s21 + $0x1478] sm:$0xff]  ;;  %v1142_v27 = vld [vmem:[%s8528_s21 + $0x1788] sm:$0xff]  ;;  %v7330_v37 = vpack.c.bf16 %v1140_v24, %v1042_v26  ;;  %v1825_v24 = vld [vmem:[%s8528_s21 + $0x2ce0] sm:$0xff] }
 0x4ad   : > { %v7362_v31 = vpack.c.bf16 %v1142_v27, %v1044_v36  ;;  %v1923_v36 = vld [vmem:[%s8528_s21 + $0x2ff0] sm:$0xff] }
 0x4ae   : > { %v1827_v27 = vld [vmem:[%s8528_s21 + $0x2cf0] sm:$0xff]  ;;  %v7348_v40 = vpack.c.bf16 %v1923_v36, %v1825_v24 }
 0x4b2   : > { %7281 = vmatpush1.bf16.xpose.msra.mxu0 %v7280_v34  ;;  %v1141_v34 = vld [vmem:[%s8528_s21 + $0x1780] sm:$0xff] }
 0x4b3   : > { %7313 = vmatpush1.bf16.xpose.msra.mxu1 %v7312_v35  ;;  %7283 = vmatprep.subr.bf16.mxu0 %v7282_v38  ;;  %v1238_v35 = vld [vmem:[%s8528_s21 + $0x1a88] sm:$0xff]  ;;  %v1336_v38 = vld [vmem:[%s8528_s21 + $0x1d98] sm:$0xff]  ;;  %v7364_v63 = vpack.c.bf16 %v1141_v34, %v1043_v32 }
 0x4b4   : > { %7315 = vmatprep.subr.bf16.mxu1 %v7314_v41  ;;  %v380_v32 = vld [vmem:[%s8580_s27 + $0x88] sm:$0xff] }
 0x4ba   : > { %7285 = vmatpush1.bf16.xpose.msra.mxu0 %v7284_v50  ;;  %v7334_v50 = vpack.c.bf16 %v1336_v38, %v1238_v35  ;;  %v2271_v38 = vcombine.high %v380_v32, %v380_v32 }
 0x4bb   : > { %7317 = vmatpush1.bf16.xpose.msra.mxu1 %v7316_v52  ;;  %7319 = vmatprep.subr.bf16.mxu0 %v7318_v53  ;;  %v1335_v52 = vld [vmem:[%s8528_s21 + $0x1d90] sm:$0xff] }
 0x4bc   : > { %7351 = vmatprep.subr.bf16.mxu1 %v7350_v61  ;;  %v1239_v53 = vld [vmem:[%s8528_s21 + $0x1a90] sm:$0xff]  ;;  %v1337_v61 = vld [vmem:[%s8528_s21 + $0x1da0] sm:$0xff] }
 0x4bd   : > { %v7368_v11 = vpack.c.bf16 %v1337_v61, %v1239_v53 }
 0x4c1   : > { %4661 = vmatmul.mubr.f32.vlgmr.msra.gmra.mrb[30].mxu0 %v9753_v56  ;;  %v848_v56 = vld [vmem:[%s8528_s21 + $0xe58] sm:$0xff] }
 0x4c2   : > { %7321 = vmatpush1.bf16.xpose.msra.mxu0 %v7320_v14  ;;  %4731 = vmatmul.mubr.f32.vlgmr.msra.gmra.mrb[30].mxu1 %v9758_v16  ;;  %v7324_v16 = vpack.c.bf16 %v747_v18, %v649_v10  ;;  %v7358_v19 = vpack.c.bf16 %v946_v62, %v848_v56  ;;  %v1531_v14 = vld [vmem:[%s8528_s21 + $0x23b0] sm:$0xff]  ;;  %v1730_v10 = vld [vmem:[%s8528_s21 + $0x29e8] sm:$0xff] }
 0x4c3   : > { %7353 = vmatpush1.bf16.xpose.msra.mxu1 %v7352_v5  ;;  %7323 = vmatprep.subr.bf16.mxu0 %v7322_v6  ;;  %v1435_v5 = vld [vmem:[%s8528_s21 + $0x20b0] sm:$0xff]  ;;  %v1533_v6 = vld [vmem:[%s8528_s21 + $0x23c0] sm:$0xff]  ;;  %v7340_v18 = vpack.c.bf16 %v1531_v14, %v1433_v3  ;;  %v950_v3 = vld [vmem:[%s8528_s21 + $0x1188] sm:$0xff] }
 0x4c4   : > { %7355 = vmatprep.subr.bf16.mxu1 %v7354_v7  ;;  %4800 = vmatprep.mubr.f32.mxu0 %v2269_v8  ;;  %v1630_v7 = vld [vmem:[%s8528_s21 + $0x26c8] sm:$0xff]  ;;  %v1728_v8 = vld [vmem:[%s8528_s21 + $0x29d8] sm:$0xff]  ;;  %v7372_v15 = vpack.c.bf16 %v1533_v6, %v1435_v5  ;;  %v1727_v56 = vld [vmem:[%s8528_s21 + $0x29d0] sm:$0xff] }
 0x4c5   : > { %4870 = vmatprep.mubr.f32.mxu1 %v2270_v9  ;;  %v1632_v9 = vld [vmem:[%s8528_s21 + $0x26d8] sm:$0xff]  ;;  %v7342_v25 = vpack.c.bf16 %v1728_v8, %v1630_v7  ;;  %v1631_v62 = vld [vmem:[%s8528_s21 + $0x26d0] sm:$0xff]  ;;  %v7344_v21 = vpack.c.bf16 %v1727_v56, %v1629_v28  ;;  %v849_v7 = vld [vmem:[%s8528_s21 + $0xe60] sm:$0xff] }
 0x4c6   : > { %v7374_v12 = vpack.c.bf16 %v1730_v10, %v1632_v9  ;;  %v947_v8 = vld [vmem:[%s8528_s21 + $0x1170] sm:$0xff]  ;;  %v949_v10 = vld [vmem:[%s8528_s21 + $0x1180] sm:$0xff] }
 0x4c7   : > { %v851_v9 = vld [vmem:[%s8528_s21 + $0xe70] sm:$0xff]  ;;  %v7392_v28 = vpack.c.bf16 %v947_v8, %v849_v7  ;;  %v1930_v7 = vld [vmem:[%s8528_s21 + $0x3028] sm:$0xff] }
 0x4c8   : > { %v7424_v56 = vpack.c.bf16 %v949_v10, %v851_v9 }
 0x4ca   : > { %7325 = vmatpush1.bf16.xpose.msra.mxu0 %v7324_v16  ;;  %v1729_v16 = vld [vmem:[%s8528_s21 + $0x29e0] sm:$0xff] }
 0x4cb   : > { %7357 = vmatpush1.bf16.xpose.msra.mxu1 %v7356_v30  ;;  %7327 = vmatprep.subr.bf16.mxu0 %v7326_v17  ;;  %v1826_v30 = vld [vmem:[%s8528_s21 + $0x2ce8] sm:$0xff]  ;;  %v1924_v17 = vld [vmem:[%s8528_s21 + $0x2ff8] sm:$0xff]  ;;  %v7376_v22 = vpack.c.bf16 %v1729_v16, %v1631_v62 }
 0x4cc   : > { %7359 = vmatprep.subr.bf16.mxu1 %v7358_v19  ;;  %v1828_v19 = vld [vmem:[%s8528_s21 + $0x2cf8] sm:$0xff]  ;;  %v7346_v23 = vpack.c.bf16 %v1924_v17, %v1826_v30  ;;  %v1045_v30 = vld [vmem:[%s8528_s21 + $0x1480] sm:$0xff]  ;;  %v1143_v17 = vld [vmem:[%s8528_s21 + $0x1790] sm:$0xff] }
 0x4cd   : > { %v7378_v26 = vpack.c.bf16 %v1926_v20, %v1828_v19  ;;  %v1047_v19 = vld [vmem:[%s8528_s21 + $0x1490] sm:$0xff] }
 0x4d2   : > { %7329 = vmatpush1.bf16.xpose.msra.mxu0 %v7328_v43  ;;  %v1925_v43 = vld [vmem:[%s8528_s21 + $0x3000] sm:$0xff] }
 0x4d3   : > { %7361 = vmatpush1.bf16.xpose.msra.mxu1 %v7360_v29  ;;  %7331 = vmatprep.subr.bf16.mxu0 %v7330_v37  ;;  %v458_v29 = vld [vmem:[%s8528_s21 + $0x228] sm:$0xff]  ;;  %v556_v37 = vld [vmem:[%s8528_s21 + $0x538] sm:$0xff] }
 0x4d4   : > { %v4242_v33 = vpop.f32.mrb[24].mxu0  ;;  %7363 = vmatprep.subr.bf16.mxu1 %v7362_v31  ;;  %v460_v31 = vld [vmem:[%s8528_s21 + $0x238] sm:$0xff]  ;;  %v7382_v34 = vpack.c.bf16 %v556_v37, %v458_v29  ;;  %v7396_v29 = vpack.c.bf16 %v1143_v17, %v1045_v30  ;;  %v562_v30 = vld [vmem:[%s8528_s21 + $0x568] sm:$0xff] }
 0x4d5   : > { %v4243_v41 = vadd.f32 %v4242_v33, %v9791_v2  ;;  %v4244_v39 = vpop.f32.mrb[25].mxu0  ;;  %v4312_v44 = vpop.f32.mrb[24].mxu1  ;;  %v1237_v2 = vld [vmem:[%s8528_s21 + $0x1a80] sm:$0xff]  ;;  %v7380_v33 = vpack.c.bf16 %v1925_v43, %v1827_v27  ;;  %v7414_v35 = vpack.c.bf16 %v558_v46, %v460_v31  ;;  %v1244_v27 = vld [vmem:[%s8528_s21 + $0x1ab8] sm:$0xff]  ;;  %v1342_v43 = vld [vmem:[%s8528_s21 + $0x1dc8] sm:$0xff] }
 0x4d6   : > { %v4314_v47 = vpop.f32.mrb[25].mxu1  ;;  %v7336_v57 = vpack.c.bf16 %v1335_v52, %v1237_v2  ;;  %v555_v39 = vld [vmem:[%s8528_s21 + $0x530] sm:$0xff] }
 0x4d7   : > { %v9871_v49 = vadd.f32 %v4312_v44, %v4243_v41  ;;  %v457_v41 = vld [vmem:[%s8528_s21 + $0x220] sm:$0xff]  ;;  %v459_v44 = vld [vmem:[%s8528_s21 + $0x230] sm:$0xff]  ;;  %v9913_v47 = vrot.slane %v380_v32, %v8582_v48  ;;  %v7430_v32 = vpack.c.bf16 %v1342_v43, %v1244_v27  ;;  %v658_v43 = vld [vmem:[%s8528_s21 + $0x868] sm:$0xff] }
 0x4d8   : > { %v7384_v2 = vpack.c.bf16 %v555_v39, %v457_v41  ;;  %v7416_v52 = vpack.c.bf16 %v557_v42, %v459_v44  ;;  %v1536_v41 = vld [vmem:[%s8528_s21 + $0x23d8] sm:$0xff]  ;;  %v1538_v44 = vld [vmem:[%s8528_s21 + $0x23e8] sm:$0xff]  ;;  %v561_v27 = vld [vmem:[%s8528_s21 + $0x560] sm:$0xff] }
 0x4d9   : > { %v2286_v54 = vcombine.high %v9913_v47, %v9913_v47  ;;  %v1440_v39 = vld [vmem:[%s8528_s21 + $0x20d8] sm:$0xff] }
 0x4da   : > { %7333 = vmatpush1.bf16.xpose.msra.mxu0 %v7332_v45  ;;  %v752_v45 = vld [vmem:[%s8528_s21 + $0xb58] sm:$0xff] }
 0x4db   : > { %7365 = vmatpush1.bf16.xpose.msra.mxu1 %v7364_v63  ;;  %7335 = vmatprep.subr.bf16.mxu0 %v7334_v50  ;;  %v656_v63 = vld [vmem:[%s8528_s21 + $0x858] sm:$0xff]  ;;  %v754_v50 = vld [vmem:[%s8528_s21 + $0xb68] sm:$0xff]  ;;  %v7386_v53 = vpack.c.bf16 %v752_v45, %v654_v59 }
 0x4dc   : > { %7367 = vmatprep.subr.bf16.mxu1 %v7366_v51  ;;  %v9918_v51 = vrot.slane %v2271_v38, %v8582_v48  ;;  %v7418_v61 = vpack.c.bf16 %v754_v50, %v656_v63  ;;  %v1438_v38 = vld [vmem:[%s8528_s21 + $0x20c8] sm:$0xff]  ;;  %v7434_v63 = vpack.c.bf16 %v1538_v44, %v1440_v39  ;;  %v1437_v50 = vld [vmem:[%s8528_s21 + $0x20c0] sm:$0xff]  ;;  %v755_v44 = vld [vmem:[%s8528_s21 + $0xb70] sm:$0xff] }
 0x4dd   : > { %v7402_v45 = vpack.c.bf16 %v1536_v41, %v1438_v38  ;;  %v657_v39 = vld [vmem:[%s8528_s21 + $0x860] sm:$0xff] }
 0x4de   : > { %v2287_v1 = vcombine.high %v9918_v51, %v9918_v51 }
 0x4e2   : > { %7337 = vmatpush1.bf16.xpose.msra.mxu0 %v7336_v57  ;;  %v655_v57 = vld [vmem:[%s8528_s21 + $0x850] sm:$0xff] }
 0x4e3   : > { %7369 = vmatpush1.bf16.xpose.msra.mxu1 %v7368_v11  ;;  %7339 = vmatprep.subr.bf16.mxu0 %v7338_v60  ;;  %v753_v11 = vld [vmem:[%s8528_s21 + $0xb60] sm:$0xff]  ;;  %v850_v60 = vld [vmem:[%s8528_s21 + $0xe68] sm:$0xff] }
 0x4e4   : > { %7371 = vmatprep.subr.bf16.mxu1 %v7370_v13  ;;  %v948_v13 = vld [vmem:[%s8528_s21 + $0x1178] sm:$0xff]  ;;  %v7420_v14 = vpack.c.bf16 %v753_v11, %v655_v57 }
 0x4e5   : > { %v7390_v5 = vpack.c.bf16 %v948_v13, %v850_v60  ;;  %v1633_v13 = vld [vmem:[%s8528_s21 + $0x26e0] sm:$0xff] }
 0x4ea   : > { %7341 = vmatpush1.bf16.xpose.msra.mxu0 %v7340_v18  ;;  %v1046_v18 = vld [vmem:[%s8528_s21 + $0x1488] sm:$0xff] }
 0x4eb   : > { %7373 = vmatpush1.bf16.xpose.msra.mxu1 %v7372_v15  ;;  %7343 = vmatprep.subr.bf16.mxu0 %v7342_v25  ;;  %v1144_v15 = vld [vmem:[%s8528_s21 + $0x1798] sm:$0xff] }
 0x4ec   : > { %7375 = vmatprep.subr.bf16.mxu1 %v7374_v12  ;;  %v1048_v25 = vld [vmem:[%s8528_s21 + $0x1498] sm:$0xff]  ;;  %v1146_v12 = vld [vmem:[%s8528_s21 + $0x17a8] sm:$0xff]  ;;  %v7394_v62 = vpack.c.bf16 %v1144_v15, %v1046_v18  ;;  %v1829_v15 = vld [vmem:[%s8528_s21 + $0x2d00] sm:$0xff] }
 0x4ed   : > { %v7426_v16 = vpack.c.bf16 %v1146_v12, %v1048_v25  ;;  %v1927_v25 = vld [vmem:[%s8528_s21 + $0x3010] sm:$0xff] }
 0x4ee   : > { %v1831_v12 = vld [vmem:[%s8528_s21 + $0x2d10] sm:$0xff]  ;;  %v7412_v17 = vpack.c.bf16 %v1927_v25, %v1829_v15 }
 0x4f2   : > { %7345 = vmatpush1.bf16.xpose.msra.mxu0 %v7344_v21  ;;  %v1145_v21 = vld [vmem:[%s8528_s21 + $0x17a0] sm:$0xff] }
 0x4f3   : > { %7377 = vmatpush1.bf16.xpose.msra.mxu1 %v7376_v22  ;;  %7347 = vmatprep.subr.bf16.mxu0 %v7346_v23  ;;  %v1242_v22 = vld [vmem:[%s8528_s21 + $0x1aa8] sm:$0xff]  ;;  %v1340_v23 = vld [vmem:[%s8528_s21 + $0x1db8] sm:$0xff]  ;;  %v7428_v46 = vpack.c.bf16 %v1145_v21, %v1047_v19 }
 0x4f4   : > { %7379 = vmatprep.subr.bf16.mxu1 %v7378_v26  ;;  %v381_v19 = vld [vmem:[%s8580_s27 + $0x90] sm:$0xff] }
 0x4fa   : > { %7349 = vmatpush1.bf16.xpose.msra.mxu0 %v7348_v40  ;;  %v7398_v40 = vpack.c.bf16 %v1340_v23, %v1242_v22  ;;  %v2288_v23 = vcombine.high %v381_v19, %v381_v19 }
 0x4fb   : > { %7381 = vmatpush1.bf16.xpose.msra.mxu1 %v7380_v33  ;;  %7383 = vmatprep.subr.bf16.mxu0 %v7382_v34  ;;  %v1339_v33 = vld [vmem:[%s8528_s21 + $0x1db0] sm:$0xff] }
 0x4fc   : > { %7415 = vmatprep.subr.bf16.mxu1 %v7414_v35  ;;  %v1243_v34 = vld [vmem:[%s8528_s21 + $0x1ab0] sm:$0xff]  ;;  %v1341_v35 = vld [vmem:[%s8528_s21 + $0x1dc0] sm:$0xff] }
 0x4fd   : > { %v7432_v59 = vpack.c.bf16 %v1341_v35, %v1243_v34 }
 0x501   : > { %4801 = vmatmul.mubr.f32.vlgmr.msra.gmra.mrb[32].mxu0 %v9833_v0  ;;  %v852_v0 = vld [vmem:[%s8528_s21 + $0xe78] sm:$0xff] }
 0x502   : > { %7385 = vmatpush1.bf16.xpose.msra.mxu0 %v7384_v2  ;;  %4871 = vmatmul.mubr.f32.vlgmr.msra.gmra.mrb[32].mxu1 %v9838_v4  ;;  %v7388_v4 = vpack.c.bf16 %v751_v58, %v653_v55  ;;  %v7422_v6 = vpack.c.bf16 %v950_v3, %v852_v0  ;;  %v1535_v2 = vld [vmem:[%s8528_s21 + $0x23d0] sm:$0xff]  ;;  %v1734_v55 = vld [vmem:[%s8528_s21 + $0x2a08] sm:$0xff] }
 0x503   : > { %7417 = vmatpush1.bf16.xpose.msra.mxu1 %v7416_v52  ;;  %7387 = vmatprep.subr.bf16.mxu0 %v7386_v53  ;;  %v1439_v52 = vld [vmem:[%s8528_s21 + $0x20d0] sm:$0xff]  ;;  %v1537_v53 = vld [vmem:[%s8528_s21 + $0x23e0] sm:$0xff]  ;;  %v7404_v58 = vpack.c.bf16 %v1535_v2, %v1437_v50  ;;  %v954_v50 = vld [vmem:[%s8528_s21 + $0x11a8] sm:$0xff] }
 0x504   : > { %7419 = vmatprep.subr.bf16.mxu1 %v7418_v61  ;;  %4940 = vmatprep.mubr.f32.mxu0 %v2286_v54  ;;  %v1634_v61 = vld [vmem:[%s8528_s21 + $0x26e8] sm:$0xff]  ;;  %v1732_v54 = vld [vmem:[%s8528_s21 + $0x29f8] sm:$0xff]  ;;  %v7436_v57 = vpack.c.bf16 %v1537_v53, %v1439_v52  ;;  %v1731_v0 = vld [vmem:[%s8528_s21 + $0x29f0] sm:$0xff] }
 0x505   : > { %5010 = vmatprep.mubr.f32.mxu1 %v2287_v1  ;;  %v1636_v1 = vld [vmem:[%s8528_s21 + $0x26f8] sm:$0xff]  ;;  %v7406_v11 = vpack.c.bf16 %v1732_v54, %v1634_v61  ;;  %v1635_v3 = vld [vmem:[%s8528_s21 + $0x26f0] sm:$0xff]  ;;  %v7408_v8 = vpack.c.bf16 %v1731_v0, %v1633_v13  ;;  %v853_v61 = vld [vmem:[%s8528_s21 + $0xe80] sm:$0xff] }
 0x506   : > { %v7438_v60 = vpack.c.bf16 %v1734_v55, %v1636_v1  ;;  %v951_v54 = vld [vmem:[%s8528_s21 + $0x1190] sm:$0xff]  ;;  %v953_v55 = vld [vmem:[%s8528_s21 + $0x11a0] sm:$0xff] }
 0x507   : > { %v855_v1 = vld [vmem:[%s8528_s21 + $0xe90] sm:$0xff]  ;;  %v7456_v13 = vpack.c.bf16 %v951_v54, %v853_v61  ;;  %v1934_v61 = vld [vmem:[%s8528_s21 + $0x3048] sm:$0xff] }
 0x508   : > { %v7488_v0 = vpack.c.bf16 %v953_v55, %v855_v1 }
 0x50a   : > { %7389 = vmatpush1.bf16.xpose.msra.mxu0 %v7388_v4  ;;  %v1733_v4 = vld [vmem:[%s8528_s21 + $0x2a00] sm:$0xff] }
 0x50b   : > { %7421 = vmatpush1.bf16.xpose.msra.mxu1 %v7420_v14  ;;  %7391 = vmatprep.subr.bf16.mxu0 %v7390_v5  ;;  %v1830_v14 = vld [vmem:[%s8528_s21 + $0x2d08] sm:$0xff]  ;;  %v1928_v5 = vld [vmem:[%s8528_s21 + $0x3018] sm:$0xff]  ;;  %v7440_v9 = vpack.c.bf16 %v1733_v4, %v1635_v3 }
 0x50c   : > { %7423 = vmatprep.subr.bf16.mxu1 %v7422_v6  ;;  %v1832_v6 = vld [vmem:[%s8528_s21 + $0x2d18] sm:$0xff]  ;;  %v7410_v10 = vpack.c.bf16 %v1928_v5, %v1830_v14  ;;  %v1049_v14 = vld [vmem:[%s8528_s21 + $0x14a0] sm:$0xff]  ;;  %v1147_v5 = vld [vmem:[%s8528_s21 + $0x17b0] sm:$0xff] }
 0x50d   : > { %v7442_v18 = vpack.c.bf16 %v1930_v7, %v1832_v6  ;;  %v1051_v6 = vld [vmem:[%s8528_s21 + $0x14b0] sm:$0xff] }
 0x512   : > { %7393 = vmatpush1.bf16.xpose.msra.mxu0 %v7392_v28  ;;  %v1929_v28 = vld [vmem:[%s8528_s21 + $0x3020] sm:$0xff] }
 0x513   : > { %7425 = vmatpush1.bf16.xpose.msra.mxu1 %v7424_v56  ;;  %7395 = vmatprep.subr.bf16.mxu0 %v7394_v62  ;;  %v462_v56 = vld [vmem:[%s8528_s21 + $0x248] sm:$0xff]  ;;  %v560_v62 = vld [vmem:[%s8528_s21 + $0x558] sm:$0xff] }
 0x514   : > { %v4382_v20 = vpop.f32.mrb[26].mxu0  ;;  %7427 = vmatprep.subr.bf16.mxu1 %v7426_v16  ;;  %v464_v16 = vld [vmem:[%s8528_s21 + $0x258] sm:$0xff]  ;;  %v7446_v21 = vpack.c.bf16 %v560_v62, %v462_v56  ;;  %v7460_v56 = vpack.c.bf16 %v1147_v5, %v1049_v14  ;;  %v566_v14 = vld [vmem:[%s8528_s21 + $0x588] sm:$0xff] }
 0x515   : > { %v4383_v26 = vadd.f32 %v4382_v20, %v9871_v49  ;;  %v4384_v24 = vpop.f32.mrb[27].mxu0  ;;  %v4452_v36 = vpop.f32.mrb[26].mxu1  ;;  %v1241_v49 = vld [vmem:[%s8528_s21 + $0x1aa0] sm:$0xff]  ;;  %v7444_v20 = vpack.c.bf16 %v1929_v28, %v1831_v12  ;;  %v7478_v22 = vpack.c.bf16 %v562_v30, %v464_v16  ;;  %v1248_v12 = vld [vmem:[%s8528_s21 + $0x1ad8] sm:$0xff]  ;;  %v1346_v28 = vld [vmem:[%s8528_s21 + $0x1de8] sm:$0xff] }
 0x516   : > { %v4454_v37 = vpop.f32.mrb[27].mxu1  ;;  %v7400_v42 = vpack.c.bf16 %v1339_v33, %v1241_v49  ;;  %v559_v24 = vld [vmem:[%s8528_s21 + $0x550] sm:$0xff] }
 0x517   : > { %v9951_v31 = vadd.f32 %v4452_v36, %v4383_v26  ;;  %v461_v26 = vld [vmem:[%s8528_s21 + $0x240] sm:$0xff]  ;;  %v463_v36 = vld [vmem:[%s8528_s21 + $0x250] sm:$0xff]  ;;  %v9993_v37 = vrot.slane %v381_v19, %v8582_v48  ;;  %v7494_v19 = vpack.c.bf16 %v1346_v28, %v1248_v12  ;;  %v662_v28 = vld [vmem:[%s8528_s21 + $0x888] sm:$0xff] }
 0x518   : > { %v7448_v49 = vpack.c.bf16 %v559_v24, %v461_v26  ;;  %v7480_v33 = vpack.c.bf16 %v561_v27, %v463_v36  ;;  %v1540_v26 = vld [vmem:[%s8528_s21 + $0x23f8] sm:$0xff]  ;;  %v1542_v36 = vld [vmem:[%s8528_s21 + $0x2408] sm:$0xff]  ;;  %v565_v12 = vld [vmem:[%s8528_s21 + $0x580] sm:$0xff] }
 0x519   : > { %v2303_v38 = vcombine.high %v9993_v37, %v9993_v37  ;;  %v1444_v24 = vld [vmem:[%s8528_s21 + $0x20f8] sm:$0xff] }
 0x51a   : > { %7397 = vmatpush1.bf16.xpose.msra.mxu0 %v7396_v29  ;;  %v756_v29 = vld [vmem:[%s8528_s21 + $0xb78] sm:$0xff] }
 0x51b   : > { %7429 = vmatpush1.bf16.xpose.msra.mxu1 %v7428_v46  ;;  %7399 = vmatprep.subr.bf16.mxu0 %v7398_v40  ;;  %v660_v46 = vld [vmem:[%s8528_s21 + $0x878] sm:$0xff]  ;;  %v758_v40 = vld [vmem:[%s8528_s21 + $0xb88] sm:$0xff]  ;;  %v7450_v34 = vpack.c.bf16 %v756_v29, %v658_v43 }
 0x51c   : > { %7431 = vmatprep.subr.bf16.mxu1 %v7430_v32  ;;  %v9998_v32 = vrot.slane %v2288_v23, %v8582_v48  ;;  %v7482_v35 = vpack.c.bf16 %v758_v40, %v660_v46  ;;  %v1442_v23 = vld [vmem:[%s8528_s21 + $0x20e8] sm:$0xff]  ;;  %v7498_v46 = vpack.c.bf16 %v1542_v36, %v1444_v24  ;;  %v1441_v40 = vld [vmem:[%s8528_s21 + $0x20e0] sm:$0xff]  ;;  %v759_v36 = vld [vmem:[%s8528_s21 + $0xb90] sm:$0xff] }
 0x51d   : > { %v7466_v29 = vpack.c.bf16 %v1540_v26, %v1442_v23  ;;  %v661_v24 = vld [vmem:[%s8528_s21 + $0x880] sm:$0xff] }
 0x51e   : > { %v2304_v41 = vcombine.high %v9998_v32, %v9998_v32 }
 0x522   : > { %7401 = vmatpush1.bf16.xpose.msra.mxu0 %v7400_v42  ;;  %v659_v42 = vld [vmem:[%s8528_s21 + $0x870] sm:$0xff] }
 0x523   : > { %7433 = vmatpush1.bf16.xpose.msra.mxu1 %v7432_v59  ;;  %7403 = vmatprep.subr.bf16.mxu0 %v7402_v45  ;;  %v757_v59 = vld [vmem:[%s8528_s21 + $0xb80] sm:$0xff]  ;;  %v854_v45 = vld [vmem:[%s8528_s21 + $0xe88] sm:$0xff] }
 0x524   : > { %7435 = vmatprep.subr.bf16.mxu1 %v7434_v63  ;;  %v952_v63 = vld [vmem:[%s8528_s21 + $0x1198] sm:$0xff]  ;;  %v7484_v2 = vpack.c.bf16 %v757_v59, %v659_v42 }
 0x525   : > { %v7454_v52 = vpack.c.bf16 %v952_v63, %v854_v45  ;;  %v1637_v63 = vld [vmem:[%s8528_s21 + $0x2700] sm:$0xff] }
 0x52a   : > { %7405 = vmatpush1.bf16.xpose.msra.mxu0 %v7404_v58  ;;  %v1050_v58 = vld [vmem:[%s8528_s21 + $0x14a8] sm:$0xff] }
 0x52b   : > { %7437 = vmatpush1.bf16.xpose.msra.mxu1 %v7436_v57  ;;  %7407 = vmatprep.subr.bf16.mxu0 %v7406_v11  ;;  %v1148_v57 = vld [vmem:[%s8528_s21 + $0x17b8] sm:$0xff] }
 0x52c   : > { %7439 = vmatprep.subr.bf16.mxu1 %v7438_v60  ;;  %v1052_v11 = vld [vmem:[%s8528_s21 + $0x14b8] sm:$0xff]  ;;  %v1150_v60 = vld [vmem:[%s8528_s21 + $0x17c8] sm:$0xff]  ;;  %v7458_v3 = vpack.c.bf16 %v1148_v57, %v1050_v58  ;;  %v1833_v57 = vld [vmem:[%s8528_s21 + $0x2d20] sm:$0xff] }
 0x52d   : > { %v7490_v4 = vpack.c.bf16 %v1150_v60, %v1052_v11  ;;  %v1931_v11 = vld [vmem:[%s8528_s21 + $0x3030] sm:$0xff] }
 0x52e   : > { %v1835_v60 = vld [vmem:[%s8528_s21 + $0x2d30] sm:$0xff]  ;;  %v7476_v5 = vpack.c.bf16 %v1931_v11, %v1833_v57 }
 0x532   : > { %7409 = vmatpush1.bf16.xpose.msra.mxu0 %v7408_v8  ;;  %v1149_v8 = vld [vmem:[%s8528_s21 + $0x17c0] sm:$0xff] }
 0x533   : > { %7441 = vmatpush1.bf16.xpose.msra.mxu1 %v7440_v9  ;;  %7411 = vmatprep.subr.bf16.mxu0 %v7410_v10  ;;  %v1246_v9 = vld [vmem:[%s8528_s21 + $0x1ac8] sm:$0xff]  ;;  %v1344_v10 = vld [vmem:[%s8528_s21 + $0x1dd8] sm:$0xff]  ;;  %v7492_v30 = vpack.c.bf16 %v1149_v8, %v1051_v6 }
 0x534   : > { %7443 = vmatprep.subr.bf16.mxu1 %v7442_v18  ;;  %v382_v6 = vld [vmem:[%s8580_s27 + $0x98] sm:$0xff] }
 0x53a   : > { %7413 = vmatpush1.bf16.xpose.msra.mxu0 %v7412_v17  ;;  %v7462_v17 = vpack.c.bf16 %v1344_v10, %v1246_v9  ;;  %v2305_v10 = vcombine.high %v382_v6, %v382_v6 }
 0x53b   : > { %7445 = vmatpush1.bf16.xpose.msra.mxu1 %v7444_v20  ;;  %7447 = vmatprep.subr.bf16.mxu0 %v7446_v21  ;;  %v1343_v20 = vld [vmem:[%s8528_s21 + $0x1dd0] sm:$0xff] }
 0x53c   : > { %7479 = vmatprep.subr.bf16.mxu1 %v7478_v22  ;;  %v1247_v21 = vld [vmem:[%s8528_s21 + $0x1ad0] sm:$0xff]  ;;  %v1345_v22 = vld [vmem:[%s8528_s21 + $0x1de0] sm:$0xff] }
 0x53d   : > { %v7496_v43 = vpack.c.bf16 %v1345_v22, %v1247_v21 }
 0x541   : > { %4941 = vmatmul.mubr.f32.vlgmr.msra.gmra.mrb[34].mxu0 %v9913_v47  ;;  %v856_v47 = vld [vmem:[%s8528_s21 + $0xe98] sm:$0xff] }
 0x542   : > { %7449 = vmatpush1.bf16.xpose.msra.mxu0 %v7448_v49  ;;  %5011 = vmatmul.mubr.f32.vlgmr.msra.gmra.mrb[34].mxu1 %v9918_v51  ;;  %v7452_v51 = vpack.c.bf16 %v755_v44, %v657_v39  ;;  %v7486_v53 = vpack.c.bf16 %v954_v50, %v856_v47  ;;  %v1539_v49 = vld [vmem:[%s8528_s21 + $0x23f0] sm:$0xff]  ;;  %v1738_v39 = vld [vmem:[%s8528_s21 + $0x2a28] sm:$0xff] }
 0x543   : > { %7481 = vmatpush1.bf16.xpose.msra.mxu1 %v7480_v33  ;;  %7451 = vmatprep.subr.bf16.mxu0 %v7450_v34  ;;  %v1443_v33 = vld [vmem:[%s8528_s21 + $0x20f0] sm:$0xff]  ;;  %v1541_v34 = vld [vmem:[%s8528_s21 + $0x2400] sm:$0xff]  ;;  %v7468_v44 = vpack.c.bf16 %v1539_v49, %v1441_v40  ;;  %v958_v40 = vld [vmem:[%s8528_s21 + $0x11c8] sm:$0xff] }
 0x544   : > { %7483 = vmatprep.subr.bf16.mxu1 %v7482_v35  ;;  %5080 = vmatprep.mubr.f32.mxu0 %v2303_v38  ;;  %v1638_v35 = vld [vmem:[%s8528_s21 + $0x2708] sm:$0xff]  ;;  %v1736_v38 = vld [vmem:[%s8528_s21 + $0x2a18] sm:$0xff]  ;;  %v7500_v42 = vpack.c.bf16 %v1541_v34, %v1443_v33  ;;  %v1735_v47 = vld [vmem:[%s8528_s21 + $0x2a10] sm:$0xff] }
 0x545   : > { %5150 = vmatprep.mubr.f32.mxu1 %v2304_v41  ;;  %v1640_v41 = vld [vmem:[%s8528_s21 + $0x2718] sm:$0xff]  ;;  %v7470_v59 = vpack.c.bf16 %v1736_v38, %v1638_v35  ;;  %v1639_v50 = vld [vmem:[%s8528_s21 + $0x2710] sm:$0xff]  ;;  %v7472_v54 = vpack.c.bf16 %v1735_v47, %v1637_v63  ;;  %v857_v35 = vld [vmem:[%s8528_s21 + $0xea0] sm:$0xff] }
 0x546   : > { %v7502_v45 = vpack.c.bf16 %v1738_v39, %v1640_v41  ;;  %v955_v38 = vld [vmem:[%s8528_s21 + $0x11b0] sm:$0xff]  ;;  %v957_v39 = vld [vmem:[%s8528_s21 + $0x11c0] sm:$0xff] }
 0x547   : > { %v859_v41 = vld [vmem:[%s8528_s21 + $0xeb0] sm:$0xff]  ;;  %v7520_v63 = vpack.c.bf16 %v955_v38, %v857_v35  ;;  %v1938_v35 = vld [vmem:[%s8528_s21 + $0x3068] sm:$0xff] }
 0x548   : > { %v7552_v47 = vpack.c.bf16 %v957_v39, %v859_v41 }
 0x54a   : > { %7453 = vmatpush1.bf16.xpose.msra.mxu0 %v7452_v51  ;;  %v1737_v51 = vld [vmem:[%s8528_s21 + $0x2a20] sm:$0xff] }
 0x54b   : > { %7485 = vmatpush1.bf16.xpose.msra.mxu1 %v7484_v2  ;;  %7455 = vmatprep.subr.bf16.mxu0 %v7454_v52  ;;  %v1834_v2 = vld [vmem:[%s8528_s21 + $0x2d28] sm:$0xff]  ;;  %v1932_v52 = vld [vmem:[%s8528_s21 + $0x3038] sm:$0xff]  ;;  %v7504_v1 = vpack.c.bf16 %v1737_v51, %v1639_v50 }
 0x54c   : > { %7487 = vmatprep.subr.bf16.mxu1 %v7486_v53  ;;  %v1836_v53 = vld [vmem:[%s8528_s21 + $0x2d38] sm:$0xff]  ;;  %v7474_v55 = vpack.c.bf16 %v1932_v52, %v1834_v2  ;;  %v1053_v2 = vld [vmem:[%s8528_s21 + $0x14c0] sm:$0xff]  ;;  %v1151_v52 = vld [vmem:[%s8528_s21 + $0x17d0] sm:$0xff] }
 0x54d   : > { %v7506_v58 = vpack.c.bf16 %v1934_v61, %v1836_v53  ;;  %v1055_v53 = vld [vmem:[%s8528_s21 + $0x14d0] sm:$0xff] }
 0x552   : > { %7457 = vmatpush1.bf16.xpose.msra.mxu0 %v7456_v13  ;;  %v1933_v13 = vld [vmem:[%s8528_s21 + $0x3040] sm:$0xff] }
 0x553   : > { %7489 = vmatpush1.bf16.xpose.msra.mxu1 %v7488_v0  ;;  %7459 = vmatprep.subr.bf16.mxu0 %v7458_v3  ;;  %v466_v0 = vld [vmem:[%s8528_s21 + $0x268] sm:$0xff]  ;;  %v564_v3 = vld [vmem:[%s8528_s21 + $0x578] sm:$0xff] }
 0x554   : > { %v4522_v7 = vpop.f32.mrb[28].mxu0  ;;  %7491 = vmatprep.subr.bf16.mxu1 %v7490_v4  ;;  %v468_v4 = vld [vmem:[%s8528_s21 + $0x278] sm:$0xff]  ;;  %v7510_v8 = vpack.c.bf16 %v564_v3, %v466_v0  ;;  %v7524_v0 = vpack.c.bf16 %v1151_v52, %v1053_v2  ;;  %v570_v2 = vld [vmem:[%s8528_s21 + $0x5a8] sm:$0xff] }
 0x555   : > { %v4523_v18 = vadd.f32 %v4522_v7, %v9951_v31  ;;  %v4524_v15 = vpop.f32.mrb[29].mxu0  ;;  %v4592_v25 = vpop.f32.mrb[28].mxu1  ;;  %v1245_v31 = vld [vmem:[%s8528_s21 + $0x1ac0] sm:$0xff]  ;;  %v7508_v7 = vpack.c.bf16 %v1933_v13, %v1835_v60  ;;  %v7542_v9 = vpack.c.bf16 %v566_v14, %v468_v4  ;;  %v1252_v60 = vld [vmem:[%s8528_s21 + $0x1af8] sm:$0xff]  ;;  %v1350_v13 = vld [vmem:[%s8528_s21 + $0x1e08] sm:$0xff] }
 0x556   : > { %v4594_v62 = vpop.f32.mrb[29].mxu1  ;;  %v7464_v27 = vpack.c.bf16 %v1343_v20, %v1245_v31  ;;  %v563_v15 = vld [vmem:[%s8528_s21 + $0x570] sm:$0xff] }
 0x557   : > { %v10031_v16 = vadd.f32 %v4592_v25, %v4523_v18  ;;  %v465_v18 = vld [vmem:[%s8528_s21 + $0x260] sm:$0xff]  ;;  %v467_v25 = vld [vmem:[%s8528_s21 + $0x270] sm:$0xff]  ;;  %v10073_v62 = vrot.slane %v382_v6, %v8582_v48  ;;  %v7558_v6 = vpack.c.bf16 %v1350_v13, %v1252_v60  ;;  %v666_v13 = vld [vmem:[%s8528_s21 + $0x8a8] sm:$0xff] }
 0x558   : > { %v7512_v31 = vpack.c.bf16 %v563_v15, %v465_v18  ;;  %v7544_v20 = vpack.c.bf16 %v565_v12, %v467_v25  ;;  %v1544_v18 = vld [vmem:[%s8528_s21 + $0x2418] sm:$0xff]  ;;  %v1546_v25 = vld [vmem:[%s8528_s21 + $0x2428] sm:$0xff]  ;;  %v569_v60 = vld [vmem:[%s8528_s21 + $0x5a0] sm:$0xff] }
 0x559   : > { %v2320_v23 = vcombine.high %v10073_v62, %v10073_v62  ;;  %v1448_v15 = vld [vmem:[%s8528_s21 + $0x2118] sm:$0xff] }
 0x55a   : > { %7461 = vmatpush1.bf16.xpose.msra.mxu0 %v7460_v56  ;;  %v760_v56 = vld [vmem:[%s8528_s21 + $0xb98] sm:$0xff] }
 0x55b   : > { %7493 = vmatpush1.bf16.xpose.msra.mxu1 %v7492_v30  ;;  %7463 = vmatprep.subr.bf16.mxu0 %v7462_v17  ;;  %v664_v30 = vld [vmem:[%s8528_s21 + $0x898] sm:$0xff]  ;;  %v762_v17 = vld [vmem:[%s8528_s21 + $0xba8] sm:$0xff]  ;;  %v7514_v21 = vpack.c.bf16 %v760_v56, %v662_v28 }
 0x55c   : > { %7495 = vmatprep.subr.bf16.mxu1 %v7494_v19  ;;  %v10078_v19 = vrot.slane %v2305_v10, %v8582_v48  ;;  %v7546_v22 = vpack.c.bf16 %v762_v17, %v664_v30  ;;  %v1446_v10 = vld [vmem:[%s8528_s21 + $0x2108] sm:$0xff]  ;;  %v7562_v30 = vpack.c.bf16 %v1546_v25, %v1448_v15  ;;  %v1445_v17 = vld [vmem:[%s8528_s21 + $0x2100] sm:$0xff]  ;;  %v763_v25 = vld [vmem:[%s8528_s21 + $0xbb0] sm:$0xff] }
 0x55d   : > { %v7530_v56 = vpack.c.bf16 %v1544_v18, %v1446_v10  ;;  %v665_v15 = vld [vmem:[%s8528_s21 + $0x8a0] sm:$0xff] }
 0x55e   : > { %v2321_v26 = vcombine.high %v10078_v19, %v10078_v19 }
 0x562   : > { %7465 = vmatpush1.bf16.xpose.msra.mxu0 %v7464_v27  ;;  %v663_v27 = vld [vmem:[%s8528_s21 + $0x890] sm:$0xff] }
 0x563   : > { %7497 = vmatpush1.bf16.xpose.msra.mxu1 %v7496_v43  ;;  %7467 = vmatprep.subr.bf16.mxu0 %v7466_v29  ;;  %v761_v43 = vld [vmem:[%s8528_s21 + $0xba0] sm:$0xff]  ;;  %v858_v29 = vld [vmem:[%s8528_s21 + $0xea8] sm:$0xff] }
 0x564   : > { %7499 = vmatprep.subr.bf16.mxu1 %v7498_v46  ;;  %v956_v46 = vld [vmem:[%s8528_s21 + $0x11b8] sm:$0xff]  ;;  %v7548_v49 = vpack.c.bf16 %v761_v43, %v663_v27 }
 0x565   : > { %v7518_v33 = vpack.c.bf16 %v956_v46, %v858_v29  ;;  %v1641_v46 = vld [vmem:[%s8528_s21 + $0x2720] sm:$0xff] }
 0x56a   : > { %7469 = vmatpush1.bf16.xpose.msra.mxu0 %v7468_v44  ;;  %v1054_v44 = vld [vmem:[%s8528_s21 + $0x14c8] sm:$0xff] }
 0x56b   : > { %7501 = vmatpush1.bf16.xpose.msra.mxu1 %v7500_v42  ;;  %7471 = vmatprep.subr.bf16.mxu0 %v7470_v59  ;;  %v1152_v42 = vld [vmem:[%s8528_s21 + $0x17d8] sm:$0xff] }
 0x56c   : > { %7503 = vmatprep.subr.bf16.mxu1 %v7502_v45  ;;  %v1056_v59 = vld [vmem:[%s8528_s21 + $0x14d8] sm:$0xff]  ;;  %v1154_v45 = vld [vmem:[%s8528_s21 + $0x17e8] sm:$0xff]  ;;  %v7522_v50 = vpack.c.bf16 %v1152_v42, %v1054_v44  ;;  %v1837_v42 = vld [vmem:[%s8528_s21 + $0x2d40] sm:$0xff] }
 0x56d   : > { %v7554_v51 = vpack.c.bf16 %v1154_v45, %v1056_v59  ;;  %v1935_v59 = vld [vmem:[%s8528_s21 + $0x3050] sm:$0xff] }
 0x56e   : > { %v1839_v45 = vld [vmem:[%s8528_s21 + $0x2d50] sm:$0xff]  ;;  %v7540_v52 = vpack.c.bf16 %v1935_v59, %v1837_v42 }
 0x572   : > { %7473 = vmatpush1.bf16.xpose.msra.mxu0 %v7472_v54  ;;  %v1153_v54 = vld [vmem:[%s8528_s21 + $0x17e0] sm:$0xff] }
 0x573   : > { %7505 = vmatpush1.bf16.xpose.msra.mxu1 %v7504_v1  ;;  %7475 = vmatprep.subr.bf16.mxu0 %v7474_v55  ;;  %v1250_v1 = vld [vmem:[%s8528_s21 + $0x1ae8] sm:$0xff]  ;;  %v1348_v55 = vld [vmem:[%s8528_s21 + $0x1df8] sm:$0xff]  ;;  %v7556_v14 = vpack.c.bf16 %v1153_v54, %v1055_v53 }
 0x574   : > { %7507 = vmatprep.subr.bf16.mxu1 %v7506_v58  ;;  %v383_v53 = vld [vmem:[%s8580_s27 + $0xa0] sm:$0xff] }
 0x57a   : > { %7477 = vmatpush1.bf16.xpose.msra.mxu0 %v7476_v5  ;;  %v7526_v5 = vpack.c.bf16 %v1348_v55, %v1250_v1  ;;  %v2322_v55 = vcombine.high %v383_v53, %v383_v53 }
 0x57b   : > { %7509 = vmatpush1.bf16.xpose.msra.mxu1 %v7508_v7  ;;  %7511 = vmatprep.subr.bf16.mxu0 %v7510_v8  ;;  %v1347_v7 = vld [vmem:[%s8528_s21 + $0x1df0] sm:$0xff] }
 0x57c   : > { %7543 = vmatprep.subr.bf16.mxu1 %v7542_v9  ;;  %v1251_v8 = vld [vmem:[%s8528_s21 + $0x1af0] sm:$0xff]  ;;  %v1349_v9 = vld [vmem:[%s8528_s21 + $0x1e00] sm:$0xff] }
 0x57d   : > { %v7560_v28 = vpack.c.bf16 %v1349_v9, %v1251_v8 }
 0x581   : > { %5081 = vmatmul.mubr.f32.vlgmr.msra.gmra.mrb[36].mxu0 %v9993_v37  ;;  %v860_v37 = vld [vmem:[%s8528_s21 + $0xeb8] sm:$0xff] }
 0x582   : > { %7513 = vmatpush1.bf16.xpose.msra.mxu0 %v7512_v31  ;;  %5151 = vmatmul.mubr.f32.vlgmr.msra.gmra.mrb[36].mxu1 %v9998_v32  ;;  %v7516_v32 = vpack.c.bf16 %v759_v36, %v661_v24  ;;  %v7550_v34 = vpack.c.bf16 %v958_v40, %v860_v37  ;;  %v1543_v31 = vld [vmem:[%s8528_s21 + $0x2410] sm:$0xff]  ;;  %v1742_v24 = vld [vmem:[%s8528_s21 + $0x2a48] sm:$0xff] }
 0x583   : > { %7545 = vmatpush1.bf16.xpose.msra.mxu1 %v7544_v20  ;;  %7515 = vmatprep.subr.bf16.mxu0 %v7514_v21  ;;  %v1447_v20 = vld [vmem:[%s8528_s21 + $0x2110] sm:$0xff]  ;;  %v1545_v21 = vld [vmem:[%s8528_s21 + $0x2420] sm:$0xff]  ;;  %v7532_v36 = vpack.c.bf16 %v1543_v31, %v1445_v17  ;;  %v962_v17 = vld [vmem:[%s8528_s21 + $0x11e8] sm:$0xff] }
 0x584   : > { %7547 = vmatprep.subr.bf16.mxu1 %v7546_v22  ;;  %5220 = vmatprep.mubr.f32.mxu0 %v2320_v23  ;;  %v1642_v22 = vld [vmem:[%s8528_s21 + $0x2728] sm:$0xff]  ;;  %v1740_v23 = vld [vmem:[%s8528_s21 + $0x2a38] sm:$0xff]  ;;  %v7564_v27 = vpack.c.bf16 %v1545_v21, %v1447_v20  ;;  %v1739_v37 = vld [vmem:[%s8528_s21 + $0x2a30] sm:$0xff] }
 0x585   : > { %5290 = vmatprep.mubr.f32.mxu1 %v2321_v26  ;;  %v1644_v26 = vld [vmem:[%s8528_s21 + $0x2738] sm:$0xff]  ;;  %v7534_v43 = vpack.c.bf16 %v1740_v23, %v1642_v22  ;;  %v1643_v40 = vld [vmem:[%s8528_s21 + $0x2730] sm:$0xff]  ;;  %v7536_v38 = vpack.c.bf16 %v1739_v37, %v1641_v46  ;;  %v861_v22 = vld [vmem:[%s8528_s21 + $0xec0] sm:$0xff] }
 0x586   : > { %v7566_v29 = vpack.c.bf16 %v1742_v24, %v1644_v26  ;;  %v959_v23 = vld [vmem:[%s8528_s21 + $0x11d0] sm:$0xff]  ;;  %v961_v24 = vld [vmem:[%s8528_s21 + $0x11e0] sm:$0xff] }
 0x587   : > { %v863_v26 = vld [vmem:[%s8528_s21 + $0xed0] sm:$0xff]  ;;  %v7584_v46 = vpack.c.bf16 %v959_v23, %v861_v22  ;;  %v1942_v22 = vld [vmem:[%s8528_s21 + $0x3088] sm:$0xff] }
 0x588   : > { %v7616_v37 = vpack.c.bf16 %v961_v24, %v863_v26 }
 0x58a   : > { %7517 = vmatpush1.bf16.xpose.msra.mxu0 %v7516_v32  ;;  %v1741_v32 = vld [vmem:[%s8528_s21 + $0x2a40] sm:$0xff] }
 0x58b   : > { %7549 = vmatpush1.bf16.xpose.msra.mxu1 %v7548_v49  ;;  %7519 = vmatprep.subr.bf16.mxu0 %v7518_v33  ;;  %v1838_v49 = vld [vmem:[%s8528_s21 + $0x2d48] sm:$0xff]  ;;  %v1936_v33 = vld [vmem:[%s8528_s21 + $0x3058] sm:$0xff]  ;;  %v7568_v41 = vpack.c.bf16 %v1741_v32, %v1643_v40 }
 0x58c   : > { %7551 = vmatprep.subr.bf16.mxu1 %v7550_v34  ;;  %v1840_v34 = vld [vmem:[%s8528_s21 + $0x2d58] sm:$0xff]  ;;  %v7538_v39 = vpack.c.bf16 %v1936_v33, %v1838_v49  ;;  %v1057_v49 = vld [vmem:[%s8528_s21 + $0x14e0] sm:$0xff]  ;;  %v1155_v33 = vld [vmem:[%s8528_s21 + $0x17f0] sm:$0xff] }
 0x58d   : > { %v7570_v44 = vpack.c.bf16 %v1938_v35, %v1840_v34  ;;  %v1059_v34 = vld [vmem:[%s8528_s21 + $0x14f0] sm:$0xff] }
 0x592   : > { %7521 = vmatpush1.bf16.xpose.msra.mxu0 %v7520_v63  ;;  %v1937_v63 = vld [vmem:[%s8528_s21 + $0x3060] sm:$0xff] }
 0x593   : > { %7553 = vmatpush1.bf16.xpose.msra.mxu1 %v7552_v47  ;;  %7523 = vmatprep.subr.bf16.mxu0 %v7522_v50  ;;  %v470_v47 = vld [vmem:[%s8528_s21 + $0x288] sm:$0xff]  ;;  %v568_v50 = vld [vmem:[%s8528_s21 + $0x598] sm:$0xff] }
 0x594   : > { %v4662_v61 = vpop.f32.mrb[30].mxu0  ;;  %7555 = vmatprep.subr.bf16.mxu1 %v7554_v51  ;;  %v472_v51 = vld [vmem:[%s8528_s21 + $0x298] sm:$0xff]  ;;  %v7574_v54 = vpack.c.bf16 %v568_v50, %v470_v47  ;;  %v7588_v47 = vpack.c.bf16 %v1155_v33, %v1057_v49  ;;  %v574_v49 = vld [vmem:[%s8528_s21 + $0x5c8] sm:$0xff] }
 0x595   : > { %v4663_v58 = vadd.f32 %v4662_v61, %v10031_v16  ;;  %v4664_v57 = vpop.f32.mrb[31].mxu0  ;;  %v4732_v11 = vpop.f32.mrb[30].mxu1  ;;  %v1249_v16 = vld [vmem:[%s8528_s21 + $0x1ae0] sm:$0xff]  ;;  %v7572_v61 = vpack.c.bf16 %v1937_v63, %v1839_v45  ;;  %v7606_v1 = vpack.c.bf16 %v570_v2, %v472_v51  ;;  %v1256_v45 = vld [vmem:[%s8528_s21 + $0x1b18] sm:$0xff]  ;;  %v1354_v63 = vld [vmem:[%s8528_s21 + $0x1e28] sm:$0xff] }
 0x596   : > { %v4734_v3 = vpop.f32.mrb[31].mxu1  ;;  %v7528_v12 = vpack.c.bf16 %v1347_v7, %v1249_v16  ;;  %v567_v57 = vld [vmem:[%s8528_s21 + $0x590] sm:$0xff] }
 0x597   : > { %v10111_v4 = vadd.f32 %v4732_v11, %v4663_v58  ;;  %v469_v58 = vld [vmem:[%s8528_s21 + $0x280] sm:$0xff]  ;;  %v471_v11 = vld [vmem:[%s8528_s21 + $0x290] sm:$0xff]  ;;  %v10153_v3 = vrot.slane %v383_v53, %v8582_v48  ;;  %v7622_v53 = vpack.c.bf16 %v1354_v63, %v1256_v45  ;;  %v670_v63 = vld [vmem:[%s8528_s21 + $0x8c8] sm:$0xff] }
 0x598   : > { %v7576_v16 = vpack.c.bf16 %v567_v57, %v469_v58  ;;  %v7608_v7 = vpack.c.bf16 %v569_v60, %v471_v11  ;;  %v1548_v58 = vld [vmem:[%s8528_s21 + $0x2438] sm:$0xff]  ;;  %v1550_v11 = vld [vmem:[%s8528_s21 + $0x2448] sm:$0xff]  ;;  %v573_v45 = vld [vmem:[%s8528_s21 + $0x5c0] sm:$0xff] }
 0x599   : > { %v2337_v10 = vcombine.high %v10153_v3, %v10153_v3  ;;  %v1452_v57 = vld [vmem:[%s8528_s21 + $0x2138] sm:$0xff] }
 0x59a   : > { %7525 = vmatpush1.bf16.xpose.msra.mxu0 %v7524_v0  ;;  %v764_v0 = vld [vmem:[%s8528_s21 + $0xbb8] sm:$0xff] }
 0x59b   : > { %7557 = vmatpush1.bf16.xpose.msra.mxu1 %v7556_v14  ;;  %7527 = vmatprep.subr.bf16.mxu0 %v7526_v5  ;;  %v668_v14 = vld [vmem:[%s8528_s21 + $0x8b8] sm:$0xff]  ;;  %v766_v5 = vld [vmem:[%s8528_s21 + $0xbc8] sm:$0xff]  ;;  %v7578_v8 = vpack.c.bf16 %v764_v0, %v666_v13 }
 0x59c   : > { %7559 = vmatprep.subr.bf16.mxu1 %v7558_v6  ;;  %v10158_v6 = vrot.slane %v2322_v55, %v8582_v48  ;;  %v7610_v9 = vpack.c.bf16 %v766_v5, %v668_v14  ;;  %v1450_v55 = vld [vmem:[%s8528_s21 + $0x2128] sm:$0xff]  ;;  %v7626_v14 = vpack.c.bf16 %v1550_v11, %v1452_v57  ;;  %v1449_v5 = vld [vmem:[%s8528_s21 + $0x2120] sm:$0xff]  ;;  %v767_v11 = vld [vmem:[%s8528_s21 + $0xbd0] sm:$0xff] }
 0x59d   : > { %v7594_v0 = vpack.c.bf16 %v1548_v58, %v1450_v55  ;;  %v669_v57 = vld [vmem:[%s8528_s21 + $0x8c0] sm:$0xff] }
 0x59e   : > { %v2338_v18 = vcombine.high %v10158_v6, %v10158_v6 }
 0x5a2   : > { %7529 = vmatpush1.bf16.xpose.msra.mxu0 %v7528_v12  ;;  %v667_v12 = vld [vmem:[%s8528_s21 + $0x8b0] sm:$0xff] }
 0x5a3   : > { %7561 = vmatpush1.bf16.xpose.msra.mxu1 %v7560_v28  ;;  %7531 = vmatprep.subr.bf16.mxu0 %v7530_v56  ;;  %v765_v28 = vld [vmem:[%s8528_s21 + $0xbc0] sm:$0xff]  ;;  %v862_v56 = vld [vmem:[%s8528_s21 + $0xec8] sm:$0xff] }
 0x5a4   : > { %7563 = vmatprep.subr.bf16.mxu1 %v7562_v30  ;;  %v960_v30 = vld [vmem:[%s8528_s21 + $0x11d8] sm:$0xff]  ;;  %v7612_v31 = vpack.c.bf16 %v765_v28, %v667_v12 }
 0x5a5   : > { %v7582_v20 = vpack.c.bf16 %v960_v30, %v862_v56  ;;  %v1645_v30 = vld [vmem:[%s8528_s21 + $0x2740] sm:$0xff] }
 0x5aa   : > { %7533 = vmatpush1.bf16.xpose.msra.mxu0 %v7532_v36  ;;  %v1058_v36 = vld [vmem:[%s8528_s21 + $0x14e8] sm:$0xff] }
 0x5ab   : > { %7565 = vmatpush1.bf16.xpose.msra.mxu1 %v7564_v27  ;;  %7535 = vmatprep.subr.bf16.mxu0 %v7534_v43  ;;  %v1156_v27 = vld [vmem:[%s8528_s21 + $0x17f8] sm:$0xff] }
 0x5ac   : > { %7567 = vmatprep.subr.bf16.mxu1 %v7566_v29  ;;  %v1060_v43 = vld [vmem:[%s8528_s21 + $0x14f8] sm:$0xff]  ;;  %v1158_v29 = vld [vmem:[%s8528_s21 + $0x1808] sm:$0xff]  ;;  %v7586_v40 = vpack.c.bf16 %v1156_v27, %v1058_v36  ;;  %v1841_v27 = vld [vmem:[%s8528_s21 + $0x2d60] sm:$0xff] }
 0x5ad   : > { %v7618_v32 = vpack.c.bf16 %v1158_v29, %v1060_v43  ;;  %v1939_v43 = vld [vmem:[%s8528_s21 + $0x3070] sm:$0xff] }
 0x5ae   : > { %v1843_v29 = vld [vmem:[%s8528_s21 + $0x2d70] sm:$0xff]  ;;  %v7604_v33 = vpack.c.bf16 %v1939_v43, %v1841_v27 }
 0x5b2   : > { %7537 = vmatpush1.bf16.xpose.msra.mxu0 %v7536_v38  ;;  %v1157_v38 = vld [vmem:[%s8528_s21 + $0x1800] sm:$0xff] }
 0x5b3   : > { %7569 = vmatpush1.bf16.xpose.msra.mxu1 %v7568_v41  ;;  %7539 = vmatprep.subr.bf16.mxu0 %v7538_v39  ;;  %v1254_v41 = vld [vmem:[%s8528_s21 + $0x1b08] sm:$0xff]  ;;  %v1352_v39 = vld [vmem:[%s8528_s21 + $0x1e18] sm:$0xff]  ;;  %v7620_v2 = vpack.c.bf16 %v1157_v38, %v1059_v34 }
 0x5b4   : > { %7571 = vmatprep.subr.bf16.mxu1 %v7570_v44  ;;  %v384_v34 = vld [vmem:[%s8580_s27 + $0xa8] sm:$0xff] }
 0x5ba   : > { %7541 = vmatpush1.bf16.xpose.msra.mxu0 %v7540_v52  ;;  %v7590_v52 = vpack.c.bf16 %v1352_v39, %v1254_v41  ;;  %v2339_v39 = vcombine.high %v384_v34, %v384_v34 }
 0x5bb   : > { %7573 = vmatpush1.bf16.xpose.msra.mxu1 %v7572_v61  ;;  %7575 = vmatprep.subr.bf16.mxu0 %v7574_v54  ;;  %v1351_v61 = vld [vmem:[%s8528_s21 + $0x1e10] sm:$0xff] }
 0x5bc   : > { %7607 = vmatprep.subr.bf16.mxu1 %v7606_v1  ;;  %v1255_v54 = vld [vmem:[%s8528_s21 + $0x1b10] sm:$0xff]  ;;  %v1353_v1 = vld [vmem:[%s8528_s21 + $0x1e20] sm:$0xff] }
 0x5bd   : > { %v7624_v13 = vpack.c.bf16 %v1353_v1, %v1255_v54 }
 0x5c1   : > { %5221 = vmatmul.mubr.f32.vlgmr.msra.gmra.mrb[38].mxu0 %v10073_v62  ;;  %v864_v62 = vld [vmem:[%s8528_s21 + $0xed8] sm:$0xff] }
 0x5c2   : > { %7577 = vmatpush1.bf16.xpose.msra.mxu0 %v7576_v16  ;;  %5291 = vmatmul.mubr.f32.vlgmr.msra.gmra.mrb[38].mxu1 %v10078_v19  ;;  %v7580_v19 = vpack.c.bf16 %v763_v25, %v665_v15  ;;  %v7614_v21 = vpack.c.bf16 %v962_v17, %v864_v62  ;;  %v1547_v16 = vld [vmem:[%s8528_s21 + $0x2430] sm:$0xff]  ;;  %v1746_v15 = vld [vmem:[%s8528_s21 + $0x2a68] sm:$0xff] }
 0x5c3   : > { %7609 = vmatpush1.bf16.xpose.msra.mxu1 %v7608_v7  ;;  %7579 = vmatprep.subr.bf16.mxu0 %v7578_v8  ;;  %v1451_v7 = vld [vmem:[%s8528_s21 + $0x2130] sm:$0xff]  ;;  %v1549_v8 = vld [vmem:[%s8528_s21 + $0x2440] sm:$0xff]  ;;  %v7596_v25 = vpack.c.bf16 %v1547_v16, %v1449_v5  ;;  %v966_v5 = vld [vmem:[%s8528_s21 + $0x1208] sm:$0xff] }
 0x5c4   : > { %7611 = vmatprep.subr.bf16.mxu1 %v7610_v9  ;;  %5360 = vmatprep.mubr.f32.mxu0 %v2337_v10  ;;  %v1646_v9 = vld [vmem:[%s8528_s21 + $0x2748] sm:$0xff]  ;;  %v1744_v10 = vld [vmem:[%s8528_s21 + $0x2a58] sm:$0xff]  ;;  %v7628_v12 = vpack.c.bf16 %v1549_v8, %v1451_v7  ;;  %v1743_v62 = vld [vmem:[%s8528_s21 + $0x2a50] sm:$0xff] }
 0x5c5   : > { %5430 = vmatprep.mubr.f32.mxu1 %v2338_v18  ;;  %v1648_v18 = vld [vmem:[%s8528_s21 + $0x2758] sm:$0xff]  ;;  %v7598_v28 = vpack.c.bf16 %v1744_v10, %v1646_v9  ;;  %v1647_v17 = vld [vmem:[%s8528_s21 + $0x2750] sm:$0xff]  ;;  %v7600_v23 = vpack.c.bf16 %v1743_v62, %v1645_v30  ;;  %v865_v9 = vld [vmem:[%s8528_s21 + $0xee0] sm:$0xff] }
 0x5c6   : > { %v7630_v56 = vpack.c.bf16 %v1746_v15, %v1648_v18  ;;  %v963_v10 = vld [vmem:[%s8528_s21 + $0x11f0] sm:$0xff]  ;;  %v965_v15 = vld [vmem:[%s8528_s21 + $0x1200] sm:$0xff] }
 0x5c7   : > { %v867_v18 = vld [vmem:[%s8528_s21 + $0xef0] sm:$0xff]  ;;  %v7648_v30 = vpack.c.bf16 %v963_v10, %v865_v9  ;;  %v1946_v9 = vld [vmem:[%s8528_s21 + $0x30a8] sm:$0xff] }
 0x5c8   : > { %v7680_v62 = vpack.c.bf16 %v965_v15, %v867_v18 }
 0x5ca   : > { %7581 = vmatpush1.bf16.xpose.msra.mxu0 %v7580_v19  ;;  %v1745_v19 = vld [vmem:[%s8528_s21 + $0x2a60] sm:$0xff] }
 0x5cb   : > { %7613 = vmatpush1.bf16.xpose.msra.mxu1 %v7612_v31  ;;  %7583 = vmatprep.subr.bf16.mxu0 %v7582_v20  ;;  %v1842_v31 = vld [vmem:[%s8528_s21 + $0x2d68] sm:$0xff]  ;;  %v1940_v20 = vld [vmem:[%s8528_s21 + $0x3078] sm:$0xff]  ;;  %v7632_v26 = vpack.c.bf16 %v1745_v19, %v1647_v17 }
 0x5cc   : > { %7615 = vmatprep.subr.bf16.mxu1 %v7614_v21  ;;  %v1844_v21 = vld [vmem:[%s8528_s21 + $0x2d78] sm:$0xff]  ;;  %v7602_v24 = vpack.c.bf16 %v1940_v20, %v1842_v31  ;;  %v1061_v31 = vld [vmem:[%s8528_s21 + $0x1500] sm:$0xff]  ;;  %v1159_v20 = vld [vmem:[%s8528_s21 + $0x1810] sm:$0xff] }
 0x5cd   : > { %v7634_v36 = vpack.c.bf16 %v1942_v22, %v1844_v21  ;;  %v1063_v21 = vld [vmem:[%s8528_s21 + $0x1510] sm:$0xff] }
 0x5d2   : > { %7585 = vmatpush1.bf16.xpose.msra.mxu0 %v7584_v46  ;;  %v1941_v46 = vld [vmem:[%s8528_s21 + $0x3080] sm:$0xff] }
 0x5d3   : > { %7617 = vmatpush1.bf16.xpose.msra.mxu1 %v7616_v37  ;;  %7587 = vmatprep.subr.bf16.mxu0 %v7586_v40  ;;  %v474_v37 = vld [vmem:[%s8528_s21 + $0x2a8] sm:$0xff]  ;;  %v572_v40 = vld [vmem:[%s8528_s21 + $0x5b8] sm:$0xff] }
 0x5d4   : > { %v4802_v35 = vpop.f32.mrb[32].mxu0  ;;  %7619 = vmatprep.subr.bf16.mxu1 %v7618_v32  ;;  %v476_v32 = vld [vmem:[%s8528_s21 + $0x2b8] sm:$0xff]  ;;  %v7638_v38 = vpack.c.bf16 %v572_v40, %v474_v37  ;;  %v7652_v37 = vpack.c.bf16 %v1159_v20, %v1061_v31  ;;  %v578_v31 = vld [vmem:[%s8528_s21 + $0x5e8] sm:$0xff] }
 0x5d5   : > { %v4803_v44 = vadd.f32 %v4802_v35, %v10111_v4  ;;  %v4804_v42 = vpop.f32.mrb[33].mxu0  ;;  %v4872_v59 = vpop.f32.mrb[32].mxu1  ;;  %v1253_v4 = vld [vmem:[%s8528_s21 + $0x1b00] sm:$0xff]  ;;  %v7636_v35 = vpack.c.bf16 %v1941_v46, %v1843_v29  ;;  %v7670_v41 = vpack.c.bf16 %v574_v49, %v476_v32  ;;  %v1260_v29 = vld [vmem:[%s8528_s21 + $0x1b38] sm:$0xff]  ;;  %v1358_v46 = vld [vmem:[%s8528_s21 + $0x1e48] sm:$0xff] }
 0x5d6   : > { %v4874_v50 = vpop.f32.mrb[33].mxu1  ;;  %v7592_v60 = vpack.c.bf16 %v1351_v61, %v1253_v4  ;;  %v571_v42 = vld [vmem:[%s8528_s21 + $0x5b0] sm:$0xff] }
 0x5d7   : > { %v10191_v51 = vadd.f32 %v4872_v59, %v4803_v44  ;;  %v473_v44 = vld [vmem:[%s8528_s21 + $0x2a0] sm:$0xff]  ;;  %v475_v59 = vld [vmem:[%s8528_s21 + $0x2b0] sm:$0xff]  ;;  %v10233_v50 = vrot.slane %v384_v34, %v8582_v48  ;;  %v7686_v34 = vpack.c.bf16 %v1358_v46, %v1260_v29  ;;  %v674_v46 = vld [vmem:[%s8528_s21 + $0x8e8] sm:$0xff] }
 0x5d8   : > { %v7640_v4 = vpack.c.bf16 %v571_v42, %v473_v44  ;;  %v7672_v61 = vpack.c.bf16 %v573_v45, %v475_v59  ;;  %v1552_v44 = vld [vmem:[%s8528_s21 + $0x2458] sm:$0xff]  ;;  %v1554_v59 = vld [vmem:[%s8528_s21 + $0x2468] sm:$0xff]  ;;  %v577_v29 = vld [vmem:[%s8528_s21 + $0x5e0] sm:$0xff] }
 0x5d9   : > { %v2354_v55 = vcombine.high %v10233_v50, %v10233_v50  ;;  %v1456_v42 = vld [vmem:[%s8528_s21 + $0x2158] sm:$0xff] }
 0x5da   : > { %7589 = vmatpush1.bf16.xpose.msra.mxu0 %v7588_v47  ;;  %v768_v47 = vld [vmem:[%s8528_s21 + $0xbd8] sm:$0xff] }
 0x5db   : > { %7621 = vmatpush1.bf16.xpose.msra.mxu1 %v7620_v2  ;;  %7591 = vmatprep.subr.bf16.mxu0 %v7590_v52  ;;  %v672_v2 = vld [vmem:[%s8528_s21 + $0x8d8] sm:$0xff]  ;;  %v770_v52 = vld [vmem:[%s8528_s21 + $0xbe8] sm:$0xff]  ;;  %v7642_v54 = vpack.c.bf16 %v768_v47, %v670_v63 }
 0x5dc   : > { %7623 = vmatprep.subr.bf16.mxu1 %v7622_v53  ;;  %v10238_v53 = vrot.slane %v2339_v39, %v8582_v48  ;;  %v7674_v1 = vpack.c.bf16 %v770_v52, %v672_v2  ;;  %v1454_v39 = vld [vmem:[%s8528_s21 + $0x2148] sm:$0xff]  ;;  %v7690_v2 = vpack.c.bf16 %v1554_v59, %v1456_v42  ;;  %v1453_v52 = vld [vmem:[%s8528_s21 + $0x2140] sm:$0xff]  ;;  %v771_v59 = vld [vmem:[%s8528_s21 + $0xbf0] sm:$0xff] }
 0x5dd   : > { %v7658_v47 = vpack.c.bf16 %v1552_v44, %v1454_v39  ;;  %v673_v42 = vld [vmem:[%s8528_s21 + $0x8e0] sm:$0xff] }
 0x5de   : > { %v2355_v58 = vcombine.high %v10238_v53, %v10238_v53 }
 0x5e2   : > { %7593 = vmatpush1.bf16.xpose.msra.mxu0 %v7592_v60  ;;  %v671_v60 = vld [vmem:[%s8528_s21 + $0x8d0] sm:$0xff] }
 0x5e3   : > { %7625 = vmatpush1.bf16.xpose.msra.mxu1 %v7624_v13  ;;  %7595 = vmatprep.subr.bf16.mxu0 %v7594_v0  ;;  %v769_v13 = vld [vmem:[%s8528_s21 + $0xbe0] sm:$0xff]  ;;  %v866_v0 = vld [vmem:[%s8528_s21 + $0xee8] sm:$0xff] }
 0x5e4   : > { %7627 = vmatprep.subr.bf16.mxu1 %v7626_v14  ;;  %v964_v14 = vld [vmem:[%s8528_s21 + $0x11f8] sm:$0xff]  ;;  %v7676_v16 = vpack.c.bf16 %v769_v13, %v671_v60 }
 0x5e5   : > { %v7646_v7 = vpack.c.bf16 %v964_v14, %v866_v0  ;;  %v1649_v14 = vld [vmem:[%s8528_s21 + $0x2760] sm:$0xff] }
 0x5ea   : > { %7597 = vmatpush1.bf16.xpose.msra.mxu0 %v7596_v25  ;;  %v1062_v25 = vld [vmem:[%s8528_s21 + $0x1508] sm:$0xff] }
 0x5eb   : > { %7629 = vmatpush1.bf16.xpose.msra.mxu1 %v7628_v12  ;;  %7599 = vmatprep.subr.bf16.mxu0 %v7598_v28  ;;  %v1160_v12 = vld [vmem:[%s8528_s21 + $0x1818] sm:$0xff] }
 0x5ec   : > { %7631 = vmatprep.subr.bf16.mxu1 %v7630_v56  ;;  %v1064_v28 = vld [vmem:[%s8528_s21 + $0x1518] sm:$0xff]  ;;  %v1162_v56 = vld [vmem:[%s8528_s21 + $0x1828] sm:$0xff]  ;;  %v7650_v17 = vpack.c.bf16 %v1160_v12, %v1062_v25  ;;  %v1845_v12 = vld [vmem:[%s8528_s21 + $0x2d80] sm:$0xff] }
 0x5ed   : > { %v7682_v19 = vpack.c.bf16 %v1162_v56, %v1064_v28  ;;  %v1943_v28 = vld [vmem:[%s8528_s21 + $0x3090] sm:$0xff] }
 0x5ee   : > { %v1847_v56 = vld [vmem:[%s8528_s21 + $0x2d90] sm:$0xff]  ;;  %v7668_v20 = vpack.c.bf16 %v1943_v28, %v1845_v12 }
 0x5f2   : > { %7601 = vmatpush1.bf16.xpose.msra.mxu0 %v7600_v23  ;;  %v1161_v23 = vld [vmem:[%s8528_s21 + $0x1820] sm:$0xff] }
 0x5f3   : > { %7633 = vmatpush1.bf16.xpose.msra.mxu1 %v7632_v26  ;;  %7603 = vmatprep.subr.bf16.mxu0 %v7602_v24  ;;  %v1258_v26 = vld [vmem:[%s8528_s21 + $0x1b28] sm:$0xff]  ;;  %v1356_v24 = vld [vmem:[%s8528_s21 + $0x1e38] sm:$0xff]  ;;  %v7684_v49 = vpack.c.bf16 %v1161_v23, %v1063_v21 }
 0x5f4   : > { %7635 = vmatprep.subr.bf16.mxu1 %v7634_v36  ;;  %v385_v21 = vld [vmem:[%s8580_s27 + $0xb0] sm:$0xff] }
 0x5fa   : > { %7605 = vmatpush1.bf16.xpose.msra.mxu0 %v7604_v33  ;;  %v7654_v33 = vpack.c.bf16 %v1356_v24, %v1258_v26  ;;  %v2356_v24 = vcombine.high %v385_v21, %v385_v21 }
 0x5fb   : > { %7637 = vmatpush1.bf16.xpose.msra.mxu1 %v7636_v35  ;;  %7639 = vmatprep.subr.bf16.mxu0 %v7638_v38  ;;  %v1355_v35 = vld [vmem:[%s8528_s21 + $0x1e30] sm:$0xff] }
 0x5fc   : > { %7671 = vmatprep.subr.bf16.mxu1 %v7670_v41  ;;  %v1259_v38 = vld [vmem:[%s8528_s21 + $0x1b30] sm:$0xff]  ;;  %v1357_v41 = vld [vmem:[%s8528_s21 + $0x1e40] sm:$0xff] }
 0x5fd   : > { %v7688_v63 = vpack.c.bf16 %v1357_v41, %v1259_v38 }
 0x601   : > { %5361 = vmatmul.mubr.f32.vlgmr.msra.gmra.mrb[40].mxu0 %v10153_v3  ;;  %v868_v3 = vld [vmem:[%s8528_s21 + $0xef8] sm:$0xff] }
 0x602   : > { %7641 = vmatpush1.bf16.xpose.msra.mxu0 %v7640_v4  ;;  %5431 = vmatmul.mubr.f32.vlgmr.msra.gmra.mrb[40].mxu1 %v10158_v6  ;;  %v7644_v6 = vpack.c.bf16 %v767_v11, %v669_v57  ;;  %v7678_v8 = vpack.c.bf16 %v966_v5, %v868_v3  ;;  %v1551_v4 = vld [vmem:[%s8528_s21 + $0x2450] sm:$0xff]  ;;  %v1750_v57 = vld [vmem:[%s8528_s21 + $0x2a88] sm:$0xff] }
 0x603   : > { %7673 = vmatpush1.bf16.xpose.msra.mxu1 %v7672_v61  ;;  %7643 = vmatprep.subr.bf16.mxu0 %v7642_v54  ;;  %v1455_v61 = vld [vmem:[%s8528_s21 + $0x2150] sm:$0xff]  ;;  %v1553_v54 = vld [vmem:[%s8528_s21 + $0x2460] sm:$0xff]  ;;  %v7660_v11 = vpack.c.bf16 %v1551_v4, %v1453_v52  ;;  %v970_v52 = vld [vmem:[%s8528_s21 + $0x1228] sm:$0xff] }
 0x604   : > { %7675 = vmatprep.subr.bf16.mxu1 %v7674_v1  ;;  %5500 = vmatprep.mubr.f32.mxu0 %v2354_v55  ;;  %v1650_v1 = vld [vmem:[%s8528_s21 + $0x2768] sm:$0xff]  ;;  %v1748_v55 = vld [vmem:[%s8528_s21 + $0x2a78] sm:$0xff]  ;;  %v7692_v60 = vpack.c.bf16 %v1553_v54, %v1455_v61  ;;  %v1747_v3 = vld [vmem:[%s8528_s21 + $0x2a70] sm:$0xff] }
 0x605   : > { %5570 = vmatprep.mubr.f32.mxu1 %v2355_v58  ;;  %v1652_v58 = vld [vmem:[%s8528_s21 + $0x2778] sm:$0xff]  ;;  %v7662_v13 = vpack.c.bf16 %v1748_v55, %v1650_v1  ;;  %v1651_v5 = vld [vmem:[%s8528_s21 + $0x2770] sm:$0xff]  ;;  %v7664_v10 = vpack.c.bf16 %v1747_v3, %v1649_v14  ;;  %v869_v1 = vld [vmem:[%s8528_s21 + $0xf00] sm:$0xff] }
 0x606   : > { %v7694_v0 = vpack.c.bf16 %v1750_v57, %v1652_v58  ;;  %v967_v55 = vld [vmem:[%s8528_s21 + $0x1210] sm:$0xff]  ;;  %v969_v57 = vld [vmem:[%s8528_s21 + $0x1220] sm:$0xff] }
 0x607   : > { %v871_v58 = vld [vmem:[%s8528_s21 + $0xf10] sm:$0xff]  ;;  %v7712_v14 = vpack.c.bf16 %v967_v55, %v869_v1  ;;  %v1950_v1 = vld [vmem:[%s8528_s21 + $0x30c8] sm:$0xff] }
 0x608   : > { %v7744_v3 = vpack.c.bf16 %v969_v57, %v871_v58 }
 0x60a   : > { %7645 = vmatpush1.bf16.xpose.msra.mxu0 %v7644_v6  ;;  %v1749_v6 = vld [vmem:[%s8528_s21 + $0x2a80] sm:$0xff] }
 0x60b   : > { %7677 = vmatpush1.bf16.xpose.msra.mxu1 %v7676_v16  ;;  %7647 = vmatprep.subr.bf16.mxu0 %v7646_v7  ;;  %v1846_v16 = vld [vmem:[%s8528_s21 + $0x2d88] sm:$0xff]  ;;  %v1944_v7 = vld [vmem:[%s8528_s21 + $0x3098] sm:$0xff]  ;;  %v7696_v18 = vpack.c.bf16 %v1749_v6, %v1651_v5 }
 0x60c   : > { %7679 = vmatprep.subr.bf16.mxu1 %v7678_v8  ;;  %v1848_v8 = vld [vmem:[%s8528_s21 + $0x2d98] sm:$0xff]  ;;  %v7666_v15 = vpack.c.bf16 %v1944_v7, %v1846_v16  ;;  %v1065_v16 = vld [vmem:[%s8528_s21 + $0x1520] sm:$0xff]  ;;  %v1163_v7 = vld [vmem:[%s8528_s21 + $0x1830] sm:$0xff] }
 0x60d   : > { %v7698_v25 = vpack.c.bf16 %v1946_v9, %v1848_v8  ;;  %v1067_v8 = vld [vmem:[%s8528_s21 + $0x1530] sm:$0xff] }
 0x612   : > { %7649 = vmatpush1.bf16.xpose.msra.mxu0 %v7648_v30  ;;  %v1945_v30 = vld [vmem:[%s8528_s21 + $0x30a0] sm:$0xff] }
 0x613   : > { %7681 = vmatpush1.bf16.xpose.msra.mxu1 %v7680_v62  ;;  %7651 = vmatprep.subr.bf16.mxu0 %v7650_v17  ;;  %v478_v62 = vld [vmem:[%s8528_s21 + $0x2c8] sm:$0xff]  ;;  %v576_v17 = vld [vmem:[%s8528_s21 + $0x5d8] sm:$0xff] }
 0x614   : > { %v4942_v22 = vpop.f32.mrb[34].mxu0  ;;  %7683 = vmatprep.subr.bf16.mxu1 %v7682_v19  ;;  %v480_v19 = vld [vmem:[%s8528_s21 + $0x2d8] sm:$0xff]  ;;  %v7702_v23 = vpack.c.bf16 %v576_v17, %v478_v62  ;;  %v7716_v62 = vpack.c.bf16 %v1163_v7, %v1065_v16  ;;  %v582_v16 = vld [vmem:[%s8528_s21 + $0x608] sm:$0xff] }
 0x615   : > { %v4943_v36 = vadd.f32 %v4942_v22, %v10191_v51  ;;  %v4944_v27 = vpop.f32.mrb[35].mxu0  ;;  %v5012_v43 = vpop.f32.mrb[34].mxu1  ;;  %v1257_v51 = vld [vmem:[%s8528_s21 + $0x1b20] sm:$0xff]  ;;  %v7700_v22 = vpack.c.bf16 %v1945_v30, %v1847_v56  ;;  %v7734_v26 = vpack.c.bf16 %v578_v31, %v480_v19  ;;  %v1264_v56 = vld [vmem:[%s8528_s21 + $0x1b58] sm:$0xff]  ;;  %v1362_v30 = vld [vmem:[%s8528_s21 + $0x1e68] sm:$0xff] }
 0x616   : > { %v5014_v40 = vpop.f32.mrb[35].mxu1  ;;  %v7656_v45 = vpack.c.bf16 %v1355_v35, %v1257_v51  ;;  %v575_v27 = vld [vmem:[%s8528_s21 + $0x5d0] sm:$0xff] }
 0x617   : > { %v10271_v32 = vadd.f32 %v5012_v43, %v4943_v36  ;;  %v477_v36 = vld [vmem:[%s8528_s21 + $0x2c0] sm:$0xff]  ;;  %v479_v43 = vld [vmem:[%s8528_s21 + $0x2d0] sm:$0xff]  ;;  %v10313_v40 = vrot.slane %v385_v21, %v8582_v48  ;;  %v7750_v21 = vpack.c.bf16 %v1362_v30, %v1264_v56  ;;  %v678_v30 = vld [vmem:[%s8528_s21 + $0x908] sm:$0xff] }
 0x618   : > { %v7704_v51 = vpack.c.bf16 %v575_v27, %v477_v36  ;;  %v7736_v35 = vpack.c.bf16 %v577_v29, %v479_v43  ;;  %v1556_v36 = vld [vmem:[%s8528_s21 + $0x2478] sm:$0xff]  ;;  %v1558_v43 = vld [vmem:[%s8528_s21 + $0x2488] sm:$0xff]  ;;  %v581_v56 = vld [vmem:[%s8528_s21 + $0x600] sm:$0xff] }
 0x619   : > { %v2371_v39 = vcombine.high %v10313_v40, %v10313_v40  ;;  %v1460_v27 = vld [vmem:[%s8528_s21 + $0x2178] sm:$0xff] }
 0x61a   : > { %7653 = vmatpush1.bf16.xpose.msra.mxu0 %v7652_v37  ;;  %v772_v37 = vld [vmem:[%s8528_s21 + $0xbf8] sm:$0xff] }
 0x61b   : > { %7685 = vmatpush1.bf16.xpose.msra.mxu1 %v7684_v49  ;;  %7655 = vmatprep.subr.bf16.mxu0 %v7654_v33  ;;  %v676_v49 = vld [vmem:[%s8528_s21 + $0x8f8] sm:$0xff]  ;;  %v774_v33 = vld [vmem:[%s8528_s21 + $0xc08] sm:$0xff]  ;;  %v7706_v38 = vpack.c.bf16 %v772_v37, %v674_v46 }
 0x61c   : > { %7687 = vmatprep.subr.bf16.mxu1 %v7686_v34  ;;  %v10318_v34 = vrot.slane %v2356_v24, %v8582_v48  ;;  %v7738_v41 = vpack.c.bf16 %v774_v33, %v676_v49  ;;  %v1458_v24 = vld [vmem:[%s8528_s21 + $0x2168] sm:$0xff]  ;;  %v7754_v49 = vpack.c.bf16 %v1558_v43, %v1460_v27  ;;  %v1457_v33 = vld [vmem:[%s8528_s21 + $0x2160] sm:$0xff]  ;;  %v775_v27 = vld [vmem:[%s8528_s21 + $0xc10] sm:$0xff] }
 0x61d   : > { %v7722_v37 = vpack.c.bf16 %v1556_v36, %v1458_v24  ;;  %v679_v43 = vld [vmem:[%s8528_s21 + $0x910] sm:$0xff] }
 0x61e   : > { %v2372_v44 = vcombine.high %v10318_v34, %v10318_v34 }
 0x622   : > { %7657 = vmatpush1.bf16.xpose.msra.mxu0 %v7656_v45  ;;  %v675_v45 = vld [vmem:[%s8528_s21 + $0x8f0] sm:$0xff] }
 0x623   : > { %7689 = vmatpush1.bf16.xpose.msra.mxu1 %v7688_v63  ;;  %7659 = vmatprep.subr.bf16.mxu0 %v7658_v47  ;;  %v773_v63 = vld [vmem:[%s8528_s21 + $0xc00] sm:$0xff]  ;;  %v870_v47 = vld [vmem:[%s8528_s21 + $0xf08] sm:$0xff] }
 0x624   : > { %7691 = vmatprep.subr.bf16.mxu1 %v7690_v2  ;;  %v968_v2 = vld [vmem:[%s8528_s21 + $0x1218] sm:$0xff]  ;;  %v7740_v4 = vpack.c.bf16 %v773_v63, %v675_v45 }
 0x625   : > { %v7710_v61 = vpack.c.bf16 %v968_v2, %v870_v47  ;;  %v1653_v2 = vld [vmem:[%s8528_s21 + $0x2780] sm:$0xff] }
 0x62a   : > { %7661 = vmatpush1.bf16.xpose.msra.mxu0 %v7660_v11  ;;  %v1066_v11 = vld [vmem:[%s8528_s21 + $0x1528] sm:$0xff] }
 0x62b   : > { %7693 = vmatpush1.bf16.xpose.msra.mxu1 %v7692_v60  ;;  %7663 = vmatprep.subr.bf16.mxu0 %v7662_v13  ;;  %v1164_v60 = vld [vmem:[%s8528_s21 + $0x1838] sm:$0xff] }
 0x62c   : > { %7695 = vmatprep.subr.bf16.mxu1 %v7694_v0  ;;  %v1068_v13 = vld [vmem:[%s8528_s21 + $0x1538] sm:$0xff]  ;;  %v1166_v0 = vld [vmem:[%s8528_s21 + $0x1848] sm:$0xff]  ;;  %v7714_v5 = vpack.c.bf16 %v1164_v60, %v1066_v11  ;;  %v1849_v60 = vld [vmem:[%s8528_s21 + $0x2da0] sm:$0xff] }
 0x62d   : > { %v7746_v6 = vpack.c.bf16 %v1166_v0, %v1068_v13  ;;  %v1947_v13 = vld [vmem:[%s8528_s21 + $0x30b0] sm:$0xff] }
 0x62e   : > { %v1851_v0 = vld [vmem:[%s8528_s21 + $0x2db0] sm:$0xff]  ;;  %v7732_v7 = vpack.c.bf16 %v1947_v13, %v1849_v60  ;;  %v1268_v13 = vld [vmem:[%s8528_s21 + $0x1b78] sm:$0xff] }
 0x632   : > { %7665 = vmatpush1.bf16.xpose.msra.mxu0 %v7664_v10  ;;  %v1165_v10 = vld [vmem:[%s8528_s21 + $0x1840] sm:$0xff] }
 0x633   : > { %7697 = vmatpush1.bf16.xpose.msra.mxu1 %v7696_v18  ;;  %7667 = vmatprep.subr.bf16.mxu0 %v7666_v15  ;;  %v1262_v18 = vld [vmem:[%s8528_s21 + $0x1b48] sm:$0xff]  ;;  %v1360_v15 = vld [vmem:[%s8528_s21 + $0x1e58] sm:$0xff]  ;;  %v7748_v31 = vpack.c.bf16 %v1165_v10, %v1067_v8 }
 0x634   : > { %7699 = vmatprep.subr.bf16.mxu1 %v7698_v25  ;;  %v386_v8 = vld [vmem:[%s8580_s27 + $0xb8] sm:$0xff] }
 0x63a   : > { %7669 = vmatpush1.bf16.xpose.msra.mxu0 %v7668_v20  ;;  %v7718_v20 = vpack.c.bf16 %v1360_v15, %v1262_v18  ;;  %v2373_v15 = vcombine.high %v386_v8, %v386_v8 }
 0x63b   : > { %7701 = vmatpush1.bf16.xpose.msra.mxu1 %v7700_v22  ;;  %7703 = vmatprep.subr.bf16.mxu0 %v7702_v23  ;;  %v1359_v22 = vld [vmem:[%s8528_s21 + $0x1e50] sm:$0xff] }
 0x63c   : > { %7735 = vmatprep.subr.bf16.mxu1 %v7734_v26  ;;  %v1263_v23 = vld [vmem:[%s8528_s21 + $0x1b50] sm:$0xff]  ;;  %v1361_v26 = vld [vmem:[%s8528_s21 + $0x1e60] sm:$0xff] }
 0x63d   : > { %v7752_v46 = vpack.c.bf16 %v1361_v26, %v1263_v23 }
 0x641   : > { %5501 = vmatmul.mubr.f32.vlgmr.msra.gmra.mrb[42].mxu0 %v10233_v50  ;;  %v872_v50 = vld [vmem:[%s8528_s21 + $0xf18] sm:$0xff] }
 0x642   : > { %7705 = vmatpush1.bf16.xpose.msra.mxu0 %v7704_v51  ;;  %5571 = vmatmul.mubr.f32.vlgmr.msra.gmra.mrb[42].mxu1 %v10238_v53  ;;  %v7708_v53 = vpack.c.bf16 %v771_v59, %v673_v42  ;;  %v7742_v54 = vpack.c.bf16 %v970_v52, %v872_v50  ;;  %v1555_v51 = vld [vmem:[%s8528_s21 + $0x2470] sm:$0xff]  ;;  %v1754_v42 = vld [vmem:[%s8528_s21 + $0x2aa8] sm:$0xff] }
 0x643   : > { %7737 = vmatpush1.bf16.xpose.msra.mxu1 %v7736_v35  ;;  %7707 = vmatprep.subr.bf16.mxu0 %v7706_v38  ;;  %v1459_v35 = vld [vmem:[%s8528_s21 + $0x2170] sm:$0xff]  ;;  %v1557_v38 = vld [vmem:[%s8528_s21 + $0x2480] sm:$0xff]  ;;  %v7724_v59 = vpack.c.bf16 %v1555_v51, %v1457_v33 }
 0x644   : > { %7739 = vmatprep.subr.bf16.mxu1 %v7738_v41  ;;  %5640 = vmatprep.mubr.f32.mxu0 %v2371_v39  ;;  %v1654_v41 = vld [vmem:[%s8528_s21 + $0x2788] sm:$0xff]  ;;  %v1752_v39 = vld [vmem:[%s8528_s21 + $0x2a98] sm:$0xff]  ;;  %v7756_v45 = vpack.c.bf16 %v1557_v38, %v1459_v35  ;;  %v1751_v50 = vld [vmem:[%s8528_s21 + $0x2a90] sm:$0xff] }
 0x645   : > { %5710 = vmatprep.mubr.f32.mxu1 %v2372_v44  ;;  %v1656_v44 = vld [vmem:[%s8528_s21 + $0x2798] sm:$0xff]  ;;  %v7726_v63 = vpack.c.bf16 %v1752_v39, %v1654_v41  ;;  %v1655_v52 = vld [vmem:[%s8528_s21 + $0x2790] sm:$0xff]  ;;  %v7728_v55 = vpack.c.bf16 %v1751_v50, %v1653_v2  ;;  %v873_v38 = vld [vmem:[%s8528_s21 + $0xf20] sm:$0xff] }
 0x646   : > { %v7758_v47 = vpack.c.bf16 %v1754_v42, %v1656_v44  ;;  %v971_v41 = vld [vmem:[%s8528_s21 + $0x1230] sm:$0xff]  ;;  %v973_v44 = vld [vmem:[%s8528_s21 + $0x1240] sm:$0xff]  ;;  %v1070_v42 = vld [vmem:[%s8528_s21 + $0x1548] sm:$0xff] }
 0x647   : > { %v875_v39 = vld [vmem:[%s8528_s21 + $0xf30] sm:$0xff] }
 0x648   : > { %v7808_v2 = vpack.c.bf16 %v973_v44, %v875_v39 }
 0x64a   : > { %7709 = vmatpush1.bf16.xpose.msra.mxu0 %v7708_v53  ;;  %v1753_v53 = vld [vmem:[%s8528_s21 + $0x2aa0] sm:$0xff] }
 0x64b   : > { %7741 = vmatpush1.bf16.xpose.msra.mxu1 %v7740_v4  ;;  %7711 = vmatprep.subr.bf16.mxu0 %v7710_v61  ;;  %v1850_v4 = vld [vmem:[%s8528_s21 + $0x2da8] sm:$0xff]  ;;  %v1948_v61 = vld [vmem:[%s8528_s21 + $0x30b8] sm:$0xff]  ;;  %v7760_v58 = vpack.c.bf16 %v1753_v53, %v1655_v52  ;;  %v1069_v53 = vld [vmem:[%s8528_s21 + $0x1540] sm:$0xff] }
 0x64c   : > { %7743 = vmatprep.subr.bf16.mxu1 %v7742_v54  ;;  %v1852_v54 = vld [vmem:[%s8528_s21 + $0x2db8] sm:$0xff]  ;;  %v7730_v57 = vpack.c.bf16 %v1948_v61, %v1850_v4  ;;  %v1167_v4 = vld [vmem:[%s8528_s21 + $0x1850] sm:$0xff] }
 0x64d   : > { %v7762_v11 = vpack.c.bf16 %v1950_v1, %v1852_v54  ;;  %v1071_v61 = vld [vmem:[%s8528_s21 + $0x1550] sm:$0xff]  ;;  %v1169_v1 = vld [vmem:[%s8528_s21 + $0x1860] sm:$0xff] }
 0x652   : > { %7713 = vmatpush1.bf16.xpose.msra.mxu0 %v7712_v14  ;;  %v1949_v14 = vld [vmem:[%s8528_s21 + $0x30c0] sm:$0xff] }
 0x653   : > { %7745 = vmatpush1.bf16.xpose.msra.mxu1 %v7744_v3  ;;  %7715 = vmatprep.subr.bf16.mxu0 %v7714_v5  ;;  %v482_v3 = vld [vmem:[%s8528_s21 + $0x2e8] sm:$0xff]  ;;  %v580_v5 = vld [vmem:[%s8528_s21 + $0x5f8] sm:$0xff] }
 0x654   : > { %v5082_v9 = vpop.f32.mrb[36].mxu0  ;;  %7747 = vmatprep.subr.bf16.mxu1 %v7746_v6  ;;  %v484_v6 = vld [vmem:[%s8528_s21 + $0x2f8] sm:$0xff]  ;;  %v7766_v10 = vpack.c.bf16 %v580_v5, %v482_v3 }
 0x655   : > { %v5083_v25 = vadd.f32 %v5082_v9, %v10271_v32  ;;  %v5084_v12 = vpop.f32.mrb[37].mxu0  ;;  %v5152_v28 = vpop.f32.mrb[36].mxu1  ;;  %v1261_v32 = vld [vmem:[%s8528_s21 + $0x1b40] sm:$0xff]  ;;  %v7764_v9 = vpack.c.bf16 %v1949_v14, %v1851_v0  ;;  %v7798_v18 = vpack.c.bf16 %v582_v16, %v484_v6  ;;  %v1366_v0 = vld [vmem:[%s8528_s21 + $0x1e88] sm:$0xff]  ;;  %v7780_v14 = vpack.c.bf16 %v1167_v4, %v1069_v53 }
 0x656   : > { %v5154_v17 = vpop.f32.mrb[37].mxu1  ;;  %v7720_v29 = vpack.c.bf16 %v1359_v22, %v1261_v32  ;;  %v579_v12 = vld [vmem:[%s8528_s21 + $0x5f0] sm:$0xff]  ;;  %v7812_v6 = vpack.c.bf16 %v1169_v1, %v1071_v61  ;;  %v485_v4 = vld [vmem:[%s8528_s21 + $0x300] sm:$0xff]  ;;  %v780_v1 = vld [vmem:[%s8528_s21 + $0xc38] sm:$0xff] }
 0x657   : > { %v10351_v19 = vadd.f32 %v5152_v28, %v5083_v25  ;;  %v481_v25 = vld [vmem:[%s8528_s21 + $0x2e0] sm:$0xff]  ;;  %v483_v28 = vld [vmem:[%s8528_s21 + $0x2f0] sm:$0xff]  ;;  %v10393_v17 = vrot.slane %v386_v8, %v8582_v48 }
 0x658   : > { %v7768_v32 = vpack.c.bf16 %v579_v12, %v481_v25  ;;  %v7800_v22 = vpack.c.bf16 %v581_v56, %v483_v28  ;;  %v1363_v8 = vld [vmem:[%s8528_s21 + $0x1e70] sm:$0xff]  ;;  %v1464_v25 = vld [vmem:[%s8528_s21 + $0x2198] sm:$0xff]  ;;  %v1562_v12 = vld [vmem:[%s8528_s21 + $0x24a8] sm:$0xff] }
 0x659   : > { %v2388_v24 = vcombine.high %v10393_v17, %v10393_v17  ;;  %v583_v61 = vld [vmem:[%s8528_s21 + $0x610] sm:$0xff] }
 0x65a   : > { %7717 = vmatpush1.bf16.xpose.msra.mxu0 %v7716_v62  ;;  %v776_v62 = vld [vmem:[%s8528_s21 + $0xc18] sm:$0xff] }
 0x65b   : > { %7749 = vmatpush1.bf16.xpose.msra.mxu1 %v7748_v31  ;;  %7719 = vmatprep.subr.bf16.mxu0 %v7718_v20  ;;  %v680_v31 = vld [vmem:[%s8528_s21 + $0x918] sm:$0xff]  ;;  %v778_v20 = vld [vmem:[%s8528_s21 + $0xc28] sm:$0xff]  ;;  %v7770_v23 = vpack.c.bf16 %v776_v62, %v678_v30  ;;  %v7818_v62 = vpack.c.bf16 %v1562_v12, %v1464_v25 }
 0x65c   : > { %7751 = vmatprep.subr.bf16.mxu1 %v7750_v21  ;;  %v10398_v21 = vrot.slane %v2373_v15, %v8582_v48  ;;  %v7802_v26 = vpack.c.bf16 %v778_v20, %v680_v31  ;;  %v677_v48 = vld [vmem:[%s8528_s21 + $0x900] sm:$0xff]  ;;  %v1560_v15 = vld [vmem:[%s8528_s21 + $0x2498] sm:$0xff]  ;;  %v1559_v20 = vld [vmem:[%s8528_s21 + $0x2490] sm:$0xff] }
 0x65d   : > { %v1461_v31 = vld [vmem:[%s8528_s21 + $0x2180] sm:$0xff]  ;;  %v1368_v25 = vld [vmem:[%s8528_s21 + $0x1e98] sm:$0xff] }
 0x65e   : > { %v2389_v36 = vcombine.high %v10398_v21, %v10398_v21 }
 0x662   : > { %7721 = vmatpush1.bf16.xpose.msra.mxu0 %v7720_v29  ;;  %v777_v29 = vld [vmem:[%s8528_s21 + $0xc20] sm:$0xff] }
 0x663   : > { %7753 = vmatpush1.bf16.xpose.msra.mxu1 %v7752_v46  ;;  %7723 = vmatprep.subr.bf16.mxu0 %v7722_v37  ;;  %v874_v46 = vld [vmem:[%s8528_s21 + $0xf28] sm:$0xff]  ;;  %v972_v37 = vld [vmem:[%s8528_s21 + $0x1238] sm:$0xff]  ;;  %v7804_v33 = vpack.c.bf16 %v777_v29, %v679_v43 }
 0x664   : > { %7755 = vmatprep.subr.bf16.mxu1 %v7754_v49  ;;  %v974_v49 = vld [vmem:[%s8528_s21 + $0x1248] sm:$0xff]  ;;  %v7774_v51 = vpack.c.bf16 %v972_v37, %v874_v46  ;;  %v1657_v46 = vld [vmem:[%s8528_s21 + $0x27a0] sm:$0xff]  ;;  %v1755_v37 = vld [vmem:[%s8528_s21 + $0x2ab0] sm:$0xff] }
 0x66a   : > { %7725 = vmatpush1.bf16.xpose.msra.mxu0 %v7724_v59  ;;  %v1168_v59 = vld [vmem:[%s8528_s21 + $0x1858] sm:$0xff] }
 0x66b   : > { %7757 = vmatpush1.bf16.xpose.msra.mxu1 %v7756_v45  ;;  %7727 = vmatprep.subr.bf16.mxu0 %v7726_v63  ;;  %v1072_v45 = vld [vmem:[%s8528_s21 + $0x1558] sm:$0xff]  ;;  %v1170_v63 = vld [vmem:[%s8528_s21 + $0x1868] sm:$0xff]  ;;  %v7778_v50 = vpack.c.bf16 %v1168_v59, %v1070_v42  ;;  %v1853_v42 = vld [vmem:[%s8528_s21 + $0x2dc0] sm:$0xff] }
 0x66c   : > { %7759 = vmatprep.subr.bf16.mxu1 %v7758_v47  ;;  %v7776_v47 = vpack.c.bf16 %v971_v41, %v873_v38  ;;  %v7810_v52 = vpack.c.bf16 %v1170_v63, %v1072_v45  ;;  %v7792_v38 = vpack.c.bf16 %v1755_v37, %v1657_v46  ;;  %v1951_v59 = vld [vmem:[%s8528_s21 + $0x30d0] sm:$0xff]  ;;  %v1953_v63 = vld [vmem:[%s8528_s21 + $0x30e0] sm:$0xff] }
 0x66d   : > { %v1855_v45 = vld [vmem:[%s8528_s21 + $0x2dd0] sm:$0xff]  ;;  %v1661_v37 = vld [vmem:[%s8528_s21 + $0x27c0] sm:$0xff] }
 0x672   : > { %7729 = vmatpush1.bf16.xpose.msra.mxu0 %v7728_v55  ;;  %v1266_v55 = vld [vmem:[%s8528_s21 + $0x1b68] sm:$0xff] }
 0x673   : > { %7761 = vmatpush1.bf16.xpose.msra.mxu1 %v7760_v58  ;;  %7731 = vmatprep.subr.bf16.mxu0 %v7730_v57  ;;  %v1364_v58 = vld [vmem:[%s8528_s21 + $0x1e78] sm:$0xff] }
 0x674   : > { %7763 = vmatprep.subr.bf16.mxu1 %v7762_v11  ;;  %v7782_v16 = vpack.c.bf16 %v1364_v58, %v1266_v55  ;;  %v10468_v55 = vld.sshfl [vmem:[%s8580_s27 + $0xc0] sm:$0x33 pattern:$0x76325410]  ;;  %v7832_v58 = vpack.c.bf16 %v583_v61, %v485_v4 }
 0x67a   : > { %7733 = vmatpush1.bf16.xpose.msra.mxu0 %v7732_v7  ;;  %v7814_v7 = vpack.c.bf16 %v1366_v0, %v1268_v13  ;;  %v779_v13 = vld [vmem:[%s8528_s21 + $0xc30] sm:$0xff]  ;;  %v878_v0 = vld [vmem:[%s8528_s21 + $0xf48] sm:$0xff] }
 0x67b   : > { %7765 = vmatpush1.bf16.xpose.msra.mxu1 %v7764_v9  ;;  %7767 = vmatprep.subr.bf16.mxu0 %v7766_v10  ;;  %v1267_v9 = vld [vmem:[%s8528_s21 + $0x1b70] sm:$0xff]  ;;  %v1365_v10 = vld [vmem:[%s8528_s21 + $0x1e80] sm:$0xff] }
 0x67c   : > { %7799 = vmatprep.subr.bf16.mxu1 %v7798_v18  ;;  %v1462_v18 = vld [vmem:[%s8528_s21 + $0x2188] sm:$0xff]  ;;  %v7816_v56 = vpack.c.bf16 %v1365_v10, %v1267_v9  ;;  %v1073_v9 = vld [vmem:[%s8528_s21 + $0x1560] sm:$0xff]  ;;  %v1171_v10 = vld [vmem:[%s8528_s21 + $0x1870] sm:$0xff] }
 0x67d   : > { %v7786_v30 = vpack.c.bf16 %v1560_v15, %v1462_v18  ;;  %v1270_v15 = vld [vmem:[%s8528_s21 + $0x1b88] sm:$0xff] }
 0x681   : > { %5641 = vmatmul.mubr.f32.vlgmr.msra.gmra.mrb[44].mxu0 %v10313_v40  ;;  %v876_v40 = vld [vmem:[%s8528_s21 + $0xf38] sm:$0xff] }
 0x682   : > { %7769 = vmatpush1.bf16.xpose.msra.mxu0 %v7768_v32  ;;  %5711 = vmatmul.mubr.f32.vlgmr.msra.gmra.mrb[44].mxu1 %v10318_v34  ;;  %v7772_v34 = vpack.c.bf16 %v775_v27, %v677_v48  ;;  %v7806_v35 = vpack.c.bf16 %v974_v49, %v876_v40  ;;  %v1463_v32 = vld [vmem:[%s8528_s21 + $0x2190] sm:$0xff]  ;;  %v7788_v48 = vpack.c.bf16 %v1559_v20, %v1461_v31  ;;  %v1757_v49 = vld [vmem:[%s8528_s21 + $0x2ac0] sm:$0xff] }
 0x683   : > { %7801 = vmatpush1.bf16.xpose.msra.mxu1 %v7800_v22  ;;  %7771 = vmatprep.subr.bf16.mxu0 %v7770_v23  ;;  %v1561_v22 = vld [vmem:[%s8528_s21 + $0x24a0] sm:$0xff]  ;;  %v1658_v23 = vld [vmem:[%s8528_s21 + $0x27a8] sm:$0xff]  ;;  %v1659_v40 = vld [vmem:[%s8528_s21 + $0x27b0] sm:$0xff]  ;;  %v7846_v20 = vpack.c.bf16 %v1368_v25, %v1270_v15 }
 0x684   : > { %7803 = vmatprep.subr.bf16.mxu1 %v7802_v26  ;;  %5780 = vmatprep.mubr.f32.mxu0 %v2388_v24  ;;  %v1756_v26 = vld [vmem:[%s8528_s21 + $0x2ab8] sm:$0xff]  ;;  %v7820_v27 = vpack.c.bf16 %v1561_v22, %v1463_v32  ;;  %v7824_v41 = vpack.c.bf16 %v1757_v49, %v1659_v40  ;;  %v1269_v32 = vld [vmem:[%s8528_s21 + $0x1b80] sm:$0xff]  ;;  %v1367_v22 = vld [vmem:[%s8528_s21 + $0x1e90] sm:$0xff] }
 0x685   : > { %5850 = vmatprep.mubr.f32.mxu1 %v2389_v36  ;;  %v1660_v24 = vld [vmem:[%s8528_s21 + $0x27b8] sm:$0xff]  ;;  %v1758_v36 = vld [vmem:[%s8528_s21 + $0x2ac8] sm:$0xff]  ;;  %v7790_v43 = vpack.c.bf16 %v1756_v26, %v1658_v23  ;;  %v1759_v40 = vld [vmem:[%s8528_s21 + $0x2ad0] sm:$0xff] }
 0x686   : > { %v7822_v29 = vpack.c.bf16 %v1758_v36, %v1660_v24  ;;  %v1466_v23 = vld [vmem:[%s8528_s21 + $0x21a8] sm:$0xff]  ;;  %v1564_v26 = vld [vmem:[%s8528_s21 + $0x24b8] sm:$0xff]  ;;  %v1465_v36 = vld [vmem:[%s8528_s21 + $0x21a0] sm:$0xff] }
 0x687   : > { %v7850_v24 = vpack.c.bf16 %v1564_v26, %v1466_v23  ;;  %v1858_v49 = vld [vmem:[%s8528_s21 + $0x2de8] sm:$0xff] }
 0x688   : > { %v5946_v15 = vld [vmem:[#allocation8 + $0x20] sm:$0xff] (!%p6244_p4)  ;;  %v5947_v25 = vld [vmem:[#allocation8 + $0x28] sm:$0xff] (!%p6244_p4) }
 0x68a   : > { %7773 = vmatpush1.bf16.xpose.msra.mxu0 %v7772_v34  ;;  %v1854_v34 = vld [vmem:[%s8528_s21 + $0x2dc8] sm:$0xff] }
 0x68b   : > { %7805 = vmatpush1.bf16.xpose.msra.mxu1 %v7804_v33  ;;  %7775 = vmatprep.subr.bf16.mxu0 %v7774_v51  ;;  %v1952_v33 = vld [vmem:[%s8528_s21 + $0x30d8] sm:$0xff] }
 0x68c   : > { %7807 = vmatprep.subr.bf16.mxu1 %v7806_v35  ;;  %v1856_v51 = vld [vmem:[%s8528_s21 + $0x2dd8] sm:$0xff]  ;;  %v1954_v35 = vld [vmem:[%s8528_s21 + $0x30e8] sm:$0xff]  ;;  %v7794_v39 = vpack.c.bf16 %v1952_v33, %v1854_v34  ;;  %v7856_v33 = vpack.c.bf16 %v1759_v40, %v1661_v37 }
 0x68d   : > { %v7826_v44 = vpack.c.bf16 %v1954_v35, %v1856_v51  ;;  %v1956_v34 = vld [vmem:[%s8528_s21 + $0x30f8] sm:$0xff]  ;;  %v1857_v35 = vld [vmem:[%s8528_s21 + $0x2de0] sm:$0xff] }
 0x68e   : > { %v7858_v51 = vpack.c.bf16 %v1956_v34, %v1858_v49 }
 0x692   : > { %7777 = vmatpush1.bf16.xpose.msra.mxu0 %v7776_v47  ;;  %v486_v47 = vld [vmem:[%s8528_s21 + $0x308] sm:$0xff] }
 0x693   : > { %7809 = vmatpush1.bf16.xpose.msra.mxu1 %v7808_v2  ;;  %7779 = vmatprep.subr.bf16.mxu0 %v7778_v50  ;;  %v584_v2 = vld [vmem:[%s8528_s21 + $0x618] sm:$0xff]  ;;  %v7796_v50 = vpack.c.bf16 %v1951_v59, %v1853_v42 }
 0x694   : > { %v5222_v54 = vpop.f32.mrb[38].mxu0  ;;  %7811 = vmatprep.subr.bf16.mxu1 %v7810_v52  ;;  %v7828_v52 = vpack.c.bf16 %v1953_v63, %v1855_v45  ;;  %v7830_v53 = vpack.c.bf16 %v584_v2, %v486_v47 }
 0x695   : > { %v5223_v57 = vadd.f32 %v5222_v54, %v10351_v19  ;;  %v5224_v11 = vpop.f32.mrb[39].mxu0  ;;  %v5292_v60 = vpop.f32.mrb[38].mxu1  ;;  %v1265_v19 = vld [vmem:[%s8528_s21 + $0x1b60] sm:$0xff]  ;;  %v682_v54 = vld [vmem:[%s8528_s21 + $0x928] sm:$0xff] }
 0x696   : > { %v5294_v3 = vpop.f32.mrb[39].mxu1  ;;  %v7784_v28 = vpack.c.bf16 %v1363_v8, %v1265_v19  ;;  %v2397_v11 = vcombine.high %v10468_v55, %v10468_v55  ;;  %v1172_v19 = vld [vmem:[%s8528_s21 + $0x1878] sm:$0xff] }
 0x697   : > { %v10431_v5 = vadd.f32 %v5292_v60, %v5223_v57  ;;  %v7834_v57 = vpack.c.bf16 %v780_v1, %v682_v54  ;;  %v681_v60 = vld [vmem:[%s8528_s21 + $0x920] sm:$0xff] }
 0x698   : > { %v7836_v3 = vpack.c.bf16 %v779_v13, %v681_v60  ;;  %v388_v60 = vld [vmem:[#allocation2] sm:$0x3] }
 0x69a   : > { %7781 = vmatpush1.bf16.xpose.msra.mxu0 %v7780_v14  ;;  %v976_v14 = vld [vmem:[%s8528_s21 + $0x1258] sm:$0xff] }
 0x69b   : > { %7813 = vmatpush1.bf16.xpose.msra.mxu1 %v7812_v6  ;;  %7783 = vmatprep.subr.bf16.mxu0 %v7782_v16  ;;  %v7838_v6 = vpack.c.bf16 %v976_v14, %v878_v0  ;;  %v877_v16 = vld [vmem:[%s8528_s21 + $0xf40] sm:$0xff] }
 0x69c   : > { %7815 = vmatprep.subr.bf16.mxu1 %v7814_v7  ;;  %v1074_v7 = vld [vmem:[%s8528_s21 + $0x1568] sm:$0xff] }
 0x6a2   : > { %7785 = vmatpush1.bf16.xpose.msra.mxu0 %v7784_v28 }
 0x6a3   : > { %7817 = vmatpush1.bf16.xpose.msra.mxu1 %v7816_v56  ;;  %7787 = vmatprep.subr.bf16.mxu0 %v7786_v30  ;;  %v7844_v30 = vpack.c.bf16 %v1171_v10, %v1073_v9  ;;  %v5945_v9 = vld [vmem:[#allocation8 + $0x18] sm:$0xff] (!%p6244_p4) }
 0x6a4   : > { %7819 = vmatprep.subr.bf16.mxu1 %v7818_v62 }
 0x6aa   : > { %7789 = vmatpush1.bf16.xpose.msra.mxu0 %v7788_v48  ;;  %v1563_v48 = vld [vmem:[%s8528_s21 + $0x24b0] sm:$0xff] }
 0x6ab   : > { %7821 = vmatpush1.bf16.xpose.msra.mxu1 %v7820_v27  ;;  %7791 = vmatprep.subr.bf16.mxu0 %v7790_v43  ;;  %v1662_v27 = vld [vmem:[%s8528_s21 + $0x27c8] sm:$0xff]  ;;  %v1760_v43 = vld [vmem:[%s8528_s21 + $0x2ad8] sm:$0xff] }
 0x6ac   : > { %7823 = vmatprep.subr.bf16.mxu1 %v7822_v29  ;;  %v7852_v29 = vpack.c.bf16 %v1563_v48, %v1465_v36  ;;  %v7854_v46 = vpack.c.bf16 %v1760_v43, %v1662_v27  ;;  %v6247_v36 = vld [vmem:[#allocation12] ss:$0 sm:$0xff] (!%p6244_p4) }
 0x6b2   : > { %7793 = vmatpush1.bf16.xpose.msra.mxu0 %v7792_v38  ;;  %v1955_v38 = vld [vmem:[%s8528_s21 + $0x30f0] sm:$0xff] }
 0x6b3   : > { %7825 = vmatpush1.bf16.xpose.msra.mxu1 %v7824_v41  ;;  %7795 = vmatprep.subr.bf16.mxu0 %v7794_v39  ;;  %v7860_v41 = vpack.c.bf16 %v1955_v38, %v1857_v35 }
 0x6b4   : > { %7827 = vmatprep.subr.bf16.mxu1 %v7826_v44 }
 0x6ba   : > { %7797 = vmatpush1.bf16.xpose.msra.mxu0 %v7796_v50 }
 0x6bb   : > { %7829 = vmatpush1.bf16.xpose.msra.mxu1 %v7828_v52  ;;  %7831 = vmatprep.subr.bf16.mxu0 %v7830_v53 }
 0x6c1   : > { %5781 = vmatmul.mubr.f32.vlgmr.msra.gmra.mrb[46].mxu0 %v10393_v17  ;;  %v975_v17 = vld [vmem:[%s8528_s21 + $0x1250] sm:$0xff] }
 0x6c2   : > { %7833 = vmatpush1.bf16.xpose.msra.mxu0 %v7832_v58  ;;  %5851 = vmatmul.mubr.f32.vlgmr.msra.gmra.mrb[46].mxu1 %v10398_v21  ;;  %v7840_v8 = vpack.c.bf16 %v975_v17, %v877_v16  ;;  %v7842_v21 = vpack.c.bf16 %v1172_v19, %v1074_v7  ;;  %v8272_v16 = vmov (!%p6244_p4), 0.0|0.0   ;;  %v8274_v7 = vmov (!%p6244_p4), 0.0   ;;  %v6028_v19 = vld [vmem:[#allocation11] sm:$0xff] (!%p6244_p4) }
 0x6c3   : > { %7835 = vmatprep.subr.bf16.mxu0 %v7834_v57  ;;  %5920 = vmatprep.mubr.f32.mxu0 %v2397_v11 }
 0x6c4   : > { %7874 = vmatprep.subr.bf16.mxu1 (!%p6244_p4), %v8272_v16  ;;  %6291 = vmatprep.mubr.msk.f32.mxu1 (!%p6244_p4), %vm8273_vm0, %v8274_v7 }
 0x6ca   : > { %7837 = vmatpush1.bf16.xpose.msra.mxu0 %v7836_v3  ;;  %v5942_v3 = vld [vmem:[#allocation8] sm:$0xff] (!%p6244_p4) }
 0x6cb   : > { %7839 = vmatprep.subr.bf16.mxu0 %v7838_v6  ;;  %v5943_v6 = vld [vmem:[#allocation8 + $0x8] sm:$0xff] (!%p6244_p4) }
 0x6cc   : > { %v7863_v17 = vpack.c.bf16 (!%p6244_p4), %v5943_v6, %v5942_v3 }
 0x6d2   : > { %7841 = vmatpush1.bf16.xpose.msra.mxu0 %v7840_v8  ;;  %v6029_v8 = vld [vmem:[#allocation11 + $0x8] sm:$0x3] (!%p6244_p4) }
 0x6d3   : > { %7843 = vmatprep.subr.bf16.mxu0 %v7842_v21  ;;  %v5944_v21 = vld [vmem:[#allocation8 + $0x10] sm:$0xff] (!%p6244_p4)  ;;  %v7875_v10 = vpack.c.bf16 (!%p6244_p4), %v6029_v8, %v6028_v19 }
 0x6d4   : > { %v5362_v18 = vpop.f32.mrb[40].mxu0 }
 0x6d5   : > { %v5363_v12 = vadd.f32 %v5362_v18, %v10431_v5  ;;  %v5364_v28 = vpop.f32.mrb[41].mxu0  ;;  %v5432_v56 = vpop.f32.mrb[40].mxu1  ;;  %v7848_v5 = vpack.c.bf16 %v1367_v22, %v1269_v32  ;;  %7877 = vmatpush3.bf16.xpose.msk.msra.mxu1 (!%p6244_p4), %vm7876_vm2, %v7875_v10  ;;  %v7866_v18 = vpack.c.bf16 (!%p6244_p4), %v5945_v9, %v5944_v21  ;;  %v6246_v22 = vld [vmem:[#allocation9] ss:$0 sm:$0xff] (!%p6244_p4) }
 0x6d6   : > { %v5434_v62 = vpop.f32.mrb[41].mxu1  ;;  %v5948_v28 = vld [vmem:[#allocation8 + $0x30] sm:$0xff] (!%p6244_p4) }
 0x6d7   : > { %v5433_v31 = vadd.f32 %v5432_v56, %v5363_v12  ;;  %v7869_v12 = vpack.c.bf16 (!%p6244_p4), %v5947_v25, %v5946_v15  ;;  %v5949_v56 = vld [vmem:[#allocation8 + $0x38] sm:$0xff] (!%p6244_p4) }
 0x6da   : > { %7845 = vmatpush1.bf16.xpose.msra.mxu0 %v7844_v30  ;;  %v7872_v30 = vpack.c.bf16 (!%p6244_p4), %v5949_v56, %v5948_v28 }
 0x6db   : > { %7847 = vmatprep.subr.bf16.mxu0 %v7846_v20 }
 0x6e2   : > { %7849 = vmatpush1.bf16.xpose.msra.mxu0 %v7848_v5 }
 0x6e3   : > { %7851 = vmatprep.subr.bf16.mxu0 %v7850_v24 }
 0x6ea   : > { %7853 = vmatpush1.bf16.xpose.msra.mxu0 %v7852_v29 }
 0x6eb   : > { %7855 = vmatprep.subr.bf16.mxu0 %v7854_v46 }
 0x6f2   : > { %7857 = vmatpush1.bf16.xpose.msra.mxu0 %v7856_v33 }
 0x6f3   : > { %7859 = vmatprep.subr.bf16.mxu0 %v7858_v51 }
 0x6fa   : > { %7861 = vmatpush1.bf16.xpose.msra.mxu0 %v7860_v41 }
 0x6fb   : > { %7862 = vmatprep.subr.bf16.mxu0 (!%p6244_p4), %v8272_v16 }
 0x701   : > { %5921 = vmatmul.mubr.f32.vlgmr.msra.gmra.mrb[48].mxu0 %v10468_v55 }
 0x702   : > { %6284 = vmatprep.mubr.msk.f32.mxu0 (!%p6244_p4), %vm8273_vm0, %v8274_v7  ;;  %7864 = vmatpush3.bf16.xpose.msra.mxu0 (!%p6244_p4), %v7863_v17 }
 0x703   : > { %7865 = vmatprep.subr.bf16.mxu0 (!%p6244_p4), %v8272_v16 }
 0x70a   : > { %7867 = vmatpush3.bf16.xpose.msra.mxu0 (!%p6244_p4), %v7866_v18 }
 0x70b   : > { %7868 = vmatprep.subr.bf16.mxu0 (!%p6244_p4), %v8272_v16 }
 0x712   : > { %7870 = vmatpush3.bf16.xpose.msra.mxu0 (!%p6244_p4), %v7869_v12 }
 0x713   : > { %7871 = vmatprep.subr.bf16.mxu0 (!%p6244_p4), %v8272_v16 }
 0x714   : > { %v5502_v39 = vpop.f32.mrb[42].mxu0 }
 0x715   : > { %v5503_v44 = vadd.f32 %v5502_v39, %v5433_v31  ;;  %v5504_v42 = vpop.f32.mrb[43].mxu0  ;;  %v5572_v59 = vpop.f32.mrb[42].mxu1  ;;  %v6245_v31 = vld [vmem:[#allocation6] ss:$0 sm:$0xff] (!%p6244_p4) }
 0x716   : > { %v5574_v45 = vpop.f32.mrb[43].mxu1 }
 0x717   : > { %v5573_v63 = vadd.f32 %v5572_v59, %v5503_v44 }
 0x71a   : > { %7873 = vmatpush3.bf16.xpose.msra.mxu0 (!%p6244_p4), %v7872_v30 }
 0x754   : > { %v5642_v47 = vpop.f32.mrb[44].mxu0 }
 0x755   : > { %v5643_v2 = vadd.f32 %v5642_v47, %v5573_v63  ;;  %v5644_v50 = vpop.f32.mrb[45].mxu0  ;;  %v5712_v52 = vpop.f32.mrb[44].mxu1 }
 0x756   : > { %v5714_v53 = vpop.f32.mrb[45].mxu1 }
 0x757   : > { %v5713_v4 = vadd.f32 %v5712_v52, %v5643_v2 }
 0x794   : > { %v5782_v61 = vpop.f32.mrb[46].mxu0 }
 0x795   : > { %v5783_v54 = vadd.f32 %v5782_v61, %v5713_v4  ;;  %v5784_v1 = vpop.f32.mrb[47].mxu0  ;;  %v5852_v58 = vpop.f32.mrb[46].mxu1 }
 0x796   : > { %v5854_v57 = vpop.f32.mrb[47].mxu1 }
 0x797   : > { %v5853_v11 = vadd.f32 %v5852_v58, %v5783_v54 }
 0x7d3   : > { %5931 = sbr.rel (%p6244_p4) target bundleno = 2452 (0x994), region = 80 }
 0x7d4   : > { %v5922_v55 = vpop.f32.mrb[48].mxu0 }
 0x7d5   : > { %v5923_v13 = vadd.f32 %v5922_v55, %v5853_v11  ;;  %v5924_v0 = vpop.f32.mrb[49].mxu0 }
 0x7d7   : > { %v5926_v14 = vadd.f32 %v5923_v13, %v388_v60 }
 0x7d9   : > { %5927 = vst [vmem:[#allocation2] sm:$0x3] %v5926_v14 }
 0x7e0   : > { %v5932_v62 = vld [vmem:[#allocation2] sm:$0x3] }
 0x7e1   : > { %v5940_v20 = vadd.f32 %v6245_v31, %v5932_v62 }
 0x7e3   : > { %v5941_v32 = vmax.f32 %v5940_v20, 0.0 }
 0x7e5   : > { %6285 = vmatmul.mubr.f32.vlgmr.msra.gmra.mrb[0].mxu0 %v5941_v32 }
 0x8b8   : > { %v6023_v23 = vpop.f32.mrb[0].mxu0 }
 0x8b9   : > { %v6024_v26 = vadd.f32 %v6246_v22, %v6023_v23  ;;  %v6286_v5 = vpop.f32.mrb[1].mxu0 }
 0x8bb   : > { %v6027_v24 = vmax.f32 %v6024_v26, 0.0 }
 0x8bd   : > { %6292 = vmatmul.mubr.msk.f32.vlgmr.msra.gmra.mrb[0].mxu1 %vm6037_vm1, %v6027_v24 }
 0x990   : > { %v6113_v48 = vpop.f32.mrb[0].mxu1 }
 0x991   : > { %v6114_v27 = vadd.f32 %v6247_v36, %v6113_v48  ;;  %v6293_v43 = vpop.f32.mrb[1].mxu1 }
 0x993   : > { %6118 = vst.msk [vmem:[#allocation14] sm:$0x3] %vm6117_vm3, %v6114_v27 }
 0x994 PF: > { %p7937_p8 = scmp.eq.s32.totalorder %s8335_s28, 1  ;;  %s8275_s24 = smov [#allocation14]  }
 0x995   : > { %s6126_s11 = sshll.u32 %s8275_s24, 4  ;;  %s6127_s11 = int_to_ptr.vmem [resolvable:$true] %s6126_s11 }
 0x996   : > { %s8181_s14 = scalar_lea.vmem %s6127_s11, 32  ;;  %p8188_p6 = scmp.lt.s32.totalorder %s6127_s11, %s6127_s11 }
 0x997   : > { %p8182_p12 = scmp.ne.s32.totalorder %s6127_s11, %s8181_s14  ;;  %p8189_p13 = scmp.lt.s32.totalorder %s8181_s14, %s8181_s14 }
 0x999   : > { %p8183_p0 = pnand %p8182_p12, %p7937_p8  ;;  %p8190_p3 = por %p8189_p13, %p8188_p6 }
 0x99b   : > { %p8184_p2 = pneg %p8183_p0 }
 0x99d   : > { %p8191_p5 = pnand %p8190_p3, %p8184_p2 }
 0x99f   : > { %8194 = shalt.err (!%p8191_p5)
}
 0x9a0   : > { %s8195_s2 = scalar_lea.hbm %s10549_s7, 32 }
 0x9a1   : > { %p8196_p7 = scmp.ne.s32.totalorder %s10549_s7, %s8195_s2  ;;  %p8201_p11 = scmp.lt.u32.totalorder %s8195_s2, %s10549_s7 }
 0x9a3   : > { %p8197_p10 = pnand %p8196_p7, %p7937_p8 }
 0x9a5   : > { %p8198_p9 = pneg %p8197_p10 }
 0x9a7   : > { %p8203_p1 = pnand %p8201_p11, %p8198_p9 }
 0x9a9   : > { %8206 = shalt.err (!%p8203_p1)
}
 0x9aa   : > { %7903 = dma.vmem_to_hbm [thread:$0]  (%p7937_p8), %s6127_s11, 32, %s10549_s7, [#allocation5]  }
 0x9ab   : > { %8240 = dma.done.wait (%p7937_p8), [#allocation5], 32  }
 0x9ac   : > { %8242 = vsyncadd (%p7937_p8), [#allocation5], 4294967264 }
 0x9ad PF: > { %p21_p4 = scmp.ge.s32.totalorder %s8472_s20, 4   ;;  %s10569_s24 = smov %s8249_s25 }
 0x9ae   : > { %s10570_s25 = smov %s8253_s26  ;;  %s10571_s26 = smov %s8482_s12 }
 0x9af   : > { %s10572_s27 = smov %s8472_s20  ;;  %23 = sbr.rel (!%p21_p4) target bundleno = 9 (0x9), region = 114 }
 0x9b6   :  { %6139 = vsyncpa [#allocation4], 1 }
 0x9b7   :  { %6141 = vsyncpa [#allocation4 + $0x1], 1 }
 0x9b8   :  { %6142 = vsyncpa [#allocation7], 1 }
 0x9b9   :  { %6143 = vsyncpa [#allocation10], 1 }
 0x9ba   :  { %6144 = vsyncpa [#allocation13], 1 }
 0x9bb   :  { %6145 = vsyncpa [#allocation5], 1 }
 0x9bc   :  { %6147 = vsyncpa [#allocation5 + $0x1], 1 }

</bundles_post_ra>
